<compile_context>
chip_gen: v5e
topology: v5e:2x2
jax: 0.10.0
libtpu: 0.0.40
codegen_flags: <defaults>
</compile_context>

<pallas_src>
import functools
import math

import jax
import jax.numpy as jnp
from jax.experimental import pallas as pl
from jax.experimental.pallas import tpu as pltpu

# ------------------------- small synthetic config -------------------------
LAYER_COUNT = 2            # real: 24 (mega)
HEAD_COUNT = 4             # real: 32
EMBED = 128                # real: 2048
HEAD_DIM = EMBED // HEAD_COUNT
GLU_EMBED = 256            # real: 4096
TEXT_VOCAB = 256           # real: 50272
TEXT_TOKENS = 16           # real: 64
IMAGE_TOKEN_COUNT = 8      # real: 256
IMAGE_VOCAB = 128          # stands in for the 2**14 sampling slice
LM_VOCAB = IMAGE_VOCAB + 3       # lm_head width (image_vocab_count + 1)
VOCAB_TILE = 128
LM_VOCAB_PAD = ((LM_VOCAB + VOCAB_TILE - 1) // VOCAB_TILE) * VOCAB_TILE

assert EMBED % HEAD_COUNT == 0
assert IMAGE_VOCAB == VOCAB_TILE          # supercondition tile == sampling slice
assert LM_VOCAB_PAD % VOCAB_TILE == 0


# ------------------------------ helpers -----------------------------------
def _full(shape):
    """BlockSpec for a whole array as a single block (index maps ignore grid/prefetch)."""
    n = len(shape)
    return pl.BlockSpec(shape, lambda *_: (0,) * n)


def _ln_math(x, g, b):
    mu = jnp.mean(x, axis=-1, keepdims=True)
    var = jnp.mean((x - mu) ** 2, axis=-1, keepdims=True)
    return (x - mu) * jax.lax.rsqrt(var + 1e-5) * g + b


# ------------------------------- kernels ----------------------------------
def _layernorm_kernel(x_ref, g_ref, b_ref, o_ref):
    o_ref[...] = _ln_math(x_ref[...], g_ref[...], b_ref[...])


def _encoder_layer_kernel(x_ref, mask_ref, lng_ref, lnb_ref, wqkv_ref, bqkv_ref,
                          wo_ref, bo_ref, wfc01_ref, bfc01_ref, ln1g_ref, ln1b_ref,
                          wfc2_ref, bfc2_ref, o_ref):
    """Full encoder layer fused: pre-LN + fused QKV + SDPA + O-proj + post-LN + GLU."""
    B, T, E = x_ref.shape
    x = x_ref[...]
    x2 = x.reshape(B * T, E)
    mask = mask_ref[...] > 0.0                                        # (B, T)

    # ---- self attention block ----
    h = _ln_math(x2, lng_ref[0:1], lnb_ref[0:1])
    qkv = jnp.dot(h.astype(jnp.bfloat16), wqkv_ref[...],
                  preferred_element_type=jnp.float32) + bqkv_ref[...]  # (B*T, 3E)
    q = qkv[:, :E].reshape(B, T, E)                                    # 1/sqrt(hd) folded in
    k = qkv[:, E:2 * E].reshape(B, T, E)
    v = qkv[:, 2 * E:].reshape(B, T, E)

    attn = jnp.zeros((B * T, E), jnp.float32)
    for hh in range(HEAD_COUNT):
        lo, hi = hh * HEAD_DIM, (hh + 1) * HEAD_DIM
        s = jnp.einsum("bqd,bkd->bqk", q[:, :, lo:hi], k[:, :, lo:hi],
                       preferred_element_type=jnp.float32)             # (B, T, T)
        s = jnp.where(mask[:, None, :], s, jnp.float32(-1e9))
        s = s - jnp.max(s, axis=-1, keepdims=True)
        p = jnp.exp(s)
        p = p * pl.reciprocal(jnp.sum(p, axis=-1, keepdims=True), approx=True)
        oh = jnp.einsum("bqk,bkd->bqd", p, v[:, :, lo:hi],
                        preferred_element_type=jnp.float32)            # (B, T, hd)
        # accumulate head output directly through its rows of the O projection
        attn = attn + jnp.dot(oh.reshape(B * T, HEAD_DIM).astype(jnp.bfloat16),
                              wo_ref[lo:hi, :], preferred_element_type=jnp.float32)
    attn = attn + bo_ref[...]
    attn = _ln_math(attn, lng_ref[1:2], lnb_ref[1:2])
    x2 = x2 + attn

    # ---- GLU feed-forward (ln0 -> fused fc0|fc1 -> gelu gate -> ln1 -> fc2) ----
    z = _ln_math(x2, lng_ref[2:3], lnb_ref[2:3])
    ab = jnp.dot(z.astype(jnp.bfloat16), wfc01_ref[...],
                 preferred_element_type=jnp.float32) + bfc01_ref[...]
    g = jax.nn.gelu(ab[:, :GLU_EMBED]) * ab[:, GLU_EMBED:]
    g = _ln_math(g, ln1g_ref[...], ln1b_ref[...])
    x2 = x2 + jnp.dot(g.astype(jnp.bfloat16), wfc2_ref[...],
                      preferred_element_type=jnp.float32) + bfc2_ref[...]

    o_ref[...] = x2.reshape(B, T, E)


def _cross_kv_kernel(enc_ref, w_ref, b_ref, o_ref):
    """Per-layer cross-attention K|V projection of the encoder state (grid over layers)."""
    B, T, E = enc_ref.shape
    x = enc_ref[...].reshape(B * T, E)
    kv = jnp.dot(x.astype(jnp.bfloat16), w_ref[0],
                 preferred_element_type=jnp.float32) + b_ref[0]
    o_ref[0] = kv.reshape(B, T, 2 * E)


def _decoder_layer_kernel(idx_ref,                                  # scalar prefetch
                          dec_ref, cache_hbm, ckv_ref, cmask_ref,
                          lng_ref, lnb_ref, wqkv_ref, bqkv_ref, wos_ref, bos_ref,
                          wqc_ref, bqc_ref, woc_ref, boc_ref,
                          wfc01_ref, bfc01_ref, ln1g_ref, ln1b_ref, wfc2_ref, bfc2_ref,
                          dec_out_ref, cache_out_hbm, row_out_ref,
                          kv_vmem, sem):
    """One decoder layer per decode step, fully fused (self-attn+cache, cross-attn, GLU)."""
    ti = idx_ref[0]
    B = dec_ref.shape[0]
    E = EMBED

    # Fetch the whole per-layer KV cache (HBM -> VMEM scratch) while projecting QKV.
    cp_in = pltpu.make_async_copy(cache_hbm, kv_vmem, sem.at[0])
    cp_in.start()

    x = dec_ref[...]                                                   # (B, E)

    # ---- self attention ----
    h = _ln_math(x, lng_ref[0:1], lnb_ref[0:1])
    qkv = jnp.dot(h.astype(jnp.bfloat16), wqkv_ref[...],
                  preferred_element_type=jnp.float32) + bqkv_ref[...]  # (B, 3E)
    q = qkv[:, :E]                                                     # scale folded in
    k_new = qkv[:, E:2 * E]
    v_new = qkv[:, 2 * E:]

    # stage this token's K/V row and write it in place into the HBM cache (one row only)
    row_out_ref[0, 0] = k_new
    row_out_ref[0, 1] = v_new
    cp_in.wait()
    cp_row = pltpu.make_async_copy(row_out_ref, cache_out_hbm.at[pl.ds(ti, 1)], sem.at[1])
    cp_row.start()

    kv_all = kv_vmem[...]                                              # (S, 2, B, E)
    S = kv_all.shape[0]
    pos = jax.lax.broadcasted_iota(jnp.int32, (S, 1), 0)               # (S, 1)
    sel = (pos == ti)[:, :, None]                                      # (S, 1, 1)
    keys = jnp.where(sel, k_new[None, :, :], kv_all[:, 0])             # (S, B, E)
    vals = jnp.where(sel, v_new[None, :, :], kv_all[:, 1])
    causal = pos <= ti                                                 # (S, 1)

    attn = jnp.zeros((B, E), jnp.float32)
    for hh in range(HEAD_COUNT):
        lo, hi = hh * HEAD_DIM, (hh + 1) * HEAD_DIM
        sc = jnp.sum(keys[:, :, lo:hi] * q[None, :, lo:hi], axis=-1)   # (S, B)
        sc = jnp.where(causal, sc, jnp.float32(-1e9))
        sc = sc - jnp.max(sc, axis=0, keepdims=True)
        p = jnp.exp(sc)
        p = p * pl.reciprocal(jnp.sum(p, axis=0, keepdims=True), approx=True)
        oh = jnp.sum(p[:, :, None] * vals[:, :, lo:hi], axis=0)        # (B, hd)
        attn = attn + jnp.dot(oh.astype(jnp.bfloat16), wos_ref[lo:hi, :],
                              preferred_element_type=jnp.float32)
    attn = attn + bos_ref[...]
    attn = _ln_math(attn, lng_ref[1:2], lnb_ref[1:2])
    x = x + attn

    # ---- cross attention over precomputed encoder K|V ----
    h = _ln_math(x, lng_ref[2:3], lnb_ref[2:3])
    qc = jnp.dot(h.astype(jnp.bfloat16), wqc_ref[...],
                 preferred_element_type=jnp.float32) + bqc_ref[...]
    ckv = ckv_ref[...]                                                 # (B, T, 2E)
    cm = (cmask_ref[...] > 0.0)[:, None, :]                            # (B, 1, T)
    attn = jnp.zeros((B, E), jnp.float32)
    for hh in range(HEAD_COUNT):
        lo, hi = hh * HEAD_DIM, (hh + 1) * HEAD_DIM
        kh = ckv[:, :, lo:hi]
        vh = ckv[:, :, E + lo:E + hi]
        s = jnp.einsum("bqd,bkd->bqk", qc[:, None, lo:hi], kh,
                       preferred_element_type=jnp.float32)             # (B, 1, T)
        s = jnp.where(cm, s, jnp.float32(-1e9))
        s = s - jnp.max(s, axis=-1, keepdims=True)
        p = jnp.exp(s)
        p = p * pl.reciprocal(jnp.sum(p, axis=-1, keepdims=True), approx=True)
        oh = jnp.einsum("bqk,bkd->bqd", p, vh,
                        preferred_element_type=jnp.float32)[:, 0, :]
        attn = attn + jnp.dot(oh.astype(jnp.bfloat16), woc_ref[lo:hi, :],
                              preferred_element_type=jnp.float32)
    attn = attn + boc_ref[...]
    attn = _ln_math(attn, lng_ref[3:4], lnb_ref[3:4])
    x = x + attn

    # ---- GLU feed-forward ----
    z = _ln_math(x, lng_ref[4:5], lnb_ref[4:5])
    ab = jnp.dot(z.astype(jnp.bfloat16), wfc01_ref[...],
                 preferred_element_type=jnp.float32) + bfc01_ref[...]
    g = jax.nn.gelu(ab[:, :GLU_EMBED]) * ab[:, GLU_EMBED:]
    g = _ln_math(g, ln1g_ref[...], ln1b_ref[...])
    x = x + jnp.dot(g.astype(jnp.bfloat16), wfc2_ref[...],
                    preferred_element_type=jnp.float32) + bfc2_ref[...]

    dec_out_ref[...] = x
    cp_row.wait()


def _head_kernel(dec_ref, fg_ref, fb_ref, lmw_ref, lmb_ref,
                 vw1_ref, vb1_ref, vw2_ref, vb2_ref,
                 logits_ref, mixed_ref, val_ref, h_scr, *, scf):
    """final_ln + vocab-tiled lm_head + supercondition mix + value head, fused."""
    j = pl.program_id(0)

    @pl.when(j == 0)
    def _():
        h = _ln_math(dec_ref[...], fg_ref[...], fb_ref[...])
        h_scr[...] = h
        # value head: Linear(E,1) -> tanh -> Linear(1,1)
        z = jnp.sum(h * vw1_ref[...], axis=-1, keepdims=True) + vb1_ref[...]
        val_ref[...] = jnp.tanh(z) * vw2_ref[...] + vb2_ref[...]

    h = h_scr[...]
    lt = jnp.dot(h.astype(jnp.bfloat16), lmw_ref[...],
                 preferred_element_type=jnp.float32) + lmb_ref[...]
    logits_ref[...] = lt

    @pl.when(j == 0)
    def _():
        pp = lt.shape[0] // 2
        mixed_ref[...] = lt[:pp, :] * (1.0 - scf) + lt[pp:, :] * scf


def _topk_exp_kernel(mixed_ref, thr_ref, mx_ref, o_ref, *, inv_temperature):
    mixed = mixed_ref[...]
    kept = (mixed >= thr_ref[...]).astype(jnp.float32)
    o_ref[...] = jnp.exp((mixed - mx_ref[...]) * inv_temperature) * kept


# --------------------------- pallas_call wrappers ---------------------------
def layernorm_call(x, g, b):
    shp = x.shape
    x2 = x.reshape(-1, shp[-1])
    out = pl.pallas_call(
        _layernorm_kernel,
        out_shape=jax.ShapeDtypeStruct(x2.shape, jnp.float32),
        grid=(1,),
        in_specs=[_full(x2.shape), _full(g.shape), _full(b.shape)],
        out_specs=_full(x2.shape),
        compiler_params=pltpu.CompilerParams(dimension_semantics=("arbitrary",)),
    )(x2, g, b)
    return out.reshape(shp)


def encoder_layer_call(lp, x, key_mask):
    B, T, E = x.shape
    G = GLU_EMBED
    return pl.pallas_call(
        _encoder_layer_kernel,
        out_shape=jax.ShapeDtypeStruct((B, T, E), jnp.float32),
        grid=(1,),
        in_specs=[_full((B, T, E)), _full((B, T)),
                  _full((3, E)), _full((3, E)),
                  _full((E, 3 * E)), _full((1, 3 * E)),
                  _full((E, E)), _full((1, E)),
                  _full((E, 2 * G)), _full((1, 2 * G)),
                  _full((1, G)), _full((1, G)),
                  _full((G, E)), _full((1, E))],
        out_specs=_full((B, T, E)),
        compiler_params=pltpu.CompilerParams(dimension_semantics=("arbitrary",)),
    )(x, key_mask, lp["ln_g"], lp["ln_b"], lp["wqkv"], lp["bqkv"], lp["wo"], lp["bo"],
      lp["wfc01"], lp["bfc01"], lp["ln1_g"], lp["ln1_b"], lp["wfc2"], lp["bfc2"])


def cross_kv_call(dp, enc_state):
    B, T, E = enc_state.shape
    L = LAYER_COUNT
    return pl.pallas_call(
        _cross_kv_kernel,
        out_shape=jax.ShapeDtypeStruct((L, B, T, 2 * E), jnp.float32),
        grid=(L,),
        in_specs=[
            pl.BlockSpec((B, T, E), lambda l: (0, 0, 0)),
            pl.BlockSpec((1, E, 2 * E), lambda l: (l, 0, 0)),
            pl.BlockSpec((1, 1, 2 * E), lambda l: (l, 0, 0)),
        ],
        out_specs=pl.BlockSpec((1, B, T, 2 * E), lambda l: (l, 0, 0, 0)),
        compiler_params=pltpu.CompilerParams(dimension_semantics=("parallel",)),
    )(enc_state, dp["wkv_cross_stack"], dp["bkv_cross_stack"])


def decoder_layer_call(lp, dec, cache, ckv, cross_mask, idx):
    B, E = dec.shape
    S = cache.shape[0]
    T = ckv.shape[1]
    G = GLU_EMBED

    out_shape = (
        jax.ShapeDtypeStruct((B, E), jnp.float32),          # new decoder state
        jax.ShapeDtypeStruct(cache.shape, cache.dtype),     # in-place-updated HBM cache
        jax.ShapeDtypeStruct((1, 2, B, E), jnp.float32),    # this step's K/V row
    )
    grid_spec = pltpu.PrefetchScalarGridSpec(
        num_scalar_prefetch=1,
        grid=(1,),
        in_specs=[
            _full((B, E)),
            pl.BlockSpec(memory_space=pl.ANY),               # KV cache stays in HBM
            _full((B, T, 2 * E)),
            _full((B, T)),
            _full((5, E)), _full((5, E)),
            _full((E, 3 * E)), _full((1, 3 * E)),
            _full((E, E)), _full((1, E)),
            _full((E, E)), _full((1, E)),
            _full((E, E)), _full((1, E)),
            _full((E, 2 * G)), _full((1, 2 * G)),
            _full((1, G)), _full((1, G)),
            _full((G, E)), _full((1, E)),
        ],
        out_specs=(
            _full((B, E)),
            pl.BlockSpec(memory_space=pl.ANY),
            _full((1, 2, B, E)),
        ),
        scratch_shapes=[
            pltpu.VMEM((S, 2, B, E), jnp.float32),
            pltpu.SemaphoreType.DMA((2,)),
        ],
    )

    def build(aliases):
        return pl.pallas_call(
            _decoder_layer_kernel,
            out_shape=out_shape,
            grid_spec=grid_spec,
            input_output_aliases=aliases,
            compiler_params=pltpu.CompilerParams(dimension_semantics=("arbitrary",)),
        )

    args = (idx, dec, cache, ckv, cross_mask,
            lp["ln_g"], lp["ln_b"], lp["wqkv"], lp["bqkv"],
            lp["wo_self"], lp["bo_self"], lp["wq_cross"], lp["bq_cross"],
            lp["wo_cross"], lp["bo_cross"], lp["wfc01"], lp["bfc01"],
            lp["ln1_g"], lp["ln1_b"], lp["wfc2"], lp["bfc2"])
    try:
        # arg index 2 (counting the scalar-prefetch token index) is the HBM KV cache;
        # aliasing it to output 1 makes the kernel's single-row DMA an in-place update.
        new_dec, new_cache, _ = build({2: 1})(*args)
    except Exception:
        # TODO(synk): fallback if this jax build numbers input_output_aliases differently;
        # the cache row is then applied functionally (still one-row traffic under scan donation).
        new_dec, _unused, row = build({})(*args)
        new_cache = jax.lax.dynamic_update_slice(cache, row, (idx[0], 0, 0, 0))
    return new_dec, new_cache


def head_call(dec, dp, vp, scf):
    B = dec.shape[0]
    P = B // 2
    nv = LM_VOCAB_PAD // VOCAB_TILE
    kernel = functools.partial(_head_kernel, scf=float(scf))
    logits, mixed, values = pl.pallas_call(
        kernel,
        out_shape=(
            jax.ShapeDtypeStruct((B, LM_VOCAB_PAD), jnp.float32),
            jax.ShapeDtypeStruct((P, IMAGE_VOCAB), jnp.float32),
            jax.ShapeDtypeStruct((B, 1), jnp.float32),
        ),
        grid=(nv,),
        in_specs=[
            pl.BlockSpec((B, EMBED), lambda j: (0, 0)),
            pl.BlockSpec((1, EMBED), lambda j: (0, 0)),
            pl.BlockSpec((1, EMBED), lambda j: (0, 0)),
            pl.BlockSpec((EMBED, VOCAB_TILE), lambda j: (0, j)),
            pl.BlockSpec((1, VOCAB_TILE), lambda j: (0, j)),
            pl.BlockSpec((1, EMBED), lambda j: (0, 0)),
            pl.BlockSpec((1, 1), lambda j: (0, 0)),
            pl.BlockSpec((1, 1), lambda j: (0, 0)),
            pl.BlockSpec((1, 1), lambda j: (0, 0)),
        ],
        out_specs=(
            pl.BlockSpec((B, VOCAB_TILE), lambda j: (0, j)),
            pl.BlockSpec((P, IMAGE_VOCAB), lambda j: (0, 0)),
            pl.BlockSpec((B, 1), lambda j: (0, 0)),
        ),
        scratch_shapes=[pltpu.VMEM((B, EMBED), jnp.float32)],
        compiler_params=pltpu.CompilerParams(dimension_semantics=("arbitrary",)),
    )(dec, dp["final_ln_g"], dp["final_ln_b"], dp["lm_w"], dp["lm_b"],
      vp["w1"], vp["b1"], vp["w2"], vp["b2"])
    return logits, mixed, values


def topk_exp_call(mixed, thr, mx, inv_temp):
    kernel = functools.partial(_topk_exp_kernel, inv_temperature=float(inv_temp))
    return pl.pallas_call(
        kernel,
        out_shape=jax.ShapeDtypeStruct(mixed.shape, jnp.float32),
        grid=(1,),
        in_specs=[_full(mixed.shape), _full(thr.shape), _full(mx.shape)],
        out_specs=_full(mixed.shape),
        compiler_params=pltpu.CompilerParams(dimension_semantics=("arbitrary",)),
    )(mixed, thr, mx)


# ------------------------------ model parts --------------------------------
def encoder_forward(ep, text_flat):
    # TODO(synk): embedding gather has no clean tiny-scale Pallas equivalent; jnp.take used.
    x = jnp.take(ep["embed_tokens"], text_flat, axis=0)               # (B, T, E)
    x = x + ep["embed_positions"][None, :, :]
    x = layernorm_call(x, ep["ln_embed_g"], ep["ln_embed_b"])
    key_mask = (text_flat != 1).astype(jnp.float32)                   # pad token == 1
    for lp in ep["layers"]:
        x = encoder_layer_call(lp, x, key_mask)
    return layernorm_call(x, ep["final_ln_g"], ep["final_ln_b"])


def decoder_step(dp, vp, cross_mask, cross_kv, caches, prev2, i, scf):
    # TODO(synk): embedding gathers via jnp.take (no clean Pallas gather at this scale).
    dec = jnp.take(dp["embed_tokens"], prev2, axis=0)                 # (B, E)
    dec = dec + jnp.take(dp["embed_positions"], i, axis=0)[None, :]
    dec = layernorm_call(dec, dp["ln_embed_g"], dp["ln_embed_b"])
    idx = jnp.full((1,), i, dtype=jnp.int32)
    new_caches = []
    for l, lp in enumerate(dp["layers"]):
        dec, cache_l = decoder_layer_call(lp, dec, caches[l], cross_kv[l], cross_mask, idx)
        new_caches.append(cache_l)
    logits, mixed, values = head_call(dec, dp, vp, scf)
    return logits, mixed, values, tuple(new_caches)


# ------------------------------ full forward --------------------------------
def dalle_forward(params, text_tokens_batched, seed=1, temperature=1.0,
                  top_k=256, supercondition_factor=16.0):
    top_k = int(min(top_k, IMAGE_VOCAB))
    P = text_tokens_batched.shape[0]
    assert P <= 4
    B = 2 * P
    ep, dp, vp = params["encoder"], params["decoder"], params["v_head"]
    scf = float(supercondition_factor)
    inv_temp = 1.0 / float(temperature)

    # cond-major batching of all prompts: rows [0,P) = "uncond" rows, [P,2P) = full prompts
    text_flat = jnp.concatenate(
        [text_tokens_batched[:, 0, :], text_tokens_batched[:, 1, :]], axis=0)   # (B, T)
    enc_state = encoder_forward(ep, text_flat)                                  # (B, T, E)
    cross_mask = (text_flat != 1).astype(jnp.float32)                           # (B, T)
    cross_kv = cross_kv_call(dp, enc_state)                                     # (L, B, T, 2E)

    caches0 = tuple(jnp.zeros((IMAGE_TOKEN_COUNT, 2, B, EMBED), jnp.float32)
                    for _ in range(LAYER_COUNT))
    image_tokens0 = jnp.full((P, IMAGE_TOKEN_COUNT + 1), IMAGE_VOCAB - 1, jnp.int32)
    base_key = jax.random.PRNGKey(seed if seed > 0 else 0)

    def step(carry, i):
        image_tokens, caches = carry
        prev = image_tokens[:, i]                                     # (P,)
        prev2 = jnp.concatenate([prev, prev], axis=0)                 # (B,)
        logits, mixed, values, caches = decoder_step(
            dp, vp, cross_mask, cross_kv, caches, prev2, i, scf)
        # TODO(synk): descending sort / top-k threshold has no clean Pallas TPU equivalent.
        topv, _ = jax.lax.top_k(mixed, top_k)
        mx = topv[:, 0:1]
        thr = topv[:, top_k - 1:top_k]
        probs = topk_exp_call(mixed, thr, mx, inv_temp)               # (P, IMAGE_VOCAB)
        # TODO(synk): torch.multinomial RNG stream is not reproducible; jax.random used.
        tok = jax.random.categorical(jax.random.fold_in(base_key, i), jnp.log(probs), axis=-1)
        image_tokens = image_tokens.at[:, i + 1].set(tok.astype(jnp.int32))
        return (image_tokens, caches), (logits[P:, :LM_VOCAB], values[P:, 0])

    (image_tokens, _), (step_logits, step_values) = jax.lax.scan(
        step, (image_tokens0, caches0), jnp.arange(IMAGE_TOKEN_COUNT))
    batched_logits = jnp.transpose(step_logits, (1, 0, 2)).astype(jnp.float32)
    batched_values = jnp.transpose(step_values, (1, 0)).astype(jnp.float32)
    return batched_logits, batched_values, image_tokens[:, 1:]


# ------------------------------- parameters ---------------------------------
def init_params(key):
    keys = iter(jax.random.split(key, 256))

    def nxt():
        return next(keys)

    sc = 0.02
    inv = 1.0 / math.sqrt(HEAD_DIM)

    def w(din, dout):
        return jax.random.normal(nxt(), (din, dout), jnp.float32) * sc

    def enc_layer():
        wq, wk, wv = w(EMBED, EMBED) * inv, w(EMBED, EMBED), w(EMBED, EMBED)
        return {
            "ln_g": jnp.ones((3, EMBED), jnp.float32), "ln_b": jnp.zeros((3, EMBED), jnp.float32),
            "wqkv": jnp.concatenate([wq, wk, wv], axis=1).astype(jnp.bfloat16),
            "bqkv": jnp.zeros((1, 3 * EMBED), jnp.float32),
            "wo": w(EMBED, EMBED).astype(jnp.bfloat16), "bo": jnp.zeros((1, EMBED), jnp.float32),
            "wfc01": jnp.concatenate([w(EMBED, GLU_EMBED), w(EMBED, GLU_EMBED)],
                                     axis=1).astype(jnp.bfloat16),
            "bfc01": jnp.zeros((1, 2 * GLU_EMBED), jnp.float32),
            "ln1_g": jnp.ones((1, GLU_EMBED), jnp.float32),
            "ln1_b": jnp.zeros((1, GLU_EMBED), jnp.float32),
            "wfc2": w(GLU_EMBED, EMBED).astype(jnp.bfloat16),
            "bfc2": jnp.zeros((1, EMBED), jnp.float32),
        }

    def dec_layer():
        wq, wk, wv = w(EMBED, EMBED) * inv, w(EMBED, EMBED), w(EMBED, EMBED)
        layer = {
            "ln_g": jnp.ones((5, EMBED), jnp.float32), "ln_b": jnp.zeros((5, EMBED), jnp.float32),
            "wqkv": jnp.concatenate([wq, wk, wv], axis=1).astype(jnp.bfloat16),
            "bqkv": jnp.zeros((1, 3 * EMBED), jnp.float32),
            "wo_self": w(EMBED, EMBED).astype(jnp.bfloat16),
            "bo_self": jnp.zeros((1, EMBED), jnp.float32),
            "wq_cross": (w(EMBED, EMBED) * inv).astype(jnp.bfloat16),
            "bq_cross": jnp.zeros((1, EMBED), jnp.float32),
            "wo_cross": w(EMBED, EMBED).astype(jnp.bfloat16),
            "bo_cross": jnp.zeros((1, EMBED), jnp.float32),
            "wfc01": jnp.concatenate([w(EMBED, GLU_EMBED), w(EMBED, GLU_EMBED)],
                                     axis=1).astype(jnp.bfloat16),
            "bfc01": jnp.zeros((1, 2 * GLU_EMBED), jnp.float32),
            "ln1_g": jnp.ones((1, GLU_EMBED), jnp.float32),
            "ln1_b": jnp.zeros((1, GLU_EMBED), jnp.float32),
            "wfc2": w(GLU_EMBED, EMBED).astype(jnp.bfloat16),
            "bfc2": jnp.zeros((1, EMBED), jnp.float32),
        }
        cross_kv = jnp.concatenate([w(EMBED, EMBED), w(EMBED, EMBED)], axis=1)  # (E, 2E)
        return layer, cross_kv

    enc_layers = [enc_layer() for _ in range(LAYER_COUNT)]
    dec_layers, cross_kvs = [], []
    for _ in range(LAYER_COUNT):
        layer, ckv = dec_layer()
        dec_layers.append(layer)
        cross_kvs.append(ckv)

    lm_w = jnp.zeros((EMBED, LM_VOCAB_PAD), jnp.float32)
    lm_w = lm_w.at[:, :LM_VOCAB].set(w(EMBED, LM_VOCAB))

    return {
        "encoder": {
            "embed_tokens": jax.random.normal(nxt(), (TEXT_VOCAB, EMBED), jnp.float32) * sc,
            "embed_positions": jax.random.normal(nxt(), (TEXT_TOKENS, EMBED), jnp.float32) * sc,
            "ln_embed_g": jnp.ones((1, EMBED), jnp.float32),
            "ln_embed_b": jnp.zeros((1, EMBED), jnp.float32),
            "layers": enc_layers,
            "final_ln_g": jnp.ones((1, EMBED), jnp.float32),
            "final_ln_b": jnp.zeros((1, EMBED), jnp.float32),
        },
        "decoder": {
            "embed_tokens": jax.random.normal(nxt(), (LM_VOCAB, EMBED), jnp.float32) * sc,
            "embed_positions": jax.random.normal(nxt(), (IMAGE_TOKEN_COUNT, EMBED), jnp.float32) * sc,
            "ln_embed_g": jnp.ones((1, EMBED), jnp.float32),
            "ln_embed_b": jnp.zeros((1, EMBED), jnp.float32),
            "layers": dec_layers,
            "final_ln_g": jnp.ones((1, EMBED), jnp.float32),
            "final_ln_b": jnp.zeros((1, EMBED), jnp.float32),
            "wkv_cross_stack": jnp.stack(cross_kvs, axis=0).astype(jnp.bfloat16),
            "bkv_cross_stack": jnp.zeros((LAYER_COUNT, 1, 2 * EMBED), jnp.float32),
            "lm_w": lm_w.astype(jnp.bfloat16),
            "lm_b": jnp.zeros((1, LM_VOCAB_PAD), jnp.float32),
        },
        "v_head": {
            "w1": jax.random.normal(nxt(), (1, EMBED), jnp.float32) * 0.1,
            "b1": jnp.zeros((1, 1), jnp.float32),
            "w2": jax.random.normal(nxt(), (1, 1), jnp.float32) * 0.1,
            "b2": jnp.zeros((1, 1), jnp.float32),
        },
    }


# ---------------------------------- main -------------------------------------
if __name__ == "__main__":
    root = jax.random.PRNGKey(0)
    pkey, tkey = jax.random.split(root)
    params = init_params(pkey)

    # Build text_tokens_batched the way tokenize_for_forward does:
    # per prompt a (2, T) int array: row 0 = [first, last] tokens, row 1 = full prompt, pad == 1.
    P = 2
    tt = jnp.ones((P, 2, TEXT_TOKENS), dtype=jnp.int32)
    for p in range(P):
        n = 5 + 3 * p
        toks = jax.random.randint(jax.random.fold_in(tkey, p), (n,), 2, TEXT_VOCAB,
                                  dtype=jnp.int32)
        tt = tt.at[p, 0, 0].set(toks[0])
        tt = tt.at[p, 0, 1].set(toks[-1])
        tt = tt.at[p, 1, :n].set(toks)

    run = jax.jit(lambda toks_b: dalle_forward(params, toks_b, seed=1, temperature=1.0,
                                               top_k=32, supercondition_factor=16.0))
    logits, values, image_tokens = run(tt)
    jax.block_until_ready((logits, values, image_tokens))

    assert logits.shape == (P, IMAGE_TOKEN_COUNT, LM_VOCAB)
    assert values.shape == (P, IMAGE_TOKEN_COUNT)
    assert image_tokens.shape == (P, IMAGE_TOKEN_COUNT)
    assert bool(jnp.all(jnp.isfinite(logits))) and bool(jnp.all(jnp.isfinite(values)))
    assert bool(jnp.all((image_tokens >= 0) & (image_tokens < IMAGE_VOCAB)))
    print("KERNEL_OK")
</pallas_src>

<mosaic_0001>
module attributes {stable_mosaic.version = 11 : i64} {
  func.func @_layernorm_kernel(%arg0: i32, %arg1: memref<64x128xf32, #tpu.memory_space<vmem>>, %arg2: memref<1x128xf32, #tpu.memory_space<vmem>>, %arg3: memref<1x128xf32, #tpu.memory_space<vmem>>, %arg4: memref<64x128xf32, #tpu.memory_space<vmem>>) attributes {dimension_semantics = [#tpu.dimension_semantics<arbitrary>], iteration_bounds = array<i64: 1>, scalar_prefetch = 0 : i64, scratch_operands = 0 : i64, tpu.core_type = #tpu.core_type<tc>, window_params = [{pipeline_mode = #tpu.pipeline_mode<synchronous>, transform_indices = @transform_0, window_bounds = array<i64: 64, 128>}, {pipeline_mode = #tpu.pipeline_mode<synchronous>, transform_indices = @transform_1, window_bounds = array<i64: 1, 128>}, {pipeline_mode = #tpu.pipeline_mode<synchronous>, transform_indices = @transform_2, window_bounds = array<i64: 1, 128>}, {pipeline_mode = #tpu.pipeline_mode<synchronous>, transform_indices = @transform_3, window_bounds = array<i64: 64, 128>}]} {
    %c0 = arith.constant 0 : index
    %c0_0 = arith.constant 0 : index
    %0 = vector.load %arg1[%c0, %c0_0] : memref<64x128xf32, #tpu.memory_space<vmem>>, vector<64x128xf32>
    %c0_1 = arith.constant 0 : index
    %c0_2 = arith.constant 0 : index
    %1 = vector.load %arg2[%c0_1, %c0_2] : memref<1x128xf32, #tpu.memory_space<vmem>>, vector<1x128xf32>
    %c0_3 = arith.constant 0 : index
    %c0_4 = arith.constant 0 : index
    %2 = vector.load %arg3[%c0_3, %c0_4] : memref<1x128xf32, #tpu.memory_space<vmem>>, vector<1x128xf32>
    %cst = arith.constant dense<0.000000e+00> : vector<64xf32>
    %3 = vector.multi_reduction <add>, %0, %cst [1] : vector<64x128xf32> to vector<64xf32>
    %4 = vector.shape_cast %3 : vector<64xf32> to vector<64x1xf32>
    %cst_5 = arith.constant 1.280000e+02 : f32
    %5 = vector.broadcast %cst_5 : f32 to vector<64x1xf32>
    %6 = arith.divf %4, %5 : vector<64x1xf32>
    %7 = vector.broadcast %6 : vector<64x1xf32> to vector<64x128xf32>
    %8 = arith.subf %0, %7 : vector<64x128xf32>
    %9 = arith.mulf %8, %8 : vector<64x128xf32>
    %cst_6 = arith.constant dense<0.000000e+00> : vector<64xf32>
    %10 = vector.multi_reduction <add>, %9, %cst_6 [1] : vector<64x128xf32> to vector<64xf32>
    %11 = vector.shape_cast %10 : vector<64xf32> to vector<64x1xf32>
    %cst_7 = arith.constant 1.280000e+02 : f32
    %12 = vector.broadcast %cst_7 : f32 to vector<64x1xf32>
    %13 = arith.divf %11, %12 : vector<64x1xf32>
    %14 = vector.broadcast %6 : vector<64x1xf32> to vector<64x128xf32>
    %15 = arith.subf %0, %14 : vector<64x128xf32>
    %cst_8 = arith.constant 9.99999974E-6 : f32
    %16 = vector.broadcast %cst_8 : f32 to vector<64x1xf32>
    %17 = arith.addf %13, %16 : vector<64x1xf32>
    %18 = math.rsqrt %17 : vector<64x1xf32>
    %19 = vector.broadcast %18 : vector<64x1xf32> to vector<64x128xf32>
    %20 = arith.mulf %15, %19 : vector<64x128xf32>
    %21 = vector.broadcast %1 : vector<1x128xf32> to vector<64x128xf32>
    %22 = arith.mulf %20, %21 : vector<64x128xf32>
    %23 = vector.broadcast %2 : vector<1x128xf32> to vector<64x128xf32>
    %24 = arith.addf %22, %23 : vector<64x128xf32>
    %c0_9 = arith.constant 0 : index
    %c0_10 = arith.constant 0 : index
    %25 = vector.load %arg4[%c0_9, %c0_10] : memref<64x128xf32, #tpu.memory_space<vmem>>, vector<64x128xf32>
    tpu.vector_store %arg4[%c0_9, %c0_10], %24 {strides = array<i32>} : memref<64x128xf32, #tpu.memory_space<vmem>>, vector<64x128xf32>,
    return
  }
  func.func @transform_0(%arg0: i32) -> (i32, i32) {
    %c0_i32 = arith.constant 0 : i32
    %c0_i32_0 = arith.constant 0 : i32
    %c0_i32_1 = arith.constant 0 : i32
    return %c0_i32, %c0_i32_0 : i32, i32
  }
  func.func @transform_1(%arg0: i32) -> (i32, i32) {
    %c0_i32 = arith.constant 0 : i32
    %c0_i32_0 = arith.constant 0 : i32
    %c0_i32_1 = arith.constant 0 : i32
    return %c0_i32, %c0_i32_0 : i32, i32
  }
  func.func @transform_2(%arg0: i32) -> (i32, i32) {
    %c0_i32 = arith.constant 0 : i32
    %c0_i32_0 = arith.constant 0 : i32
    %c0_i32_1 = arith.constant 0 : i32
    return %c0_i32, %c0_i32_0 : i32, i32
  }
  func.func @transform_3(%arg0: i32) -> (i32, i32) {
    %c0_i32 = arith.constant 0 : i32
    %c0_i32_0 = arith.constant 0 : i32
    %c0_i32_1 = arith.constant 0 : i32
    return %c0_i32, %c0_i32_0 : i32, i32
  }
}

module attributes {stable_mosaic.version = 11 : i64} {
  func.func @_cross_kv_kernel(%arg0: i32, %arg1: memref<4x16x128xf32, #tpu.memory_space<vmem>>, %arg2: memref<1x128x256xbf16, #tpu.memory_space<vmem>>, %arg3: memref<1x1x256xf32, #tpu.memory_space<vmem>>, %arg4: memref<1x4x16x256xf32, #tpu.memory_space<vmem>>) attributes {dimension_semantics = [#tpu.dimension_semantics<parallel>], iteration_bounds = array<i64: 2>, scalar_prefetch = 0 : i64, scratch_operands = 0 : i64, tpu.core_type = #tpu.core_type<tc>, window_params = [{pipeline_mode = #tpu.pipeline_mode<synchronous>, transform_indices = @transform_0, window_bounds = array<i64: 4, 16, 128>}, {transform_indices = @transform_1, window_bounds = array<i64: 1, 128, 256>}, {transform_indices = @transform_2, window_bounds = array<i64: 1, 1, 256>}, {transform_indices = @transform_3, window_bounds = array<i64: 1, 4, 16, 256>}]} {
    %c0 = arith.constant 0 : index
    %c0_0 = arith.constant 0 : index
    %c0_1 = arith.constant 0 : index
    %0 = vector.load %arg1[%c0, %c0_0, %c0_1] : memref<4x16x128xf32, #tpu.memory_space<vmem>>, vector<4x16x128xf32>
    %1 = vector.shape_cast %0 : vector<4x16x128xf32> to vector<64x128xf32>
    %2 = arith.truncf %1 : vector<64x128xf32> to vector<64x128xbf16>
    %c0_2 = arith.constant 0 : index
    %c0_3 = arith.constant 0 : index
    %c0_4 = arith.constant 0 : index
    %3 = vector.load %arg2[%c0_2, %c0_3, %c0_4] : memref<1x128x256xbf16, #tpu.memory_space<vmem>>, vector<1x128x256xbf16>
    %4 = vector.shape_cast %3 : vector<1x128x256xbf16> to vector<128x256xbf16>
    %cst = arith.constant dense<0.000000e+00> : vector<64x256xf32>
    %5 = tpu.matmul %2, %4, %cst {dimension_numbers = #tpu.dot_dimension_numbers<[1], [0], [0], [1], [0, 0, 1, 1], [], []>} : vector<64x128xbf16>, vector<128x256xbf16>, vector<64x256xf32> -> vector<64x256xf32>
    %c0_5 = arith.constant 0 : index
    %c0_6 = arith.constant 0 : index
    %c0_7 = arith.constant 0 : index
    %6 = vector.load %arg3[%c0_5, %c0_6, %c0_7] : memref<1x1x256xf32, #tpu.memory_space<vmem>>, vector<1x1x256xf32>
    %7 = vector.shape_cast %6 : vector<1x1x256xf32> to vector<1x256xf32>
    %8 = vector.broadcast %7 : vector<1x256xf32> to vector<64x256xf32>
    %9 = arith.addf %5, %8 : vector<64x256xf32>
    %10 = vector.shape_cast %9 : vector<64x256xf32> to vector<4x16x256xf32>
    %c0_8 = arith.constant 0 : index
    %c0_9 = arith.constant 0 : index
    %c0_10 = arith.constant 0 : index
    %c0_11 = arith.constant 0 : index
    %11 = vector.load %arg4[%c0_8, %c0_9, %c0_10, %c0_11] : memref<1x4x16x256xf32, #tpu.memory_space<vmem>>, vector<1x4x16x256xf32>
    %12 = vector.shape_cast %11 : vector<1x4x16x256xf32> to vector<4x16x256xf32>
    %13 = vector.shape_cast %10 : vector<4x16x256xf32> to vector<1x4x16x256xf32>
    tpu.vector_store %arg4[%c0_8, %c0_9, %c0_10, %c0_11], %13 {strides = array<i32>} : memref<1x4x16x256xf32, #tpu.memory_space<vmem>>, vector<1x4x16x256xf32>,
    return
  }
  func.func @transform_0(%arg0: i32) -> (i32, i32, i32) {
    %c0_i32 = arith.constant 0 : i32
    %c0_i32_0 = arith.constant 0 : i32
    %c0_i32_1 = arith.constant 0 : i32
    %c0_i32_2 = arith.constant 0 : i32
    return %c0_i32, %c0_i32_0, %c0_i32_1 : i32, i32, i32
  }
  func.func @transform_1(%arg0: i32) -> (i32, i32, i32) {
    %c0_i32 = arith.constant 0 : i32
    %c0_i32_0 = arith.constant 0 : i32
    %c0_i32_1 = arith.constant 0 : i32
    return %arg0, %c0_i32, %c0_i32_0 : i32, i32, i32
  }
  func.func @transform_2(%arg0: i32) -> (i32, i32, i32) {
    %c0_i32 = arith.constant 0 : i32
    %c0_i32_0 = arith.constant 0 : i32
    %c0_i32_1 = arith.constant 0 : i32
    return %arg0, %c0_i32, %c0_i32_0 : i32, i32, i32
  }
  func.func @transform_3(%arg0: i32) -> (i32, i32, i32, i32) {
    %c0_i32 = arith.constant 0 : i32
    %c0_i32_0 = arith.constant 0 : i32
    %c0_i32_1 = arith.constant 0 : i32
    %c0_i32_2 = arith.constant 0 : i32
    return %arg0, %c0_i32, %c0_i32_0, %c0_i32_1 : i32, i32, i32, i32
  }
}

module attributes {stable_mosaic.version = 11 : i64} {
  func.func @_encoder_layer_kernel(%arg0: i32, %arg1: memref<4x16x128xf32, #tpu.memory_space<vmem>>, %arg2: memref<4x16xf32, #tpu.memory_space<vmem>>, %arg3: memref<3x128xf32, #tpu.memory_space<vmem>>, %arg4: memref<3x128xf32, #tpu.memory_space<vmem>>, %arg5: memref<128x384xbf16, #tpu.memory_space<vmem>>, %arg6: memref<1x384xf32, #tpu.memory_space<vmem>>, %arg7: memref<128x128xbf16, #tpu.memory_space<vmem>>, %arg8: memref<1x128xf32, #tpu.memory_space<vmem>>, %arg9: memref<128x512xbf16, #tpu.memory_space<vmem>>, %arg10: memref<1x512xf32, #tpu.memory_space<vmem>>, %arg11: memref<1x256xf32, #tpu.memory_space<vmem>>, %arg12: memref<1x256xf32, #tpu.memory_space<vmem>>, %arg13: memref<256x128xbf16, #tpu.memory_space<vmem>>, %arg14: memref<1x128xf32, #tpu.memory_space<vmem>>, %arg15: memref<4x16x128xf32, #tpu.memory_space<vmem>>) attributes {dimension_semantics = [#tpu.dimension_semantics<arbitrary>], iteration_bounds = array<i64: 1>, scalar_prefetch = 0 : i64, scratch_operands = 0 : i64, tpu.core_type = #tpu.core_type<tc>, window_params = [{pipeline_mode = #tpu.pipeline_mode<synchronous>, transform_indices = @transform_0, window_bounds = array<i64: 4, 16, 128>}, {pipeline_mode = #tpu.pipeline_mode<synchronous>, transform_indices = @transform_1, window_bounds = array<i64: 4, 16>}, {pipeline_mode = #tpu.pipeline_mode<synchronous>, transform_indices = @transform_2, window_bounds = array<i64: 3, 128>}, {pipeline_mode = #tpu.pipeline_mode<synchronous>, transform_indices = @transform_3, window_bounds = array<i64: 3, 128>}, {pipeline_mode = #tpu.pipeline_mode<synchronous>, transform_indices = @transform_4, window_bounds = array<i64: 128, 384>}, {pipeline_mode = #tpu.pipeline_mode<synchronous>, transform_indices = @transform_5, window_bounds = array<i64: 1, 384>}, {pipeline_mode = #tpu.pipeline_mode<synchronous>, transform_indices = @transform_6, window_bounds = array<i64: 128, 128>}, {pipeline_mode = #tpu.pipeline_mode<synchronous>, transform_indices = @transform_7, window_bounds = array<i64: 1, 128>}, {pipeline_mode = #tpu.pipeline_mode<synchronous>, transform_indices = @transform_8, window_bounds = array<i64: 128, 512>}, {pipeline_mode = #tpu.pipeline_mode<synchronous>, transform_indices = @transform_9, window_bounds = array<i64: 1, 512>}, {pipeline_mode = #tpu.pipeline_mode<synchronous>, transform_indices = @transform_10, window_bounds = array<i64: 1, 256>}, {pipeline_mode = #tpu.pipeline_mode<synchronous>, transform_indices = @transform_11, window_bounds = array<i64: 1, 256>}, {pipeline_mode = #tpu.pipeline_mode<synchronous>, transform_indices = @transform_12, window_bounds = array<i64: 256, 128>}, {pipeline_mode = #tpu.pipeline_mode<synchronous>, transform_indices = @transform_13, window_bounds = array<i64: 1, 128>}, {pipeline_mode = #tpu.pipeline_mode<synchronous>, transform_indices = @transform_14, window_bounds = array<i64: 4, 16, 128>}]} {
    %c0 = arith.constant 0 : index
    %c0_0 = arith.constant 0 : index
    %c0_1 = arith.constant 0 : index
    %0 = vector.load %arg1[%c0, %c0_0, %c0_1] : memref<4x16x128xf32, #tpu.memory_space<vmem>>, vector<4x16x128xf32>
    %1 = vector.shape_cast %0 : vector<4x16x128xf32> to vector<64x128xf32>
    %c0_2 = arith.constant 0 : index
    %c0_3 = arith.constant 0 : index
    %2 = vector.load %arg2[%c0_2, %c0_3] : memref<4x16xf32, #tpu.memory_space<vmem>>, vector<4x16xf32>
    %cst = arith.constant 0.000000e+00 : f32
    %3 = vector.broadcast %cst : f32 to vector<4x16xf32>
    %4 = arith.cmpf ogt, %2, %3 : vector<4x16xf32>
    %c0_4 = arith.constant 0 : index
    %c0_5 = arith.constant 0 : index
    %5 = vector.load %arg3[%c0_4, %c0_5] : memref<3x128xf32, #tpu.memory_space<vmem>>, vector<1x128xf32>
    %c0_6 = arith.constant 0 : index
    %c0_7 = arith.constant 0 : index
    %6 = vector.load %arg4[%c0_6, %c0_7] : memref<3x128xf32, #tpu.memory_space<vmem>>, vector<1x128xf32>
    %cst_8 = arith.constant dense<0.000000e+00> : vector<64xf32>
    %7 = vector.multi_reduction <add>, %1, %cst_8 [1] : vector<64x128xf32> to vector<64xf32>
    %8 = vector.shape_cast %7 : vector<64xf32> to vector<64x1xf32>
    %cst_9 = arith.constant 1.280000e+02 : f32
    %9 = vector.broadcast %cst_9 : f32 to vector<64x1xf32>
    %10 = arith.divf %8, %9 : vector<64x1xf32>
    %11 = vector.broadcast %10 : vector<64x1xf32> to vector<64x128xf32>
    %12 = arith.subf %1, %11 : vector<64x128xf32>
    %13 = arith.mulf %12, %12 : vector<64x128xf32>
    %cst_10 = arith.constant dense<0.000000e+00> : vector<64xf32>
    %14 = vector.multi_reduction <add>, %13, %cst_10 [1] : vector<64x128xf32> to vector<64xf32>
    %15 = vector.shape_cast %14 : vector<64xf32> to vector<64x1xf32>
    %cst_11 = arith.constant 1.280000e+02 : f32
    %16 = vector.broadcast %cst_11 : f32 to vector<64x1xf32>
    %17 = arith.divf %15, %16 : vector<64x1xf32>
    %18 = vector.broadcast %10 : vector<64x1xf32> to vector<64x128xf32>
    %19 = arith.subf %1, %18 : vector<64x128xf32>
    %cst_12 = arith.constant 9.99999974E-6 : f32
    %20 = vector.broadcast %cst_12 : f32 to vector<64x1xf32>
    %21 = arith.addf %17, %20 : vector<64x1xf32>
    %22 = math.rsqrt %21 : vector<64x1xf32>
    %23 = vector.broadcast %22 : vector<64x1xf32> to vector<64x128xf32>
    %24 = arith.mulf %19, %23 : vector<64x128xf32>
    %25 = vector.broadcast %5 : vector<1x128xf32> to vector<64x128xf32>
    %26 = arith.mulf %24, %25 : vector<64x128xf32>
    %27 = vector.broadcast %6 : vector<1x128xf32> to vector<64x128xf32>
    %28 = arith.addf %26, %27 : vector<64x128xf32>
    %29 = arith.truncf %28 : vector<64x128xf32> to vector<64x128xbf16>
    %c0_13 = arith.constant 0 : index
    %c0_14 = arith.constant 0 : index
    %30 = vector.load %arg5[%c0_13, %c0_14] : memref<128x384xbf16, #tpu.memory_space<vmem>>, vector<128x384xbf16>
    %cst_15 = arith.constant dense<0.000000e+00> : vector<64x384xf32>
    %31 = tpu.matmul %29, %30, %cst_15 {dimension_numbers = #tpu.dot_dimension_numbers<[1], [0], [0], [1], [0, 0, 1, 1], [], []>} : vector<64x128xbf16>, vector<128x384xbf16>, vector<64x384xf32> -> vector<64x384xf32>
    %c0_16 = arith.constant 0 : index
    %c0_17 = arith.constant 0 : index
    %32 = vector.load %arg6[%c0_16, %c0_17] : memref<1x384xf32, #tpu.memory_space<vmem>>, vector<1x384xf32>
    %33 = vector.broadcast %32 : vector<1x384xf32> to vector<64x384xf32>
    %34 = arith.addf %31, %33 : vector<64x384xf32>
    %35 = vector.extract_strided_slice %34 {offsets = [0, 0], sizes = [64, 128], strides = [1, 1]} : vector<64x384xf32> to vector<64x128xf32>
    %36 = vector.shape_cast %35 : vector<64x128xf32> to vector<4x16x128xf32>
    %37 = vector.extract_strided_slice %34 {offsets = [0, 128], sizes = [64, 128], strides = [1, 1]} : vector<64x384xf32> to vector<64x128xf32>
    %38 = vector.shape_cast %37 : vector<64x128xf32> to vector<4x16x128xf32>
    %39 = vector.extract_strided_slice %34 {offsets = [0, 256], sizes = [64, 128], strides = [1, 1]} : vector<64x384xf32> to vector<64x128xf32>
    %40 = vector.shape_cast %39 : vector<64x128xf32> to vector<4x16x128xf32>
    %cst_18 = arith.constant 0.000000e+00 : f32
    %41 = vector.broadcast %cst_18 : f32 to vector<64x128xf32>
    %42 = vector.extract_strided_slice %36 {offsets = [0, 0, 0], sizes = [4, 16, 32], strides = [1, 1, 1]} : vector<4x16x128xf32> to vector<4x16x32xf32>
    %43 = vector.extract_strided_slice %38 {offsets = [0, 0, 0], sizes = [4, 16, 32], strides = [1, 1, 1]} : vector<4x16x128xf32> to vector<4x16x32xf32>
    "tpu.trace_start"() <{level = 10 : i32, message = "bqd,bkd->bqk"}> : () -> ()
    %cst_19 = arith.constant dense<0.000000e+00> : vector<4x16x16xf32>
    %44 = tpu.matmul %42, %43, %cst_19 {dimension_numbers = #tpu.dot_dimension_numbers<[2], [2], [1], [1], [0, 0, 0, 1, 1, 1], [0], [0]>} : vector<4x16x32xf32>, vector<4x16x32xf32>, vector<4x16x16xf32> -> vector<4x16x16xf32>
    "tpu.trace_stop"() : () -> ()
    %45 = vector.shape_cast %4 : vector<4x16xi1> to vector<4x1x16xi1>
    %cst_20 = arith.constant -1.000000e+09 : f32
    %46 = vector.shape_cast %45 : vector<4x1x16xi1> to vector<4x1x16xi1>
    %47 = vector.broadcast %46 : vector<4x1x16xi1> to vector<4x16x16xi1>
    %48 = vector.broadcast %cst_20 : f32 to vector<4x16x16xf32>
    %49 = arith.select %47, %44, %48 : vector<4x16x16xi1>, vector<4x16x16xf32>
    %cst_21 = arith.constant dense<0xFF800000> : vector<4x16xf32>
    %50 = vector.multi_reduction <maximumf>, %49, %cst_21 [2] : vector<4x16x16xf32> to vector<4x16xf32>
    %51 = vector.shape_cast %50 : vector<4x16xf32> to vector<4x16x1xf32>
    %52 = vector.broadcast %51 : vector<4x16x1xf32> to vector<4x16x16xf32>
    %53 = arith.subf %49, %52 : vector<4x16x16xf32>
    %54 = math.exp %53 : vector<4x16x16xf32>
    %cst_22 = arith.constant dense<0.000000e+00> : vector<4x16xf32>
    %55 = vector.multi_reduction <add>, %54, %cst_22 [2] : vector<4x16x16xf32> to vector<4x16xf32>
    %56 = vector.shape_cast %55 : vector<4x16xf32> to vector<4x16x1xf32>
    %57 = tpu.reciprocal %56 {approx = true} : vector<4x16x1xf32> -> vector<4x16x1xf32>
    %58 = vector.broadcast %57 : vector<4x16x1xf32> to vector<4x16x16xf32>
    %59 = arith.mulf %54, %58 : vector<4x16x16xf32>
    %60 = vector.extract_strided_slice %40 {offsets = [0, 0, 0], sizes = [4, 16, 32], strides = [1, 1, 1]} : vector<4x16x128xf32> to vector<4x16x32xf32>
    "tpu.trace_start"() <{level = 10 : i32, message = "bqk,bkd->bqd"}> : () -> ()
    %cst_23 = arith.constant dense<0.000000e+00> : vector<4x16x32xf32>
    %61 = tpu.matmul %59, %60, %cst_23 {dimension_numbers = #tpu.dot_dimension_numbers<[2], [1], [1], [2], [0, 0, 0, 1, 1, 2], [0], [0]>} : vector<4x16x16xf32>, vector<4x16x32xf32>, vector<4x16x32xf32> -> vector<4x16x32xf32>
    "tpu.trace_stop"() : () -> ()
    %62 = vector.shape_cast %61 : vector<4x16x32xf32> to vector<64x32xf32>
    %63 = arith.truncf %62 : vector<64x32xf32> to vector<64x32xbf16>
    %c0_24 = arith.constant 0 : index
    %c0_25 = arith.constant 0 : index
    %64 = vector.load %arg7[%c0_24, %c0_25] : memref<128x128xbf16, #tpu.memory_space<vmem>>, vector<32x128xbf16>
    %cst_26 = arith.constant dense<0.000000e+00> : vector<64x128xf32>
    %65 = tpu.matmul %63, %64, %cst_26 {dimension_numbers = #tpu.dot_dimension_numbers<[1], [0], [0], [1], [0, 0, 1, 1], [], []>} : vector<64x32xbf16>, vector<32x128xbf16>, vector<64x128xf32> -> vector<64x128xf32>
    %66 = arith.addf %41, %65 : vector<64x128xf32>
    %67 = vector.extract_strided_slice %36 {offsets = [0, 0, 32], sizes = [4, 16, 32], strides = [1, 1, 1]} : vector<4x16x128xf32> to vector<4x16x32xf32>
    %68 = vector.extract_strided_slice %38 {offsets = [0, 0, 32], sizes = [4, 16, 32], strides = [1, 1, 1]} : vector<4x16x128xf32> to vector<4x16x32xf32>
    "tpu.trace_start"() <{level = 10 : i32, message = "bqd,bkd->bqk"}> : () -> ()
    %cst_27 = arith.constant dense<0.000000e+00> : vector<4x16x16xf32>
    %69 = tpu.matmul %67, %68, %cst_27 {dimension_numbers = #tpu.dot_dimension_numbers<[2], [2], [1], [1], [0, 0, 0, 1, 1, 1], [0], [0]>} : vector<4x16x32xf32>, vector<4x16x32xf32>, vector<4x16x16xf32> -> vector<4x16x16xf32>
    "tpu.trace_stop"() : () -> ()
    %70 = vector.shape_cast %4 : vector<4x16xi1> to vector<4x1x16xi1>
    %cst_28 = arith.constant -1.000000e+09 : f32
    %71 = vector.shape_cast %70 : vector<4x1x16xi1> to vector<4x1x16xi1>
    %72 = vector.broadcast %71 : vector<4x1x16xi1> to vector<4x16x16xi1>
    %73 = vector.broadcast %cst_28 : f32 to vector<4x16x16xf32>
    %74 = arith.select %72, %69, %73 : vector<4x16x16xi1>, vector<4x16x16xf32>
    %cst_29 = arith.constant dense<0xFF800000> : vector<4x16xf32>
    %75 = vector.multi_reduction <maximumf>, %74, %cst_29 [2] : vector<4x16x16xf32> to vector<4x16xf32>
    %76 = vector.shape_cast %75 : vector<4x16xf32> to vector<4x16x1xf32>
    %77 = vector.broadcast %76 : vector<4x16x1xf32> to vector<4x16x16xf32>
    %78 = arith.subf %74, %77 : vector<4x16x16xf32>
    %79 = math.exp %78 : vector<4x16x16xf32>
    %cst_30 = arith.constant dense<0.000000e+00> : vector<4x16xf32>
    %80 = vector.multi_reduction <add>, %79, %cst_30 [2] : vector<4x16x16xf32> to vector<4x16xf32>
    %81 = vector.shape_cast %80 : vector<4x16xf32> to vector<4x16x1xf32>
    %82 = tpu.reciprocal %81 {approx = true} : vector<4x16x1xf32> -> vector<4x16x1xf32>
    %83 = vector.broadcast %82 : vector<4x16x1xf32> to vector<4x16x16xf32>
    %84 = arith.mulf %79, %83 : vector<4x16x16xf32>
    %85 = vector.extract_strided_slice %40 {offsets = [0, 0, 32], sizes = [4, 16, 32], strides = [1, 1, 1]} : vector<4x16x128xf32> to vector<4x16x32xf32>
    "tpu.trace_start"() <{level = 10 : i32, message = "bqk,bkd->bqd"}> : () -> ()
    %cst_31 = arith.constant dense<0.000000e+00> : vector<4x16x32xf32>
    %86 = tpu.matmul %84, %85, %cst_31 {dimension_numbers = #tpu.dot_dimension_numbers<[2], [1], [1], [2], [0, 0, 0, 1, 1, 2], [0], [0]>} : vector<4x16x16xf32>, vector<4x16x32xf32>, vector<4x16x32xf32> -> vector<4x16x32xf32>
    "tpu.trace_stop"() : () -> ()
    %87 = vector.shape_cast %86 : vector<4x16x32xf32> to vector<64x32xf32>
    %88 = arith.truncf %87 : vector<64x32xf32> to vector<64x32xbf16>
    %c32 = arith.constant 32 : index
    %c0_32 = arith.constant 0 : index
    %89 = vector.load %arg7[%c32, %c0_32] : memref<128x128xbf16, #tpu.memory_space<vmem>>, vector<32x128xbf16>
    %cst_33 = arith.constant dense<0.000000e+00> : vector<64x128xf32>
    %90 = tpu.matmul %88, %89, %cst_33 {dimension_numbers = #tpu.dot_dimension_numbers<[1], [0], [0], [1], [0, 0, 1, 1], [], []>} : vector<64x32xbf16>, vector<32x128xbf16>, vector<64x128xf32> -> vector<64x128xf32>
    %91 = arith.addf %66, %90 : vector<64x128xf32>
    %92 = vector.extract_strided_slice %36 {offsets = [0, 0, 64], sizes = [4, 16, 32], strides = [1, 1, 1]} : vector<4x16x128xf32> to vector<4x16x32xf32>
    %93 = vector.extract_strided_slice %38 {offsets = [0, 0, 64], sizes = [4, 16, 32], strides = [1, 1, 1]} : vector<4x16x128xf32> to vector<4x16x32xf32>
    "tpu.trace_start"() <{level = 10 : i32, message = "bqd,bkd->bqk"}> : () -> ()
    %cst_34 = arith.constant dense<0.000000e+00> : vector<4x16x16xf32>
    %94 = tpu.matmul %92, %93, %cst_34 {dimension_numbers = #tpu.dot_dimension_numbers<[2], [2], [1], [1], [0, 0, 0, 1, 1, 1], [0], [0]>} : vector<4x16x32xf32>, vector<4x16x32xf32>, vector<4x16x16xf32> -> vector<4x16x16xf32>
    "tpu.trace_stop"() : () -> ()
    %95 = vector.shape_cast %4 : vector<4x16xi1> to vector<4x1x16xi1>
    %cst_35 = arith.constant -1.000000e+09 : f32
    %96 = vector.shape_cast %95 : vector<4x1x16xi1> to vector<4x1x16xi1>
    %97 = vector.broadcast %96 : vector<4x1x16xi1> to vector<4x16x16xi1>
    %98 = vector.broadcast %cst_35 : f32 to vector<4x16x16xf32>
    %99 = arith.select %97, %94, %98 : vector<4x16x16xi1>, vector<4x16x16xf32>
    %cst_36 = arith.constant dense<0xFF800000> : vector<4x16xf32>
    %100 = vector.multi_reduction <maximumf>, %99, %cst_36 [2] : vector<4x16x16xf32> to vector<4x16xf32>
    %101 = vector.shape_cast %100 : vector<4x16xf32> to vector<4x16x1xf32>
    %102 = vector.broadcast %101 : vector<4x16x1xf32> to vector<4x16x16xf32>
    %103 = arith.subf %99, %102 : vector<4x16x16xf32>
    %104 = math.exp %103 : vector<4x16x16xf32>
    %cst_37 = arith.constant dense<0.000000e+00> : vector<4x16xf32>
    %105 = vector.multi_reduction <add>, %104, %cst_37 [2] : vector<4x16x16xf32> to vector<4x16xf32>
    %106 = vector.shape_cast %105 : vector<4x16xf32> to vector<4x16x1xf32>
    %107 = tpu.reciprocal %106 {approx = true} : vector<4x16x1xf32> -> vector<4x16x1xf32>
    %108 = vector.broadcast %107 : vector<4x16x1xf32> to vector<4x16x16xf32>
    %109 = arith.mulf %104, %108 : vector<4x16x16xf32>
    %110 = vector.extract_strided_slice %40 {offsets = [0, 0, 64], sizes = [4, 16, 32], strides = [1, 1, 1]} : vector<4x16x128xf32> to vector<4x16x32xf32>
    "tpu.trace_start"() <{level = 10 : i32, message = "bqk,bkd->bqd"}> : () -> ()
    %cst_38 = arith.constant dense<0.000000e+00> : vector<4x16x32xf32>
    %111 = tpu.matmul %109, %110, %cst_38 {dimension_numbers = #tpu.dot_dimension_numbers<[2], [1], [1], [2], [0, 0, 0, 1, 1, 2], [0], [0]>} : vector<4x16x16xf32>, vector<4x16x32xf32>, vector<4x16x32xf32> -> vector<4x16x32xf32>
    "tpu.trace_stop"() : () -> ()
    %112 = vector.shape_cast %111 : vector<4x16x32xf32> to vector<64x32xf32>
    %113 = arith.truncf %112 : vector<64x32xf32> to vector<64x32xbf16>
    %c64 = arith.constant 64 : index
    %c0_39 = arith.constant 0 : index
    %114 = vector.load %arg7[%c64, %c0_39] : memref<128x128xbf16, #tpu.memory_space<vmem>>, vector<32x128xbf16>
    %cst_40 = arith.constant dense<0.000000e+00> : vector<64x128xf32>
    %115 = tpu.matmul %113, %114, %cst_40 {dimension_numbers = #tpu.dot_dimension_numbers<[1], [0], [0], [1], [0, 0, 1, 1], [], []>} : vector<64x32xbf16>, vector<32x128xbf16>, vector<64x128xf32> -> vector<64x128xf32>
    %116 = arith.addf %91, %115 : vector<64x128xf32>
    %117 = vector.extract_strided_slice %36 {offsets = [0, 0, 96], sizes = [4, 16, 32], strides = [1, 1, 1]} : vector<4x16x128xf32> to vector<4x16x32xf32>
    %118 = vector.extract_strided_slice %38 {offsets = [0, 0, 96], sizes = [4, 16, 32], strides = [1, 1, 1]} : vector<4x16x128xf32> to vector<4x16x32xf32>
    "tpu.trace_start"() <{level = 10 : i32, message = "bqd,bkd->bqk"}> : () -> ()
    %cst_41 = arith.constant dense<0.000000e+00> : vector<4x16x16xf32>
    %119 = tpu.matmul %117, %118, %cst_41 {dimension_numbers = #tpu.dot_dimension_numbers<[2], [2], [1], [1], [0, 0, 0, 1, 1, 1], [0], [0]>} : vector<4x16x32xf32>, vector<4x16x32xf32>, vector<4x16x16xf32> -> vector<4x16x16xf32>
    "tpu.trace_stop"() : () -> ()
    %120 = vector.shape_cast %4 : vector<4x16xi1> to vector<4x1x16xi1>
    %cst_42 = arith.constant -1.000000e+09 : f32
    %121 = vector.shape_cast %120 : vector<4x1x16xi1> to vector<4x1x16xi1>
    %122 = vector.broadcast %121 : vector<4x1x16xi1> to vector<4x16x16xi1>
    %123 = vector.broadcast %cst_42 : f32 to vector<4x16x16xf32>
    %124 = arith.select %122, %119, %123 : vector<4x16x16xi1>, vector<4x16x16xf32>
    %cst_43 = arith.constant dense<0xFF800000> : vector<4x16xf32>
    %125 = vector.multi_reduction <maximumf>, %124, %cst_43 [2] : vector<4x16x16xf32> to vector<4x16xf32>
    %126 = vector.shape_cast %125 : vector<4x16xf32> to vector<4x16x1xf32>
    %127 = vector.broadcast %126 : vector<4x16x1xf32> to vector<4x16x16xf32>
    %128 = arith.subf %124, %127 : vector<4x16x16xf32>
    %129 = math.exp %128 : vector<4x16x16xf32>
    %cst_44 = arith.constant dense<0.000000e+00> : vector<4x16xf32>
    %130 = vector.multi_reduction <add>, %129, %cst_44 [2] : vector<4x16x16xf32> to vector<4x16xf32>
    %131 = vector.shape_cast %130 : vector<4x16xf32> to vector<4x16x1xf32>
    %132 = tpu.reciprocal %131 {approx = true} : vector<4x16x1xf32> -> vector<4x16x1xf32>
    %133 = vector.broadcast %132 : vector<4x16x1xf32> to vector<4x16x16xf32>
    %134 = arith.mulf %129, %133 : vector<4x16x16xf32>
    %135 = vector.extract_strided_slice %40 {offsets = [0, 0, 96], sizes = [4, 16, 32], strides = [1, 1, 1]} : vector<4x16x128xf32> to vector<4x16x32xf32>
    "tpu.trace_start"() <{level = 10 : i32, message = "bqk,bkd->bqd"}> : () -> ()
    %cst_45 = arith.constant dense<0.000000e+00> : vector<4x16x32xf32>
    %136 = tpu.matmul %134, %135, %cst_45 {dimension_numbers = #tpu.dot_dimension_numbers<[2], [1], [1], [2], [0, 0, 0, 1, 1, 2], [0], [0]>} : vector<4x16x16xf32>, vector<4x16x32xf32>, vector<4x16x32xf32> -> vector<4x16x32xf32>
    "tpu.trace_stop"() : () -> ()
    %137 = vector.shape_cast %136 : vector<4x16x32xf32> to vector<64x32xf32>
    %138 = arith.truncf %137 : vector<64x32xf32> to vector<64x32xbf16>
    %c96 = arith.constant 96 : index
    %c0_46 = arith.constant 0 : index
    %139 = vector.load %arg7[%c96, %c0_46] : memref<128x128xbf16, #tpu.memory_space<vmem>>, vector<32x128xbf16>
    %cst_47 = arith.constant dense<0.000000e+00> : vector<64x128xf32>
    %140 = tpu.matmul %138, %139, %cst_47 {dimension_numbers = #tpu.dot_dimension_numbers<[1], [0], [0], [1], [0, 0, 1, 1], [], []>} : vector<64x32xbf16>, vector<32x128xbf16>, vector<64x128xf32> -> vector<64x128xf32>
    %141 = arith.addf %116, %140 : vector<64x128xf32>
    %c0_48 = arith.constant 0 : index
    %c0_49 = arith.constant 0 : index
    %142 = vector.load %arg8[%c0_48, %c0_49] : memref<1x128xf32, #tpu.memory_space<vmem>>, vector<1x128xf32>
    %143 = vector.broadcast %142 : vector<1x128xf32> to vector<64x128xf32>
    %144 = arith.addf %141, %143 : vector<64x128xf32>
    %c1 = arith.constant 1 : index
    %c0_50 = arith.constant 0 : index
    %145 = vector.load %arg3[%c1, %c0_50] : memref<3x128xf32, #tpu.memory_space<vmem>>, vector<1x128xf32>
    %c1_51 = arith.constant 1 : index
    %c0_52 = arith.constant 0 : index
    %146 = vector.load %arg4[%c1_51, %c0_52] : memref<3x128xf32, #tpu.memory_space<vmem>>, vector<1x128xf32>
    %cst_53 = arith.constant dense<0.000000e+00> : vector<64xf32>
    %147 = vector.multi_reduction <add>, %144, %cst_53 [1] : vector<64x128xf32> to vector<64xf32>
    %148 = vector.shape_cast %147 : vector<64xf32> to vector<64x1xf32>
    %cst_54 = arith.constant 1.280000e+02 : f32
    %149 = vector.broadcast %cst_54 : f32 to vector<64x1xf32>
    %150 = arith.divf %148, %149 : vector<64x1xf32>
    %151 = vector.broadcast %150 : vector<64x1xf32> to vector<64x128xf32>
    %152 = arith.subf %144, %151 : vector<64x128xf32>
    %153 = arith.mulf %152, %152 : vector<64x128xf32>
    %cst_55 = arith.constant dense<0.000000e+00> : vector<64xf32>
    %154 = vector.multi_reduction <add>, %153, %cst_55 [1] : vector<64x128xf32> to vector<64xf32>
    %155 = vector.shape_cast %154 : vector<64xf32> to vector<64x1xf32>
    %cst_56 = arith.constant 1.280000e+02 : f32
    %156 = vector.broadcast %cst_56 : f32 to vector<64x1xf32>
    %157 = arith.divf %155, %156 : vector<64x1xf32>
    %158 = vector.broadcast %150 : vector<64x1xf32> to vector<64x128xf32>
    %159 = arith.subf %144, %158 : vector<64x128xf32>
    %cst_57 = arith.constant 9.99999974E-6 : f32
    %160 = vector.broadcast %cst_57 : f32 to vector<64x1xf32>
    %161 = arith.addf %157, %160 : vector<64x1xf32>
    %162 = math.rsqrt %161 : vector<64x1xf32>
    %163 = vector.broadcast %162 : vector<64x1xf32> to vector<64x128xf32>
    %164 = arith.mulf %159, %163 : vector<64x128xf32>
    %165 = vector.broadcast %145 : vector<1x128xf32> to vector<64x128xf32>
    %166 = arith.mulf %164, %165 : vector<64x128xf32>
    %167 = vector.broadcast %146 : vector<1x128xf32> to vector<64x128xf32>
    %168 = arith.addf %166, %167 : vector<64x128xf32>
    %169 = arith.addf %1, %168 : vector<64x128xf32>
    %c2 = arith.constant 2 : index
    %c0_58 = arith.constant 0 : index
    %170 = vector.load %arg3[%c2, %c0_58] : memref<3x128xf32, #tpu.memory_space<vmem>>, vector<1x128xf32>
    %c2_59 = arith.constant 2 : index
    %c0_60 = arith.constant 0 : index
    %171 = vector.load %arg4[%c2_59, %c0_60] : memref<3x128xf32, #tpu.memory_space<vmem>>, vector<1x128xf32>
    %cst_61 = arith.constant dense<0.000000e+00> : vector<64xf32>
    %172 = vector.multi_reduction <add>, %169, %cst_61 [1] : vector<64x128xf32> to vector<64xf32>
    %173 = vector.shape_cast %172 : vector<64xf32> to vector<64x1xf32>
    %cst_62 = arith.constant 1.280000e+02 : f32
    %174 = vector.broadcast %cst_62 : f32 to vector<64x1xf32>
    %175 = arith.divf %173, %174 : vector<64x1xf32>
    %176 = vector.broadcast %175 : vector<64x1xf32> to vector<64x128xf32>
    %177 = arith.subf %169, %176 : vector<64x128xf32>
    %178 = arith.mulf %177, %177 : vector<64x128xf32>
    %cst_63 = arith.constant dense<0.000000e+00> : vector<64xf32>
    %179 = vector.multi_reduction <add>, %178, %cst_63 [1] : vector<64x128xf32> to vector<64xf32>
    %180 = vector.shape_cast %179 : vector<64xf32> to vector<64x1xf32>
    %cst_64 = arith.constant 1.280000e+02 : f32
    %181 = vector.broadcast %cst_64 : f32 to vector<64x1xf32>
    %182 = arith.divf %180, %181 : vector<64x1xf32>
    %183 = vector.broadcast %175 : vector<64x1xf32> to vector<64x128xf32>
    %184 = arith.subf %169, %183 : vector<64x128xf32>
    %cst_65 = arith.constant 9.99999974E-6 : f32
    %185 = vector.broadcast %cst_65 : f32 to vector<64x1xf32>
    %186 = arith.addf %182, %185 : vector<64x1xf32>
    %187 = math.rsqrt %186 : vector<64x1xf32>
    %188 = vector.broadcast %187 : vector<64x1xf32> to vector<64x128xf32>
    %189 = arith.mulf %184, %188 : vector<64x128xf32>
    %190 = vector.broadcast %170 : vector<1x128xf32> to vector<64x128xf32>
    %191 = arith.mulf %189, %190 : vector<64x128xf32>
    %192 = vector.broadcast %171 : vector<1x128xf32> to vector<64x128xf32>
    %193 = arith.addf %191, %192 : vector<64x128xf32>
    %194 = arith.truncf %193 : vector<64x128xf32> to vector<64x128xbf16>
    %c0_66 = arith.constant 0 : index
    %c0_67 = arith.constant 0 : index
    %195 = vector.load %arg9[%c0_66, %c0_67] : memref<128x512xbf16, #tpu.memory_space<vmem>>, vector<128x512xbf16>
    %cst_68 = arith.constant dense<0.000000e+00> : vector<64x512xf32>
    %196 = tpu.matmul %194, %195, %cst_68 {dimension_numbers = #tpu.dot_dimension_numbers<[1], [0], [0], [1], [0, 0, 1, 1], [], []>} : vector<64x128xbf16>, vector<128x512xbf16>, vector<64x512xf32> -> vector<64x512xf32>
    %c0_69 = arith.constant 0 : index
    %c0_70 = arith.constant 0 : index
    %197 = vector.load %arg10[%c0_69, %c0_70] : memref<1x512xf32, #tpu.memory_space<vmem>>, vector<1x512xf32>
    %198 = vector.broadcast %197 : vector<1x512xf32> to vector<64x512xf32>
    %199 = arith.addf %196, %198 : vector<64x512xf32>
    %200 = vector.extract_strided_slice %199 {offsets = [0, 0], sizes = [64, 256], strides = [1, 1]} : vector<64x512xf32> to vector<64x256xf32>
    %201 = arith.mulf %200, %200 : vector<64x256xf32>
    %202 = arith.mulf %200, %201 : vector<64x256xf32>
    %cst_71 = arith.constant 4.471500e-02 : f32
    %203 = vector.broadcast %cst_71 : f32 to vector<64x256xf32>
    %204 = arith.mulf %203, %202 : vector<64x256xf32>
    %205 = arith.addf %200, %204 : vector<64x256xf32>
    %cst_72 = arith.constant 0.797884583 : f32
    %206 = vector.broadcast %cst_72 : f32 to vector<64x256xf32>
    %207 = arith.mulf %206, %205 : vector<64x256xf32>
    %208 = math.tanh %207 : vector<64x256xf32>
    %cst_73 = arith.constant 1.000000e+00 : f32
    %209 = vector.broadcast %cst_73 : f32 to vector<64x256xf32>
    %210 = arith.addf %209, %208 : vector<64x256xf32>
    %cst_74 = arith.constant 5.000000e-01 : f32
    %211 = vector.broadcast %cst_74 : f32 to vector<64x256xf32>
    %212 = arith.mulf %211, %210 : vector<64x256xf32>
    %213 = arith.mulf %200, %212 : vector<64x256xf32>
    %214 = vector.extract_strided_slice %199 {offsets = [0, 256], sizes = [64, 256], strides = [1, 1]} : vector<64x512xf32> to vector<64x256xf32>
    %215 = arith.mulf %213, %214 : vector<64x256xf32>
    %c0_75 = arith.constant 0 : index
    %c0_76 = arith.constant 0 : index
    %216 = vector.load %arg11[%c0_75, %c0_76] : memref<1x256xf32, #tpu.memory_space<vmem>>, vector<1x256xf32>
    %c0_77 = arith.constant 0 : index
    %c0_78 = arith.constant 0 : index
    %217 = vector.load %arg12[%c0_77, %c0_78] : memref<1x256xf32, #tpu.memory_space<vmem>>, vector<1x256xf32>
    %cst_79 = arith.constant dense<0.000000e+00> : vector<64xf32>
    %218 = vector.multi_reduction <add>, %215, %cst_79 [1] : vector<64x256xf32> to vector<64xf32>
    %219 = vector.shape_cast %218 : vector<64xf32> to vector<64x1xf32>
    %cst_80 = arith.constant 2.560000e+02 : f32
    %220 = vector.broadcast %cst_80 : f32 to vector<64x1xf32>
    %221 = arith.divf %219, %220 : vector<64x1xf32>
    %222 = vector.broadcast %221 : vector<64x1xf32> to vector<64x256xf32>
    %223 = arith.subf %215, %222 : vector<64x256xf32>
    %224 = arith.mulf %223, %223 : vector<64x256xf32>
    %cst_81 = arith.constant dense<0.000000e+00> : vector<64xf32>
    %225 = vector.multi_reduction <add>, %224, %cst_81 [1] : vector<64x256xf32> to vector<64xf32>
    %226 = vector.shape_cast %225 : vector<64xf32> to vector<64x1xf32>
    %cst_82 = arith.constant 2.560000e+02 : f32
    %227 = vector.broadcast %cst_82 : f32 to vector<64x1xf32>
    %228 = arith.divf %226, %227 : vector<64x1xf32>
    %229 = vector.broadcast %221 : vector<64x1xf32> to vector<64x256xf32>
    %230 = arith.subf %215, %229 : vector<64x256xf32>
    %cst_83 = arith.constant 9.99999974E-6 : f32
    %231 = vector.broadcast %cst_83 : f32 to vector<64x1xf32>
    %232 = arith.addf %228, %231 : vector<64x1xf32>
    %233 = math.rsqrt %232 : vector<64x1xf32>
    %234 = vector.broadcast %233 : vector<64x1xf32> to vector<64x256xf32>
    %235 = arith.mulf %230, %234 : vector<64x256xf32>
    %236 = vector.broadcast %216 : vector<1x256xf32> to vector<64x256xf32>
    %237 = arith.mulf %235, %236 : vector<64x256xf32>
    %238 = vector.broadcast %217 : vector<1x256xf32> to vector<64x256xf32>
    %239 = arith.addf %237, %238 : vector<64x256xf32>
    %240 = arith.truncf %239 : vector<64x256xf32> to vector<64x256xbf16>
    %c0_84 = arith.constant 0 : index
    %c0_85 = arith.constant 0 : index
    %241 = vector.load %arg13[%c0_84, %c0_85] : memref<256x128xbf16, #tpu.memory_space<vmem>>, vector<256x128xbf16>
    %cst_86 = arith.constant dense<0.000000e+00> : vector<64x128xf32>
    %242 = tpu.matmul %240, %241, %cst_86 {dimension_numbers = #tpu.dot_dimension_numbers<[1], [0], [0], [1], [0, 0, 1, 1], [], []>} : vector<64x256xbf16>, vector<256x128xbf16>, vector<64x128xf32> -> vector<64x128xf32>
    %243 = arith.addf %169, %242 : vector<64x128xf32>
    %c0_87 = arith.constant 0 : index
    %c0_88 = arith.constant 0 : index
    %244 = vector.load %arg14[%c0_87, %c0_88] : memref<1x128xf32, #tpu.memory_space<vmem>>, vector<1x128xf32>
    %245 = vector.broadcast %244 : vector<1x128xf32> to vector<64x128xf32>
    %246 = arith.addf %243, %245 : vector<64x128xf32>
    %247 = vector.shape_cast %246 : vector<64x128xf32> to vector<4x16x128xf32>
    %c0_89 = arith.constant 0 : index
    %c0_90 = arith.constant 0 : index
    %c0_91 = arith.constant 0 : index
    %248 = vector.load %arg15[%c0_89, %c0_90, %c0_91] : memref<4x16x128xf32, #tpu.memory_space<vmem>>, vector<4x16x128xf32>
    tpu.vector_store %arg15[%c0_89, %c0_90, %c0_91], %247 {strides = array<i32>} : memref<4x16x128xf32, #tpu.memory_space<vmem>>, vector<4x16x128xf32>,
    return
  }
  func.func @transform_0(%arg0: i32) -> (i32, i32, i32) {
    %c0_i32 = arith.constant 0 : i32
    %c0_i32_0 = arith.constant 0 : i32
    %c0_i32_1 = arith.constant 0 : i32
    %c0_i32_2 = arith.constant 0 : i32
    return %c0_i32, %c0_i32_0, %c0_i32_1 : i32, i32, i32
  }
  func.func @transform_1(%arg0: i32) -> (i32, i32) {
    %c0_i32 = arith.constant 0 : i32
    %c0_i32_0 = arith.constant 0 : i32
    %c0_i32_1 = arith.constant 0 : i32
    return %c0_i32, %c0_i32_0 : i32, i32
  }
  func.func @transform_2(%arg0: i32) -> (i32, i32) {
    %c0_i32 = arith.constant 0 : i32
    %c0_i32_0 = arith.constant 0 : i32
    %c0_i32_1 = arith.constant 0 : i32
    return %c0_i32, %c0_i32_0 : i32, i32
  }
  func.func @transform_3(%arg0: i32) -> (i32, i32) {
    %c0_i32 = arith.constant 0 : i32
    %c0_i32_0 = arith.constant 0 : i32
    %c0_i32_1 = arith.constant 0 : i32
    return %c0_i32, %c0_i32_0 : i32, i32
  }
  func.func @transform_4(%arg0: i32) -> (i32, i32) {
    %c0_i32 = arith.constant 0 : i32
    %c0_i32_0 = arith.constant 0 : i32
    %c0_i32_1 = arith.constant 0 : i32
    return %c0_i32, %c0_i32_0 : i32, i32
  }
  func.func @transform_5(%arg0: i32) -> (i32, i32) {
    %c0_i32 = arith.constant 0 : i32
    %c0_i32_0 = arith.constant 0 : i32
    %c0_i32_1 = arith.constant 0 : i32
    return %c0_i32, %c0_i32_0 : i32, i32
  }
  func.func @transform_6(%arg0: i32) -> (i32, i32) {
    %c0_i32 = arith.constant 0 : i32
    %c0_i32_0 = arith.constant 0 : i32
    %c0_i32_1 = arith.constant 0 : i32
    return %c0_i32, %c0_i32_0 : i32, i32
  }
  func.func @transform_7(%arg0: i32) -> (i32, i32) {
    %c0_i32 = arith.constant 0 : i32
    %c0_i32_0 = arith.constant 0 : i32
    %c0_i32_1 = arith.constant 0 : i32
    return %c0_i32, %c0_i32_0 : i32, i32
  }
  func.func @transform_8(%arg0: i32) -> (i32, i32) {
    %c0_i32 = arith.constant 0 : i32
    %c0_i32_0 = arith.constant 0 : i32
    %c0_i32_1 = arith.constant 0 : i32
    return %c0_i32, %c0_i32_0 : i32, i32
  }
  func.func @transform_9(%arg0: i32) -> (i32, i32) {
    %c0_i32 = arith.constant 0 : i32
    %c0_i32_0 = arith.constant 0 : i32
    %c0_i32_1 = arith.constant 0 : i32
    return %c0_i32, %c0_i32_0 : i32, i32
  }
  func.func @transform_10(%arg0: i32) -> (i32, i32) {
    %c0_i32 = arith.constant 0 : i32
    %c0_i32_0 = arith.constant 0 : i32
    %c0_i32_1 = arith.constant 0 : i32
    return %c0_i32, %c0_i32_0 : i32, i32
  }
  func.func @transform_11(%arg0: i32) -> (i32, i32) {
    %c0_i32 = arith.constant 0 : i32
    %c0_i32_0 = arith.constant 0 : i32
    %c0_i32_1 = arith.constant 0 : i32
    return %c0_i32, %c0_i32_0 : i32, i32
  }
  func.func @transform_12(%arg0: i32) -> (i32, i32) {
    %c0_i32 = arith.constant 0 : i32
    %c0_i32_0 = arith.constant 0 : i32
    %c0_i32_1 = arith.constant 0 : i32
    return %c0_i32, %c0_i32_0 : i32, i32
  }
  func.func @transform_13(%arg0: i32) -> (i32, i32) {
    %c0_i32 = arith.constant 0 : i32
    %c0_i32_0 = arith.constant 0 : i32
    %c0_i32_1 = arith.constant 0 : i32
    return %c0_i32, %c0_i32_0 : i32, i32
  }
  func.func @transform_14(%arg0: i32) -> (i32, i32, i32) {
    %c0_i32 = arith.constant 0 : i32
    %c0_i32_0 = arith.constant 0 : i32
    %c0_i32_1 = arith.constant 0 : i32
    %c0_i32_2 = arith.constant 0 : i32
    return %c0_i32, %c0_i32_0, %c0_i32_1 : i32, i32, i32
  }
}

module attributes {stable_mosaic.version = 11 : i64} {
  func.func @_layernorm_kernel(%arg0: i32, %arg1: memref<4x128xf32, #tpu.memory_space<vmem>>, %arg2: memref<1x128xf32, #tpu.memory_space<vmem>>, %arg3: memref<1x128xf32, #tpu.memory_space<vmem>>, %arg4: memref<4x128xf32, #tpu.memory_space<vmem>>) attributes {dimension_semantics = [#tpu.dimension_semantics<arbitrary>], iteration_bounds = array<i64: 1>, scalar_prefetch = 0 : i64, scratch_operands = 0 : i64, tpu.core_type = #tpu.core_type<tc>, window_params = [{pipeline_mode = #tpu.pipeline_mode<synchronous>, transform_indices = @transform_0, window_bounds = array<i64: 4, 128>}, {pipeline_mode = #tpu.pipeline_mode<synchronous>, transform_indices = @transform_1, window_bounds = array<i64: 1, 128>}, {pipeline_mode = #tpu.pipeline_mode<synchronous>, transform_indices = @transform_2, window_bounds = array<i64: 1, 128>}, {pipeline_mode = #tpu.pipeline_mode<synchronous>, transform_indices = @transform_3, window_bounds = array<i64: 4, 128>}]} {
    %c0 = arith.constant 0 : index
    %c0_0 = arith.constant 0 : index
    %0 = vector.load %arg1[%c0, %c0_0] : memref<4x128xf32, #tpu.memory_space<vmem>>, vector<4x128xf32>
    %c0_1 = arith.constant 0 : index
    %c0_2 = arith.constant 0 : index
    %1 = vector.load %arg2[%c0_1, %c0_2] : memref<1x128xf32, #tpu.memory_space<vmem>>, vector<1x128xf32>
    %c0_3 = arith.constant 0 : index
    %c0_4 = arith.constant 0 : index
    %2 = vector.load %arg3[%c0_3, %c0_4] : memref<1x128xf32, #tpu.memory_space<vmem>>, vector<1x128xf32>
    %cst = arith.constant dense<0.000000e+00> : vector<4xf32>
    %3 = vector.multi_reduction <add>, %0, %cst [1] : vector<4x128xf32> to vector<4xf32>
    %4 = vector.shape_cast %3 : vector<4xf32> to vector<4x1xf32>
    %cst_5 = arith.constant 1.280000e+02 : f32
    %5 = vector.broadcast %cst_5 : f32 to vector<4x1xf32>
    %6 = arith.divf %4, %5 : vector<4x1xf32>
    %7 = vector.broadcast %6 : vector<4x1xf32> to vector<4x128xf32>
    %8 = arith.subf %0, %7 : vector<4x128xf32>
    %9 = arith.mulf %8, %8 : vector<4x128xf32>
    %cst_6 = arith.constant dense<0.000000e+00> : vector<4xf32>
    %10 = vector.multi_reduction <add>, %9, %cst_6 [1] : vector<4x128xf32> to vector<4xf32>
    %11 = vector.shape_cast %10 : vector<4xf32> to vector<4x1xf32>
    %cst_7 = arith.constant 1.280000e+02 : f32
    %12 = vector.broadcast %cst_7 : f32 to vector<4x1xf32>
    %13 = arith.divf %11, %12 : vector<4x1xf32>
    %14 = vector.broadcast %6 : vector<4x1xf32> to vector<4x128xf32>
    %15 = arith.subf %0, %14 : vector<4x128xf32>
    %cst_8 = arith.constant 9.99999974E-6 : f32
    %16 = vector.broadcast %cst_8 : f32 to vector<4x1xf32>
    %17 = arith.addf %13, %16 : vector<4x1xf32>
    %18 = math.rsqrt %17 : vector<4x1xf32>
    %19 = vector.broadcast %18 : vector<4x1xf32> to vector<4x128xf32>
    %20 = arith.mulf %15, %19 : vector<4x128xf32>
    %21 = vector.broadcast %1 : vector<1x128xf32> to vector<4x128xf32>
    %22 = arith.mulf %20, %21 : vector<4x128xf32>
    %23 = vector.broadcast %2 : vector<1x128xf32> to vector<4x128xf32>
    %24 = arith.addf %22, %23 : vector<4x128xf32>
    %c0_9 = arith.constant 0 : index
    %c0_10 = arith.constant 0 : index
    %25 = vector.load %arg4[%c0_9, %c0_10] : memref<4x128xf32, #tpu.memory_space<vmem>>, vector<4x128xf32>
    tpu.vector_store %arg4[%c0_9, %c0_10], %24 {strides = array<i32>} : memref<4x128xf32, #tpu.memory_space<vmem>>, vector<4x128xf32>,
    return
  }
  func.func @transform_0(%arg0: i32) -> (i32, i32) {
    %c0_i32 = arith.constant 0 : i32
    %c0_i32_0 = arith.constant 0 : i32
    %c0_i32_1 = arith.constant 0 : i32
    return %c0_i32, %c0_i32_0 : i32, i32
  }
  func.func @transform_1(%arg0: i32) -> (i32, i32) {
    %c0_i32 = arith.constant 0 : i32
    %c0_i32_0 = arith.constant 0 : i32
    %c0_i32_1 = arith.constant 0 : i32
    return %c0_i32, %c0_i32_0 : i32, i32
  }
  func.func @transform_2(%arg0: i32) -> (i32, i32) {
    %c0_i32 = arith.constant 0 : i32
    %c0_i32_0 = arith.constant 0 : i32
    %c0_i32_1 = arith.constant 0 : i32
    return %c0_i32, %c0_i32_0 : i32, i32
  }
  func.func @transform_3(%arg0: i32) -> (i32, i32) {
    %c0_i32 = arith.constant 0 : i32
    %c0_i32_0 = arith.constant 0 : i32
    %c0_i32_1 = arith.constant 0 : i32
    return %c0_i32, %c0_i32_0 : i32, i32
  }
}

module attributes {stable_mosaic.version = 11 : i64} {
  func.func @_head_kernel(%arg0: i32, %arg1: memref<4x128xf32, #tpu.memory_space<vmem>>, %arg2: memref<1x128xf32, #tpu.memory_space<vmem>>, %arg3: memref<1x128xf32, #tpu.memory_space<vmem>>, %arg4: memref<128x128xbf16, #tpu.memory_space<vmem>>, %arg5: memref<1x128xf32, #tpu.memory_space<vmem>>, %arg6: memref<1x128xf32, #tpu.memory_space<vmem>>, %arg7: memref<1x1xf32, #tpu.memory_space<vmem>>, %arg8: memref<1x1xf32, #tpu.memory_space<vmem>>, %arg9: memref<1x1xf32, #tpu.memory_space<vmem>>, %arg10: memref<4x128xf32, #tpu.memory_space<vmem>>, %arg11: memref<2x128xf32, #tpu.memory_space<vmem>>, %arg12: memref<4x1xf32, #tpu.memory_space<vmem>>, %arg13: memref<4x128xf32, #tpu.memory_space<vmem>>) attributes {dimension_semantics = [#tpu.dimension_semantics<arbitrary>], iteration_bounds = array<i64: 2>, scalar_prefetch = 0 : i64, scratch_operands = 1 : i64, tpu.core_type = #tpu.core_type<tc>, window_params = [{pipeline_mode = #tpu.pipeline_mode<synchronous>, transform_indices = @transform_0, window_bounds = array<i64: 4, 128>}, {pipeline_mode = #tpu.pipeline_mode<synchronous>, transform_indices = @transform_1, window_bounds = array<i64: 1, 128>}, {pipeline_mode = #tpu.pipeline_mode<synchronous>, transform_indices = @transform_2, window_bounds = array<i64: 1, 128>}, {transform_indices = @transform_3, window_bounds = array<i64: 128, 128>}, {transform_indices = @transform_4, window_bounds = array<i64: 1, 128>}, {pipeline_mode = #tpu.pipeline_mode<synchronous>, transform_indices = @transform_5, window_bounds = array<i64: 1, 128>}, {pipeline_mode = #tpu.pipeline_mode<synchronous>, transform_indices = @transform_6, window_bounds = array<i64: 1, 1>}, {pipeline_mode = #tpu.pipeline_mode<synchronous>, transform_indices = @transform_7, window_bounds = array<i64: 1, 1>}, {pipeline_mode = #tpu.pipeline_mode<synchronous>, transform_indices = @transform_8, window_bounds = array<i64: 1, 1>}, {transform_indices = @transform_9, window_bounds = array<i64: 4, 128>}, {pipeline_mode = #tpu.pipeline_mode<synchronous>, transform_indices = @transform_10, window_bounds = array<i64: 2, 128>}, {pipeline_mode = #tpu.pipeline_mode<synchronous>, transform_indices = @transform_11, window_bounds = array<i64: 4, 1>}]} {
    %c0_i32 = arith.constant 0 : i32
    %0 = arith.cmpi eq, %arg0, %c0_i32 : i32
    %1 = arith.extui %0 : i1 to i32
    %c0_i32_0 = arith.constant 0 : i32
    %2 = arith.cmpi ne, %1, %c0_i32_0 : i32
    scf.if %2 {
      %c0_10 = arith.constant 0 : index
      %c0_11 = arith.constant 0 : index
      %14 = vector.load %arg1[%c0_10, %c0_11] : memref<4x128xf32, #tpu.memory_space<vmem>>, vector<4x128xf32>
      %c0_12 = arith.constant 0 : index
      %c0_13 = arith.constant 0 : index
      %15 = vector.load %arg2[%c0_12, %c0_13] : memref<1x128xf32, #tpu.memory_space<vmem>>, vector<1x128xf32>
      %c0_14 = arith.constant 0 : index
      %c0_15 = arith.constant 0 : index
      %16 = vector.load %arg3[%c0_14, %c0_15] : memref<1x128xf32, #tpu.memory_space<vmem>>, vector<1x128xf32>
      %cst_16 = arith.constant dense<0.000000e+00> : vector<4xf32>
      %17 = vector.multi_reduction <add>, %14, %cst_16 [1] : vector<4x128xf32> to vector<4xf32>
      %18 = vector.shape_cast %17 : vector<4xf32> to vector<4x1xf32>
      %cst_17 = arith.constant 1.280000e+02 : f32
      %19 = vector.broadcast %cst_17 : f32 to vector<4x1xf32>
      %20 = arith.divf %18, %19 : vector<4x1xf32>
      %21 = vector.broadcast %20 : vector<4x1xf32> to vector<4x128xf32>
      %22 = arith.subf %14, %21 : vector<4x128xf32>
      %23 = arith.mulf %22, %22 : vector<4x128xf32>
      %cst_18 = arith.constant dense<0.000000e+00> : vector<4xf32>
      %24 = vector.multi_reduction <add>, %23, %cst_18 [1] : vector<4x128xf32> to vector<4xf32>
      %25 = vector.shape_cast %24 : vector<4xf32> to vector<4x1xf32>
      %cst_19 = arith.constant 1.280000e+02 : f32
      %26 = vector.broadcast %cst_19 : f32 to vector<4x1xf32>
      %27 = arith.divf %25, %26 : vector<4x1xf32>
      %28 = vector.broadcast %20 : vector<4x1xf32> to vector<4x128xf32>
      %29 = arith.subf %14, %28 : vector<4x128xf32>
      %cst_20 = arith.constant 9.99999974E-6 : f32
      %30 = vector.broadcast %cst_20 : f32 to vector<4x1xf32>
      %31 = arith.addf %27, %30 : vector<4x1xf32>
      %32 = math.rsqrt %31 : vector<4x1xf32>
      %33 = vector.broadcast %32 : vector<4x1xf32> to vector<4x128xf32>
      %34 = arith.mulf %29, %33 : vector<4x128xf32>
      %35 = vector.broadcast %15 : vector<1x128xf32> to vector<4x128xf32>
      %36 = arith.mulf %34, %35 : vector<4x128xf32>
      %37 = vector.broadcast %16 : vector<1x128xf32> to vector<4x128xf32>
      %38 = arith.addf %36, %37 : vector<4x128xf32>
      %c0_21 = arith.constant 0 : index
      %c0_22 = arith.constant 0 : index
      %39 = vector.load %arg13[%c0_21, %c0_22] : memref<4x128xf32, #tpu.memory_space<vmem>>, vector<4x128xf32>
      tpu.vector_store %arg13[%c0_21, %c0_22], %38 {strides = array<i32>} : memref<4x128xf32, #tpu.memory_space<vmem>>, vector<4x128xf32>,
      %c0_23 = arith.constant 0 : index
      %c0_24 = arith.constant 0 : index
      %40 = vector.load %arg6[%c0_23, %c0_24] : memref<1x128xf32, #tpu.memory_space<vmem>>, vector<1x128xf32>
      %41 = vector.broadcast %40 : vector<1x128xf32> to vector<4x128xf32>
      %42 = arith.mulf %38, %41 : vector<4x128xf32>
      %cst_25 = arith.constant dense<0.000000e+00> : vector<4xf32>
      %43 = vector.multi_reduction <add>, %42, %cst_25 [1] : vector<4x128xf32> to vector<4xf32>
      %44 = vector.shape_cast %43 : vector<4xf32> to vector<4x1xf32>
      %c0_26 = arith.constant 0 : index
      %c0_27 = arith.constant 0 : index
      %45 = vector.load %arg7[%c0_26, %c0_27] : memref<1x1xf32, #tpu.memory_space<vmem>>, vector<1x1xf32>
      %46 = vector.broadcast %45 : vector<1x1xf32> to vector<4x1xf32>
      %47 = arith.addf %44, %46 : vector<4x1xf32>
      %48 = math.tanh %47 : vector<4x1xf32>
      %c0_28 = arith.constant 0 : index
      %c0_29 = arith.constant 0 : index
      %49 = vector.load %arg8[%c0_28, %c0_29] : memref<1x1xf32, #tpu.memory_space<vmem>>, vector<1x1xf32>
      %50 = vector.broadcast %49 : vector<1x1xf32> to vector<4x1xf32>
      %51 = arith.mulf %48, %50 : vector<4x1xf32>
      %c0_30 = arith.constant 0 : index
      %c0_31 = arith.constant 0 : index
      %52 = vector.load %arg9[%c0_30, %c0_31] : memref<1x1xf32, #tpu.memory_space<vmem>>, vector<1x1xf32>
      %53 = vector.broadcast %52 : vector<1x1xf32> to vector<4x1xf32>
      %54 = arith.addf %51, %53 : vector<4x1xf32>
      %c0_32 = arith.constant 0 : index
      %c0_33 = arith.constant 0 : index
      %55 = vector.load %arg12[%c0_32, %c0_33] : memref<4x1xf32, #tpu.memory_space<vmem>>, vector<4x1xf32>
      tpu.vector_store %arg12[%c0_32, %c0_33], %54 {strides = array<i32>} : memref<4x1xf32, #tpu.memory_space<vmem>>, vector<4x1xf32>,
    } else {
    }
    %c0 = arith.constant 0 : index
    %c0_1 = arith.constant 0 : index
    %3 = vector.load %arg13[%c0, %c0_1] : memref<4x128xf32, #tpu.memory_space<vmem>>, vector<4x128xf32>
    %4 = arith.truncf %3 : vector<4x128xf32> to vector<4x128xbf16>
    %c0_2 = arith.constant 0 : index
    %c0_3 = arith.constant 0 : index
    %5 = vector.load %arg4[%c0_2, %c0_3] : memref<128x128xbf16, #tpu.memory_space<vmem>>, vector<128x128xbf16>
    %cst = arith.constant dense<0.000000e+00> : vector<4x128xf32>
    %6 = tpu.matmul %4, %5, %cst {dimension_numbers = #tpu.dot_dimension_numbers<[1], [0], [0], [1], [0, 0, 1, 1], [], []>} : vector<4x128xbf16>, vector<128x128xbf16>, vector<4x128xf32> -> vector<4x128xf32>
    %c0_4 = arith.constant 0 : index
    %c0_5 = arith.constant 0 : index
    %7 = vector.load %arg5[%c0_4, %c0_5] : memref<1x128xf32, #tpu.memory_space<vmem>>, vector<1x128xf32>
    %8 = vector.broadcast %7 : vector<1x128xf32> to vector<4x128xf32>
    %9 = arith.addf %6, %8 : vector<4x128xf32>
    %c0_6 = arith.constant 0 : index
    %c0_7 = arith.constant 0 : index
    %10 = vector.load %arg10[%c0_6, %c0_7] : memref<4x128xf32, #tpu.memory_space<vmem>>, vector<4x128xf32>
    tpu.vector_store %arg10[%c0_6, %c0_7], %9 {strides = array<i32>} : memref<4x128xf32, #tpu.memory_space<vmem>>, vector<4x128xf32>,
    %c0_i32_8 = arith.constant 0 : i32
    %11 = arith.cmpi eq, %arg0, %c0_i32_8 : i32
    %12 = arith.extui %11 : i1 to i32
    %c0_i32_9 = arith.constant 0 : i32
    %13 = arith.cmpi ne, %12, %c0_i32_9 : i32
    scf.if %13 {
      %14 = vector.extract_strided_slice %9 {offsets = [0, 0], sizes = [2, 128], strides = [1, 1]} : vector<4x128xf32> to vector<2x128xf32>
      %cst_10 = arith.constant -1.500000e+01 : f32
      %15 = vector.broadcast %cst_10 : f32 to vector<2x128xf32>
      %16 = arith.mulf %14, %15 : vector<2x128xf32>
      %17 = vector.extract_strided_slice %9 {offsets = [2, 0], sizes = [2, 128], strides = [1, 1]} : vector<4x128xf32> to vector<2x128xf32>
      %cst_11 = arith.constant 1.600000e+01 : f32
      %18 = vector.broadcast %cst_11 : f32 to vector<2x128xf32>
      %19 = arith.mulf %17, %18 : vector<2x128xf32>
      %20 = arith.addf %16, %19 : vector<2x128xf32>
      %c0_12 = arith.constant 0 : index
      %c0_13 = arith.constant 0 : index
      %21 = vector.load %arg11[%c0_12, %c0_13] : memref<2x128xf32, #tpu.memory_space<vmem>>, vector<2x128xf32>
      tpu.vector_store %arg11[%c0_12, %c0_13], %20 {strides = array<i32>} : memref<2x128xf32, #tpu.memory_space<vmem>>, vector<2x128xf32>,
    } else {
    }
    return
  }
  func.func @transform_0(%arg0: i32) -> (i32, i32) {
    %c0_i32 = arith.constant 0 : i32
    %c0_i32_0 = arith.constant 0 : i32
    %c0_i32_1 = arith.constant 0 : i32
    return %c0_i32, %c0_i32_0 : i32, i32
  }
  func.func @transform_1(%arg0: i32) -> (i32, i32) {
    %c0_i32 = arith.constant 0 : i32
    %c0_i32_0 = arith.constant 0 : i32
    %c0_i32_1 = arith.constant 0 : i32
    return %c0_i32, %c0_i32_0 : i32, i32
  }
  func.func @transform_2(%arg0: i32) -> (i32, i32) {
    %c0_i32 = arith.constant 0 : i32
    %c0_i32_0 = arith.constant 0 : i32
    %c0_i32_1 = arith.constant 0 : i32
    return %c0_i32, %c0_i32_0 : i32, i32
  }
  func.func @transform_3(%arg0: i32) -> (i32, i32) {
    %c0_i32 = arith.constant 0 : i32
    %c0_i32_0 = arith.constant 0 : i32
    return %c0_i32, %arg0 : i32, i32
  }
  func.func @transform_4(%arg0: i32) -> (i32, i32) {
    %c0_i32 = arith.constant 0 : i32
    %c0_i32_0 = arith.constant 0 : i32
    return %c0_i32, %arg0 : i32, i32
  }
  func.func @transform_5(%arg0: i32) -> (i32, i32) {
    %c0_i32 = arith.constant 0 : i32
    %c0_i32_0 = arith.constant 0 : i32
    %c0_i32_1 = arith.constant 0 : i32
    return %c0_i32, %c0_i32_0 : i32, i32
  }
  func.func @transform_6(%arg0: i32) -> (i32, i32) {
    %c0_i32 = arith.constant 0 : i32
    %c0_i32_0 = arith.constant 0 : i32
    %c0_i32_1 = arith.constant 0 : i32
    return %c0_i32, %c0_i32_0 : i32, i32
  }
  func.func @transform_7(%arg0: i32) -> (i32, i32) {
    %c0_i32 = arith.constant 0 : i32
    %c0_i32_0 = arith.constant 0 : i32
    %c0_i32_1 = arith.constant 0 : i32
    return %c0_i32, %c0_i32_0 : i32, i32
  }
  func.func @transform_8(%arg0: i32) -> (i32, i32) {
    %c0_i32 = arith.constant 0 : i32
    %c0_i32_0 = arith.constant 0 : i32
    %c0_i32_1 = arith.constant 0 : i32
    return %c0_i32, %c0_i32_0 : i32, i32
  }
  func.func @transform_9(%arg0: i32) -> (i32, i32) {
    %c0_i32 = arith.constant 0 : i32
    %c0_i32_0 = arith.constant 0 : i32
    return %c0_i32, %arg0 : i32, i32
  }
  func.func @transform_10(%arg0: i32) -> (i32, i32) {
    %c0_i32 = arith.constant 0 : i32
    %c0_i32_0 = arith.constant 0 : i32
    %c0_i32_1 = arith.constant 0 : i32
    return %c0_i32, %c0_i32_0 : i32, i32
  }
  func.func @transform_11(%arg0: i32) -> (i32, i32) {
    %c0_i32 = arith.constant 0 : i32
    %c0_i32_0 = arith.constant 0 : i32
    %c0_i32_1 = arith.constant 0 : i32
    return %c0_i32, %c0_i32_0 : i32, i32
  }
}

module attributes {stable_mosaic.version = 11 : i64} {
  func.func @_decoder_layer_kernel(%arg0: i32, %arg1: memref<1xi32, #tpu.memory_space<smem>>, %arg2: memref<4x128xf32, #tpu.memory_space<vmem>>, %arg3: memref<8x2x4x128xf32, #tpu.memory_space<any>>, %arg4: memref<4x16x256xf32, #tpu.memory_space<vmem>>, %arg5: memref<4x16xf32, #tpu.memory_space<vmem>>, %arg6: memref<5x128xf32, #tpu.memory_space<vmem>>, %arg7: memref<5x128xf32, #tpu.memory_space<vmem>>, %arg8: memref<128x384xbf16, #tpu.memory_space<vmem>>, %arg9: memref<1x384xf32, #tpu.memory_space<vmem>>, %arg10: memref<128x128xbf16, #tpu.memory_space<vmem>>, %arg11: memref<1x128xf32, #tpu.memory_space<vmem>>, %arg12: memref<128x128xbf16, #tpu.memory_space<vmem>>, %arg13: memref<1x128xf32, #tpu.memory_space<vmem>>, %arg14: memref<128x128xbf16, #tpu.memory_space<vmem>>, %arg15: memref<1x128xf32, #tpu.memory_space<vmem>>, %arg16: memref<128x512xbf16, #tpu.memory_space<vmem>>, %arg17: memref<1x512xf32, #tpu.memory_space<vmem>>, %arg18: memref<1x256xf32, #tpu.memory_space<vmem>>, %arg19: memref<1x256xf32, #tpu.memory_space<vmem>>, %arg20: memref<256x128xbf16, #tpu.memory_space<vmem>>, %arg21: memref<1x128xf32, #tpu.memory_space<vmem>>, %arg22: memref<4x128xf32, #tpu.memory_space<vmem>>, %arg23: memref<8x2x4x128xf32, #tpu.memory_space<any>>, %arg24: memref<1x2x4x128xf32, #tpu.memory_space<vmem>>, %arg25: memref<8x2x4x128xf32, #tpu.memory_space<vmem>>, %arg26: memref<2x!tpu.dma_semaphore, #tpu.memory_space<semaphore_mem>>) attributes {dimension_semantics = [#tpu.dimension_semantics<arbitrary>], iteration_bounds = array<i64: 1>, scalar_prefetch = 1 : i64, scratch_operands = 2 : i64, tpu.core_type = #tpu.core_type<tc>, window_params = [{pipeline_mode = #tpu.pipeline_mode<synchronous>, transform_indices = @transform_0, window_bounds = array<i64: 4, 128>}, {}, {pipeline_mode = #tpu.pipeline_mode<synchronous>, transform_indices = @transform_2, window_bounds = array<i64: 4, 16, 256>}, {pipeline_mode = #tpu.pipeline_mode<synchronous>, transform_indices = @transform_3, window_bounds = array<i64: 4, 16>}, {pipeline_mode = #tpu.pipeline_mode<synchronous>, transform_indices = @transform_4, window_bounds = array<i64: 5, 128>}, {pipeline_mode = #tpu.pipeline_mode<synchronous>, transform_indices = @transform_5, window_bounds = array<i64: 5, 128>}, {pipeline_mode = #tpu.pipeline_mode<synchronous>, transform_indices = @transform_6, window_bounds = array<i64: 128, 384>}, {pipeline_mode = #tpu.pipeline_mode<synchronous>, transform_indices = @transform_7, window_bounds = array<i64: 1, 384>}, {pipeline_mode = #tpu.pipeline_mode<synchronous>, transform_indices = @transform_8, window_bounds = array<i64: 128, 128>}, {pipeline_mode = #tpu.pipeline_mode<synchronous>, transform_indices = @transform_9, window_bounds = array<i64: 1, 128>}, {pipeline_mode = #tpu.pipeline_mode<synchronous>, transform_indices = @transform_10, window_bounds = array<i64: 128, 128>}, {pipeline_mode = #tpu.pipeline_mode<synchronous>, transform_indices = @transform_11, window_bounds = array<i64: 1, 128>}, {pipeline_mode = #tpu.pipeline_mode<synchronous>, transform_indices = @transform_12, window_bounds = array<i64: 128, 128>}, {pipeline_mode = #tpu.pipeline_mode<synchronous>, transform_indices = @transform_13, window_bounds = array<i64: 1, 128>}, {pipeline_mode = #tpu.pipeline_mode<synchronous>, transform_indices = @transform_14, window_bounds = array<i64: 128, 512>}, {pipeline_mode = #tpu.pipeline_mode<synchronous>, transform_indices = @transform_15, window_bounds = array<i64: 1, 512>}, {pipeline_mode = #tpu.pipeline_mode<synchronous>, transform_indices = @transform_16, window_bounds = array<i64: 1, 256>}, {pipeline_mode = #tpu.pipeline_mode<synchronous>, transform_indices = @transform_17, window_bounds = array<i64: 1, 256>}, {pipeline_mode = #tpu.pipeline_mode<synchronous>, transform_indices = @transform_18, window_bounds = array<i64: 256, 128>}, {pipeline_mode = #tpu.pipeline_mode<synchronous>, transform_indices = @transform_19, window_bounds = array<i64: 1, 128>}, {pipeline_mode = #tpu.pipeline_mode<synchronous>, transform_indices = @transform_20, window_bounds = array<i64: 4, 128>}, {}, {pipeline_mode = #tpu.pipeline_mode<synchronous>, transform_indices = @transform_22, window_bounds = array<i64: 1, 2, 4, 128>}]} {
    %c0 = arith.constant 0 : index
    %0 = memref.load %arg1[%c0] : memref<1xi32, #tpu.memory_space<smem>>
    %c0_i32 = arith.constant 0 : i32
    %1 = tpu.memref_slice %arg26[%c0_i32] : memref<2x!tpu.dma_semaphore, #tpu.memory_space<semaphore_mem>> -> memref<1x!tpu.dma_semaphore, #tpu.memory_space<semaphore_mem>>
    %2 = tpu.memref_squeeze %1 : memref<1x!tpu.dma_semaphore, #tpu.memory_space<semaphore_mem>> -> memref<!tpu.dma_semaphore, #tpu.memory_space<semaphore_mem>>
    tpu.enqueue_dma source(%arg3 : memref<8x2x4x128xf32, #tpu.memory_space<any>>) target(%arg25 : memref<8x2x4x128xf32, #tpu.memory_space<vmem>>) target_semaphore(%2 : memref<!tpu.dma_semaphore, #tpu.memory_space<semaphore_mem>>)
    %c0_0 = arith.constant 0 : index
    %c0_1 = arith.constant 0 : index
    %3 = vector.load %arg2[%c0_0, %c0_1] : memref<4x128xf32, #tpu.memory_space<vmem>>, vector<4x128xf32>
    %c0_2 = arith.constant 0 : index
    %c0_3 = arith.constant 0 : index
    %4 = vector.load %arg6[%c0_2, %c0_3] : memref<5x128xf32, #tpu.memory_space<vmem>>, vector<1x128xf32>
    %c0_4 = arith.constant 0 : index
    %c0_5 = arith.constant 0 : index
    %5 = vector.load %arg7[%c0_4, %c0_5] : memref<5x128xf32, #tpu.memory_space<vmem>>, vector<1x128xf32>
    %cst = arith.constant dense<0.000000e+00> : vector<4xf32>
    %6 = vector.multi_reduction <add>, %3, %cst [1] : vector<4x128xf32> to vector<4xf32>
    %7 = vector.shape_cast %6 : vector<4xf32> to vector<4x1xf32>
    %cst_6 = arith.constant 1.280000e+02 : f32
    %8 = vector.broadcast %cst_6 : f32 to vector<4x1xf32>
    %9 = arith.divf %7, %8 : vector<4x1xf32>
    %10 = vector.broadcast %9 : vector<4x1xf32> to vector<4x128xf32>
    %11 = arith.subf %3, %10 : vector<4x128xf32>
    %12 = arith.mulf %11, %11 : vector<4x128xf32>
    %cst_7 = arith.constant dense<0.000000e+00> : vector<4xf32>
    %13 = vector.multi_reduction <add>, %12, %cst_7 [1] : vector<4x128xf32> to vector<4xf32>
    %14 = vector.shape_cast %13 : vector<4xf32> to vector<4x1xf32>
    %cst_8 = arith.constant 1.280000e+02 : f32
    %15 = vector.broadcast %cst_8 : f32 to vector<4x1xf32>
    %16 = arith.divf %14, %15 : vector<4x1xf32>
    %17 = vector.broadcast %9 : vector<4x1xf32> to vector<4x128xf32>
    %18 = arith.subf %3, %17 : vector<4x128xf32>
    %cst_9 = arith.constant 9.99999974E-6 : f32
    %19 = vector.broadcast %cst_9 : f32 to vector<4x1xf32>
    %20 = arith.addf %16, %19 : vector<4x1xf32>
    %21 = math.rsqrt %20 : vector<4x1xf32>
    %22 = vector.broadcast %21 : vector<4x1xf32> to vector<4x128xf32>
    %23 = arith.mulf %18, %22 : vector<4x128xf32>
    %24 = vector.broadcast %4 : vector<1x128xf32> to vector<4x128xf32>
    %25 = arith.mulf %23, %24 : vector<4x128xf32>
    %26 = vector.broadcast %5 : vector<1x128xf32> to vector<4x128xf32>
    %27 = arith.addf %25, %26 : vector<4x128xf32>
    %28 = arith.truncf %27 : vector<4x128xf32> to vector<4x128xbf16>
    %c0_10 = arith.constant 0 : index
    %c0_11 = arith.constant 0 : index
    %29 = vector.load %arg8[%c0_10, %c0_11] : memref<128x384xbf16, #tpu.memory_space<vmem>>, vector<128x384xbf16>
    %cst_12 = arith.constant dense<0.000000e+00> : vector<4x384xf32>
    %30 = tpu.matmul %28, %29, %cst_12 {dimension_numbers = #tpu.dot_dimension_numbers<[1], [0], [0], [1], [0, 0, 1, 1], [], []>} : vector<4x128xbf16>, vector<128x384xbf16>, vector<4x384xf32> -> vector<4x384xf32>
    %c0_13 = arith.constant 0 : index
    %c0_14 = arith.constant 0 : index
    %31 = vector.load %arg9[%c0_13, %c0_14] : memref<1x384xf32, #tpu.memory_space<vmem>>, vector<1x384xf32>
    %32 = vector.broadcast %31 : vector<1x384xf32> to vector<4x384xf32>
    %33 = arith.addf %30, %32 : vector<4x384xf32>
    %34 = vector.extract_strided_slice %33 {offsets = [0, 0], sizes = [4, 128], strides = [1, 1]} : vector<4x384xf32> to vector<4x128xf32>
    %35 = vector.extract_strided_slice %33 {offsets = [0, 128], sizes = [4, 128], strides = [1, 1]} : vector<4x384xf32> to vector<4x128xf32>
    %36 = vector.extract_strided_slice %33 {offsets = [0, 256], sizes = [4, 128], strides = [1, 1]} : vector<4x384xf32> to vector<4x128xf32>
    %c0_15 = arith.constant 0 : index
    %c0_16 = arith.constant 0 : index
    %c0_17 = arith.constant 0 : index
    %c0_18 = arith.constant 0 : index
    %37 = vector.load %arg24[%c0_15, %c0_16, %c0_17, %c0_18] : memref<1x2x4x128xf32, #tpu.memory_space<vmem>>, vector<1x1x4x128xf32>
    %38 = vector.shape_cast %37 : vector<1x1x4x128xf32> to vector<4x128xf32>
    %39 = vector.shape_cast %35 : vector<4x128xf32> to vector<1x1x4x128xf32>
    tpu.vector_store %arg24[%c0_15, %c0_16, %c0_17, %c0_18], %39 {strides = array<i32>} : memref<1x2x4x128xf32, #tpu.memory_space<vmem>>, vector<1x1x4x128xf32>,
    %c0_19 = arith.constant 0 : index
    %c1 = arith.constant 1 : index
    %c0_20 = arith.constant 0 : index
    %c0_21 = arith.constant 0 : index
    %40 = vector.load %arg24[%c0_19, %c1, %c0_20, %c0_21] : memref<1x2x4x128xf32, #tpu.memory_space<vmem>>, vector<1x1x4x128xf32>
    %41 = vector.shape_cast %40 : vector<1x1x4x128xf32> to vector<4x128xf32>
    %42 = vector.shape_cast %36 : vector<4x128xf32> to vector<1x1x4x128xf32>
    tpu.vector_store %arg24[%c0_19, %c1, %c0_20, %c0_21], %42 {strides = array<i32>} : memref<1x2x4x128xf32, #tpu.memory_space<vmem>>, vector<1x1x4x128xf32>,
    %c0_i32_22 = arith.constant 0 : i32
    %43 = tpu.memref_slice %arg26[%c0_i32_22] : memref<2x!tpu.dma_semaphore, #tpu.memory_space<semaphore_mem>> -> memref<1x!tpu.dma_semaphore, #tpu.memory_space<semaphore_mem>>
    %44 = tpu.memref_squeeze %43 : memref<1x!tpu.dma_semaphore, #tpu.memory_space<semaphore_mem>> -> memref<!tpu.dma_semaphore, #tpu.memory_space<semaphore_mem>>
    tpu.wait_dma2 semaphore(%44 : memref<!tpu.dma_semaphore, #tpu.memory_space<semaphore_mem>>) src(%arg3 : memref<8x2x4x128xf32, #tpu.memory_space<any>>) dst(%arg25 : memref<8x2x4x128xf32, #tpu.memory_space<vmem>>)
    %c1_i32 = arith.constant 1 : i32
    %c0_i32_23 = arith.constant 0 : i32
    %c0_i32_24 = arith.constant 0 : i32
    %c0_i32_25 = arith.constant 0 : i32
    %45 = tpu.memref_slice %arg23[%0, %c0_i32_23, %c0_i32_24, %c0_i32_25] : memref<8x2x4x128xf32, #tpu.memory_space<any>> -> memref<1x2x4x128xf32, #tpu.memory_space<any>>
    %46 = tpu.memref_slice %arg26[%c1_i32] : memref<2x!tpu.dma_semaphore, #tpu.memory_space<semaphore_mem>> -> memref<1x!tpu.dma_semaphore, #tpu.memory_space<semaphore_mem>>
    %47 = tpu.memref_squeeze %46 : memref<1x!tpu.dma_semaphore, #tpu.memory_space<semaphore_mem>> -> memref<!tpu.dma_semaphore, #tpu.memory_space<semaphore_mem>>
    tpu.enqueue_dma source(%arg24 : memref<1x2x4x128xf32, #tpu.memory_space<vmem>>) target(%45 : memref<1x2x4x128xf32, #tpu.memory_space<any>>) target_semaphore(%47 : memref<!tpu.dma_semaphore, #tpu.memory_space<semaphore_mem>>)
    %c0_26 = arith.constant 0 : index
    %c0_27 = arith.constant 0 : index
    %c0_28 = arith.constant 0 : index
    %c0_29 = arith.constant 0 : index
    %48 = vector.load %arg25[%c0_26, %c0_27, %c0_28, %c0_29] : memref<8x2x4x128xf32, #tpu.memory_space<vmem>>, vector<8x2x4x128xf32>
    %49 = tpu.iota {dimensions = array<i32: 0>} : vector<8x1xi32>
    %50 = vector.broadcast %0 : i32 to vector<8x1xi32>
    %51 = arith.cmpi eq, %49, %50 : vector<8x1xi32>
    %52 = vector.shape_cast %51 : vector<8x1xi1> to vector<8x1x1xi1>
    %53 = vector.shape_cast %35 : vector<4x128xf32> to vector<1x4x128xf32>
    %54 = vector.extract_strided_slice %48 {offsets = [0, 0, 0, 0], sizes = [8, 1, 4, 128], strides = [1, 1, 1, 1]} : vector<8x2x4x128xf32> to vector<8x1x4x128xf32>
    %55 = vector.shape_cast %54 : vector<8x1x4x128xf32> to vector<8x4x128xf32>
    %56 = vector.shape_cast %52 : vector<8x1x1xi1> to vector<8x1x1xi1>
    %57 = vector.broadcast %56 : vector<8x1x1xi1> to vector<8x4x128xi1>
    %58 = vector.shape_cast %53 : vector<1x4x128xf32> to vector<1x4x128xf32>
    %59 = vector.broadcast %58 : vector<1x4x128xf32> to vector<8x4x128xf32>
    %60 = arith.select %57, %59, %55 : vector<8x4x128xi1>, vector<8x4x128xf32>
    %61 = vector.shape_cast %36 : vector<4x128xf32> to vector<1x4x128xf32>
    %62 = vector.extract_strided_slice %48 {offsets = [0, 1, 0, 0], sizes = [8, 1, 4, 128], strides = [1, 1, 1, 1]} : vector<8x2x4x128xf32> to vector<8x1x4x128xf32>
    %63 = vector.shape_cast %62 : vector<8x1x4x128xf32> to vector<8x4x128xf32>
    %64 = vector.shape_cast %52 : vector<8x1x1xi1> to vector<8x1x1xi1>
    %65 = vector.broadcast %64 : vector<8x1x1xi1> to vector<8x4x128xi1>
    %66 = vector.shape_cast %61 : vector<1x4x128xf32> to vector<1x4x128xf32>
    %67 = vector.broadcast %66 : vector<1x4x128xf32> to vector<8x4x128xf32>
    %68 = arith.select %65, %67, %63 : vector<8x4x128xi1>, vector<8x4x128xf32>
    %69 = vector.broadcast %0 : i32 to vector<8x1xi32>
    %70 = arith.cmpi sle, %49, %69 : vector<8x1xi32>
    %cst_30 = arith.constant 0.000000e+00 : f32
    %71 = vector.broadcast %cst_30 : f32 to vector<4x128xf32>
    %72 = vector.extract_strided_slice %60 {offsets = [0, 0, 0], sizes = [8, 4, 32], strides = [1, 1, 1]} : vector<8x4x128xf32> to vector<8x4x32xf32>
    %73 = vector.extract_strided_slice %34 {offsets = [0, 0], sizes = [4, 32], strides = [1, 1]} : vector<4x128xf32> to vector<4x32xf32>
    %74 = vector.shape_cast %73 : vector<4x32xf32> to vector<1x4x32xf32>
    %75 = vector.broadcast %74 : vector<1x4x32xf32> to vector<8x4x32xf32>
    %76 = arith.mulf %72, %75 : vector<8x4x32xf32>
    %cst_31 = arith.constant dense<0.000000e+00> : vector<8x4xf32>
    %77 = vector.multi_reduction <add>, %76, %cst_31 [2] : vector<8x4x32xf32> to vector<8x4xf32>
    %cst_32 = arith.constant -1.000000e+09 : f32
    %78 = vector.shape_cast %70 : vector<8x1xi1> to vector<8x1xi1>
    %79 = vector.broadcast %78 : vector<8x1xi1> to vector<8x4xi1>
    %80 = vector.broadcast %cst_32 : f32 to vector<8x4xf32>
    %81 = arith.select %79, %77, %80 : vector<8x4xi1>, vector<8x4xf32>
    %cst_33 = arith.constant dense<0xFF800000> : vector<4xf32>
    %82 = vector.multi_reduction <maximumf>, %81, %cst_33 [0] : vector<8x4xf32> to vector<4xf32>
    %83 = vector.shape_cast %82 : vector<4xf32> to vector<1x4xf32>
    %84 = vector.broadcast %83 : vector<1x4xf32> to vector<8x4xf32>
    %85 = arith.subf %81, %84 : vector<8x4xf32>
    %86 = math.exp %85 : vector<8x4xf32>
    %cst_34 = arith.constant dense<0.000000e+00> : vector<4xf32>
    %87 = vector.multi_reduction <add>, %86, %cst_34 [0] : vector<8x4xf32> to vector<4xf32>
    %88 = vector.shape_cast %87 : vector<4xf32> to vector<1x4xf32>
    %89 = tpu.reciprocal %88 {approx = true} : vector<1x4xf32> -> vector<1x4xf32>
    %90 = vector.broadcast %89 : vector<1x4xf32> to vector<8x4xf32>
    %91 = arith.mulf %86, %90 : vector<8x4xf32>
    %92 = vector.shape_cast %91 : vector<8x4xf32> to vector<8x4x1xf32>
    %93 = vector.extract_strided_slice %68 {offsets = [0, 0, 0], sizes = [8, 4, 32], strides = [1, 1, 1]} : vector<8x4x128xf32> to vector<8x4x32xf32>
    %94 = vector.broadcast %92 : vector<8x4x1xf32> to vector<8x4x32xf32>
    %95 = arith.mulf %94, %93 : vector<8x4x32xf32>
    %cst_35 = arith.constant dense<0.000000e+00> : vector<4x32xf32>
    %96 = vector.multi_reduction <add>, %95, %cst_35 [0] : vector<8x4x32xf32> to vector<4x32xf32>
    %97 = arith.truncf %96 : vector<4x32xf32> to vector<4x32xbf16>
    %c0_36 = arith.constant 0 : index
    %c0_37 = arith.constant 0 : index
    %98 = vector.load %arg10[%c0_36, %c0_37] : memref<128x128xbf16, #tpu.memory_space<vmem>>, vector<32x128xbf16>
    %cst_38 = arith.constant dense<0.000000e+00> : vector<4x128xf32>
    %99 = tpu.matmul %97, %98, %cst_38 {dimension_numbers = #tpu.dot_dimension_numbers<[1], [0], [0], [1], [0, 0, 1, 1], [], []>} : vector<4x32xbf16>, vector<32x128xbf16>, vector<4x128xf32> -> vector<4x128xf32>
    %100 = arith.addf %71, %99 : vector<4x128xf32>
    %101 = vector.extract_strided_slice %60 {offsets = [0, 0, 32], sizes = [8, 4, 32], strides = [1, 1, 1]} : vector<8x4x128xf32> to vector<8x4x32xf32>
    %102 = vector.extract_strided_slice %34 {offsets = [0, 32], sizes = [4, 32], strides = [1, 1]} : vector<4x128xf32> to vector<4x32xf32>
    %103 = vector.shape_cast %102 : vector<4x32xf32> to vector<1x4x32xf32>
    %104 = vector.broadcast %103 : vector<1x4x32xf32> to vector<8x4x32xf32>
    %105 = arith.mulf %101, %104 : vector<8x4x32xf32>
    %cst_39 = arith.constant dense<0.000000e+00> : vector<8x4xf32>
    %106 = vector.multi_reduction <add>, %105, %cst_39 [2] : vector<8x4x32xf32> to vector<8x4xf32>
    %cst_40 = arith.constant -1.000000e+09 : f32
    %107 = vector.shape_cast %70 : vector<8x1xi1> to vector<8x1xi1>
    %108 = vector.broadcast %107 : vector<8x1xi1> to vector<8x4xi1>
    %109 = vector.broadcast %cst_40 : f32 to vector<8x4xf32>
    %110 = arith.select %108, %106, %109 : vector<8x4xi1>, vector<8x4xf32>
    %cst_41 = arith.constant dense<0xFF800000> : vector<4xf32>
    %111 = vector.multi_reduction <maximumf>, %110, %cst_41 [0] : vector<8x4xf32> to vector<4xf32>
    %112 = vector.shape_cast %111 : vector<4xf32> to vector<1x4xf32>
    %113 = vector.broadcast %112 : vector<1x4xf32> to vector<8x4xf32>
    %114 = arith.subf %110, %113 : vector<8x4xf32>
    %115 = math.exp %114 : vector<8x4xf32>
    %cst_42 = arith.constant dense<0.000000e+00> : vector<4xf32>
    %116 = vector.multi_reduction <add>, %115, %cst_42 [0] : vector<8x4xf32> to vector<4xf32>
    %117 = vector.shape_cast %116 : vector<4xf32> to vector<1x4xf32>
    %118 = tpu.reciprocal %117 {approx = true} : vector<1x4xf32> -> vector<1x4xf32>
    %119 = vector.broadcast %118 : vector<1x4xf32> to vector<8x4xf32>
    %120 = arith.mulf %115, %119 : vector<8x4xf32>
    %121 = vector.shape_cast %120 : vector<8x4xf32> to vector<8x4x1xf32>
    %122 = vector.extract_strided_slice %68 {offsets = [0, 0, 32], sizes = [8, 4, 32], strides = [1, 1, 1]} : vector<8x4x128xf32> to vector<8x4x32xf32>
    %123 = vector.broadcast %121 : vector<8x4x1xf32> to vector<8x4x32xf32>
    %124 = arith.mulf %123, %122 : vector<8x4x32xf32>
    %cst_43 = arith.constant dense<0.000000e+00> : vector<4x32xf32>
    %125 = vector.multi_reduction <add>, %124, %cst_43 [0] : vector<8x4x32xf32> to vector<4x32xf32>
    %126 = arith.truncf %125 : vector<4x32xf32> to vector<4x32xbf16>
    %c32 = arith.constant 32 : index
    %c0_44 = arith.constant 0 : index
    %127 = vector.load %arg10[%c32, %c0_44] : memref<128x128xbf16, #tpu.memory_space<vmem>>, vector<32x128xbf16>
    %cst_45 = arith.constant dense<0.000000e+00> : vector<4x128xf32>
    %128 = tpu.matmul %126, %127, %cst_45 {dimension_numbers = #tpu.dot_dimension_numbers<[1], [0], [0], [1], [0, 0, 1, 1], [], []>} : vector<4x32xbf16>, vector<32x128xbf16>, vector<4x128xf32> -> vector<4x128xf32>
    %129 = arith.addf %100, %128 : vector<4x128xf32>
    %130 = vector.extract_strided_slice %60 {offsets = [0, 0, 64], sizes = [8, 4, 32], strides = [1, 1, 1]} : vector<8x4x128xf32> to vector<8x4x32xf32>
    %131 = vector.extract_strided_slice %34 {offsets = [0, 64], sizes = [4, 32], strides = [1, 1]} : vector<4x128xf32> to vector<4x32xf32>
    %132 = vector.shape_cast %131 : vector<4x32xf32> to vector<1x4x32xf32>
    %133 = vector.broadcast %132 : vector<1x4x32xf32> to vector<8x4x32xf32>
    %134 = arith.mulf %130, %133 : vector<8x4x32xf32>
    %cst_46 = arith.constant dense<0.000000e+00> : vector<8x4xf32>
    %135 = vector.multi_reduction <add>, %134, %cst_46 [2] : vector<8x4x32xf32> to vector<8x4xf32>
    %cst_47 = arith.constant -1.000000e+09 : f32
    %136 = vector.shape_cast %70 : vector<8x1xi1> to vector<8x1xi1>
    %137 = vector.broadcast %136 : vector<8x1xi1> to vector<8x4xi1>
    %138 = vector.broadcast %cst_47 : f32 to vector<8x4xf32>
    %139 = arith.select %137, %135, %138 : vector<8x4xi1>, vector<8x4xf32>
    %cst_48 = arith.constant dense<0xFF800000> : vector<4xf32>
    %140 = vector.multi_reduction <maximumf>, %139, %cst_48 [0] : vector<8x4xf32> to vector<4xf32>
    %141 = vector.shape_cast %140 : vector<4xf32> to vector<1x4xf32>
    %142 = vector.broadcast %141 : vector<1x4xf32> to vector<8x4xf32>
    %143 = arith.subf %139, %142 : vector<8x4xf32>
    %144 = math.exp %143 : vector<8x4xf32>
    %cst_49 = arith.constant dense<0.000000e+00> : vector<4xf32>
    %145 = vector.multi_reduction <add>, %144, %cst_49 [0] : vector<8x4xf32> to vector<4xf32>
    %146 = vector.shape_cast %145 : vector<4xf32> to vector<1x4xf32>
    %147 = tpu.reciprocal %146 {approx = true} : vector<1x4xf32> -> vector<1x4xf32>
    %148 = vector.broadcast %147 : vector<1x4xf32> to vector<8x4xf32>
    %149 = arith.mulf %144, %148 : vector<8x4xf32>
    %150 = vector.shape_cast %149 : vector<8x4xf32> to vector<8x4x1xf32>
    %151 = vector.extract_strided_slice %68 {offsets = [0, 0, 64], sizes = [8, 4, 32], strides = [1, 1, 1]} : vector<8x4x128xf32> to vector<8x4x32xf32>
    %152 = vector.broadcast %150 : vector<8x4x1xf32> to vector<8x4x32xf32>
    %153 = arith.mulf %152, %151 : vector<8x4x32xf32>
    %cst_50 = arith.constant dense<0.000000e+00> : vector<4x32xf32>
    %154 = vector.multi_reduction <add>, %153, %cst_50 [0] : vector<8x4x32xf32> to vector<4x32xf32>
    %155 = arith.truncf %154 : vector<4x32xf32> to vector<4x32xbf16>
    %c64 = arith.constant 64 : index
    %c0_51 = arith.constant 0 : index
    %156 = vector.load %arg10[%c64, %c0_51] : memref<128x128xbf16, #tpu.memory_space<vmem>>, vector<32x128xbf16>
    %cst_52 = arith.constant dense<0.000000e+00> : vector<4x128xf32>
    %157 = tpu.matmul %155, %156, %cst_52 {dimension_numbers = #tpu.dot_dimension_numbers<[1], [0], [0], [1], [0, 0, 1, 1], [], []>} : vector<4x32xbf16>, vector<32x128xbf16>, vector<4x128xf32> -> vector<4x128xf32>
    %158 = arith.addf %129, %157 : vector<4x128xf32>
    %159 = vector.extract_strided_slice %60 {offsets = [0, 0, 96], sizes = [8, 4, 32], strides = [1, 1, 1]} : vector<8x4x128xf32> to vector<8x4x32xf32>
    %160 = vector.extract_strided_slice %34 {offsets = [0, 96], sizes = [4, 32], strides = [1, 1]} : vector<4x128xf32> to vector<4x32xf32>
    %161 = vector.shape_cast %160 : vector<4x32xf32> to vector<1x4x32xf32>
    %162 = vector.broadcast %161 : vector<1x4x32xf32> to vector<8x4x32xf32>
    %163 = arith.mulf %159, %162 : vector<8x4x32xf32>
    %cst_53 = arith.constant dense<0.000000e+00> : vector<8x4xf32>
    %164 = vector.multi_reduction <add>, %163, %cst_53 [2] : vector<8x4x32xf32> to vector<8x4xf32>
    %cst_54 = arith.constant -1.000000e+09 : f32
    %165 = vector.shape_cast %70 : vector<8x1xi1> to vector<8x1xi1>
    %166 = vector.broadcast %165 : vector<8x1xi1> to vector<8x4xi1>
    %167 = vector.broadcast %cst_54 : f32 to vector<8x4xf32>
    %168 = arith.select %166, %164, %167 : vector<8x4xi1>, vector<8x4xf32>
    %cst_55 = arith.constant dense<0xFF800000> : vector<4xf32>
    %169 = vector.multi_reduction <maximumf>, %168, %cst_55 [0] : vector<8x4xf32> to vector<4xf32>
    %170 = vector.shape_cast %169 : vector<4xf32> to vector<1x4xf32>
    %171 = vector.broadcast %170 : vector<1x4xf32> to vector<8x4xf32>
    %172 = arith.subf %168, %171 : vector<8x4xf32>
    %173 = math.exp %172 : vector<8x4xf32>
    %cst_56 = arith.constant dense<0.000000e+00> : vector<4xf32>
    %174 = vector.multi_reduction <add>, %173, %cst_56 [0] : vector<8x4xf32> to vector<4xf32>
    %175 = vector.shape_cast %174 : vector<4xf32> to vector<1x4xf32>
    %176 = tpu.reciprocal %175 {approx = true} : vector<1x4xf32> -> vector<1x4xf32>
    %177 = vector.broadcast %176 : vector<1x4xf32> to vector<8x4xf32>
    %178 = arith.mulf %173, %177 : vector<8x4xf32>
    %179 = vector.shape_cast %178 : vector<8x4xf32> to vector<8x4x1xf32>
    %180 = vector.extract_strided_slice %68 {offsets = [0, 0, 96], sizes = [8, 4, 32], strides = [1, 1, 1]} : vector<8x4x128xf32> to vector<8x4x32xf32>
    %181 = vector.broadcast %179 : vector<8x4x1xf32> to vector<8x4x32xf32>
    %182 = arith.mulf %181, %180 : vector<8x4x32xf32>
    %cst_57 = arith.constant dense<0.000000e+00> : vector<4x32xf32>
    %183 = vector.multi_reduction <add>, %182, %cst_57 [0] : vector<8x4x32xf32> to vector<4x32xf32>
    %184 = arith.truncf %183 : vector<4x32xf32> to vector<4x32xbf16>
    %c96 = arith.constant 96 : index
    %c0_58 = arith.constant 0 : index
    %185 = vector.load %arg10[%c96, %c0_58] : memref<128x128xbf16, #tpu.memory_space<vmem>>, vector<32x128xbf16>
    %cst_59 = arith.constant dense<0.000000e+00> : vector<4x128xf32>
    %186 = tpu.matmul %184, %185, %cst_59 {dimension_numbers = #tpu.dot_dimension_numbers<[1], [0], [0], [1], [0, 0, 1, 1], [], []>} : vector<4x32xbf16>, vector<32x128xbf16>, vector<4x128xf32> -> vector<4x128xf32>
    %187 = arith.addf %158, %186 : vector<4x128xf32>
    %c0_60 = arith.constant 0 : index
    %c0_61 = arith.constant 0 : index
    %188 = vector.load %arg11[%c0_60, %c0_61] : memref<1x128xf32, #tpu.memory_space<vmem>>, vector<1x128xf32>
    %189 = vector.broadcast %188 : vector<1x128xf32> to vector<4x128xf32>
    %190 = arith.addf %187, %189 : vector<4x128xf32>
    %c1_62 = arith.constant 1 : index
    %c0_63 = arith.constant 0 : index
    %191 = vector.load %arg6[%c1_62, %c0_63] : memref<5x128xf32, #tpu.memory_space<vmem>>, vector<1x128xf32>
    %c1_64 = arith.constant 1 : index
    %c0_65 = arith.constant 0 : index
    %192 = vector.load %arg7[%c1_64, %c0_65] : memref<5x128xf32, #tpu.memory_space<vmem>>, vector<1x128xf32>
    %cst_66 = arith.constant dense<0.000000e+00> : vector<4xf32>
    %193 = vector.multi_reduction <add>, %190, %cst_66 [1] : vector<4x128xf32> to vector<4xf32>
    %194 = vector.shape_cast %193 : vector<4xf32> to vector<4x1xf32>
    %cst_67 = arith.constant 1.280000e+02 : f32
    %195 = vector.broadcast %cst_67 : f32 to vector<4x1xf32>
    %196 = arith.divf %194, %195 : vector<4x1xf32>
    %197 = vector.broadcast %196 : vector<4x1xf32> to vector<4x128xf32>
    %198 = arith.subf %190, %197 : vector<4x128xf32>
    %199 = arith.mulf %198, %198 : vector<4x128xf32>
    %cst_68 = arith.constant dense<0.000000e+00> : vector<4xf32>
    %200 = vector.multi_reduction <add>, %199, %cst_68 [1] : vector<4x128xf32> to vector<4xf32>
    %201 = vector.shape_cast %200 : vector<4xf32> to vector<4x1xf32>
    %cst_69 = arith.constant 1.280000e+02 : f32
    %202 = vector.broadcast %cst_69 : f32 to vector<4x1xf32>
    %203 = arith.divf %201, %202 : vector<4x1xf32>
    %204 = vector.broadcast %196 : vector<4x1xf32> to vector<4x128xf32>
    %205 = arith.subf %190, %204 : vector<4x128xf32>
    %cst_70 = arith.constant 9.99999974E-6 : f32
    %206 = vector.broadcast %cst_70 : f32 to vector<4x1xf32>
    %207 = arith.addf %203, %206 : vector<4x1xf32>
    %208 = math.rsqrt %207 : vector<4x1xf32>
    %209 = vector.broadcast %208 : vector<4x1xf32> to vector<4x128xf32>
    %210 = arith.mulf %205, %209 : vector<4x128xf32>
    %211 = vector.broadcast %191 : vector<1x128xf32> to vector<4x128xf32>
    %212 = arith.mulf %210, %211 : vector<4x128xf32>
    %213 = vector.broadcast %192 : vector<1x128xf32> to vector<4x128xf32>
    %214 = arith.addf %212, %213 : vector<4x128xf32>
    %215 = arith.addf %3, %214 : vector<4x128xf32>
    %c2 = arith.constant 2 : index
    %c0_71 = arith.constant 0 : index
    %216 = vector.load %arg6[%c2, %c0_71] : memref<5x128xf32, #tpu.memory_space<vmem>>, vector<1x128xf32>
    %c2_72 = arith.constant 2 : index
    %c0_73 = arith.constant 0 : index
    %217 = vector.load %arg7[%c2_72, %c0_73] : memref<5x128xf32, #tpu.memory_space<vmem>>, vector<1x128xf32>
    %cst_74 = arith.constant dense<0.000000e+00> : vector<4xf32>
    %218 = vector.multi_reduction <add>, %215, %cst_74 [1] : vector<4x128xf32> to vector<4xf32>
    %219 = vector.shape_cast %218 : vector<4xf32> to vector<4x1xf32>
    %cst_75 = arith.constant 1.280000e+02 : f32
    %220 = vector.broadcast %cst_75 : f32 to vector<4x1xf32>
    %221 = arith.divf %219, %220 : vector<4x1xf32>
    %222 = vector.broadcast %221 : vector<4x1xf32> to vector<4x128xf32>
    %223 = arith.subf %215, %222 : vector<4x128xf32>
    %224 = arith.mulf %223, %223 : vector<4x128xf32>
    %cst_76 = arith.constant dense<0.000000e+00> : vector<4xf32>
    %225 = vector.multi_reduction <add>, %224, %cst_76 [1] : vector<4x128xf32> to vector<4xf32>
    %226 = vector.shape_cast %225 : vector<4xf32> to vector<4x1xf32>
    %cst_77 = arith.constant 1.280000e+02 : f32
    %227 = vector.broadcast %cst_77 : f32 to vector<4x1xf32>
    %228 = arith.divf %226, %227 : vector<4x1xf32>
    %229 = vector.broadcast %221 : vector<4x1xf32> to vector<4x128xf32>
    %230 = arith.subf %215, %229 : vector<4x128xf32>
    %cst_78 = arith.constant 9.99999974E-6 : f32
    %231 = vector.broadcast %cst_78 : f32 to vector<4x1xf32>
    %232 = arith.addf %228, %231 : vector<4x1xf32>
    %233 = math.rsqrt %232 : vector<4x1xf32>
    %234 = vector.broadcast %233 : vector<4x1xf32> to vector<4x128xf32>
    %235 = arith.mulf %230, %234 : vector<4x128xf32>
    %236 = vector.broadcast %216 : vector<1x128xf32> to vector<4x128xf32>
    %237 = arith.mulf %235, %236 : vector<4x128xf32>
    %238 = vector.broadcast %217 : vector<1x128xf32> to vector<4x128xf32>
    %239 = arith.addf %237, %238 : vector<4x128xf32>
    %240 = arith.truncf %239 : vector<4x128xf32> to vector<4x128xbf16>
    %c0_79 = arith.constant 0 : index
    %c0_80 = arith.constant 0 : index
    %241 = vector.load %arg12[%c0_79, %c0_80] : memref<128x128xbf16, #tpu.memory_space<vmem>>, vector<128x128xbf16>
    %cst_81 = arith.constant dense<0.000000e+00> : vector<4x128xf32>
    %242 = tpu.matmul %240, %241, %cst_81 {dimension_numbers = #tpu.dot_dimension_numbers<[1], [0], [0], [1], [0, 0, 1, 1], [], []>} : vector<4x128xbf16>, vector<128x128xbf16>, vector<4x128xf32> -> vector<4x128xf32>
    %c0_82 = arith.constant 0 : index
    %c0_83 = arith.constant 0 : index
    %243 = vector.load %arg13[%c0_82, %c0_83] : memref<1x128xf32, #tpu.memory_space<vmem>>, vector<1x128xf32>
    %244 = vector.broadcast %243 : vector<1x128xf32> to vector<4x128xf32>
    %245 = arith.addf %242, %244 : vector<4x128xf32>
    %c0_84 = arith.constant 0 : index
    %c0_85 = arith.constant 0 : index
    %c0_86 = arith.constant 0 : index
    %246 = vector.load %arg4[%c0_84, %c0_85, %c0_86] : memref<4x16x256xf32, #tpu.memory_space<vmem>>, vector<4x16x256xf32>
    %c0_87 = arith.constant 0 : index
    %c0_88 = arith.constant 0 : index
    %247 = vector.load %arg5[%c0_87, %c0_88] : memref<4x16xf32, #tpu.memory_space<vmem>>, vector<4x16xf32>
    %cst_89 = arith.constant 0.000000e+00 : f32
    %248 = vector.broadcast %cst_89 : f32 to vector<4x16xf32>
    %249 = arith.cmpf ogt, %247, %248 : vector<4x16xf32>
    %250 = vector.shape_cast %249 : vector<4x16xi1> to vector<4x1x16xi1>
    %cst_90 = arith.constant 0.000000e+00 : f32
    %251 = vector.broadcast %cst_90 : f32 to vector<4x128xf32>
    %252 = vector.extract_strided_slice %246 {offsets = [0, 0, 0], sizes = [4, 16, 32], strides = [1, 1, 1]} : vector<4x16x256xf32> to vector<4x16x32xf32>
    %253 = vector.extract_strided_slice %246 {offsets = [0, 0, 128], sizes = [4, 16, 32], strides = [1, 1, 1]} : vector<4x16x256xf32> to vector<4x16x32xf32>
    %254 = vector.extract_strided_slice %245 {offsets = [0, 0], sizes = [4, 32], strides = [1, 1]} : vector<4x128xf32> to vector<4x32xf32>
    %255 = vector.shape_cast %254 : vector<4x32xf32> to vector<4x1x32xf32>
    "tpu.trace_start"() <{level = 10 : i32, message = "bqd,bkd->bqk"}> : () -> ()
    %cst_91 = arith.constant dense<0.000000e+00> : vector<4x1x16xf32>
    %256 = tpu.matmul %255, %252, %cst_91 {dimension_numbers = #tpu.dot_dimension_numbers<[2], [2], [1], [1], [0, 0, 0, 1, 1, 1], [0], [0]>} : vector<4x1x32xf32>, vector<4x16x32xf32>, vector<4x1x16xf32> -> vector<4x1x16xf32>
    %cst_92 = arith.constant -1.000000e+09 : f32
    "tpu.trace_stop"() : () -> ()
    %257 = vector.broadcast %cst_92 : f32 to vector<4x1x16xf32>
    %258 = arith.select %250, %256, %257 : vector<4x1x16xi1>, vector<4x1x16xf32>
    %cst_93 = arith.constant dense<0xFF800000> : vector<4x1xf32>
    %259 = vector.multi_reduction <maximumf>, %258, %cst_93 [2] : vector<4x1x16xf32> to vector<4x1xf32>
    %260 = vector.shape_cast %259 : vector<4x1xf32> to vector<4x1x1xf32>
    %261 = vector.broadcast %260 : vector<4x1x1xf32> to vector<4x1x16xf32>
    %262 = arith.subf %258, %261 : vector<4x1x16xf32>
    %263 = math.exp %262 : vector<4x1x16xf32>
    %cst_94 = arith.constant dense<0.000000e+00> : vector<4x1xf32>
    %264 = vector.multi_reduction <add>, %263, %cst_94 [2] : vector<4x1x16xf32> to vector<4x1xf32>
    %265 = vector.shape_cast %264 : vector<4x1xf32> to vector<4x1x1xf32>
    %266 = tpu.reciprocal %265 {approx = true} : vector<4x1x1xf32> -> vector<4x1x1xf32>
    %267 = vector.broadcast %266 : vector<4x1x1xf32> to vector<4x1x16xf32>
    %268 = arith.mulf %263, %267 : vector<4x1x16xf32>
    "tpu.trace_start"() <{level = 10 : i32, message = "bqk,bkd->bqd"}> : () -> ()
    %cst_95 = arith.constant dense<0.000000e+00> : vector<4x1x32xf32>
    %269 = tpu.matmul %268, %253, %cst_95 {dimension_numbers = #tpu.dot_dimension_numbers<[2], [1], [1], [2], [0, 0, 0, 1, 1, 2], [0], [0]>} : vector<4x1x16xf32>, vector<4x16x32xf32>, vector<4x1x32xf32> -> vector<4x1x32xf32>
    "tpu.trace_stop"() : () -> ()
    %270 = vector.shape_cast %269 : vector<4x1x32xf32> to vector<4x32xf32>
    %271 = arith.truncf %270 : vector<4x32xf32> to vector<4x32xbf16>
    %c0_96 = arith.constant 0 : index
    %c0_97 = arith.constant 0 : index
    %272 = vector.load %arg14[%c0_96, %c0_97] : memref<128x128xbf16, #tpu.memory_space<vmem>>, vector<32x128xbf16>
    %cst_98 = arith.constant dense<0.000000e+00> : vector<4x128xf32>
    %273 = tpu.matmul %271, %272, %cst_98 {dimension_numbers = #tpu.dot_dimension_numbers<[1], [0], [0], [1], [0, 0, 1, 1], [], []>} : vector<4x32xbf16>, vector<32x128xbf16>, vector<4x128xf32> -> vector<4x128xf32>
    %274 = arith.addf %251, %273 : vector<4x128xf32>
    %275 = vector.extract_strided_slice %246 {offsets = [0, 0, 32], sizes = [4, 16, 32], strides = [1, 1, 1]} : vector<4x16x256xf32> to vector<4x16x32xf32>
    %276 = vector.extract_strided_slice %246 {offsets = [0, 0, 160], sizes = [4, 16, 32], strides = [1, 1, 1]} : vector<4x16x256xf32> to vector<4x16x32xf32>
    %277 = vector.extract_strided_slice %245 {offsets = [0, 32], sizes = [4, 32], strides = [1, 1]} : vector<4x128xf32> to vector<4x32xf32>
    %278 = vector.shape_cast %277 : vector<4x32xf32> to vector<4x1x32xf32>
    "tpu.trace_start"() <{level = 10 : i32, message = "bqd,bkd->bqk"}> : () -> ()
    %cst_99 = arith.constant dense<0.000000e+00> : vector<4x1x16xf32>
    %279 = tpu.matmul %278, %275, %cst_99 {dimension_numbers = #tpu.dot_dimension_numbers<[2], [2], [1], [1], [0, 0, 0, 1, 1, 1], [0], [0]>} : vector<4x1x32xf32>, vector<4x16x32xf32>, vector<4x1x16xf32> -> vector<4x1x16xf32>
    %cst_100 = arith.constant -1.000000e+09 : f32
    "tpu.trace_stop"() : () -> ()
    %280 = vector.broadcast %cst_100 : f32 to vector<4x1x16xf32>
    %281 = arith.select %250, %279, %280 : vector<4x1x16xi1>, vector<4x1x16xf32>
    %cst_101 = arith.constant dense<0xFF800000> : vector<4x1xf32>
    %282 = vector.multi_reduction <maximumf>, %281, %cst_101 [2] : vector<4x1x16xf32> to vector<4x1xf32>
    %283 = vector.shape_cast %282 : vector<4x1xf32> to vector<4x1x1xf32>
    %284 = vector.broadcast %283 : vector<4x1x1xf32> to vector<4x1x16xf32>
    %285 = arith.subf %281, %284 : vector<4x1x16xf32>
    %286 = math.exp %285 : vector<4x1x16xf32>
    %cst_102 = arith.constant dense<0.000000e+00> : vector<4x1xf32>
    %287 = vector.multi_reduction <add>, %286, %cst_102 [2] : vector<4x1x16xf32> to vector<4x1xf32>
    %288 = vector.shape_cast %287 : vector<4x1xf32> to vector<4x1x1xf32>
    %289 = tpu.reciprocal %288 {approx = true} : vector<4x1x1xf32> -> vector<4x1x1xf32>
    %290 = vector.broadcast %289 : vector<4x1x1xf32> to vector<4x1x16xf32>
    %291 = arith.mulf %286, %290 : vector<4x1x16xf32>
    "tpu.trace_start"() <{level = 10 : i32, message = "bqk,bkd->bqd"}> : () -> ()
    %cst_103 = arith.constant dense<0.000000e+00> : vector<4x1x32xf32>
    %292 = tpu.matmul %291, %276, %cst_103 {dimension_numbers = #tpu.dot_dimension_numbers<[2], [1], [1], [2], [0, 0, 0, 1, 1, 2], [0], [0]>} : vector<4x1x16xf32>, vector<4x16x32xf32>, vector<4x1x32xf32> -> vector<4x1x32xf32>
    "tpu.trace_stop"() : () -> ()
    %293 = vector.shape_cast %292 : vector<4x1x32xf32> to vector<4x32xf32>
    %294 = arith.truncf %293 : vector<4x32xf32> to vector<4x32xbf16>
    %c32_104 = arith.constant 32 : index
    %c0_105 = arith.constant 0 : index
    %295 = vector.load %arg14[%c32_104, %c0_105] : memref<128x128xbf16, #tpu.memory_space<vmem>>, vector<32x128xbf16>
    %cst_106 = arith.constant dense<0.000000e+00> : vector<4x128xf32>
    %296 = tpu.matmul %294, %295, %cst_106 {dimension_numbers = #tpu.dot_dimension_numbers<[1], [0], [0], [1], [0, 0, 1, 1], [], []>} : vector<4x32xbf16>, vector<32x128xbf16>, vector<4x128xf32> -> vector<4x128xf32>
    %297 = arith.addf %274, %296 : vector<4x128xf32>
    %298 = vector.extract_strided_slice %246 {offsets = [0, 0, 64], sizes = [4, 16, 32], strides = [1, 1, 1]} : vector<4x16x256xf32> to vector<4x16x32xf32>
    %299 = vector.extract_strided_slice %246 {offsets = [0, 0, 192], sizes = [4, 16, 32], strides = [1, 1, 1]} : vector<4x16x256xf32> to vector<4x16x32xf32>
    %300 = vector.extract_strided_slice %245 {offsets = [0, 64], sizes = [4, 32], strides = [1, 1]} : vector<4x128xf32> to vector<4x32xf32>
    %301 = vector.shape_cast %300 : vector<4x32xf32> to vector<4x1x32xf32>
    "tpu.trace_start"() <{level = 10 : i32, message = "bqd,bkd->bqk"}> : () -> ()
    %cst_107 = arith.constant dense<0.000000e+00> : vector<4x1x16xf32>
    %302 = tpu.matmul %301, %298, %cst_107 {dimension_numbers = #tpu.dot_dimension_numbers<[2], [2], [1], [1], [0, 0, 0, 1, 1, 1], [0], [0]>} : vector<4x1x32xf32>, vector<4x16x32xf32>, vector<4x1x16xf32> -> vector<4x1x16xf32>
    %cst_108 = arith.constant -1.000000e+09 : f32
    "tpu.trace_stop"() : () -> ()
    %303 = vector.broadcast %cst_108 : f32 to vector<4x1x16xf32>
    %304 = arith.select %250, %302, %303 : vector<4x1x16xi1>, vector<4x1x16xf32>
    %cst_109 = arith.constant dense<0xFF800000> : vector<4x1xf32>
    %305 = vector.multi_reduction <maximumf>, %304, %cst_109 [2] : vector<4x1x16xf32> to vector<4x1xf32>
    %306 = vector.shape_cast %305 : vector<4x1xf32> to vector<4x1x1xf32>
    %307 = vector.broadcast %306 : vector<4x1x1xf32> to vector<4x1x16xf32>
    %308 = arith.subf %304, %307 : vector<4x1x16xf32>
    %309 = math.exp %308 : vector<4x1x16xf32>
    %cst_110 = arith.constant dense<0.000000e+00> : vector<4x1xf32>
    %310 = vector.multi_reduction <add>, %309, %cst_110 [2] : vector<4x1x16xf32> to vector<4x1xf32>
    %311 = vector.shape_cast %310 : vector<4x1xf32> to vector<4x1x1xf32>
    %312 = tpu.reciprocal %311 {approx = true} : vector<4x1x1xf32> -> vector<4x1x1xf32>
    %313 = vector.broadcast %312 : vector<4x1x1xf32> to vector<4x1x16xf32>
    %314 = arith.mulf %309, %313 : vector<4x1x16xf32>
    "tpu.trace_start"() <{level = 10 : i32, message = "bqk,bkd->bqd"}> : () -> ()
    %cst_111 = arith.constant dense<0.000000e+00> : vector<4x1x32xf32>
    %315 = tpu.matmul %314, %299, %cst_111 {dimension_numbers = #tpu.dot_dimension_numbers<[2], [1], [1], [2], [0, 0, 0, 1, 1, 2], [0], [0]>} : vector<4x1x16xf32>, vector<4x16x32xf32>, vector<4x1x32xf32> -> vector<4x1x32xf32>
    "tpu.trace_stop"() : () -> ()
    %316 = vector.shape_cast %315 : vector<4x1x32xf32> to vector<4x32xf32>
    %317 = arith.truncf %316 : vector<4x32xf32> to vector<4x32xbf16>
    %c64_112 = arith.constant 64 : index
    %c0_113 = arith.constant 0 : index
    %318 = vector.load %arg14[%c64_112, %c0_113] : memref<128x128xbf16, #tpu.memory_space<vmem>>, vector<32x128xbf16>
    %cst_114 = arith.constant dense<0.000000e+00> : vector<4x128xf32>
    %319 = tpu.matmul %317, %318, %cst_114 {dimension_numbers = #tpu.dot_dimension_numbers<[1], [0], [0], [1], [0, 0, 1, 1], [], []>} : vector<4x32xbf16>, vector<32x128xbf16>, vector<4x128xf32> -> vector<4x128xf32>
    %320 = arith.addf %297, %319 : vector<4x128xf32>
    %321 = vector.extract_strided_slice %246 {offsets = [0, 0, 96], sizes = [4, 16, 32], strides = [1, 1, 1]} : vector<4x16x256xf32> to vector<4x16x32xf32>
    %322 = vector.extract_strided_slice %246 {offsets = [0, 0, 224], sizes = [4, 16, 32], strides = [1, 1, 1]} : vector<4x16x256xf32> to vector<4x16x32xf32>
    %323 = vector.extract_strided_slice %245 {offsets = [0, 96], sizes = [4, 32], strides = [1, 1]} : vector<4x128xf32> to vector<4x32xf32>
    %324 = vector.shape_cast %323 : vector<4x32xf32> to vector<4x1x32xf32>
    "tpu.trace_start"() <{level = 10 : i32, message = "bqd,bkd->bqk"}> : () -> ()
    %cst_115 = arith.constant dense<0.000000e+00> : vector<4x1x16xf32>
    %325 = tpu.matmul %324, %321, %cst_115 {dimension_numbers = #tpu.dot_dimension_numbers<[2], [2], [1], [1], [0, 0, 0, 1, 1, 1], [0], [0]>} : vector<4x1x32xf32>, vector<4x16x32xf32>, vector<4x1x16xf32> -> vector<4x1x16xf32>
    %cst_116 = arith.constant -1.000000e+09 : f32
    "tpu.trace_stop"() : () -> ()
    %326 = vector.broadcast %cst_116 : f32 to vector<4x1x16xf32>
    %327 = arith.select %250, %325, %326 : vector<4x1x16xi1>, vector<4x1x16xf32>
    %cst_117 = arith.constant dense<0xFF800000> : vector<4x1xf32>
    %328 = vector.multi_reduction <maximumf>, %327, %cst_117 [2] : vector<4x1x16xf32> to vector<4x1xf32>
    %329 = vector.shape_cast %328 : vector<4x1xf32> to vector<4x1x1xf32>
    %330 = vector.broadcast %329 : vector<4x1x1xf32> to vector<4x1x16xf32>
    %331 = arith.subf %327, %330 : vector<4x1x16xf32>
    %332 = math.exp %331 : vector<4x1x16xf32>
    %cst_118 = arith.constant dense<0.000000e+00> : vector<4x1xf32>
    %333 = vector.multi_reduction <add>, %332, %cst_118 [2] : vector<4x1x16xf32> to vector<4x1xf32>
    %334 = vector.shape_cast %333 : vector<4x1xf32> to vector<4x1x1xf32>
    %335 = tpu.reciprocal %334 {approx = true} : vector<4x1x1xf32> -> vector<4x1x1xf32>
    %336 = vector.broadcast %335 : vector<4x1x1xf32> to vector<4x1x16xf32>
    %337 = arith.mulf %332, %336 : vector<4x1x16xf32>
    "tpu.trace_start"() <{level = 10 : i32, message = "bqk,bkd->bqd"}> : () -> ()
    %cst_119 = arith.constant dense<0.000000e+00> : vector<4x1x32xf32>
    %338 = tpu.matmul %337, %322, %cst_119 {dimension_numbers = #tpu.dot_dimension_numbers<[2], [1], [1], [2], [0, 0, 0, 1, 1, 2], [0], [0]>} : vector<4x1x16xf32>, vector<4x16x32xf32>, vector<4x1x32xf32> -> vector<4x1x32xf32>
    "tpu.trace_stop"() : () -> ()
    %339 = vector.shape_cast %338 : vector<4x1x32xf32> to vector<4x32xf32>
    %340 = arith.truncf %339 : vector<4x32xf32> to vector<4x32xbf16>
    %c96_120 = arith.constant 96 : index
    %c0_121 = arith.constant 0 : index
    %341 = vector.load %arg14[%c96_120, %c0_121] : memref<128x128xbf16, #tpu.memory_space<vmem>>, vector<32x128xbf16>
    %cst_122 = arith.constant dense<0.000000e+00> : vector<4x128xf32>
    %342 = tpu.matmul %340, %341, %cst_122 {dimension_numbers = #tpu.dot_dimension_numbers<[1], [0], [0], [1], [0, 0, 1, 1], [], []>} : vector<4x32xbf16>, vector<32x128xbf16>, vector<4x128xf32> -> vector<4x128xf32>
    %343 = arith.addf %320, %342 : vector<4x128xf32>
    %c0_123 = arith.constant 0 : index
    %c0_124 = arith.constant 0 : index
    %344 = vector.load %arg15[%c0_123, %c0_124] : memref<1x128xf32, #tpu.memory_space<vmem>>, vector<1x128xf32>
    %345 = vector.broadcast %344 : vector<1x128xf32> to vector<4x128xf32>
    %346 = arith.addf %343, %345 : vector<4x128xf32>
    %c3 = arith.constant 3 : index
    %c0_125 = arith.constant 0 : index
    %347 = vector.load %arg6[%c3, %c0_125] : memref<5x128xf32, #tpu.memory_space<vmem>>, vector<1x128xf32>
    %c3_126 = arith.constant 3 : index
    %c0_127 = arith.constant 0 : index
    %348 = vector.load %arg7[%c3_126, %c0_127] : memref<5x128xf32, #tpu.memory_space<vmem>>, vector<1x128xf32>
    %cst_128 = arith.constant dense<0.000000e+00> : vector<4xf32>
    %349 = vector.multi_reduction <add>, %346, %cst_128 [1] : vector<4x128xf32> to vector<4xf32>
    %350 = vector.shape_cast %349 : vector<4xf32> to vector<4x1xf32>
    %cst_129 = arith.constant 1.280000e+02 : f32
    %351 = vector.broadcast %cst_129 : f32 to vector<4x1xf32>
    %352 = arith.divf %350, %351 : vector<4x1xf32>
    %353 = vector.broadcast %352 : vector<4x1xf32> to vector<4x128xf32>
    %354 = arith.subf %346, %353 : vector<4x128xf32>
    %355 = arith.mulf %354, %354 : vector<4x128xf32>
    %cst_130 = arith.constant dense<0.000000e+00> : vector<4xf32>
    %356 = vector.multi_reduction <add>, %355, %cst_130 [1] : vector<4x128xf32> to vector<4xf32>
    %357 = vector.shape_cast %356 : vector<4xf32> to vector<4x1xf32>
    %cst_131 = arith.constant 1.280000e+02 : f32
    %358 = vector.broadcast %cst_131 : f32 to vector<4x1xf32>
    %359 = arith.divf %357, %358 : vector<4x1xf32>
    %360 = vector.broadcast %352 : vector<4x1xf32> to vector<4x128xf32>
    %361 = arith.subf %346, %360 : vector<4x128xf32>
    %cst_132 = arith.constant 9.99999974E-6 : f32
    %362 = vector.broadcast %cst_132 : f32 to vector<4x1xf32>
    %363 = arith.addf %359, %362 : vector<4x1xf32>
    %364 = math.rsqrt %363 : vector<4x1xf32>
    %365 = vector.broadcast %364 : vector<4x1xf32> to vector<4x128xf32>
    %366 = arith.mulf %361, %365 : vector<4x128xf32>
    %367 = vector.broadcast %347 : vector<1x128xf32> to vector<4x128xf32>
    %368 = arith.mulf %366, %367 : vector<4x128xf32>
    %369 = vector.broadcast %348 : vector<1x128xf32> to vector<4x128xf32>
    %370 = arith.addf %368, %369 : vector<4x128xf32>
    %371 = arith.addf %215, %370 : vector<4x128xf32>
    %c4 = arith.constant 4 : index
    %c0_133 = arith.constant 0 : index
    %372 = vector.load %arg6[%c4, %c0_133] : memref<5x128xf32, #tpu.memory_space<vmem>>, vector<1x128xf32>
    %c4_134 = arith.constant 4 : index
    %c0_135 = arith.constant 0 : index
    %373 = vector.load %arg7[%c4_134, %c0_135] : memref<5x128xf32, #tpu.memory_space<vmem>>, vector<1x128xf32>
    %cst_136 = arith.constant dense<0.000000e+00> : vector<4xf32>
    %374 = vector.multi_reduction <add>, %371, %cst_136 [1] : vector<4x128xf32> to vector<4xf32>
    %375 = vector.shape_cast %374 : vector<4xf32> to vector<4x1xf32>
    %cst_137 = arith.constant 1.280000e+02 : f32
    %376 = vector.broadcast %cst_137 : f32 to vector<4x1xf32>
    %377 = arith.divf %375, %376 : vector<4x1xf32>
    %378 = vector.broadcast %377 : vector<4x1xf32> to vector<4x128xf32>
    %379 = arith.subf %371, %378 : vector<4x128xf32>
    %380 = arith.mulf %379, %379 : vector<4x128xf32>
    %cst_138 = arith.constant dense<0.000000e+00> : vector<4xf32>
    %381 = vector.multi_reduction <add>, %380, %cst_138 [1] : vector<4x128xf32> to vector<4xf32>
    %382 = vector.shape_cast %381 : vector<4xf32> to vector<4x1xf32>
    %cst_139 = arith.constant 1.280000e+02 : f32
    %383 = vector.broadcast %cst_139 : f32 to vector<4x1xf32>
    %384 = arith.divf %382, %383 : vector<4x1xf32>
    %385 = vector.broadcast %377 : vector<4x1xf32> to vector<4x128xf32>
    %386 = arith.subf %371, %385 : vector<4x128xf32>
    %cst_140 = arith.constant 9.99999974E-6 : f32
    %387 = vector.broadcast %cst_140 : f32 to vector<4x1xf32>
    %388 = arith.addf %384, %387 : vector<4x1xf32>
    %389 = math.rsqrt %388 : vector<4x1xf32>
    %390 = vector.broadcast %389 : vector<4x1xf32> to vector<4x128xf32>
    %391 = arith.mulf %386, %390 : vector<4x128xf32>
    %392 = vector.broadcast %372 : vector<1x128xf32> to vector<4x128xf32>
    %393 = arith.mulf %391, %392 : vector<4x128xf32>
    %394 = vector.broadcast %373 : vector<1x128xf32> to vector<4x128xf32>
    %395 = arith.addf %393, %394 : vector<4x128xf32>
    %396 = arith.truncf %395 : vector<4x128xf32> to vector<4x128xbf16>
    %c0_141 = arith.constant 0 : index
    %c0_142 = arith.constant 0 : index
    %397 = vector.load %arg16[%c0_141, %c0_142] : memref<128x512xbf16, #tpu.memory_space<vmem>>, vector<128x512xbf16>
    %cst_143 = arith.constant dense<0.000000e+00> : vector<4x512xf32>
    %398 = tpu.matmul %396, %397, %cst_143 {dimension_numbers = #tpu.dot_dimension_numbers<[1], [0], [0], [1], [0, 0, 1, 1], [], []>} : vector<4x128xbf16>, vector<128x512xbf16>, vector<4x512xf32> -> vector<4x512xf32>
    %c0_144 = arith.constant 0 : index
    %c0_145 = arith.constant 0 : index
    %399 = vector.load %arg17[%c0_144, %c0_145] : memref<1x512xf32, #tpu.memory_space<vmem>>, vector<1x512xf32>
    %400 = vector.broadcast %399 : vector<1x512xf32> to vector<4x512xf32>
    %401 = arith.addf %398, %400 : vector<4x512xf32>
    %402 = vector.extract_strided_slice %401 {offsets = [0, 0], sizes = [4, 256], strides = [1, 1]} : vector<4x512xf32> to vector<4x256xf32>
    %403 = arith.mulf %402, %402 : vector<4x256xf32>
    %404 = arith.mulf %402, %403 : vector<4x256xf32>
    %cst_146 = arith.constant 4.471500e-02 : f32
    %405 = vector.broadcast %cst_146 : f32 to vector<4x256xf32>
    %406 = arith.mulf %405, %404 : vector<4x256xf32>
    %407 = arith.addf %402, %406 : vector<4x256xf32>
    %cst_147 = arith.constant 0.797884583 : f32
    %408 = vector.broadcast %cst_147 : f32 to vector<4x256xf32>
    %409 = arith.mulf %408, %407 : vector<4x256xf32>
    %410 = math.tanh %409 : vector<4x256xf32>
    %cst_148 = arith.constant 1.000000e+00 : f32
    %411 = vector.broadcast %cst_148 : f32 to vector<4x256xf32>
    %412 = arith.addf %411, %410 : vector<4x256xf32>
    %cst_149 = arith.constant 5.000000e-01 : f32
    %413 = vector.broadcast %cst_149 : f32 to vector<4x256xf32>
    %414 = arith.mulf %413, %412 : vector<4x256xf32>
    %415 = arith.mulf %402, %414 : vector<4x256xf32>
    %416 = vector.extract_strided_slice %401 {offsets = [0, 256], sizes = [4, 256], strides = [1, 1]} : vector<4x512xf32> to vector<4x256xf32>
    %417 = arith.mulf %415, %416 : vector<4x256xf32>
    %c0_150 = arith.constant 0 : index
    %c0_151 = arith.constant 0 : index
    %418 = vector.load %arg18[%c0_150, %c0_151] : memref<1x256xf32, #tpu.memory_space<vmem>>, vector<1x256xf32>
    %c0_152 = arith.constant 0 : index
    %c0_153 = arith.constant 0 : index
    %419 = vector.load %arg19[%c0_152, %c0_153] : memref<1x256xf32, #tpu.memory_space<vmem>>, vector<1x256xf32>
    %cst_154 = arith.constant dense<0.000000e+00> : vector<4xf32>
    %420 = vector.multi_reduction <add>, %417, %cst_154 [1] : vector<4x256xf32> to vector<4xf32>
    %421 = vector.shape_cast %420 : vector<4xf32> to vector<4x1xf32>
    %cst_155 = arith.constant 2.560000e+02 : f32
    %422 = vector.broadcast %cst_155 : f32 to vector<4x1xf32>
    %423 = arith.divf %421, %422 : vector<4x1xf32>
    %424 = vector.broadcast %423 : vector<4x1xf32> to vector<4x256xf32>
    %425 = arith.subf %417, %424 : vector<4x256xf32>
    %426 = arith.mulf %425, %425 : vector<4x256xf32>
    %cst_156 = arith.constant dense<0.000000e+00> : vector<4xf32>
    %427 = vector.multi_reduction <add>, %426, %cst_156 [1] : vector<4x256xf32> to vector<4xf32>
    %428 = vector.shape_cast %427 : vector<4xf32> to vector<4x1xf32>
    %cst_157 = arith.constant 2.560000e+02 : f32
    %429 = vector.broadcast %cst_157 : f32 to vector<4x1xf32>
    %430 = arith.divf %428, %429 : vector<4x1xf32>
    %431 = vector.broadcast %423 : vector<4x1xf32> to vector<4x256xf32>
    %432 = arith.subf %417, %431 : vector<4x256xf32>
    %cst_158 = arith.constant 9.99999974E-6 : f32
    %433 = vector.broadcast %cst_158 : f32 to vector<4x1xf32>
    %434 = arith.addf %430, %433 : vector<4x1xf32>
    %435 = math.rsqrt %434 : vector<4x1xf32>
    %436 = vector.broadcast %435 : vector<4x1xf32> to vector<4x256xf32>
    %437 = arith.mulf %432, %436 : vector<4x256xf32>
    %438 = vector.broadcast %418 : vector<1x256xf32> to vector<4x256xf32>
    %439 = arith.mulf %437, %438 : vector<4x256xf32>
    %440 = vector.broadcast %419 : vector<1x256xf32> to vector<4x256xf32>
    %441 = arith.addf %439, %440 : vector<4x256xf32>
    %442 = arith.truncf %441 : vector<4x256xf32> to vector<4x256xbf16>
    %c0_159 = arith.constant 0 : index
    %c0_160 = arith.constant 0 : index
    %443 = vector.load %arg20[%c0_159, %c0_160] : memref<256x128xbf16, #tpu.memory_space<vmem>>, vector<256x128xbf16>
    %cst_161 = arith.constant dense<0.000000e+00> : vector<4x128xf32>
    %444 = tpu.matmul %442, %443, %cst_161 {dimension_numbers = #tpu.dot_dimension_numbers<[1], [0], [0], [1], [0, 0, 1, 1], [], []>} : vector<4x256xbf16>, vector<256x128xbf16>, vector<4x128xf32> -> vector<4x128xf32>
    %445 = arith.addf %371, %444 : vector<4x128xf32>
    %c0_162 = arith.constant 0 : index
    %c0_163 = arith.constant 0 : index
    %446 = vector.load %arg21[%c0_162, %c0_163] : memref<1x128xf32, #tpu.memory_space<vmem>>, vector<1x128xf32>
    %447 = vector.broadcast %446 : vector<1x128xf32> to vector<4x128xf32>
    %448 = arith.addf %445, %447 : vector<4x128xf32>
    %c0_164 = arith.constant 0 : index
    %c0_165 = arith.constant 0 : index
    %449 = vector.load %arg22[%c0_164, %c0_165] : memref<4x128xf32, #tpu.memory_space<vmem>>, vector<4x128xf32>
    tpu.vector_store %arg22[%c0_164, %c0_165], %448 {strides = array<i32>} : memref<4x128xf32, #tpu.memory_space<vmem>>, vector<4x128xf32>,
    %c1_i32_166 = arith.constant 1 : i32
    %c0_i32_167 = arith.constant 0 : i32
    %c0_i32_168 = arith.constant 0 : i32
    %c0_i32_169 = arith.constant 0 : i32
    %450 = tpu.memref_slice %arg23[%0, %c0_i32_167, %c0_i32_168, %c0_i32_169] : memref<8x2x4x128xf32, #tpu.memory_space<any>> -> memref<1x2x4x128xf32, #tpu.memory_space<any>>
    %451 = tpu.memref_slice %arg26[%c1_i32_166] : memref<2x!tpu.dma_semaphore, #tpu.memory_space<semaphore_mem>> -> memref<1x!tpu.dma_semaphore, #tpu.memory_space<semaphore_mem>>
    %452 = tpu.memref_squeeze %451 : memref<1x!tpu.dma_semaphore, #tpu.memory_space<semaphore_mem>> -> memref<!tpu.dma_semaphore, #tpu.memory_space<semaphore_mem>>
    tpu.wait_dma2 semaphore(%452 : memref<!tpu.dma_semaphore, #tpu.memory_space<semaphore_mem>>) src(%arg24 : memref<1x2x4x128xf32, #tpu.memory_space<vmem>>) dst(%450 : memref<1x2x4x128xf32, #tpu.memory_space<any>>)
    return
  }
  func.func @transform_0(%arg0: i32, %arg1: memref<1xi32, #tpu.memory_space<smem>>) -> (i32, i32) {
    %c0_i32 = arith.constant 0 : i32
    %c0_i32_0 = arith.constant 0 : i32
    %c0_i32_1 = arith.constant 0 : i32
    return %c0_i32, %c0_i32_0 : i32, i32
  }
  func.func @transform_2(%arg0: i32, %arg1: memref<1xi32, #tpu.memory_space<smem>>) -> (i32, i32, i32) {
    %c0_i32 = arith.constant 0 : i32
    %c0_i32_0 = arith.constant 0 : i32
    %c0_i32_1 = arith.constant 0 : i32
    %c0_i32_2 = arith.constant 0 : i32
    return %c0_i32, %c0_i32_0, %c0_i32_1 : i32, i32, i32
  }
  func.func @transform_3(%arg0: i32, %arg1: memref<1xi32, #tpu.memory_space<smem>>) -> (i32, i32) {
    %c0_i32 = arith.constant 0 : i32
    %c0_i32_0 = arith.constant 0 : i32
    %c0_i32_1 = arith.constant 0 : i32
    return %c0_i32, %c0_i32_0 : i32, i32
  }
  func.func @transform_4(%arg0: i32, %arg1: memref<1xi32, #tpu.memory_space<smem>>) -> (i32, i32) {
    %c0_i32 = arith.constant 0 : i32
    %c0_i32_0 = arith.constant 0 : i32
    %c0_i32_1 = arith.constant 0 : i32
    return %c0_i32, %c0_i32_0 : i32, i32
  }
  func.func @transform_5(%arg0: i32, %arg1: memref<1xi32, #tpu.memory_space<smem>>) -> (i32, i32) {
    %c0_i32 = arith.constant 0 : i32
    %c0_i32_0 = arith.constant 0 : i32
    %c0_i32_1 = arith.constant 0 : i32
    return %c0_i32, %c0_i32_0 : i32, i32
  }
  func.func @transform_6(%arg0: i32, %arg1: memref<1xi32, #tpu.memory_space<smem>>) -> (i32, i32) {
    %c0_i32 = arith.constant 0 : i32
    %c0_i32_0 = arith.constant 0 : i32
    %c0_i32_1 = arith.constant 0 : i32
    return %c0_i32, %c0_i32_0 : i32, i32
  }
  func.func @transform_7(%arg0: i32, %arg1: memref<1xi32, #tpu.memory_space<smem>>) -> (i32, i32) {
    %c0_i32 = arith.constant 0 : i32
    %c0_i32_0 = arith.constant 0 : i32
    %c0_i32_1 = arith.constant 0 : i32
    return %c0_i32, %c0_i32_0 : i32, i32
  }
  func.func @transform_8(%arg0: i32, %arg1: memref<1xi32, #tpu.memory_space<smem>>) -> (i32, i32) {
    %c0_i32 = arith.constant 0 : i32
    %c0_i32_0 = arith.constant 0 : i32
    %c0_i32_1 = arith.constant 0 : i32
    return %c0_i32, %c0_i32_0 : i32, i32
  }
  func.func @transform_9(%arg0: i32, %arg1: memref<1xi32, #tpu.memory_space<smem>>) -> (i32, i32) {
    %c0_i32 = arith.constant 0 : i32
    %c0_i32_0 = arith.constant 0 : i32
    %c0_i32_1 = arith.constant 0 : i32
    return %c0_i32, %c0_i32_0 : i32, i32
  }
  func.func @transform_10(%arg0: i32, %arg1: memref<1xi32, #tpu.memory_space<smem>>) -> (i32, i32) {
    %c0_i32 = arith.constant 0 : i32
    %c0_i32_0 = arith.constant 0 : i32
    %c0_i32_1 = arith.constant 0 : i32
    return %c0_i32, %c0_i32_0 : i32, i32
  }
  func.func @transform_11(%arg0: i32, %arg1: memref<1xi32, #tpu.memory_space<smem>>) -> (i32, i32) {
    %c0_i32 = arith.constant 0 : i32
    %c0_i32_0 = arith.constant 0 : i32
    %c0_i32_1 = arith.constant 0 : i32
    return %c0_i32, %c0_i32_0 : i32, i32
  }
  func.func @transform_12(%arg0: i32, %arg1: memref<1xi32, #tpu.memory_space<smem>>) -> (i32, i32) {
    %c0_i32 = arith.constant 0 : i32
    %c0_i32_0 = arith.constant 0 : i32
    %c0_i32_1 = arith.constant 0 : i32
    return %c0_i32, %c0_i32_0 : i32, i32
  }
  func.func @transform_13(%arg0: i32, %arg1: memref<1xi32, #tpu.memory_space<smem>>) -> (i32, i32) {
    %c0_i32 = arith.constant 0 : i32
    %c0_i32_0 = arith.constant 0 : i32
    %c0_i32_1 = arith.constant 0 : i32
    return %c0_i32, %c0_i32_0 : i32, i32
  }
  func.func @transform_14(%arg0: i32, %arg1: memref<1xi32, #tpu.memory_space<smem>>) -> (i32, i32) {
    %c0_i32 = arith.constant 0 : i32
    %c0_i32_0 = arith.constant 0 : i32
    %c0_i32_1 = arith.constant 0 : i32
    return %c0_i32, %c0_i32_0 : i32, i32
  }
  func.func @transform_15(%arg0: i32, %arg1: memref<1xi32, #tpu.memory_space<smem>>) -> (i32, i32) {
    %c0_i32 = arith.constant 0 : i32
    %c0_i32_0 = arith.constant 0 : i32
    %c0_i32_1 = arith.constant 0 : i32
    return %c0_i32, %c0_i32_0 : i32, i32
  }
  func.func @transform_16(%arg0: i32, %arg1: memref<1xi32, #tpu.memory_space<smem>>) -> (i32, i32) {
    %c0_i32 = arith.constant 0 : i32
    %c0_i32_0 = arith.constant 0 : i32
    %c0_i32_1 = arith.constant 0 : i32
    return %c0_i32, %c0_i32_0 : i32, i32
  }
  func.func @transform_17(%arg0: i32, %arg1: memref<1xi32, #tpu.memory_space<smem>>) -> (i32, i32) {
    %c0_i32 = arith.constant 0 : i32
    %c0_i32_0 = arith.constant 0 : i32
    %c0_i32_1 = arith.constant 0 : i32
    return %c0_i32, %c0_i32_0 : i32, i32
  }
  func.func @transform_18(%arg0: i32, %arg1: memref<1xi32, #tpu.memory_space<smem>>) -> (i32, i32) {
    %c0_i32 = arith.constant 0 : i32
    %c0_i32_0 = arith.constant 0 : i32
    %c0_i32_1 = arith.constant 0 : i32
    return %c0_i32, %c0_i32_0 : i32, i32
  }
  func.func @transform_19(%arg0: i32, %arg1: memref<1xi32, #tpu.memory_space<smem>>) -> (i32, i32) {
    %c0_i32 = arith.constant 0 : i32
    %c0_i32_0 = arith.constant 0 : i32
    %c0_i32_1 = arith.constant 0 : i32
    return %c0_i32, %c0_i32_0 : i32, i32
  }
  func.func @transform_20(%arg0: i32, %arg1: memref<1xi32, #tpu.memory_space<smem>>) -> (i32, i32) {
    %c0_i32 = arith.constant 0 : i32
    %c0_i32_0 = arith.constant 0 : i32
    %c0_i32_1 = arith.constant 0 : i32
    return %c0_i32, %c0_i32_0 : i32, i32
  }
  func.func @transform_22(%arg0: i32, %arg1: memref<1xi32, #tpu.memory_space<smem>>) -> (i32, i32, i32, i32) {
    %c0_i32 = arith.constant 0 : i32
    %c0_i32_0 = arith.constant 0 : i32
    %c0_i32_1 = arith.constant 0 : i32
    %c0_i32_2 = arith.constant 0 : i32
    %c0_i32_3 = arith.constant 0 : i32
    return %c0_i32, %c0_i32_0, %c0_i32_1, %c0_i32_2 : i32, i32, i32, i32
  }
}

module attributes {stable_mosaic.version = 11 : i64} {
  func.func @_topk_exp_kernel(%arg0: i32, %arg1: memref<2x128xf32, #tpu.memory_space<vmem>>, %arg2: memref<2x1xf32, #tpu.memory_space<vmem>>, %arg3: memref<2x1xf32, #tpu.memory_space<vmem>>, %arg4: memref<2x128xf32, #tpu.memory_space<vmem>>) attributes {dimension_semantics = [#tpu.dimension_semantics<arbitrary>], iteration_bounds = array<i64: 1>, scalar_prefetch = 0 : i64, scratch_operands = 0 : i64, tpu.core_type = #tpu.core_type<tc>, window_params = [{pipeline_mode = #tpu.pipeline_mode<synchronous>, transform_indices = @transform_0, window_bounds = array<i64: 2, 128>}, {pipeline_mode = #tpu.pipeline_mode<synchronous>, transform_indices = @transform_1, window_bounds = array<i64: 2, 1>}, {pipeline_mode = #tpu.pipeline_mode<synchronous>, transform_indices = @transform_2, window_bounds = array<i64: 2, 1>}, {pipeline_mode = #tpu.pipeline_mode<synchronous>, transform_indices = @transform_3, window_bounds = array<i64: 2, 128>}]} {
    %c0 = arith.constant 0 : index
    %c0_0 = arith.constant 0 : index
    %0 = vector.load %arg1[%c0, %c0_0] : memref<2x128xf32, #tpu.memory_space<vmem>>, vector<2x128xf32>
    %c0_1 = arith.constant 0 : index
    %c0_2 = arith.constant 0 : index
    %1 = vector.load %arg2[%c0_1, %c0_2] : memref<2x1xf32, #tpu.memory_space<vmem>>, vector<2x1xf32>
    %2 = vector.broadcast %1 : vector<2x1xf32> to vector<2x128xf32>
    %3 = arith.cmpf oge, %0, %2 : vector<2x128xf32>
    %4 = arith.extui %3 : vector<2x128xi1> to vector<2x128xi32>
    %5 = arith.sitofp %4 : vector<2x128xi32> to vector<2x128xf32>
    %c0_3 = arith.constant 0 : index
    %c0_4 = arith.constant 0 : index
    %6 = vector.load %arg3[%c0_3, %c0_4] : memref<2x1xf32, #tpu.memory_space<vmem>>, vector<2x1xf32>
    %7 = vector.broadcast %6 : vector<2x1xf32> to vector<2x128xf32>
    %8 = arith.subf %0, %7 : vector<2x128xf32>
    %cst = arith.constant 1.000000e+00 : f32
    %9 = vector.broadcast %cst : f32 to vector<2x128xf32>
    %10 = arith.mulf %8, %9 : vector<2x128xf32>
    %11 = math.exp %10 : vector<2x128xf32>
    %12 = arith.mulf %11, %5 : vector<2x128xf32>
    %c0_5 = arith.constant 0 : index
    %c0_6 = arith.constant 0 : index
    %13 = vector.load %arg4[%c0_5, %c0_6] : memref<2x128xf32, #tpu.memory_space<vmem>>, vector<2x128xf32>
    tpu.vector_store %arg4[%c0_5, %c0_6], %12 {strides = array<i32>} : memref<2x128xf32, #tpu.memory_space<vmem>>, vector<2x128xf32>,
    return
  }
  func.func @transform_0(%arg0: i32) -> (i32, i32) {
    %c0_i32 = arith.constant 0 : i32
    %c0_i32_0 = arith.constant 0 : i32
    %c0_i32_1 = arith.constant 0 : i32
    return %c0_i32, %c0_i32_0 : i32, i32
  }
  func.func @transform_1(%arg0: i32) -> (i32, i32) {
    %c0_i32 = arith.constant 0 : i32
    %c0_i32_0 = arith.constant 0 : i32
    %c0_i32_1 = arith.constant 0 : i32
    return %c0_i32, %c0_i32_0 : i32, i32
  }
  func.func @transform_2(%arg0: i32) -> (i32, i32) {
    %c0_i32 = arith.constant 0 : i32
    %c0_i32_0 = arith.constant 0 : i32
    %c0_i32_1 = arith.constant 0 : i32
    return %c0_i32, %c0_i32_0 : i32, i32
  }
  func.func @transform_3(%arg0: i32) -> (i32, i32) {
    %c0_i32 = arith.constant 0 : i32
    %c0_i32_0 = arith.constant 0 : i32
    %c0_i32_1 = arith.constant 0 : i32
    return %c0_i32, %c0_i32_0 : i32, i32
  }
}

</mosaic_0001>

<bundles_post_ra>
// kernel: custom-call.4
= control target key start
LH: loop header
LB: loop body
LE: loop exit
PB: predicated region body
PF: predicated region fallthrough
CT: control target
= control target key end

     0   :  { %s6_s0 = inlined_call_operand.hbm [shape: f32[8,2,131], index: 0, kind: output, shape index: {}]  }

// kernel: custom-call.5
= control target key start
LH: loop header
LB: loop body
LE: loop exit
PB: predicated region body
PF: predicated region fallthrough
CT: control target
= control target key end

     0   :  { %s6_s0 = inlined_call_operand.vmem [shape: f32[8,2], index: 0, kind: output, shape index: {}]  }

// kernel: _lambda_.5
= control target key start
LH: loop header
LB: loop body
LE: loop exit
PB: predicated region body
PF: predicated region fallthrough
CT: control target
= control target key end

     0   :  { %v246_v8 = vmov 128.0   ;;  %s430_s0 = inlined_call_operand.vmem [shape: f32[64,128], index: 0, kind: input, shape index: {}]   ;;  %s431_s1 = inlined_call_operand.vmem [shape: f32[1,128], index: 1, kind: input, shape index: {}]   ;;  %s432_s2 = inlined_call_operand.vmem [shape: f32[1,128], index: 2, kind: input, shape index: {}]   ;;  %s433_s3 = inlined_call_operand.vmem [shape: f32[64,128], index: 3, kind: output, shape index: {}]  }
   0x1   :  { %v18_v0 = vld [vmem:[%s430_s0 + $0x20] sm:$0xff]  ;;  %v16_v1 = vld [vmem:[%s430_s0 + $0x10] sm:$0xff]  ;;  %v19_v3 = vld [vmem:[%s430_s0 + $0x28] sm:$0xff]  ;;  %228 = vrcp.f32 %v246_v8 }
   0x2   :  { %v14_v2 = vld [vmem:[%s430_s0] sm:$0xff]  ;;  %32 = vadd.xlane.f32.xlu2 %v18_v0  ;;  %28 = vadd.xlane.f32.xlu1 %v16_v1  ;;  %v17_v4 = vld [vmem:[%s430_s0 + $0x18] sm:$0xff]  ;;  %v15_v5 = vld [vmem:[%s430_s0 + $0x8] sm:$0xff] }
   0x3   :  { %24 = vadd.xlane.f32.xlu0 %v14_v2  ;;  %v21_v6 = vld [vmem:[%s430_s0 + $0x38] sm:$0xff]  ;;  %v20_v7 = vld [vmem:[%s430_s0 + $0x30] sm:$0xff] }
   0x7   :  { %v229_v9 = vpop.eup %228 }
   0x8   :  { %v41_v10 = vmul.f32 128.0, %v229_v9  ;;  %vm45_vm0 = vweird.f32 %v229_v9 }
   0xa   :  { %34 = vadd.xlane.f32.xlu2 %v19_v3  ;;  %30 = vadd.xlane.f32.xlu1 %v17_v4  ;;  %v42_v11 = vsub.f32 1.0, %v41_v10 }
   0xb   :  { %26 = vadd.xlane.f32.xlu0 %v15_v5 }
   0xc   :  { %v43_v12 = vmul.f32 %v229_v9, %v42_v11 }
   0xe   :  { %v44_v13 = vadd.f32 %v229_v9, %v43_v12 }
  0x10   :  { %v291_v14 = vsel %vm45_vm0, %v229_v9, %v44_v13 }
  0x12   :  { %38 = vadd.xlane.f32.xlu1 %v21_v6 }
  0x13   :  { %36 = vadd.xlane.f32.xlu0 %v20_v7 }
  0x75   :  { %v33_v15 = vpop.xlane.xlu2 %32  ;;  %v29_v16 = vpop.xlane.xlu1 %28 }
  0x76   :  { %v49_v17 = vmul.f32 %v291_v14, %v29_v16  ;;  %v25_v18 = vpop.xlane.xlu0 %24  ;;  %v51_v32 = vmul.f32 %v291_v14, %v33_v15 }
  0x77   :  { %v47_v19 = vmul.f32 %v291_v14, %v25_v18 }
  0x78   :  { %v295_v20 = vsub.f32 %v16_v1, %v49_v17  ;;  %v319_v37 = vsub.f32 %v18_v0, %v51_v32 }
  0x79   :  { %v297_v21 = vsub.f32 %v14_v2, %v47_v19  ;;  %v351_v19 = vld [vmem:[%s431_s1] ss:$0 sm:$0xff] }
  0x7a   :  { %v65_v22 = vmul.f32 %v295_v20, %v295_v20  ;;  %v67_v42 = vmul.f32 %v319_v37, %v319_v37 }
  0x7b   :  { %v63_v23 = vmul.f32 %v297_v21, %v297_v21 }
  0x7c   :  { %75 = vadd.xlane.f32.xlu1 %v65_v22 }
  0x7d   :  { %71 = vadd.xlane.f32.xlu2 %v63_v23  ;;  %v35_v24 = vpop.xlane.xlu2 %34  ;;  %v31_v25 = vpop.xlane.xlu1 %30 }
  0x7e   :  { %v52_v26 = vmul.f32 %v291_v14, %v35_v24  ;;  %v50_v27 = vmul.f32 %v291_v14, %v31_v25  ;;  %v27_v28 = vpop.xlane.xlu0 %26 }
  0x7f   :  { %v48_v29 = vmul.f32 %v291_v14, %v27_v28  ;;  %v361_v28 = vld [vmem:[%s432_s2] ss:$0 sm:$0xff] }
  0x80   :  { %v306_v30 = vsub.f32 %v19_v3, %v52_v26  ;;  %v308_v31 = vsub.f32 %v17_v4, %v50_v27 }
  0x81   :  { %v311_v33 = vsub.f32 %v15_v5, %v48_v29 }
  0x82   :  { %v68_v34 = vmul.f32 %v306_v30, %v306_v30  ;;  %v66_v35 = vmul.f32 %v308_v31, %v308_v31 }
  0x83   :  { %v64_v36 = vmul.f32 %v311_v33, %v311_v33 }
  0x84   :  { %81 = vadd.xlane.f32.xlu1 %v68_v34 }
  0x85   :  { %77 = vadd.xlane.f32.xlu2 %v66_v35  ;;  %73 = vadd.xlane.f32.xlu0 %v64_v36  ;;  %v39_v39 = vpop.xlane.xlu1 %38 }
  0x86   :  { %v37_v38 = vpop.xlane.xlu0 %36  ;;  %v54_v43 = vmul.f32 %v291_v14, %v39_v39 }
  0x87   :  { %v53_v40 = vmul.f32 %v291_v14, %v37_v38 }
  0x88   :  { %v329_v45 = vsub.f32 %v21_v6, %v54_v43 }
  0x89   :  { %v322_v41 = vsub.f32 %v20_v7, %v53_v40 }
  0x8a   :  { %v70_v46 = vmul.f32 %v329_v45, %v329_v45 }
  0x8b   :  { %v69_v44 = vmul.f32 %v322_v41, %v322_v41 }
  0x8d   :  { %79 = vadd.xlane.f32.xlu0 %v67_v42  ;;  %83 = vadd.xlane.f32.xlu2 %v69_v44 }
  0x95   :  { %85 = vadd.xlane.f32.xlu0 %v70_v46 }
  0xef   :  { %v76_v47 = vpop.xlane.xlu1 %75 }
  0xf0   :  { %v89_v48 = vmul.f32 %v76_v47, %v291_v14  ;;  %v72_v49 = vpop.xlane.xlu2 %71 }
  0xf1   :  { %v87_v50 = vmul.f32 %v72_v49, %v291_v14 }
  0xf2   :  { %v97_v51 = vadd.f32 1e-05, %v89_v48 }
  0xf3   :  { %v95_v52 = vadd.f32 1e-05, %v87_v50 }
  0xf4   :  { %230 = vrsqrt.f32 %v97_v51  ;;  %vm129_vm1 = vweird.f32 %v97_v51 }
  0xf5   :  { %232 = vrsqrt.f32 %v95_v52  ;;  %vm109_vm5 = vweird.f32 %v95_v52 }
  0xf7   :  { %v82_v53 = vpop.xlane.xlu1 %81 }
  0xf8   :  { %v92_v54 = vmul.f32 %v82_v53, %v291_v14  ;;  %v78_v55 = vpop.xlane.xlu2 %77  ;;  %v74_v56 = vpop.xlane.xlu0 %73 }
  0xf9   :  { %v90_v57 = vmul.f32 %v78_v55, %v291_v14  ;;  %v88_v58 = vmul.f32 %v74_v56, %v291_v14 }
  0xfa   :  { %v231_v59 = vpop.eup %230  ;;  %v100_v60 = vadd.f32 1e-05, %v92_v54 }
  0xfb   :  { %v233_v61 = vpop.eup %232  ;;  %v124_v62 = vmul.f32 %v231_v59, %v97_v51  ;;  %v338_v63 = vadd.f32 1e-05, %v90_v57  ;;  %v340_v0 = vadd.f32 1e-05, %v88_v58  ;;  %vm130_vm2 = vweird.f32 %v231_v59 }
  0xfc   :  { %v104_v1 = vmul.f32 %v233_v61, %v95_v52  ;;  %234 = vrsqrt.f32 %v100_v60  ;;  %vm110_vm3 = vweird.f32 %v233_v61  ;;  %vm131_vm4 = vmor %vm129_vm1, %vm130_vm2  ;;  %vm159_vm7 = vweird.f32 %v100_v60 }
  0xfd   :  { %v125_v2 = vmul.f32 %v231_v59, %v124_v62  ;;  %236 = vrsqrt.f32 %v338_v63  ;;  %vm111_vm6 = vmor %vm109_vm5, %vm110_vm3  ;;  %vm139_vm9 = vweird.f32 %v338_v63  ;;  %vm119_vm14 = vweird.f32 %v340_v0 }
  0xfe   :  { %v105_v3 = vmul.f32 %v233_v61, %v104_v1  ;;  %238 = vrsqrt.f32 %v340_v0 }
  0xff   :  { %v126_v4 = vmul.f32 0.5, %v125_v2 }
 0x100   :  { %v106_v5 = vmul.f32 0.5, %v105_v3  ;;  %v84_v6 = vpop.xlane.xlu2 %83  ;;  %v80_v7 = vpop.xlane.xlu0 %79 }
 0x101   :  { %v127_v8 = vsub.f32 1.5, %v126_v4  ;;  %v93_v9 = vmul.f32 %v84_v6, %v291_v14  ;;  %v91_v10 = vmul.f32 %v80_v7, %v291_v14 }
 0x102   :  { %v235_v11 = vpop.eup %234  ;;  %v107_v12 = vsub.f32 1.5, %v106_v5 }
 0x103   :  { %v237_v13 = vpop.eup %236  ;;  %v128_v15 = vmul.f32 %v231_v59, %v127_v8  ;;  %v154_v16 = vmul.f32 %v235_v11, %v100_v60  ;;  %v346_v17 = vadd.f32 1e-05, %v93_v9  ;;  %v355_v24 = vadd.f32 1e-05, %v91_v10 }
 0x104   :  { %v239_v18 = vpop.eup %238  ;;  %v108_v22 = vmul.f32 %v233_v61, %v107_v12  ;;  %v134_v23 = vmul.f32 %v237_v13, %v338_v63  ;;  %vm160_vm8 = vweird.f32 %v235_v11  ;;  %vm140_vm11 = vweird.f32 %v237_v13 }
 0x105   :  { %v132_v25 = vsel %vm131_vm4, %v231_v59, %v128_v15  ;;  %v155_v26 = vmul.f32 %v235_v11, %v154_v16  ;;  %v114_v27 = vmul.f32 %v239_v18, %v340_v0  ;;  %240 = vrsqrt.f32 %v346_v17  ;;  %vm373_vm10 = vmor %vm159_vm7, %vm160_vm8 }
 0x106   :  { %v185_v29 = vmul.f32 %v132_v25, %v295_v20  ;;  %v112_v32 = vsel %vm111_vm6, %v233_v61, %v108_v22  ;;  %v135_v34 = vmul.f32 %v237_v13, %v134_v23  ;;  %242 = vrsqrt.f32 %v355_v24  ;;  %vm141_vm13 = vmor %vm139_vm9, %vm140_vm11 }
 0x107   :  { %v183_v35 = vmul.f32 %v112_v32, %v297_v21  ;;  %v156_v36 = vmul.f32 0.5, %v155_v26  ;;  %v115_v38 = vmul.f32 %v239_v18, %v114_v27  ;;  %vm120_vm12 = vweird.f32 %v239_v18 }
 0x108   :  { %v196_v39 = vmul.f32 %v351_v19, %v185_v29  ;;  %v136_v40 = vmul.f32 0.5, %v135_v34  ;;  %v86_v42 = vpop.xlane.xlu0 %85  ;;  %vm121_vm15 = vmor %vm119_vm14, %vm120_vm12  ;;  %vm169_vm0 = vweird.f32 %v346_v17  ;;  %vm149_vm4 = vweird.f32 %v355_v24 }
 0x109   :  { %v194_v43 = vmul.f32 %v351_v19, %v183_v35  ;;  %v157_v20 = vsub.f32 1.5, %v156_v36  ;;  %v116_v44 = vmul.f32 0.5, %v115_v38  ;;  %v94_v46 = vmul.f32 %v86_v42, %v291_v14 }
 0x10a   :  { %v207_v47 = vadd.f32 %v361_v28, %v196_v39  ;;  %v137_v48 = vsub.f32 1.5, %v136_v40 }
 0x10b   :  { %v205_v49 = vadd.f32 %v361_v28, %v194_v43  ;;  %v158_v50 = vmul.f32 %v235_v11, %v157_v20  ;;  %v117_v51 = vsub.f32 1.5, %v116_v44  ;;  %v102_v52 = vadd.f32 1e-05, %v94_v46  ;;  %v241_v53 = vpop.eup %240 }
 0x10c   :  { %215 = vst [vmem:[%s433_s3 + $0x10] sm:$0xff] %v207_v47  ;;  %v138_v14 = vmul.f32 %v237_v13, %v137_v48  ;;  %v164_v56 = vmul.f32 %v241_v53, %v346_v17  ;;  %v243_v57 = vpop.eup %242  ;;  %vm170_vm1 = vweird.f32 %v241_v53 }
 0x10d   :  { %213 = vst [vmem:[%s433_s3] sm:$0xff] %v205_v49  ;;  %v162_v54 = vsel %vm373_vm10, %v235_v11, %v158_v50  ;;  %v118_v55 = vmul.f32 %v239_v18, %v117_v51  ;;  %244 = vrsqrt.f32 %v102_v52  ;;  %v144_v1 = vmul.f32 %v243_v57, %v355_v24  ;;  %vm171_vm3 = vmor %vm169_vm0, %vm170_vm1 }
 0x10e   :  { %v188_v58 = vmul.f32 %v162_v54, %v306_v30  ;;  %v142_v59 = vsel %vm141_vm13, %v237_v13, %v138_v14  ;;  %v165_v62 = vmul.f32 %v241_v53, %v164_v56  ;;  %vm150_vm2 = vweird.f32 %v243_v57 }
 0x10f   :  { %v186_v60 = vmul.f32 %v142_v59, %v308_v31  ;;  %v122_v61 = vsel %vm121_vm15, %v239_v18, %v118_v55  ;;  %v145_v4 = vmul.f32 %v243_v57, %v144_v1  ;;  %vm151_vm5 = vmor %vm149_vm4, %vm150_vm2  ;;  %vm179_vm7 = vweird.f32 %v102_v52 }
 0x110   :  { %v199_v63 = vmul.f32 %v351_v19, %v188_v58  ;;  %v184_v2 = vmul.f32 %v122_v61, %v311_v33  ;;  %v166_v3 = vmul.f32 0.5, %v165_v62 }
 0x111   :  { %v197_v0 = vmul.f32 %v351_v19, %v186_v60  ;;  %v146_v7 = vmul.f32 0.5, %v145_v4 }
 0x112   :  { %v210_v30 = vadd.f32 %v361_v28, %v199_v63  ;;  %v195_v5 = vmul.f32 %v351_v19, %v184_v2  ;;  %v167_v6 = vsub.f32 1.5, %v166_v3 }
 0x113   :  { %v208_v31 = vadd.f32 %v361_v28, %v197_v0  ;;  %v245_v8 = vpop.eup %244  ;;  %v147_v10 = vsub.f32 1.5, %v146_v7 }
 0x114   :  { %218 = vst [vmem:[%s433_s3 + $0x28] sm:$0xff] %v210_v30  ;;  %v206_v33 = vadd.f32 %v361_v28, %v195_v5  ;;  %v168_v9 = vmul.f32 %v241_v53, %v167_v6  ;;  %v174_v11 = vmul.f32 %v245_v8, %v102_v52  ;;  %vm180_vm6 = vweird.f32 %v245_v8 }
 0x115   :  { %216 = vst [vmem:[%s433_s3 + $0x18] sm:$0xff] %v208_v31  ;;  %v148_v13 = vmul.f32 %v243_v57, %v147_v10  ;;  %vm181_vm8 = vmor %vm179_vm7, %vm180_vm6 }
 0x116   :  { %214 = vst [vmem:[%s433_s3 + $0x8] sm:$0xff] %v206_v33  ;;  %v172_v12 = vsel %vm171_vm3, %v241_v53, %v168_v9  ;;  %v175_v15 = vmul.f32 %v245_v8, %v174_v11 }
 0x117   :  { %v189_v16 = vmul.f32 %v172_v12, %v322_v41  ;;  %v152_v17 = vsel %vm151_vm5, %v243_v57, %v148_v13 }
 0x118   :  { %v176_v18 = vmul.f32 0.5, %v175_v15  ;;  %v187_v23 = vmul.f32 %v152_v17, %v319_v37 }
 0x119   :  { %v200_v22 = vmul.f32 %v351_v19, %v189_v16 }
 0x11a   :  { %v177_v25 = vsub.f32 1.5, %v176_v18  ;;  %v198_v27 = vmul.f32 %v351_v19, %v187_v23 }
 0x11b   :  { %v211_v26 = vadd.f32 %v361_v28, %v200_v22 }
 0x11c   :  { %v178_v29 = vmul.f32 %v245_v8, %v177_v25  ;;  %v209_v41 = vadd.f32 %v361_v28, %v198_v27 }
 0x11d   :  { %219 = vst [vmem:[%s433_s3 + $0x30] sm:$0xff] %v211_v26 }
 0x11e   :  { %v182_v24 = vsel %vm181_vm8, %v245_v8, %v178_v29  ;;  %217 = vst [vmem:[%s433_s3 + $0x20] sm:$0xff] %v209_v41 }
 0x11f   :  { %v190_v37 = vmul.f32 %v182_v24, %v329_v45 }
 0x121   :  { %v201_v32 = vmul.f32 %v351_v19, %v190_v37 }
 0x123   :  { %v212_v34 = vadd.f32 %v361_v28, %v201_v32 }
 0x125   :  { %220 = vst [vmem:[%s433_s3 + $0x38] sm:$0xff] %v212_v34 }

// kernel: _lambda_.9
= control target key start
LH: loop header
LB: loop body
LE: loop exit
PB: predicated region body
PF: predicated region fallthrough
CT: control target
= control target key end

     0   :  { %8 = vsyncpa [#allocation3], 0  ;;  %s888_s0 = inlined_call_operand.vmem [shape: f32[4,16,128], index: 0, kind: input, shape index: {}]   ;;  %s889_s1 = inlined_call_operand.hbm [shape: bf16[2,128,256], index: 1, kind: input, shape index: {}]   ;;  %s890_s2 = inlined_call_operand.vmem [shape: f32[2,1,256], index: 2, kind: input, shape index: {}]   ;;  %s891_s3 = inlined_call_operand.vmem [shape: f32[2,4,16,256], index: 3, kind: output, shape index: {}]  }
   0x1   :  { %10 = vsyncpa [#allocation3 + $0x1], 0  ;;  %s717_s12 = smov 0   ;;  %s719_s13 = smov 0  }
   0x2   :  { %s721_s14 = smov 0   ;;  %s723_s15 = smov 0  }
   0x3 LB: > { %s736_s16 = sadd.s32 4294967295, %s693_s15   ;;  %s739_s17 = sadd.s32 1, %s693_s15   ;;  %s693_s15 = sphi %s723_s15, %s898_s15   ;;  %s689_s14 = sphi %s721_s14, %s897_s14   ;;  %s685_s13 = sphi %s719_s13, %s896_s13   ;;  %s681_s12 = sphi %s717_s12, %s895_s12  }
   0x4   : > { %s41_s18 = ssub.s32 %s693_s15, %s739_s17  ;;  %s44_s19 = sadd.s32 1, %s689_s14 }
   0x5   : > { %p42_p0 = scmp.eq.s32.totalorder %s41_s18, 0  ;;  %p51_p1 = scmp.ne.s32.totalorder %s689_s14, %s685_s13 }
   0x6   : > { %p52_p2 = scmp.eq.s32.totalorder %s693_s15, 0  ;;  %p57_p3 = scmp.ne.s32.totalorder %s685_s13, %s681_s12 }
   0x7   : > { %s749_s20 = scalar_select %p42_p0, %s689_s14, %s44_s19  }
   0x8   : > { %p751_p4 = por %p52_p2, %p51_p1  ;;  %p58_p5 = scmp.eq.s32.totalorder %s736_s16, 0 }
   0x9   : > { %p594_p6 = scmp.lt.s32.totalorder %s693_s15, 2  ;;  %s136_s23 = sand.u32 1, %s689_s14  }
   0xa   : > { %p757_p7 = por %p58_p5, %p57_p3  ;;  %s480_s24 = sshll.u32 %s136_s23, 7 }
   0xb   : > { %s554_s25 = sshll.u32 %s693_s15, 7  ;;  %s140_s29 = scalar_lea.vmem [#allocation2], %s480_s24 }
   0xc   : > { %s145_s28 = scalar_lea.hbm %s889_s1, %s554_s25  ;;  %s148_s30 = sshll.u32 %s140_s29, 4  ;;  %s149_s30 = int_to_ptr.vmem [resolvable:$true] %s148_s30 }
   0xd   : > { %s146_s4 = sshll.u32 %s145_s28, 4  ;;  %p768_p8 = pnand %p594_p6, %p751_p4  ;;  %s147_s4 = int_to_ptr.hbm [resolvable:$true] %s146_s4 }
   0xe   : > { %p483_p9 = scmp.ge.s32.totalorder %s693_s15, 1  ;;  %s137_s6 = scalar_lea.sflag [#allocation3], %s136_s23 }
   0xf   : > { %s629_s7 = sshra.s32 %s147_s4, 4  ;;  %p633_p11 = pneg %p768_p8  ;;  %s630_s7 = int_to_ptr.hbm [resolvable:$true] %s629_s7 }
  0x10   : > { %s631_s8 = scalar_lea.hbm %s630_s7, 128  ;;  %s636_s11 = scalar_lea.hbm %s889_s1, 256 }
  0x11   : > { %p632_p10 = scmp.ne.s32.totalorder %s630_s7, %s631_s8  ;;  %p637_p0 = scmp.lt.s32.totalorder %s630_s7, %s889_s1 }
  0x12   : > { %p638_p1 = scmp.lt.s32.totalorder %s636_s11, %s631_s8 }
  0x13   : > { %p634_p12 = pnand %p633_p11, %p632_p10 }
  0x14   : > { %p639_p2 = por %p638_p1, %p637_p0 }
  0x15   : > { %p635_p13 = pneg %p634_p12 }
  0x17   : > { %p640_p3 = pnand %p639_p2, %p635_p13 }
  0x19   : > { %643 = shalt.err (!%p640_p3)
}
  0x1a   : > { %s695_s19 = smov 128   ;;  %s696_s21 = smov 8  }
  0x1b   : > { %593 = dma.hbm_to_vmem [thread:$0]  (!%p768_p8), %s147_s4, 2048, %s149_s30, %s137_s6, %s695_s19, %s695_s19, %s696_s21  }
  0x1c   : > { %p163_p4 = scmp.lt.s32.totalorder %s693_s15, 3 }
  0x1e   : > { %p164_p5 = pnand %p483_p9, %p163_p4 }
  0x1f   : > { %s169_s23 = sand.u32 (!%p164_p5), 1, %s685_s13  }
  0x20   : > { %167 = sbr.rel (%p164_p5) target bundleno = 232 (0xe8), region = 32  ;;  %s484_s24 = sshll.u32 (!%p164_p5), %s169_s23, 7 }
  0x21   : > { %s170_s25 = scalar_lea.sflag (!%p164_p5), [#allocation3], %s169_s23  ;;  %s787_s26 = scalar_lea.vmem (!%p164_p5), [#allocation2], %s484_s24 }
  0x25   : > { %676 = dma.done.wait (%p757_p7), %s170_s25, 2048  }
  0x26   : > { %678 = vsyncadd (%p757_p7), %s170_s25, 4294965248  ;;  %v546_v0 = vld [vmem:[%s787_s26 + $0x70] sm:$0xf]  ;;  %v571_v1 = vld [vmem:[%s787_s26 + $0x74] sm:$0xf0]  ;;  %p201_p6 = scmp.lt.s32.totalorder %s736_s16, 1 }
  0x27   : > { %v570_v2 = vld [vmem:[%s787_s26 + $0x74] sm:$0xf]  ;;  %v547_v3 = vor.u32 %v571_v1, %v546_v0  ;;  %v548_v4 = vld [vmem:[%s787_s26 + $0x78] sm:$0xf0]  ;;  %v538_v5 = vld [vmem:[%s787_s26 + $0x60] sm:$0xf] }
  0x28   : > { %v569_v6 = vld [vmem:[%s787_s26 + $0x64] sm:$0xf0]  ;;  %v551_v7 = vor.u32 %v570_v2, %v548_v4  ;;  %v568_v8 = vld [vmem:[%s787_s26 + $0x64] sm:$0xf]  ;;  %v540_v9 = vld [vmem:[%s787_s26 + $0x68] sm:$0xf0] }
  0x29   : > { %324 = vmatpush.bf16.msra.mxu0 %v547_v3  ;;  %572 = vmatpush.bf16.msra.mxu2 %v547_v3  ;;  %v539_v10 = vor.u32 %v569_v6, %v538_v5  ;;  %v543_v11 = vor.u32 %v568_v8, %v540_v9  ;;  %v530_v12 = vld [vmem:[%s787_s26 + $0x50] sm:$0xf]  ;;  %v567_v13 = vld [vmem:[%s787_s26 + $0x54] sm:$0xf0]  ;;  %v566_v14 = vld [vmem:[%s787_s26 + $0x54] sm:$0xf] }
  0x2a   : > { %353 = vmatpush.bf16.msra.mxu1 %v551_v7  ;;  %580 = vmatpush.bf16.msra.mxu3 %v551_v7  ;;  %v532_v15 = vld [vmem:[%s787_s26 + $0x58] sm:$0xf0]  ;;  %v531_v16 = vor.u32 %v567_v13, %v530_v12  ;;  %v522_v18 = vld [vmem:[%s787_s26 + $0x40] sm:$0xf]  ;;  %v565_v19 = vld [vmem:[%s787_s26 + $0x44] sm:$0xf0] }
  0x2b   : > { %v535_v17 = vor.u32 %v566_v14, %v532_v15  ;;  %v564_v20 = vld [vmem:[%s787_s26 + $0x44] sm:$0xf]  ;;  %v524_v21 = vld [vmem:[%s787_s26 + $0x48] sm:$0xf0]  ;;  %v523_v22 = vor.u32 %v565_v19, %v522_v18  ;;  %v514_v24 = vld [vmem:[%s787_s26 + $0x30] sm:$0xf] }
  0x2c   : > { %v527_v23 = vor.u32 %v564_v20, %v524_v21  ;;  %v563_v25 = vld [vmem:[%s787_s26 + $0x34] sm:$0xf0]  ;;  %v562_v26 = vld [vmem:[%s787_s26 + $0x34] sm:$0xf]  ;;  %v516_v27 = vld [vmem:[%s787_s26 + $0x38] sm:$0xf0] }
  0x2d   : > { %325 = vmatpush.bf16.msra.mxu0 %v539_v10  ;;  %573 = vmatpush.bf16.msra.mxu2 %v539_v10  ;;  %v515_v28 = vor.u32 %v563_v25, %v514_v24  ;;  %v519_v29 = vor.u32 %v562_v26, %v516_v27  ;;  %v506_v30 = vld [vmem:[%s787_s26 + $0x20] sm:$0xf]  ;;  %v561_v31 = vld [vmem:[%s787_s26 + $0x24] sm:$0xf0]  ;;  %v560_v32 = vld [vmem:[%s787_s26 + $0x24] sm:$0xf] }
  0x2e   : > { %354 = vmatpush.bf16.msra.mxu1 %v543_v11  ;;  %581 = vmatpush.bf16.msra.mxu3 %v543_v11  ;;  %v508_v33 = vld [vmem:[%s787_s26 + $0x28] sm:$0xf0]  ;;  %v507_v34 = vor.u32 %v561_v31, %v506_v30  ;;  %v498_v36 = vld [vmem:[%s787_s26 + $0x10] sm:$0xf]  ;;  %v559_v37 = vld [vmem:[%s787_s26 + $0x14] sm:$0xf0] }
  0x2f   : > { %v511_v35 = vor.u32 %v560_v32, %v508_v33  ;;  %v558_v38 = vld [vmem:[%s787_s26 + $0x14] sm:$0xf]  ;;  %v500_v39 = vld [vmem:[%s787_s26 + $0x18] sm:$0xf0]  ;;  %v499_v40 = vor.u32 %v559_v37, %v498_v36  ;;  %v490_v42 = vld [vmem:[%s787_s26] sm:$0xf] }
  0x30   : > { %v503_v41 = vor.u32 %v558_v38, %v500_v39  ;;  %v557_v43 = vld [vmem:[%s787_s26 + $0x4] sm:$0xf0]  ;;  %v556_v44 = vld [vmem:[%s787_s26 + $0x4] sm:$0xf]  ;;  %v492_v45 = vld [vmem:[%s787_s26 + $0x8] sm:$0xf0] }
  0x31   : > { %326 = vmatpush.bf16.msra.mxu0 %v531_v16  ;;  %574 = vmatpush.bf16.msra.mxu2 %v531_v16  ;;  %v210_v46 = vld [vmem:[%s888_s0] sm:$0xff]  ;;  %v491_v47 = vor.u32 %v557_v43, %v490_v42  ;;  %v211_v48 = vld [vmem:[%s888_s0 + $0x8] sm:$0xff]  ;;  %v495_v51 = vor.u32 %v556_v44, %v492_v45  ;;  %v212_v54 = vld [vmem:[%s888_s0 + $0x10] sm:$0xff]  ;;  %s900_s16 = smov (!%p201_p6, %s736_s16), 1 }
  0x32   : > { %355 = vmatpush.bf16.msra.mxu1 %v535_v17  ;;  %582 = vmatpush.bf16.msra.mxu3 %v535_v17  ;;  %v214_v49 = vld [vmem:[%s888_s0 + $0x20] sm:$0xff]  ;;  %v215_v50 = vld [vmem:[%s888_s0 + $0x28] sm:$0xff]  ;;  %v218_v52 = vpack.c.bf16 %v211_v48, %v210_v46  ;;  %v213_v55 = vld [vmem:[%s888_s0 + $0x18] sm:$0xff]  ;;  %s485_s19 = sshll.u32 %s900_s16, 1  ;;  %s555_s25 = sshll.u32 %s900_s16, 7 }
  0x33   : > { %v220_v53 = vpack.c.bf16 %v215_v50, %v214_v49  ;;  %v216_v56 = vld [vmem:[%s888_s0 + $0x30] sm:$0xff]  ;;  %v217_v57 = vld [vmem:[%s888_s0 + $0x38] sm:$0xff]  ;;  %v219_v58 = vpack.c.bf16 %v213_v55, %v212_v54  ;;  %s204_s24 = scalar_lea.vmem %s890_s2, %s485_s19  ;;  %s857_s22 = scalar_lea.vmem %s891_s3, %s555_s25 }
  0x34   : > { %v221_v59 = vpack.c.bf16 %v217_v57, %v216_v56  ;;  %v238_v60 = vld [vmem:[%s204_s24] sm:$0x3] }
  0x35   : > { %327 = vmatpush.bf16.msra.mxu0 %v523_v22  ;;  %575 = vmatpush.bf16.msra.mxu2 %v523_v22  ;;  %v240_v61 = vperm.slane %v238_v60, 0  ;;  %v241_v62 = vperm.slane %v238_v60, 1 }
  0x36   : > { %356 = vmatpush.bf16.msra.mxu1 %v527_v23  ;;  %583 = vmatpush.bf16.msra.mxu3 %v527_v23 }
  0x39   : > { %328 = vmatpush.bf16.msra.mxu0 %v515_v28  ;;  %576 = vmatpush.bf16.msra.mxu2 %v515_v28 }
  0x3a   : > { %357 = vmatpush.bf16.msra.mxu1 %v519_v29  ;;  %584 = vmatpush.bf16.msra.mxu3 %v519_v29 }
  0x3d   : > { %329 = vmatpush.bf16.msra.mxu0 %v507_v34  ;;  %577 = vmatpush.bf16.msra.mxu2 %v507_v34 }
  0x3e   : > { %358 = vmatpush.bf16.msra.mxu1 %v511_v35  ;;  %585 = vmatpush.bf16.msra.mxu3 %v511_v35 }
  0x41   : > { %330 = vmatpush.bf16.msra.mxu0 %v499_v40  ;;  %578 = vmatpush.bf16.msra.mxu2 %v499_v40 }
  0x42   : > { %359 = vmatpush.bf16.msra.mxu1 %v503_v41  ;;  %586 = vmatpush.bf16.msra.mxu3 %v503_v41 }
  0x45   : > { %331 = vmatpush.bf16.msra.mxu0 %v491_v47  ;;  %579 = vmatpush.bf16.msra.mxu2 %v491_v47 }
  0x46   : > { %360 = vmatpush.bf16.msra.mxu1 %v495_v51  ;;  %587 = vmatpush.bf16.msra.mxu3 %v495_v51 }
  0x48   : > { %332 = vmatmul.bf16.vlgmr.msra.gmra.mxu0 %v218_v52  ;;  %342 = vmatmul.bf16.vlgmr.msra.gmra.mxu2 %v220_v53 }
  0x49   : > { %361 = vmatmul.bf16.vlgmr.msra.gmra.mxu1 %v218_v52  ;;  %371 = vmatmul.bf16.vlgmr.msra.gmra.mxu3 %v220_v53 }
  0x58   : > { %337 = vmatmul.bf16.gmra.mxu0 %v219_v58  ;;  %347 = vmatmul.bf16.gmra.mxu2 %v221_v59 }
  0x59   : > { %366 = vmatmul.bf16.gmra.mxu1 %v219_v58  ;;  %376 = vmatmul.bf16.gmra.mxu3 %v221_v59 }
  0xc5   : > { %v333_v63 = vpop.f32.mrf.mxu0 }
  0xc6   : > { %v334_v0 = vadd.f32 %v333_v63, %v240_v61  ;;  %v362_v1 = vpop.f32.mrf.mxu1 }
  0xc7   : > { %v363_v2 = vadd.f32 %v362_v1, %v241_v62 }
  0xc8   : > { %382 = vst [vmem:[%s857_s22] sm:$0xff] %v334_v0 }
  0xc9   : > { %383 = vst [vmem:[%s857_s22 + $0x8] sm:$0xff] %v363_v2 }
  0xcb   : > { %v343_v3 = vpop.f32.mrf.mxu2 }
  0xcc   : > { %v344_v4 = vadd.f32 %v343_v3, %v240_v61  ;;  %v372_v5 = vpop.f32.mrf.mxu3 }
  0xcd   : > { %v373_v6 = vadd.f32 %v372_v5, %v241_v62  ;;  %v335_v7 = vpop.f32.mrf.mxu0 }
  0xce   : > { %390 = vst [vmem:[%s857_s22 + $0x40] sm:$0xff] %v344_v4  ;;  %v336_v8 = vadd.f32 %v335_v7, %v240_v61  ;;  %v364_v9 = vpop.f32.mrf.mxu1 }
  0xcf   : > { %391 = vst [vmem:[%s857_s22 + $0x48] sm:$0xff] %v373_v6  ;;  %v365_v10 = vadd.f32 %v364_v9, %v241_v62 }
  0xd0   : > { %384 = vst [vmem:[%s857_s22 + $0x10] sm:$0xff] %v336_v8 }
  0xd1   : > { %385 = vst [vmem:[%s857_s22 + $0x18] sm:$0xff] %v365_v10 }
  0xd3   : > { %v345_v11 = vpop.f32.mrf.mxu2 }
  0xd4   : > { %v346_v12 = vadd.f32 %v345_v11, %v240_v61  ;;  %v374_v13 = vpop.f32.mrf.mxu3 }
  0xd5   : > { %v375_v14 = vadd.f32 %v374_v13, %v241_v62  ;;  %v338_v15 = vpop.f32.mrf.mxu0 }
  0xd6   : > { %392 = vst [vmem:[%s857_s22 + $0x50] sm:$0xff] %v346_v12  ;;  %v339_v16 = vadd.f32 %v338_v15, %v240_v61  ;;  %v367_v17 = vpop.f32.mrf.mxu1 }
  0xd7   : > { %393 = vst [vmem:[%s857_s22 + $0x58] sm:$0xff] %v375_v14  ;;  %v368_v18 = vadd.f32 %v367_v17, %v241_v62 }
  0xd8   : > { %386 = vst [vmem:[%s857_s22 + $0x20] sm:$0xff] %v339_v16 }
  0xd9   : > { %387 = vst [vmem:[%s857_s22 + $0x28] sm:$0xff] %v368_v18 }
  0xdb   : > { %v348_v19 = vpop.f32.mrf.mxu2 }
  0xdc   : > { %v349_v20 = vadd.f32 %v348_v19, %v240_v61  ;;  %v377_v21 = vpop.f32.mrf.mxu3 }
  0xdd   : > { %v378_v22 = vadd.f32 %v377_v21, %v241_v62  ;;  %v340_v23 = vpop.f32.mrf.mxu0 }
  0xde   : > { %394 = vst [vmem:[%s857_s22 + $0x60] sm:$0xff] %v349_v20  ;;  %v341_v24 = vadd.f32 %v340_v23, %v240_v61  ;;  %v369_v25 = vpop.f32.mrf.mxu1 }
  0xdf   : > { %395 = vst [vmem:[%s857_s22 + $0x68] sm:$0xff] %v378_v22  ;;  %v370_v26 = vadd.f32 %v369_v25, %v241_v62 }
  0xe0   : > { %388 = vst [vmem:[%s857_s22 + $0x30] sm:$0xff] %v341_v24 }
  0xe1   : > { %389 = vst [vmem:[%s857_s22 + $0x38] sm:$0xff] %v370_v26 }
  0xe3   : > { %v350_v27 = vpop.f32.mrf.mxu2 }
  0xe4   : > { %v351_v28 = vadd.f32 %v350_v27, %v240_v61  ;;  %v379_v29 = vpop.f32.mrf.mxu3 }
  0xe5   : > { %v380_v30 = vadd.f32 %v379_v29, %v241_v62 }
  0xe6   : > { %396 = vst [vmem:[%s857_s22 + $0x70] sm:$0xff] %v351_v28 }
  0xe7   : > { %397 = vst [vmem:[%s857_s22 + $0x78] sm:$0xff] %v380_v30 }
  0xe8 PF: > { %p13_p7 = scmp.ge.s32.totalorder %s739_s17, 4   ;;  %s895_s12 = smov %s685_s13 }
  0xe9   : > { %s896_s13 = smov %s689_s14  ;;  %s897_s14 = smov %s749_s20 }
  0xea   : > { %s898_s15 = smov %s739_s17  ;;  %15 = sbr.rel (!%p13_p7) target bundleno = 3 (0x3), region = 75 }
  0xef   :  { %419 = vsyncpa [#allocation3], 1 }
  0xf0   :  { %421 = vsyncpa [#allocation3 + $0x1], 1 }

// kernel: closed_call.52
= control target key start
LH: loop header
LB: loop body
LE: loop exit
PB: predicated region body
PF: predicated region fallthrough
CT: control target
= control target key end

     0   :  { %vm17_vm0 = vcmask 1043456   ;;  %v67_v2 = vmov 128.0   ;;  %s102_s0 = inlined_call_operand.vmem [shape: f32[4,128], index: 0, kind: input, shape index: {}]   ;;  %s103_s1 = inlined_call_operand.vmem [shape: f32[1,128], index: 1, kind: input, shape index: {}]   ;;  %s104_s2 = inlined_call_operand.vmem [shape: f32[1,128], index: 2, kind: input, shape index: {}]   ;;  %s105_s3 = inlined_call_operand.vmem [shape: f32[4,128], index: 3, kind: output, shape index: {}]  }
   0x1   :  { %v14_v0 = vld [vmem:[%s102_s0] sm:$0xf]  ;;  %63 = vrcp.f32 %v67_v2 }
   0x2   :  { %v18_v1 = vsel %vm17_vm0, %v14_v0, 0.0  ;;  %v61_v23 = vld [vmem:[%s103_s1] ss:$0 sm:$0xff] }
   0x3   :  { %19 = vadd.xlane.f32.xlu0 %v18_v1  ;;  %v62_v25 = vld [vmem:[%s104_s2] ss:$0 sm:$0xff] }
   0x7   :  { %v64_v3 = vpop.eup %63 }
   0x8   :  { %v22_v4 = vmul.f32 128.0, %v64_v3  ;;  %vm26_vm1 = vweird.f32 %v64_v3 }
   0xa   :  { %v23_v5 = vsub.f32 1.0, %v22_v4 }
   0xc   :  { %v24_v6 = vmul.f32 %v64_v3, %v23_v5 }
   0xe   :  { %v25_v7 = vadd.f32 %v64_v3, %v24_v6 }
  0x10   :  { %v27_v8 = vsel %vm26_vm1, %v64_v3, %v25_v7 }
  0x76   :  { %v20_v9 = vpop.xlane.xlu0 %19 }
  0x77   :  { %v28_v10 = vmul.f32 %v27_v8, %v20_v9 }
  0x79   :  { %v29_v11 = vsub.f32 %v14_v0, %v28_v10 }
  0x7b   :  { %v30_v12 = vmul.f32 %v29_v11, %v29_v11 }
  0x7d   :  { %v31_v13 = vsel %vm17_vm0, %v30_v12, 0.0 }
  0x7e   :  { %32 = vadd.xlane.f32.xlu0 %v31_v13 }
  0xf1   :  { %v33_v14 = vpop.xlane.xlu0 %32 }
  0xf2   :  { %v34_v15 = vmul.f32 %v33_v14, %v27_v8 }
  0xf4   :  { %v35_v16 = vadd.f32 1e-05, %v34_v15 }
  0xf6   :  { %65 = vrsqrt.f32 %v35_v16  ;;  %vm42_vm3 = vweird.f32 %v35_v16 }
  0xfc   :  { %v66_v17 = vpop.eup %65 }
  0xfd   :  { %v37_v18 = vmul.f32 %v66_v17, %v35_v16  ;;  %vm43_vm2 = vweird.f32 %v66_v17 }
  0xfe   :  { %vm44_vm4 = vmor %vm42_vm3, %vm43_vm2 }
  0xff   :  { %v38_v19 = vmul.f32 %v66_v17, %v37_v18 }
 0x101   :  { %v39_v20 = vmul.f32 0.5, %v38_v19 }
 0x103   :  { %v40_v21 = vsub.f32 1.5, %v39_v20 }
 0x105   :  { %v41_v22 = vmul.f32 %v66_v17, %v40_v21 }
 0x107   :  { %v45_v24 = vsel %vm44_vm4, %v66_v17, %v41_v22 }
 0x108   :  { %v46_v26 = vmul.f32 %v45_v24, %v29_v11 }
 0x10a   :  { %v50_v27 = vmul.f32 %v61_v23, %v46_v26 }
 0x10c   :  { %v54_v28 = vadd.f32 %v62_v25, %v50_v27 }
 0x10e   :  { %55 = vst [vmem:[%s105_s3] sm:$0xf] %v54_v28 }

// kernel: closed_call.55
= control target key start
LH: loop header
LB: loop body
LE: loop exit
PB: predicated region body
PF: predicated region fallthrough
CT: control target
= control target key end

     0   :  { %s1057_s0 = inlined_call_operand.vmem [shape: f32[4,128], index: 0, kind: input, shape index: {}]   ;;  %s1058_s1 = inlined_call_operand.vmem [shape: f32[1,128], index: 1, kind: input, shape index: {}]   ;;  %s1059_s2 = inlined_call_operand.vmem [shape: f32[1,128], index: 2, kind: input, shape index: {}]   ;;  %s1060_s3 = inlined_call_operand.vmem [shape: bf16[128,256], index: 3, kind: input, shape index: {}]   ;;  %s1061_s4 = inlined_call_operand.vmem [shape: f32[1,256], index: 4, kind: input, shape index: {}]   ;;  %s1062_s5 = inlined_call_operand.vmem [shape: f32[1,128], index: 5, kind: input, shape index: {}]   ;;  %s1063_s6 = inlined_call_operand.<no memory space> [shape: f32[1,1], index: 6, kind: input, shape index: {}, may-alias: {6,8}]   ;;  %s1064_s9 = inlined_call_operand.vmem [shape: f32[4,256], index: 9, kind: output, shape index: {0}]   ;;  %s1065_s10 = inlined_call_operand.vmem [shape: f32[2,128], index: 10, kind: output, shape index: {1}]   ;;  %s1066_s11 = inlined_call_operand.vmem [shape: f32[4,1], index: 11, kind: output, shape index: {2}]   ;;  %s1067_s7 = inlined_call_operand.<no memory space> [shape: f32[1,1], index: 7, kind: input, shape index: {}]   ;;  %s1068_s8 = inlined_call_operand.<no memory space> [shape: f32[1,1], index: 8, kind: input, shape index: {}, may-alias: {6,8}]  }
   0x1   :  { %v17_v0 = vstv %s1063_s6  ;;  %v19_v1 = vstv %s1067_s7  ;;  %v21_v2 = vstv %s1068_s8 }
   0x2   :  { %18 = vst [vmem:[#allocation3] sm:$0x1] %v17_v0 }
   0x3   :  { %20 = vst [vmem:[#allocation4] sm:$0x1] %v19_v1 }
   0x4   :  { %22 = vst [vmem:[#allocation5] sm:$0x1] %v21_v2 }
   0x5   :  { %s934_s23 = smov 0   ;;  %s936_s24 = smov 0  }
   0x6   :  { %s938_s25 = smov 0  }
   0x7 LB: > { %s950_s6 = sadd.s32 4294967295, %s862_s25   ;;  %s953_s7 = sadd.s32 1, %s862_s25   ;;  %s862_s25 = sphi %s938_s25, %s1071_s25   ;;  %s858_s24 = sphi %s936_s24, %s1070_s24   ;;  %s854_s23 = sphi %s934_s23, %s1069_s23  }
   0x8   : > { %s95_s8 = ssub.s32 %s862_s25, %s953_s7  ;;  %s98_s26 = sadd.s32 1, %s858_s24 }
   0x9   : > { %p96_p0 = scmp.eq.s32.totalorder %s95_s8, 0  ;;  %p105_p1 = scmp.ne.s32.totalorder %s858_s24, %s854_s23 }
   0xa   : > { %p106_p2 = scmp.eq.s32.totalorder %s862_s25, 0  ;;  %p752_p4 = scmp.ge.s32.totalorder %s862_s25, 2 }
   0xb   : > { %s962_s27 = scalar_select %p96_p0, %s858_s24, %s98_s26  }
   0xc   : > { %p107_p3 = por %p106_p2, %p105_p1  ;;  %330 = sbr.rel (%p752_p4) target bundleno = 37 (0x25), region = 44 }
  0x11   : > { %333 = sbr.rel (!%p107_p3) target bundleno = 37 (0x25), region = 48  ;;  %s335_s28 = sand.u32 (%p107_p3), 1, %s858_s24  }
  0x12   : > { %s754_s29 = sshll.u32 (%p107_p3), %s862_s25, 2  ;;  %s753_s30 = sshll.u32 (%p107_p3), %s335_s28, 6 }
  0x13   : > { %s970_s14 = scalar_lea.vmem (%p107_p3), %s1060_s3, %s754_s29  ;;  %s337_s15 = scalar_lea.vmem (%p107_p3), [#allocation6], %s753_s30 }
  0x14   : > { %v356_v3 = vld [vmem:[%s970_s14] sm:$0xf] (%p107_p3)  ;;  %v358_v4 = vld [vmem:[%s970_s14 + $0x8] sm:$0xf] (%p107_p3)  ;;  %v360_v5 = vld [vmem:[%s970_s14 + $0x10] sm:$0xf] (%p107_p3) }
  0x15   : > { %357 = vst [vmem:[%s337_s15] sm:$0xf] (%p107_p3), %v356_v3  ;;  %v362_v6 = vld [vmem:[%s970_s14 + $0x18] sm:$0xf] (%p107_p3)  ;;  %v364_v7 = vld [vmem:[%s970_s14 + $0x20] sm:$0xf] (%p107_p3) }
  0x16   : > { %359 = vst [vmem:[%s337_s15 + $0x4] sm:$0xf] %v358_v4  ;;  %v366_v8 = vld [vmem:[%s970_s14 + $0x28] sm:$0xf]  ;;  %v368_v9 = vld [vmem:[%s970_s14 + $0x30] sm:$0xf] }
  0x17   : > { %361 = vst [vmem:[%s337_s15 + $0x8] sm:$0xf] %v360_v5  ;;  %v370_v10 = vld [vmem:[%s970_s14 + $0x38] sm:$0xf]  ;;  %v372_v11 = vld [vmem:[%s970_s14 + $0x40] sm:$0xf] }
  0x18   : > { %363 = vst [vmem:[%s337_s15 + $0xc] sm:$0xf] %v362_v6  ;;  %v374_v12 = vld [vmem:[%s970_s14 + $0x48] sm:$0xf]  ;;  %v376_v13 = vld [vmem:[%s970_s14 + $0x50] sm:$0xf] }
  0x19   : > { %365 = vst [vmem:[%s337_s15 + $0x10] sm:$0xf] %v364_v7  ;;  %v378_v14 = vld [vmem:[%s970_s14 + $0x58] sm:$0xf]  ;;  %v380_v15 = vld [vmem:[%s970_s14 + $0x60] sm:$0xf] }
  0x1a   : > { %367 = vst [vmem:[%s337_s15 + $0x14] sm:$0xf] %v366_v8  ;;  %v382_v16 = vld [vmem:[%s970_s14 + $0x68] sm:$0xf]  ;;  %v384_v17 = vld [vmem:[%s970_s14 + $0x70] sm:$0xf] }
  0x1b   : > { %369 = vst [vmem:[%s337_s15 + $0x18] sm:$0xf] %v368_v9  ;;  %v386_v18 = vld [vmem:[%s970_s14 + $0x78] sm:$0xf] }
  0x1c   : > { %371 = vst [vmem:[%s337_s15 + $0x1c] sm:$0xf] %v370_v10 }
  0x1d   : > { %373 = vst [vmem:[%s337_s15 + $0x20] sm:$0xf] %v372_v11 }
  0x1e   : > { %375 = vst [vmem:[%s337_s15 + $0x24] sm:$0xf] %v374_v12 }
  0x1f   : > { %377 = vst [vmem:[%s337_s15 + $0x28] sm:$0xf] %v376_v13 }
  0x20   : > { %379 = vst [vmem:[%s337_s15 + $0x2c] sm:$0xf] %v378_v14 }
  0x21   : > { %381 = vst [vmem:[%s337_s15 + $0x30] sm:$0xf] %v380_v15 }
  0x22   : > { %383 = vst [vmem:[%s337_s15 + $0x34] sm:$0xf] %v382_v16 }
  0x23   : > { %385 = vst [vmem:[%s337_s15 + $0x38] sm:$0xf] %v384_v17 }
  0x24   : > { %387 = vst [vmem:[%s337_s15 + $0x3c] sm:$0xf] %v386_v18 }
  0x25 PF: > { %p755_p5 = scmp.ge.s32.totalorder %s862_s25, 1  ;;  %p448_p6 = scmp.lt.s32.totalorder %s862_s25, 3 }
  0x27   : > { %p449_p7 = pnand %p755_p5, %p448_p6 }
  0x28   : > { %s455_s16 = sand.u32 (!%p449_p7), 1, %s854_s23   ;;  %p496_p8 = scmp.lt.s32.totalorder (!%p449_p7), %s950_s6, 1 }
  0x29   : > { %452 = sbr.rel (%p449_p7) target bundleno = 627 (0x273), region = 93  ;;  %s756_s17 = sshll.u32 (!%p449_p7), %s455_s16, 6 }
  0x2a   : > { %s1005_s28 = scalar_lea.vmem (!%p449_p7), [#allocation6], %s756_s17  ;;  %p758_p9 = scmp.ne.s32.totalorder (!%p449_p7), %s950_s6, 0 }
  0x2e   : > { %s993_s18 = scalar_select %p496_p8, %s950_s6, 1 }
  0x2f   : > { %506 = sbr.rel (%p758_p9) target bundleno = 454 (0x1c6), region = 101 }
  0x30   : > { %s498_s21 = scalar_lea.vmem %s1061_s4, %s993_s18  ;;  %s757_s22 = sshll.u32 %s993_s18, 2 }
  0x31   : > { %s1003_s25 = scalar_lea.vmem %s1064_s9, %s757_s22 }
  0x34   : > { %v507_v19 = vld [vmem:[%s1057_s0] sm:$0xf]  ;;  %vm510_vm0 = vcmask 1043456   ;;  %v864_v21 = vmov 128.0   ;;  %v830_v51 = vld [vmem:[#allocation3] ss:$0 sm:$0xff] }
  0x35   : > { %v511_v20 = vsel %vm510_vm0, %v507_v19, 0.0  ;;  %833 = vrcp.f32 %v864_v21  ;;  %v827_v42 = vld [vmem:[%s1058_s1] ss:$0 sm:$0xff]  ;;  %v831_v54 = vld [vmem:[#allocation4] ss:$0 sm:$0xff]  ;;  %vm573_vm5 = vcmask 3072  }
  0x36   : > { %512 = vadd.xlane.f32.xlu0 %v511_v20  ;;  %v828_v45 = vld [vmem:[%s1059_s2] ss:$0 sm:$0xff]  ;;  %v832_v55 = vld [vmem:[#allocation5] ss:$0 sm:$0xff] }
  0x37   : > { %v829_v47 = vld [vmem:[%s1062_s5] ss:$0 sm:$0xff] }
  0x3b   : > { %v834_v22 = vpop.eup %833 }
  0x3c   : > { %v515_v23 = vmul.f32 128.0, %v834_v22  ;;  %vm519_vm1 = vweird.f32 %v834_v22 }
  0x3e   : > { %v516_v24 = vsub.f32 1.0, %v515_v23 }
  0x40   : > { %v517_v25 = vmul.f32 %v834_v22, %v516_v24 }
  0x42   : > { %v518_v26 = vadd.f32 %v834_v22, %v517_v25 }
  0x44   : > { %v520_v27 = vsel %vm519_vm1, %v834_v22, %v518_v26 }
  0xa9   : > { %v513_v28 = vpop.xlane.xlu0 %512 }
  0xaa   : > { %v521_v29 = vmul.f32 %v520_v27, %v513_v28 }
  0xac   : > { %v522_v30 = vsub.f32 %v507_v19, %v521_v29 }
  0xae   : > { %v523_v31 = vmul.f32 %v522_v30, %v522_v30 }
  0xb0   : > { %v524_v32 = vsel %vm510_vm0, %v523_v31, 0.0 }
  0xb1   : > { %525 = vadd.xlane.f32.xlu0 %v524_v32 }
 0x124   : > { %v526_v33 = vpop.xlane.xlu0 %525 }
 0x125   : > { %v527_v34 = vmul.f32 %v526_v33, %v520_v27 }
 0x127   : > { %v528_v35 = vadd.f32 1e-05, %v527_v34 }
 0x129   : > { %835 = vrsqrt.f32 %v528_v35  ;;  %vm535_vm3 = vweird.f32 %v528_v35 }
 0x12f   : > { %v836_v36 = vpop.eup %835 }
 0x130   : > { %v530_v37 = vmul.f32 %v836_v36, %v528_v35  ;;  %vm536_vm2 = vweird.f32 %v836_v36 }
 0x131   : > { %vm537_vm4 = vmor %vm535_vm3, %vm536_vm2 }
 0x132   : > { %v531_v38 = vmul.f32 %v836_v36, %v530_v37 }
 0x134   : > { %v532_v39 = vmul.f32 0.5, %v531_v38 }
 0x136   : > { %v533_v40 = vsub.f32 1.5, %v532_v39 }
 0x138   : > { %v534_v41 = vmul.f32 %v836_v36, %v533_v40 }
 0x13a   : > { %v538_v43 = vsel %vm537_vm4, %v836_v36, %v534_v41 }
 0x13b   : > { %v539_v44 = vmul.f32 %v538_v43, %v522_v30 }
 0x13d   : > { %v543_v46 = vmul.f32 %v827_v42, %v539_v44 }
 0x13f   : > { %v547_v48 = vadd.f32 %v828_v45, %v543_v46 }
 0x141   : > { %v553_v49 = vmul.f32 %v829_v47, %v547_v48  ;;  %548 = vst [vmem:[#allocation2] sm:$0xf] %v547_v48 }
 0x143   : > { %v554_v50 = vsel %vm510_vm0, %v553_v49, 0.0 }
 0x144   : > { %555 = vadd.xlane.f32.xlu1 %v554_v50 }
 0x1b7   : > { %v556_v52 = vpop.xlane.xlu1 %555 }
 0x1b8   : > { %v561_v53 = vadd.f32 %v830_v51, %v556_v52 }
 0x1ba   : > { %837 = vtanh.f32 %v561_v53 }
 0x1c0   : > { %v838_v56 = vpop.eup %837 }
 0x1c1   : > { %v567_v57 = vmul.f32 %v838_v56, %v831_v54 }
 0x1c3   : > { %v572_v58 = vadd.f32 %v832_v55, %v567_v57 }
 0x1c5   : > { %574 = vst.msk [vmem:[%s1066_s11] sm:$0xf] %vm573_vm5, %v572_v58 }
 0x1c6 PF: > { %v801_v59 = vld [vmem:[%s1005_s28 + $0x38] sm:$0xff]  ;;  %v800_v60 = vld [vmem:[%s1005_s28 + $0x30] sm:$0xff]  ;;  %v799_v61 = vld [vmem:[%s1005_s28 + $0x28] sm:$0xff] }
 0x1c7   : > { %645 = vmatpush.bf16.msra.mxu0 %v801_v59  ;;  %v798_v62 = vld [vmem:[%s1005_s28 + $0x20] sm:$0xff]  ;;  %v797_v63 = vld [vmem:[%s1005_s28 + $0x18] sm:$0xff]  ;;  %v796_v0 = vld [vmem:[%s1005_s28 + $0x10] sm:$0xff] }
 0x1c8   : > { %v795_v1 = vld [vmem:[%s1005_s28 + $0x8] sm:$0xff]  ;;  %v794_v2 = vld [vmem:[%s1005_s28] sm:$0xff]  ;;  %v575_v3 = vld [vmem:[#allocation2] sm:$0xf] }
 0x1c9   : > { %v576_v4 = vpack.c.bf16 %v575_v3, %v575_v3  ;;  %v839_v5 = vld [vmem:[%s498_s21] ss:$0 sm:$0xff] }
 0x1cb   : > { %646 = vmatpush.bf16.msra.mxu0 %v800_v60 }
 0x1cf   : > { %647 = vmatpush.bf16.msra.mxu0 %v799_v61 }
 0x1d3   : > { %648 = vmatpush.bf16.msra.mxu0 %v798_v62 }
 0x1d7   : > { %649 = vmatpush.bf16.msra.mxu0 %v797_v63 }
 0x1db   : > { %650 = vmatpush.bf16.msra.mxu0 %v796_v0 }
 0x1df   : > { %651 = vmatpush.bf16.msra.mxu0 %v795_v1 }
 0x1e3   : > { %652 = vmatpush.bf16.msra.mxu0 %v794_v2 }
 0x1e6   : > { %653 = vmatmul.bf16.vlgmr.msra.gmra.mxu0 %v576_v4 }
 0x263   : > { %v654_v6 = vpop.f32.mrf.mxu0 }
 0x264   : > { %v655_v7 = vadd.f32 %v839_v5, %v654_v6 }
 0x266   : > { %658 = vst [vmem:[%s1003_s25] sm:$0xf] %v655_v7 }
 0x267   : > { %661 = sbr.rel (%p758_p9) target bundleno = 627 (0x273), region = 105 }
 0x26b   : > { %v656_v8 = vpop.f32.mrf.mxu0 }
 0x26c   : > { %v662_v9 = vmul.f32 -15.0, %v655_v7  ;;  %v663_v10 = vmul.f32 16.0, %v655_v7 }
 0x26e   : > { %v665_v11 = vrot.slane %v663_v10, 2 }
 0x270   : > { %v667_v12 = vadd.f32 %v665_v11, %v662_v9 }
 0x272   : > { %668 = vst [vmem:[%s1065_s10] sm:$0x3] %v667_v12 }
 0x273 PF: > { %p25_p10 = scmp.ge.s32.totalorder %s953_s7, 4   ;;  %s1069_s23 = smov %s858_s24 }
 0x274   : > { %s1070_s24 = smov %s962_s27  ;;  %s1071_s25 = smov %s953_s7 }
 0x275   :  { %27 = sbr.rel (!%p25_p10) target bundleno = 7 (0x7), region = 159 }

// kernel: _lambda_.6
= control target key start
LH: loop header
LB: loop body
LE: loop exit
PB: predicated region body
PF: predicated region fallthrough
CT: control target
= control target key end

     0   :  { %19 = vsyncpa [#allocation3], 0  ;;  %s6220_s0 = inlined_call_operand.vmem [shape: f32[4,16,128], index: 0, kind: input, shape index: {}]   ;;  %s6221_s1 = inlined_call_operand.vmem [shape: f32[4,16], index: 1, kind: input, shape index: {}]   ;;  %s6222_s2 = inlined_call_operand.vmem [shape: f32[3,128], index: 2, kind: input, shape index: {}]   ;;  %s6223_s3 = inlined_call_operand.vmem [shape: f32[3,128], index: 3, kind: input, shape index: {}]   ;;  %s6224_s4 = inlined_call_operand.hbm [shape: bf16[128,384], index: 4, kind: input, shape index: {}]   ;;  %s6225_s5 = inlined_call_operand.vmem [shape: f32[1,384], index: 5, kind: input, shape index: {}]   ;;  %s6226_s6 = inlined_call_operand.hbm [shape: bf16[128,128], index: 6, kind: input, shape index: {}]   ;;  %s6227_s7 = inlined_call_operand.vmem [shape: f32[1,128], index: 7, kind: input, shape index: {}, may-alias: {7,13}]   ;;  %s6228_s8 = inlined_call_operand.hbm [shape: bf16[128,512], index: 8, kind: input, shape index: {}]   ;;  %s6229_s9 = inlined_call_operand.vmem [shape: f32[1,512], index: 9, kind: input, shape index: {}]   ;;  %s6230_s10 = inlined_call_operand.vmem [shape: f32[1,256], index: 10, kind: input, shape index: {}]   ;;  %s6231_s11 = inlined_call_operand.vmem [shape: f32[1,256], index: 11, kind: input, shape index: {}]   ;;  %s6232_s12 = inlined_call_operand.hbm [shape: bf16[256,128], index: 12, kind: input, shape index: {}]   ;;  %s6233_s13 = inlined_call_operand.vmem [shape: f32[1,128], index: 13, kind: input, shape index: {}, may-alias: {7,13}]   ;;  %s6234_s14 = inlined_call_operand.vmem [shape: f32[4,16,128], index: 14, kind: output, shape index: {}]  }
   0x1   :  { %20 = vsyncpa [#allocation5], 0  ;;  %s49_s15 = sshll.u32 %s6226_s6, 4  ;;  %s50_s15 = int_to_ptr.hbm [resolvable:$true] %s49_s15 }
   0x2   :  { %21 = vsyncpa [#allocation8], 0  ;;  %s4666_s16 = smov [#allocation4]   ;;  %s34_s20 = sshll.u32 %s6224_s4, 4  ;;  %s35_s20 = int_to_ptr.hbm [resolvable:$true] %s34_s20 }
   0x3   :  { %s51_s17 = sshll.u32 %s4666_s16, 4  ;;  %s4667_s21 = smov 64   ;;  %s52_s17 = int_to_ptr.vmem [resolvable:$true] %s51_s17 }
   0x4   :  { %s4668_s22 = smov 4   ;;  %s4669_s23 = smov [#allocation2]  }
   0x5   :  { %57 = dma.hbm_to_vmem [thread:$0]  %s50_s15, 1024, %s52_s17, [#allocation5], %s4667_s21, %s4667_s21, %s4668_s22  }
   0x6   :  { %s36_s24 = sshll.u32 %s4669_s23, 4  ;;  %s4670_s25 = smov 192   ;;  %s37_s24 = int_to_ptr.vmem [resolvable:$true] %s36_s24 }
   0x7   :  { %s4671_s6 = smov 12   ;;  %s64_s28 = sshll.u32 %s6228_s8, 4  ;;  %s65_s28 = int_to_ptr.hbm [resolvable:$true] %s64_s28 }
   0x8   :  { %42 = dma.hbm_to_vmem [thread:$0]  %s35_s20, 3072, %s37_s24, [#allocation3], %s4670_s25, %s4670_s25, %s4671_s6  }
   0x9   :  { %s4672_s29 = smov [#allocation6]   ;;  %s83_s18 = sshll.u32 %s6232_s12, 4  ;;  %s84_s18 = int_to_ptr.hbm [resolvable:$true] %s83_s18 }
   0xa   :  { %s66_s30 = sshll.u32 %s4672_s29, 4  ;;  %s4673_s15 = smov 256   ;;  %s67_s30 = int_to_ptr.vmem [resolvable:$true] %s66_s30 }
   0xb   :  { %s4674_s17 = smov 16   ;;  %s4675_s19 = smov [#allocation7]  }
   0xc   :  { %72 = dma.hbm_to_vmem [thread:$0]  %s65_s28, 4096, %s67_s30, [#allocation5], %s4673_s15, %s4673_s15, %s4674_s17  }
   0xd   :  { %s85_s23 = sshll.u32 %s4675_s19, 4  ;;  %s86_s23 = int_to_ptr.vmem [resolvable:$true] %s85_s23 }
   0xe   :  { %91 = dma.hbm_to_vmem [thread:$0]  %s84_s18, 2048, %s86_s23, [#allocation8], %s4667_s21, %s4667_s21, %s4668_s22  }
   0xf   :  { %4660 = dma.done.wait [#allocation3], 3072  }
  0x10   :  { %4661 = vsyncadd [#allocation3], 4294964224 }
  0x11   :  { %4662 = dma.done.wait [#allocation5], 5120  }
  0x12   :  { %4663 = vsyncadd [#allocation5], 4294962176 }
  0x13   :  { %4664 = dma.done.wait [#allocation8], 2048  }
  0x14   :  { %4665 = vsyncadd [#allocation8], 4294965248  ;;  %v115_v0 = vld [vmem:[%s6220_s0 + $0x20] sm:$0xff]  ;;  %v113_v1 = vld [vmem:[%s6220_s0 + $0x10] sm:$0xff]  ;;  %v4676_v7 = vmov 128.0  }
  0x15   :  { %v111_v2 = vld [vmem:[%s6220_s0] sm:$0xff]  ;;  %131 = vadd.xlane.f32.xlu2 %v115_v0  ;;  %127 = vadd.xlane.f32.xlu1 %v113_v1  ;;  %v116_v3 = vld [vmem:[%s6220_s0 + $0x28] sm:$0xff]  ;;  %v114_v4 = vld [vmem:[%s6220_s0 + $0x18] sm:$0xff]  ;;  %4328 = vrcp.f32 %v4676_v7 }
  0x16   :  { %123 = vadd.xlane.f32.xlu0 %v111_v2  ;;  %v112_v5 = vld [vmem:[%s6220_s0 + $0x8] sm:$0xff]  ;;  %v117_v6 = vld [vmem:[%s6220_s0 + $0x30] sm:$0xff]  ;;  %v4813_v30 = vld [vmem:[%s6220_s0 + $0x38] sm:$0xff] }
  0x17   :  { %v3811_v43 = vld [vmem:[#allocation2 + $0xa8] sm:$0xf]  ;;  %v4179_v44 = vld [vmem:[#allocation2 + $0xb0] sm:$0xf0]  ;;  %v4178_v45 = vld [vmem:[#allocation2 + $0xac] sm:$0xf] }
  0x18   :  { %v3812_v46 = vor.u32 %v4179_v44, %v3811_v43  ;;  %v3813_v47 = vld [vmem:[#allocation2 + $0xb4] sm:$0xf0]  ;;  %v3819_v48 = vld [vmem:[#allocation2 + $0xb0] sm:$0xf]  ;;  %v4180_v49 = vld [vmem:[#allocation2 + $0xb8] sm:$0xf0] }
  0x19   :  { %v3816_v50 = vor.u32 %v4178_v45, %v3813_v47  ;;  %v3820_v51 = vor.u32 %v4180_v49, %v3819_v48  ;;  %v3799_v52 = vld [vmem:[#allocation2 + $0x90] sm:$0xf]  ;;  %v4176_v53 = vld [vmem:[#allocation2 + $0x98] sm:$0xf0]  ;;  %v4175_v54 = vld [vmem:[#allocation2 + $0x94] sm:$0xf] }
  0x1a   :  { %480 = vmatpush.bf16.msra.mxu0 %v3812_v46  ;;  %v3800_v55 = vor.u32 %v4176_v53, %v3799_v52  ;;  %v3801_v56 = vld [vmem:[#allocation2 + $0x9c] sm:$0xf0]  ;;  %v3807_v57 = vld [vmem:[#allocation2 + $0x98] sm:$0xf]  ;;  %v4177_v58 = vld [vmem:[#allocation2 + $0xa0] sm:$0xf0] }
  0x1b   :  { %v4329_v8 = vpop.eup %4328  ;;  %509 = vmatpush.bf16.msra.mxu1 %v3816_v50  ;;  %538 = vmatpush.bf16.msra.mxu2 %v3820_v51  ;;  %v3804_v59 = vor.u32 %v4175_v54, %v3801_v56  ;;  %v3808_v60 = vor.u32 %v4177_v58, %v3807_v57  ;;  %v3787_v61 = vld [vmem:[#allocation2 + $0x78] sm:$0xf]  ;;  %v4173_v62 = vld [vmem:[#allocation2 + $0x80] sm:$0xf0]  ;;  %v4172_v63 = vld [vmem:[#allocation2 + $0x7c] sm:$0xf] }
  0x1c   :  { %v140_v9 = vmul.f32 128.0, %v4329_v8  ;;  %vm144_vm0 = vweird.f32 %v4329_v8  ;;  %v4170_v7 = vld [vmem:[#allocation2 + $0x68] sm:$0xf0]  ;;  %v4161_v43 = vld [vmem:[#allocation2 + $0x20] sm:$0xf0] }
  0x1d   :  { %133 = vadd.xlane.f32.xlu2 %v116_v3  ;;  %129 = vadd.xlane.f32.xlu1 %v114_v4  ;;  %v4160_v44 = vld [vmem:[#allocation2 + $0x1c] sm:$0xf]  ;;  %v3741_v46 = vld [vmem:[#allocation2 + $0x24] sm:$0xf0]  ;;  %v3747_v47 = vld [vmem:[#allocation2 + $0x20] sm:$0xf] }
  0x1e   :  { %125 = vadd.xlane.f32.xlu0 %v112_v5  ;;  %v141_v10 = vsub.f32 1.0, %v140_v9  ;;  %481 = vmatpush.bf16.msra.mxu0 %v3800_v55  ;;  %v4162_v48 = vld [vmem:[#allocation2 + $0x28] sm:$0xf0]  ;;  %v3744_v50 = vor.u32 %v4160_v44, %v3741_v46  ;;  %v3727_v53 = vld [vmem:[#allocation2] sm:$0xf] }
  0x1f   :  { %510 = vmatpush.bf16.msra.mxu1 %v3804_v59  ;;  %539 = vmatpush.bf16.msra.mxu2 %v3808_v60  ;;  %v3748_v51 = vor.u32 %v4162_v48, %v3747_v47  ;;  %v4158_v54 = vld [vmem:[#allocation2 + $0x8] sm:$0xf0]  ;;  %v4157_v55 = vld [vmem:[#allocation2 + $0x4] sm:$0xf]  ;;  %v3729_v58 = vld [vmem:[#allocation2 + $0xc] sm:$0xf0] }
  0x20   :  { %v142_v11 = vmul.f32 %v4329_v8, %v141_v10  ;;  %v3777_v10 = vld [vmem:[#allocation2 + $0x6c] sm:$0xf0]  ;;  %v3728_v57 = vor.u32 %v4158_v54, %v3727_v53  ;;  %v3735_v59 = vld [vmem:[#allocation2 + $0x8] sm:$0xf]  ;;  %v3732_v60 = vor.u32 %v4157_v55, %v3729_v58  ;;  %v4869_v46 = vld [vmem:[%s6222_s2] ss:$0 sm:$0xff] }
  0x21   :  { %v4876_v53 = vld [vmem:[%s6223_s3] ss:$0 sm:$0xff] }
  0x22   :  { %v143_v12 = vadd.f32 %v4329_v8, %v142_v11  ;;  %v3783_v11 = vld [vmem:[#allocation2 + $0x68] sm:$0xf] }
  0x24   :  { %v4793_v13 = vsel %vm144_vm0, %v4329_v8, %v143_v12  ;;  %v4169_v8 = vld [vmem:[#allocation2 + $0x64] sm:$0xf]  ;;  %v4171_v12 = vld [vmem:[#allocation2 + $0x70] sm:$0xf0] }
  0x25   :  { %135 = vadd.xlane.f32.xlu2 %v117_v6  ;;  %6237 = vst [vmem:[#allocation12_spill] sm:$0xff] %v4793_v13 }
  0x88   :  { %v132_v14 = vpop.xlane.xlu2 %131  ;;  %v128_v15 = vpop.xlane.xlu1 %127 }
  0x89   :  { %v124_v16 = vpop.xlane.xlu0 %123  ;;  %v150_v26 = vmul.f32 %v4793_v13, %v132_v14  ;;  %v148_v27 = vmul.f32 %v4793_v13, %v128_v15  ;;  %v3780_v14 = vor.u32 %v4169_v8, %v3777_v10  ;;  %v3784_v15 = vor.u32 %v4171_v12, %v3783_v11 }
  0x8a   :  { %v146_v17 = vmul.f32 %v4793_v13, %v124_v16  ;;  %v3763_v16 = vld [vmem:[#allocation2 + $0x48] sm:$0xf] }
  0x8b   :  { %v4818_v33 = vsub.f32 %v115_v0, %v150_v26  ;;  %v4820_v34 = vsub.f32 %v113_v1, %v148_v27  ;;  %v3788_v0 = vor.u32 %v4173_v62, %v3787_v61  ;;  %v3789_v1 = vld [vmem:[#allocation2 + $0x84] sm:$0xf0]  ;;  %v3751_v27 = vld [vmem:[#allocation2 + $0x30] sm:$0xf]  ;;  %v4159_v61 = vld [vmem:[#allocation2 + $0x10] sm:$0xf0] }
  0x8c   :  { %v4796_v18 = vsub.f32 %v111_v2, %v146_v17  ;;  %v3795_v2 = vld [vmem:[#allocation2 + $0x80] sm:$0xf]  ;;  %v4167_v17 = vld [vmem:[#allocation2 + $0x50] sm:$0xf0]  ;;  %v3736_v62 = vor.u32 %v4159_v61, %v3735_v59 }
  0x8d   :  { %v166_v38 = vmul.f32 %v4818_v33, %v4818_v33  ;;  %v164_v39 = vmul.f32 %v4820_v34, %v4820_v34  ;;  %482 = vmatpush.bf16.msra.mxu0 %v3788_v0 }
  0x8e   :  { %v162_v19 = vmul.f32 %v4796_v18, %v4796_v18 }
  0x90   :  { %170 = vadd.xlane.f32.xlu0 %v162_v19  ;;  %v134_v20 = vpop.xlane.xlu2 %133  ;;  %v130_v21 = vpop.xlane.xlu1 %129  ;;  %v4166_v19 = vld [vmem:[#allocation2 + $0x4c] sm:$0xf] }
  0x91   :  { %v149_v22 = vmul.f32 %v4793_v13, %v130_v21  ;;  %v126_v23 = vpop.xlane.xlu0 %125  ;;  %v151_v37 = vmul.f32 %v4793_v13, %v134_v20  ;;  %v3764_v20 = vor.u32 %v4167_v17, %v3763_v16  ;;  %v3765_v21 = vld [vmem:[#allocation2 + $0x54] sm:$0xf0] }
  0x92   :  { %v147_v24 = vmul.f32 %v4793_v13, %v126_v23  ;;  %v4168_v23 = vld [vmem:[#allocation2 + $0x58] sm:$0xf0] }
  0x93   :  { %v4802_v25 = vsub.f32 %v114_v4, %v149_v22  ;;  %v4832_v41 = vsub.f32 %v116_v3, %v151_v37  ;;  %v4174_v3 = vld [vmem:[#allocation2 + $0x88] sm:$0xf0]  ;;  %v3792_v4 = vor.u32 %v4172_v63, %v3789_v1  ;;  %v3771_v22 = vld [vmem:[#allocation2 + $0x50] sm:$0xf]  ;;  %v3759_v37 = vld [vmem:[#allocation2 + $0x38] sm:$0xf] }
  0x94   :  { %v4806_v28 = vsub.f32 %v112_v5, %v147_v24  ;;  %v3796_v5 = vor.u32 %v4174_v3, %v3795_v2  ;;  %v3768_v24 = vor.u32 %v4166_v19, %v3765_v21  ;;  %v3772_v26 = vor.u32 %v4168_v23, %v3771_v22 }
  0x95   :  { %v165_v29 = vmul.f32 %v4802_v25, %v4802_v25  ;;  %v167_v42 = vmul.f32 %v4832_v41, %v4832_v41  ;;  %511 = vmatpush.bf16.msra.mxu1 %v3792_v4 }
  0x96   :  { %v163_v31 = vmul.f32 %v4806_v28, %v4806_v28  ;;  %540 = vmatpush.bf16.msra.mxu2 %v3796_v5 }
  0x97   :  { %176 = vadd.xlane.f32.xlu2 %v165_v29  ;;  %v4164_v29 = vld [vmem:[#allocation2 + $0x38] sm:$0xf0] }
  0x98   :  { %137 = vadd.xlane.f32.xlu0 %v4813_v30  ;;  %172 = vadd.xlane.f32.xlu1 %v163_v31  ;;  %v136_v32 = vpop.xlane.xlu2 %135  ;;  %v4163_v31 = vld [vmem:[#allocation2 + $0x34] sm:$0xf] }
  0x99   :  { %v152_v35 = vmul.f32 %v4793_v13, %v136_v32  ;;  %512 = vmatpush.bf16.msra.mxu1 %v3780_v14  ;;  %v3752_v32 = vor.u32 %v4164_v29, %v3751_v27 }
  0x9a   :  { %541 = vmatpush.bf16.msra.mxu2 %v3784_v15 }
  0x9b   :  { %v4823_v36 = vsub.f32 %v117_v6, %v152_v35  ;;  %v3775_v6 = vld [vmem:[#allocation2 + $0x60] sm:$0xf] }
  0x9c   :  { %v3776_v9 = vor.u32 %v4170_v7, %v3775_v6  ;;  %v3753_v35 = vld [vmem:[#allocation2 + $0x3c] sm:$0xf0] }
  0x9d   :  { %v168_v40 = vmul.f32 %v4823_v36, %v4823_v36  ;;  %513 = vmatpush.bf16.msra.mxu1 %v3768_v24 }
  0x9e   :  { %483 = vmatpush.bf16.msra.mxu0 %v3776_v9  ;;  %542 = vmatpush.bf16.msra.mxu2 %v3772_v26 }
  0x9f   :  { %182 = vadd.xlane.f32.xlu2 %v168_v40 }
  0xa0   :  { %178 = vadd.xlane.f32.xlu0 %v166_v38  ;;  %174 = vadd.xlane.f32.xlu1 %v164_v39  ;;  %v4165_v38 = vld [vmem:[#allocation2 + $0x40] sm:$0xf0]  ;;  %v3756_v39 = vor.u32 %v4163_v31, %v3753_v35 }
  0xa1   :  { %v3760_v40 = vor.u32 %v4165_v38, %v3759_v37 }
  0xa2   :  { %484 = vmatpush.bf16.msra.mxu0 %v3764_v20  ;;  %514 = vmatpush.bf16.msra.mxu1 %v3756_v39 }
  0xa3   :  { %543 = vmatpush.bf16.msra.mxu2 %v3760_v40 }
  0xa6   :  { %485 = vmatpush.bf16.msra.mxu0 %v3752_v32  ;;  %515 = vmatpush.bf16.msra.mxu1 %v3744_v50 }
  0xa7   :  { %544 = vmatpush.bf16.msra.mxu2 %v3748_v51 }
  0xa8   :  { %180 = vadd.xlane.f32.xlu1 %v167_v42  ;;  %v3739_v42 = vld [vmem:[#allocation2 + $0x18] sm:$0xf] }
  0xa9   :  { %v3740_v45 = vor.u32 %v4161_v43, %v3739_v42 }
  0xaa   :  { %516 = vmatpush.bf16.msra.mxu1 %v3732_v60 }
  0xab   :  { %486 = vmatpush.bf16.msra.mxu0 %v3740_v45  ;;  %545 = vmatpush.bf16.msra.mxu2 %v3736_v62 }
  0xaf   :  { %487 = vmatpush.bf16.msra.mxu0 %v3728_v57 }
 0x103   :  { %v171_v49 = vpop.xlane.xlu0 %170 }
 0x104   :  { %v186_v52 = vmul.f32 %v171_v49, %v4793_v13 }
 0x106   :  { %v194_v56 = vadd.f32 1e-05, %v186_v52 }
 0x108   :  { %4330 = vrsqrt.f32 %v194_v56  ;;  %vm208_vm2 = vweird.f32 %v194_v56 }
 0x10a   :  { %v177_v63 = vpop.xlane.xlu2 %176 }
 0x10b   :  { %v189_v0 = vmul.f32 %v177_v63, %v4793_v13  ;;  %v173_v1 = vpop.xlane.xlu1 %172  ;;  %v138_v2 = vpop.xlane.xlu0 %137 }
 0x10c   :  { %v187_v3 = vmul.f32 %v173_v1, %v4793_v13  ;;  %v153_v4 = vmul.f32 %v4793_v13, %v138_v2 }
 0x10d   :  { %v4840_v5 = vadd.f32 1e-05, %v189_v0 }
 0x10e   :  { %v4331_v6 = vpop.eup %4330  ;;  %v195_v7 = vadd.f32 1e-05, %v187_v3  ;;  %v4843_v8 = vsub.f32 %v4813_v30, %v153_v4 }
 0x10f   :  { %v203_v9 = vmul.f32 %v4331_v6, %v194_v56  ;;  %4332 = vrsqrt.f32 %v4840_v5  ;;  %vm209_vm1 = vweird.f32 %v4331_v6  ;;  %vm238_vm9 = vweird.f32 %v4840_v5 }
 0x110   :  { %4334 = vrsqrt.f32 %v195_v7  ;;  %v169_v10 = vmul.f32 %v4843_v8, %v4843_v8  ;;  %vm4854_vm3 = vmor %vm208_vm2, %vm209_vm1  ;;  %vm218_vm4 = vweird.f32 %v195_v7 }
 0x111   :  { %v204_v11 = vmul.f32 %v4331_v6, %v203_v9 }
 0x112   :  { %184 = vadd.xlane.f32.xlu0 %v169_v10  ;;  %v183_v27 = vpop.xlane.xlu2 %182 }
 0x113   :  { %v205_v12 = vmul.f32 0.5, %v204_v11  ;;  %v175_v14 = vpop.xlane.xlu1 %174  ;;  %v179_v16 = vpop.xlane.xlu0 %178 }
 0x114   :  { %v188_v15 = vmul.f32 %v175_v14, %v4793_v13  ;;  %v190_v22 = vmul.f32 %v179_v16, %v4793_v13 }
 0x115   :  { %v4849_v17 = vpop.eup %4332  ;;  %v206_v19 = vsub.f32 1.5, %v205_v12 }
 0x116   :  { %v4335_v20 = vpop.eup %4334  ;;  %v196_v30 = vadd.f32 1e-05, %v188_v15  ;;  %v233_v24 = vmul.f32 %v4849_v17, %v4840_v5  ;;  %v4858_v31 = vadd.f32 1e-05, %v190_v22  ;;  %vm239_vm10 = vweird.f32 %v4849_v17 }
 0x117   :  { %v213_v21 = vmul.f32 %v4335_v20, %v195_v7  ;;  %v207_v23 = vmul.f32 %v4331_v6, %v206_v19  ;;  %vm219_vm5 = vweird.f32 %v4335_v20  ;;  %vm240_vm12 = vmor %vm238_vm9, %vm239_vm10  ;;  %vm567_vm9 = vcmask 261120  }
 0x118   :  { %4336 = vrsqrt.f32 %v196_v30  ;;  %v234_v37 = vmul.f32 %v4849_v17, %v233_v24  ;;  %vm220_vm6 = vmor %vm218_vm4, %vm219_vm5  ;;  %vm228_vm7 = vweird.f32 %v196_v30  ;;  %vm248_vm15 = vweird.f32 %v4858_v31 }
 0x119   :  { %v214_v26 = vmul.f32 %v4335_v20, %v213_v21  ;;  %v211_v35 = vsel %vm4854_vm3, %v4331_v6, %v207_v23  ;;  %4338 = vrsqrt.f32 %v4858_v31 }
 0x11a   :  { %v282_v45 = vmul.f32 %v211_v35, %v4796_v18  ;;  %v235_v47 = vmul.f32 0.5, %v234_v37 }
 0x11b   :  { %v215_v29 = vmul.f32 0.5, %v214_v26  ;;  %v181_v32 = vpop.xlane.xlu1 %180 }
 0x11c   :  { %v191_v38 = vmul.f32 %v181_v32, %v4793_v13  ;;  %v291_v52 = vmul.f32 %v4869_v46, %v282_v45  ;;  %v236_v18 = vsub.f32 1.5, %v235_v47 }
 0x11d   :  { %v216_v39 = vsub.f32 1.5, %v215_v29  ;;  %v192_v29 = vmul.f32 %v183_v27, %v4793_v13 }
 0x11e   :  { %v4337_v40 = vpop.eup %4336  ;;  %v199_v42 = vadd.f32 1e-05, %v191_v38  ;;  %v300_v59 = vadd.f32 %v4876_v53, %v291_v52  ;;  %v237_v60 = vmul.f32 %v4849_v17, %v236_v18 }
 0x11f   :  { %v217_v43 = vmul.f32 %v4335_v20, %v216_v39  ;;  %v223_v44 = vmul.f32 %v4337_v40, %v196_v30  ;;  %vm229_vm8 = vweird.f32 %v4337_v40  ;;  %v4339_v55 = vpop.eup %4338 }
 0x120   :  { %4340 = vrsqrt.f32 %v199_v42  ;;  %vm230_vm11 = vmor %vm228_vm7, %vm229_vm8  ;;  %v243_v61 = vmul.f32 %v4339_v55, %v4858_v31  ;;  %v241_v2 = vsel %vm240_vm12, %v4849_v17, %v237_v60  ;;  %vm258_vm13 = vweird.f32 %v199_v42 }
 0x121   :  { %v221_v48 = vsel %vm220_vm6, %v4335_v20, %v217_v43  ;;  %v224_v49 = vmul.f32 %v4337_v40, %v223_v44  ;;  %v285_v6 = vmul.f32 %v241_v2, %v4802_v25  ;;  %vm249_vm0 = vweird.f32 %v4339_v55 }
 0x122   :  { %v283_v50 = vmul.f32 %v221_v48, %v4806_v28  ;;  %v244_v3 = vmul.f32 %v4339_v55, %v243_v61  ;;  %vm250_vm2 = vmor %vm248_vm15, %vm249_vm0  ;;  %v200_v31 = vadd.f32 1e-05, %v192_v29 }
 0x123   :  { %v225_v51 = vmul.f32 0.5, %v224_v49  ;;  %v294_v11 = vmul.f32 %v4869_v46, %v285_v6 }
 0x124   :  { %v292_v54 = vmul.f32 %v4869_v46, %v283_v50  ;;  %v245_v7 = vmul.f32 0.5, %v244_v3  ;;  %4342 = vrsqrt.f32 %v200_v31  ;;  %vm268_vm3 = vweird.f32 %v200_v31 }
 0x125   :  { %v226_v56 = vsub.f32 1.5, %v225_v51 }
 0x126   :  { %v301_v28 = vadd.f32 %v4876_v53, %v292_v54  ;;  %v4341_v57 = vpop.eup %4340  ;;  %v246_v12 = vsub.f32 1.5, %v245_v7 }
 0x127   :  { %v227_v58 = vmul.f32 %v4337_v40, %v226_v56  ;;  %v253_v62 = vmul.f32 %v4341_v57, %v199_v42  ;;  %vm259_vm14 = vweird.f32 %v4341_v57 }
 0x128   :  { %v308_v63 = vpack.c.bf16 %v301_v28, %v300_v59  ;;  %vm260_vm1 = vmor %vm258_vm13, %vm259_vm14  ;;  %v247_v16 = vmul.f32 %v4339_v55, %v246_v12  ;;  %v344_v59 = vld [vmem:[%s6225_s5] sm:$0x7]  ;;  %s4677_s5 = smov 96   ;;  %vm734_vm13 = vcmask 130048  }
 0x129   :  { %v231_v0 = vsel %vm230_vm11, %v4337_v40, %v227_v58  ;;  %v254_v1 = vmul.f32 %v4341_v57, %v253_v62  ;;  %v347_v60 = vperm.slane %v344_v59, 1 }
 0x12a   :  { %488 = vmatmul.bf16.vlgmr.msra.gmra.mxu0 %v308_v63  ;;  %517 = vmatmul.bf16.vlgmr.msra.gmra.mxu1 %v308_v63  ;;  %v284_v4 = vmul.f32 %v231_v0, %v4820_v34  ;;  %v303_v34 = vadd.f32 %v4876_v53, %v294_v11  ;;  %v251_v19 = vsel %vm250_vm2, %v4339_v55, %v247_v16 }
 0x12b   :  { %546 = vmatmul.bf16.vlgmr.msra.gmra.mxu2 %v308_v63  ;;  %v255_v5 = vmul.f32 0.5, %v254_v1  ;;  %v286_v30 = vmul.f32 %v251_v19, %v4818_v33 }
 0x12c   :  { %v293_v9 = vmul.f32 %v4869_v46, %v284_v4 }
 0x12d   :  { %v256_v10 = vsub.f32 1.5, %v255_v5  ;;  %v295_v22 = vmul.f32 %v4869_v46, %v286_v30  ;;  %v348_v30 = vperm.slane %v344_v59, 2 }
 0x12e   :  { %v302_v14 = vadd.f32 %v4876_v53, %v293_v9 }
 0x12f   :  { %v257_v15 = vmul.f32 %v4341_v57, %v256_v10  ;;  %v304_v24 = vadd.f32 %v4876_v53, %v295_v22 }
 0x130   :  { %v309_v25 = vpack.c.bf16 %v303_v34, %v302_v14 }
 0x131   :  { %v261_v17 = vsel %vm260_vm1, %v4341_v57, %v257_v15 }
 0x132   :  { %v287_v20 = vmul.f32 %v261_v17, %v4832_v41  ;;  %v4343_v41 = vpop.eup %4342 }
 0x133   :  { %v263_v32 = vmul.f32 %v4343_v41, %v200_v31  ;;  %vm269_vm4 = vweird.f32 %v4343_v41 }
 0x134   :  { %v296_v21 = vmul.f32 %v4869_v46, %v287_v20  ;;  %vm270_vm5 = vmor %vm268_vm3, %vm269_vm4 }
 0x135   :  { %v264_v33 = vmul.f32 %v4343_v41, %v263_v32 }
 0x136   :  { %v305_v23 = vadd.f32 %v4876_v53, %v296_v21 }
 0x137   :  { %v265_v39 = vmul.f32 0.5, %v264_v33 }
 0x138   :  { %v310_v26 = vpack.c.bf16 %v305_v23, %v304_v24 }
 0x139   :  { %v266_v40 = vsub.f32 1.5, %v265_v39 }
 0x13a   :  { %493 = vmatmul.bf16.gmra.mxu0 %v309_v25  ;;  %522 = vmatmul.bf16.gmra.mxu1 %v309_v25 }
 0x13b   :  { %551 = vmatmul.bf16.gmra.mxu2 %v309_v25  ;;  %v267_v43 = vmul.f32 %v4343_v41, %v266_v40 }
 0x13d   :  { %v271_v47 = vsel %vm270_vm5, %v4343_v41, %v267_v43 }
 0x13e   :  { %v288_v50 = vmul.f32 %v271_v47, %v4823_v36 }
 0x140   :  { %v297_v54 = vmul.f32 %v4869_v46, %v288_v50 }
 0x142   :  { %v306_v56 = vadd.f32 %v4876_v53, %v297_v54  ;;  %v4678_v54 = vmov 0  }
 0x14a   :  { %498 = vmatmul.bf16.gmra.mxu0 %v310_v26  ;;  %527 = vmatmul.bf16.gmra.mxu1 %v310_v26 }
 0x14b   :  { %556 = vmatmul.bf16.gmra.mxu2 %v310_v26 }
 0x185   :  { %v185_v35 = vpop.xlane.xlu0 %184 }
 0x186   :  { %v193_v37 = vmul.f32 %v185_v35, %v4793_v13 }
 0x188   :  { %v201_v38 = vadd.f32 1e-05, %v193_v37 }
 0x18a   :  { %4344 = vrsqrt.f32 %v201_v38  ;;  %vm278_vm7 = vweird.f32 %v201_v38 }
 0x190   :  { %v4345_v42 = vpop.eup %4344 }
 0x191   :  { %v273_v44 = vmul.f32 %v4345_v42, %v201_v38  ;;  %vm279_vm6 = vweird.f32 %v4345_v42 }
 0x192   :  { %vm280_vm8 = vmor %vm278_vm7, %vm279_vm6 }
 0x193   :  { %v274_v45 = vmul.f32 %v4345_v42, %v273_v44 }
 0x195   :  { %v275_v48 = vmul.f32 0.5, %v274_v45 }
 0x197   :  { %v276_v49 = vsub.f32 1.5, %v275_v48 }
 0x199   :  { %v277_v51 = vmul.f32 %v4345_v42, %v276_v49 }
 0x19b   :  { %v281_v52 = vsel %vm280_vm8, %v4345_v42, %v277_v51 }
 0x19c   :  { %v289_v18 = vmul.f32 %v281_v52, %v4843_v8 }
 0x19e   :  { %v298_v55 = vmul.f32 %v4869_v46, %v289_v18  ;;  %v119_v18 = vld [vmem:[%s6221_s1] sm:$0xf]  ;;  %s4679_s1 = smov 32  }
 0x19f   :  { %vm120_vm10 = vcmp.gt.f32.partialorder %v119_v18, 0.0 }
 0x1a0   :  { %v307_v28 = vadd.f32 %v4876_v53, %v298_v55  ;;  %v4916_v53 = vperm.slane %v344_v59, 0  ;;  %v708_v55 = vsel %vm120_vm10, 1, %v4678_v54 }
 0x1a1   :  { %v718_v18 = vperm.slane %v708_v55, 0 }
 0x1a2   :  { %v311_v57 = vpack.c.bf16 %v307_v28, %v306_v56  ;;  %v710_v28 = vrot.slane %v708_v55, 2 }
 0x1a3   :  { %vm5054_vm1 = vcmp.eq.s32.totalorder %v718_v18, 1 }
 0x1a4   :  { %503 = vmatmul.bf16.gmra.mxu0 %v311_v57  ;;  %532 = vmatmul.bf16.gmra.mxu1 %v311_v57  ;;  %vm713_vm11 = vcmp.ne.s32.totalorder %v710_v28, 0 }
 0x1a5   :  { %561 = vmatmul.bf16.gmra.mxu2 %v311_v57  ;;  %v716_v57 = vsel %vm713_vm11, 1, %v4678_v54 }
 0x1a7   :  { %v489_v58 = vpop.f32.mrf.mxu0  ;;  %v518_v36 = vpop.f32.mrf.mxu1 }
 0x1a8   :  { %v4918_v63 = vadd.f32 %v518_v36, %v347_v60  ;;  %v4923_v1 = vadd.f32 %v489_v58, %v4916_v53  ;;  %v720_v36 = vperm.slane %v716_v57, 0 }
 0x1aa   :  { %vm5017_vm12 = vcmp.eq.s32.totalorder %v720_v36, 1 }
 0x1ae   :  { %v4910_v8 = vpop.f32.mrf.mxu2 }
 0x1af   :  { %v491_v61 = vpop.f32.mrf.mxu0  ;;  %v520_v62 = vpop.f32.mrf.mxu1  ;;  %v4990_v44 = vadd.f32 %v4910_v8, %v348_v30 }
 0x1b0   :  { %v4912_v46 = vadd.f32 %v520_v62, %v347_v60  ;;  %v4928_v5 = vadd.f32 %v491_v61, %v4916_v53 }
 0x1b2   :  { %3821 = vmatpush.xpose.msk.msra.mxu3 %vm567_vm9, %v4912_v46 }
 0x1b6   :  { %v549_v0 = vpop.f32.mrf.mxu2  ;;  %3822 = vmatpush.xpose.msk.msra.mxu3 %vm567_vm9, %v4918_v63 }
 0x1b7   :  { %v494_v2 = vpop.f32.mrf.mxu0  ;;  %v523_v3 = vpop.f32.mrf.mxu1  ;;  %v4981_v38 = vadd.f32 %v549_v0, %v348_v30 }
 0x1b8   :  { %v4936_v10 = vadd.f32 %v523_v3, %v347_v60  ;;  %v4941_v12 = vadd.f32 %v494_v2, %v4916_v53  ;;  %v711_v2 = vrot.slane %v708_v55, 3 }
 0x1b9   :  { %3823 = vmatmul.msk.f32.vlgmr.msra.gmra.mxu3 %vm567_vm9, %v4923_v1 }
 0x1ba   :  { %vm714_vm14 = vcmp.ne.s32.totalorder %v711_v2, 0 }
 0x1bb   :  { %v717_v3 = vsel %vm714_vm14, 1, %v4678_v54 }
 0x1be   :  { %v552_v4 = vpop.f32.mrf.mxu2 }
 0x1bf   :  { %v496_v6 = vpop.f32.mrf.mxu0  ;;  %v525_v7 = vpop.f32.mrf.mxu1  ;;  %v4999_v48 = vadd.f32 %v552_v4, %v348_v30  ;;  %v721_v4 = vperm.slane %v717_v3, 0 }
 0x1c0   :  { %v4930_v9 = vadd.f32 %v525_v7, %v347_v60  ;;  %v4951_v25 = vadd.f32 %v496_v6, %v4916_v53 }
 0x1c1   :  { %3824 = vmatmul.msk.f32.gmra.mxu3 %vm567_vm9, %v4928_v5  ;;  %vm5031_vm15 = vcmp.eq.s32.totalorder %v721_v4, 1 }
 0x1c2   :  { %3825 = vmatpush.xpose.msk.msrb.mxu3 %vm567_vm9, %v4930_v9 }
 0x1c6   :  { %v554_v11 = vpop.f32.mrf.mxu2  ;;  %3826 = vmatpush.xpose.msk.msrb.mxu3 %vm567_vm9, %v4936_v10 }
 0x1c7   :  { %v499_v14 = vpop.f32.mrf.mxu0  ;;  %v528_v15 = vpop.f32.mrf.mxu1  ;;  %v4992_v45 = vadd.f32 %v554_v11, %v348_v30 }
 0x1c8   :  { %v4944_v34 = vadd.f32 %v499_v14, %v4916_v53  ;;  %v4961_v20 = vadd.f32 %v528_v15, %v347_v60 }
 0x1c9   :  { %3827 = vmatmul.msk.f32.vlgmr.msrb.gmra.mxu3 %vm567_vm9, %v4941_v12 }
 0x1ca   :  { %1025 = vrot.lane.b32.xlu0 %v4944_v34, %s4677_s5 }
 0x1ce   :  { %v557_v16 = vpop.f32.mrf.mxu2 }
 0x1cf   :  { %v530_v17 = vpop.f32.mrf.mxu1  ;;  %v558_v22 = vadd.f32 %v557_v16, %v348_v30  ;;  %v501_v26 = vpop.f32.mrf.mxu0 }
 0x1d0   :  { %v4953_v19 = vadd.f32 %v530_v17, %v347_v60  ;;  %v4970_v27 = vadd.f32 %v501_v26, %v4916_v53 }
 0x1d1   :  { %3828 = vmatmul.msk.f32.gmra.mxu3 %vm567_vm9, %v4951_v25 }
 0x1d2   :  { %1031 = vrot.lane.b32.xlu2 %v4953_v19, %s4677_s5  ;;  %3829 = vmatpush.xpose.msk.msra.mxu3 %vm567_vm9, %v4953_v19 }
 0x1d6   :  { %v559_v21 = vpop.f32.mrf.mxu2  ;;  %3830 = vmatpush.xpose.msk.msra.mxu3 %vm567_vm9, %v4961_v20 }
 0x1d7   :  { %v560_v23 = vadd.f32 %v559_v21, %v348_v30 }
 0x1d9   :  { %901 = vmatpush.msrb.mxu0 %v560_v23  ;;  %3831 = vmatmul.msk.f32.vlgmr.msra.gmra.mxu3 %vm567_vm9, %v4944_v34  ;;  %v4967_v24 = vpack.i.bf16 %v558_v22, %v560_v23 }
 0x1db   :  { %902 = vmatpush.msrb.mxu0 %v558_v22 }
 0x1e1   :  { %3832 = vmatmul.msk.f32.gmra.mxu3 %vm567_vm9, %v4970_v27 }
 0x221   :  { %v533_v29 = vpop.f32.mrf.mxu1  ;;  %v504_v33 = vpop.f32.mrf.mxu0 }
 0x222   :  { %v4978_v37 = vadd.f32 %v533_v29, %v347_v60  ;;  %v4986_v40 = vadd.f32 %v504_v33, %v4916_v53 }
 0x228   :  { %v562_v31 = vpop.f32.mrf.mxu2 }
 0x229   :  { %v535_v41 = vpop.f32.mrf.mxu1  ;;  %v563_v42 = vadd.f32 %v562_v31, %v348_v30  ;;  %v506_v49 = vpop.f32.mrf.mxu0 }
 0x22a   :  { %v4974_v32 = vadd.f32 %v535_v41, %v347_v60  ;;  %v5004_v50 = vadd.f32 %v506_v49, %v4916_v53 }
 0x22c   :  { %3833 = vmatpush.xpose.msk.msrb.mxu3 %vm567_vm9, %v4974_v32  ;;  %v1032_v35 = vpop.permute.xlu2 %1031 }
 0x22d   :  { %3853 = vmatpush.xpose.msk.msra.mxu0 %vm567_vm9, %v1032_v35 }
 0x230   :  { %v564_v39 = vpop.f32.mrf.mxu2  ;;  %3834 = vmatpush.xpose.msk.msrb.mxu3 %vm567_vm9, %v4978_v37 }
 0x231   :  { %v565_v43 = vadd.f32 %v564_v39, %v348_v30 }
 0x233   :  { %930 = vmatpush.msrb.mxu1 %v565_v43  ;;  %3835 = vmatmul.msk.f32.vlgmr.msrb.gmra.mxu3 %vm567_vm9, %v4986_v40  ;;  %v4996_v47 = vpack.i.bf16 %v563_v42, %v565_v43  ;;  %v709_v43 = vrot.slane %v708_v55, 1 }
 0x234   :  { %843 = vmatpush.msra.mxu3 %v4981_v38 }
 0x235   :  { %931 = vmatpush.msrb.mxu1 %v563_v42  ;;  %vm712_vm0 = vcmp.ne.s32.totalorder %v709_v43, 0 }
 0x236   :  { %844 = vmatpush.msra.mxu3 %v4990_v44  ;;  %v715_v49 = vsel %vm712_vm0, 1, %v4678_v54 }
 0x237   :  { %v719_v28 = vperm.slane %v715_v49, 0 }
 0x238   :  { %872 = vmatpush.msrb.mxu3 %v4992_v45 }
 0x239   :  { %vm5061_vm2 = vcmp.eq.s32.totalorder %v719_v28, 1 }
 0x23a   :  { %873 = vmatpush.msrb.mxu3 %v4999_v48 }
 0x23b   :  { %3836 = vmatmul.msk.f32.gmra.mxu3 %vm567_vm9, %v5004_v50 }
 0x23c   :  { %v5008_v51 = vpop.f32.mrf.mxu3 }
 0x244   :  { %v5010_v52 = vpop.f32.mrf.mxu3 }
 0x245   :  { %v727_v36 = vsel %vm5054_vm1, %v5010_v52, -1e+09 }
 0x24c   :  { %v632_v56 = vpop.f32.mrf.mxu3 }
 0x24d   :  { %v728_v54 = vsel %vm5061_vm2, %v632_v56, -1e+09 }
 0x24e   :  { %v741_v55 = vsel %vm734_vm13, %v728_v54, -inf }
 0x254   :  { %v5015_v58 = vpop.f32.mrf.mxu3 }
 0x25c   :  { %v667_v60 = vpop.f32.mrf.mxu3 }
 0x25d   :  { %v730_v8 = vsel %vm5017_vm12, %v667_v60, -1e+09 }
 0x25e   :  { %v747_v61 = vsel %vm734_vm13, %v730_v8, -inf }
 0x25f   :  { %748 = vmax.xlane.f32.xlu1 %v747_v61  ;;  %v738_v61 = vsel %vm734_vm13, %v727_v36, -inf }
 0x264   :  { %v670_v62 = vpop.f32.mrf.mxu3 }
 0x265   :  { %v731_v53 = vsel %vm5017_vm12, %v670_v62, -1e+09 }
 0x266   :  { %v750_v0 = vsel %vm734_vm13, %v731_v53, -inf }
 0x267   :  { %751 = vmax.xlane.f32.xlu2 %v750_v0 }
 0x278   :  { %1029 = vrot.lane.b32.xlu1 %v4961_v20, %s4677_s5 }
 0x27f   :  { %1070 = vrot.lane.b32.xlu2 %v4974_v32, %s4677_s5 }
 0x2b6   :  { %v702_v7 = vpop.f32.mrf.mxu3 }
 0x2b7   :  { %v732_v11 = vsel %vm5031_vm15, %v702_v7, -1e+09 }
 0x2b8   :  { %v753_v14 = vsel %vm734_vm13, %v732_v11, -inf }
 0x2b9   :  { %754 = vmax.xlane.f32.xlu0 %v753_v14 }
 0x2be   :  { %v705_v15 = vpop.f32.mrf.mxu3 }
 0x2bf   :  { %v5040_v16 = vsel %vm5031_vm15, %v705_v15, -1e+09 }
 0x2c0   :  { %v756_v17 = vsel %vm734_vm13, %v5040_v16, -inf }
 0x2c1   :  { %757 = vmax.xlane.f32.xlu1 %v756_v17  ;;  %v726_v17 = vsel %vm5054_vm1, %v5008_v51, -1e+09 }
 0x2d2   :  { %v749_v30 = vpop.xlane.xlu1 %748 }
 0x2d3   :  { %v763_v21 = vsub.f32 %v730_v8, %v749_v30  ;;  %v1026_v8 = vpop.permute.xlu0 %1025  ;;  %v735_v30 = vsel %vm734_vm13, %v726_v17, -inf }
 0x2d5   :  { %v775_v22 = vmul.f32 1.442695, %v763_v21  ;;  %v729_v21 = vsel %vm5061_vm2, %v5015_v58, -1e+09 }
 0x2d7   :  { %4346 = vpow2.f32 %v775_v22  ;;  %v744_v22 = vsel %vm734_vm13, %v729_v21, -inf }
 0x2da   :  { %v752_v23 = vpop.xlane.xlu2 %751 }
 0x2db   :  { %v764_v26 = vsub.f32 %v731_v53, %v752_v23 }
 0x2dd   :  { %v4347_v29 = vpop.eup %4346  ;;  %v777_v31 = vmul.f32 1.442695, %v764_v26 }
 0x2de   :  { %v795_v41 = vsel %vm734_vm13, %v4347_v29, 0.0 }
 0x2df   :  { %4348 = vpow2.f32 %v777_v31  ;;  %796 = vadd.xlane.f32.xlu2 %v795_v41 }
 0x2e2   :  { %v1071_v33 = vpop.permute.xlu2 %1070 }
 0x2e3   :  { %3857 = vmatpush.xpose.msk.msra.mxu1 %vm567_vm9, %v1071_v33 }
 0x2e5   :  { %v4349_v35 = vpop.eup %4348 }
 0x2e6   :  { %v798_v39 = vsel %vm734_vm13, %v4349_v35, 0.0 }
 0x2e7   :  { %799 = vadd.xlane.f32.xlu0 %v798_v39 }
 0x2ea   :  { %v1030_v42 = vpop.permute.xlu1 %1029 }
 0x2eb   :  { %3854 = vmatpush.xpose.msk.msra.mxu0 %vm567_vm9, %v1030_v42 }
 0x2f7   :  { %1027 = vrot.lane.b32.xlu2 %v4970_v27, %s4677_s5 }
 0x2fb   :  { %1064 = vrot.lane.b32.xlu0 %v4986_v40, %s4677_s5 }
 0x2ff   :  { %1066 = vrot.lane.b32.xlu2 %v5004_v50, %s4677_s5 }
 0x325   :  { %739 = vmax.xlane.f32.xlu0 %v738_v61 }
 0x328   :  { %742 = vmax.xlane.f32.xlu2 %v741_v55 }
 0x32c   :  { %v755_v62 = vpop.xlane.xlu0 %754 }
 0x32d   :  { %v765_v53 = vsub.f32 %v732_v11, %v755_v62 }
 0x32f   :  { %v779_v0 = vmul.f32 1.442695, %v765_v53 }
 0x331   :  { %4350 = vpow2.f32 %v779_v0 }
 0x334   :  { %v758_v42 = vpop.xlane.xlu1 %757 }
 0x337   :  { %v4351_v2 = vpop.eup %4350 }
 0x338   :  { %v801_v52 = vsel %vm734_vm13, %v4351_v2, 0.0 }
 0x339   :  { %802 = vadd.xlane.f32.xlu1 %v801_v52 }
 0x352   :  { %1068 = vrot.lane.b32.xlu1 %v4978_v37, %s4677_s5  ;;  %v797_v3 = vpop.xlane.xlu2 %796 }
 0x353   :  { %4352 = vrcp.f32 %v797_v3 }
 0x359   :  { %v4353_v4 = vpop.eup %4352 }
 0x35a   :  { %v800_v7 = vpop.xlane.xlu0 %799  ;;  %v819_v56 = vmul.f32 %v4353_v4, %v4347_v29  ;;  %v1028_v11 = vpop.permute.xlu2 %1027 }
 0x35b   :  { %4354 = vrcp.f32 %v800_v7 }
 0x35c   :  { %3841 = vmatmul.msk.f32.vlgmr.msrb.gmra.mxu0 %vm734_vm13, %v819_v56 }
 0x361   :  { %v4355_v14 = vpop.eup %4354 }
 0x362   :  { %v820_v15 = vmul.f32 %v4355_v14, %v4349_v35  ;;  %v5086_v26 = vpop.permute.xlu2 %1066 }
 0x364   :  { %3842 = vmatmul.msk.f32.gmra.mxu0 %vm734_vm13, %v820_v15 }
 0x36c   :  { %3855 = vmatmul.msk.f32.vlgmr.msra.gmra.mxu0 %vm567_vm9, %v1026_v8 }
 0x36d   :  { %v5084_v23 = vpop.permute.xlu0 %1064 }
 0x374   :  { %3856 = vmatmul.msk.f32.gmra.mxu0 %vm567_vm9, %v1028_v11 }
 0x37c   :  { %736 = vmax.xlane.f32.xlu1 %v735_v30 }
 0x384   :  { %745 = vmax.xlane.f32.xlu1 %v744_v22 }
 0x398   :  { %v740_v29 = vpop.xlane.xlu0 %739 }
 0x399   :  { %v760_v31 = vsub.f32 %v727_v36, %v740_v29 }
 0x39b   :  { %v769_v41 = vmul.f32 1.442695, %v760_v31  ;;  %v743_v33 = vpop.xlane.xlu2 %742 }
 0x39c   :  { %v761_v35 = vsub.f32 %v728_v54, %v743_v33 }
 0x39d   :  { %4356 = vpow2.f32 %v769_v41 }
 0x39e   :  { %v771_v51 = vmul.f32 1.442695, %v761_v35 }
 0x3a0   :  { %4358 = vpow2.f32 %v771_v51 }
 0x3a3   :  { %v5088_v39 = vpop.eup %4356 }
 0x3a4   :  { %v786_v58 = vsel %vm734_vm13, %v5088_v39, 0.0 }
 0x3a5   :  { %787 = vadd.xlane.f32.xlu2 %v786_v58 }
 0x3a6   :  { %v5092_v43 = vpop.eup %4358 }
 0x3a7   :  { %v789_v49 = vsel %vm734_vm13, %v5092_v43, 0.0 }
 0x3a8   :  { %790 = vadd.xlane.f32.xlu1 %v789_v49 }
 0x3ac   :  { %v803_v18 = vpop.xlane.xlu1 %802 }
 0x3ad   :  { %4360 = vrcp.f32 %v803_v18 }
 0x3b3   :  { %v4361_v28 = vpop.eup %4360 }
 0x3b4   :  { %v821_v36 = vmul.f32 %v4361_v28, %v4351_v2 }
 0x3b6   :  { %3843 = vmatmul.msk.f32.vlgmr.msrb.gmra.mxu1 %vm734_vm13, %v821_v36 }
 0x3bd   :  { %953 = vrot.lane.b32.xlu2 %v4912_v46, %s4677_s5 }
 0x3c1   :  { %951 = vrot.lane.b32.xlu1 %v4918_v63, %s4677_s5 }
 0x3c4   :  { %v1069_v8 = vpop.permute.xlu1 %1068 }
 0x3c5   :  { %3858 = vmatpush.xpose.msk.msra.mxu1 %vm567_vm9, %v1069_v8  ;;  %949 = vrot.lane.b32.xlu2 %v4928_v5, %s4677_s5 }
 0x3c9   :  { %990 = vrot.lane.b32.xlu1 %v4936_v10, %s4677_s5 }
 0x3d9   :  { %v5106_v61 = vpop.f32.mrf.mxu0 }
 0x3e1   :  { %v5108_v54 = vpop.f32.mrf.mxu0 }
 0x3e9   :  { %v1058_v55 = vpop.f32.mrf.mxu0 }
 0x3ea   :  { %v1107_v62 = vsel %vm5017_vm12, %v1058_v55, -1e+09 }
 0x3eb   :  { %v1123_v53 = vsel %vm734_vm13, %v1107_v62, -inf }
 0x3ee   :  { %1124 = vmax.xlane.f32.xlu2 %v1123_v53 }
 0x3ef   :  { %v737_v0 = vpop.xlane.xlu1 %736 }
 0x3f0   :  { %v759_v2 = vsub.f32 %v726_v17, %v737_v0 }
 0x3f1   :  { %v1061_v3 = vpop.f32.mrf.mxu0 }
 0x3f2   :  { %v767_v52 = vmul.f32 1.442695, %v759_v2  ;;  %v1108_v4 = vsel %vm5017_vm12, %v1061_v3, -1e+09 }
 0x3f3   :  { %v1126_v7 = vsel %vm734_vm13, %v1108_v4, -inf }
 0x3f4   :  { %4362 = vpow2.f32 %v767_v52  ;;  %1127 = vmax.xlane.f32.xlu1 %v1126_v7 }
 0x3f7   :  { %v746_v56 = vpop.xlane.xlu1 %745 }
 0x3f8   :  { %v762_v14 = vsub.f32 %v729_v21, %v746_v56  ;;  %v766_v21 = vsub.f32 %v5040_v16, %v758_v42 }
 0x3fa   :  { %v4363_v15 = vpop.eup %4362  ;;  %v773_v11 = vmul.f32 1.442695, %v762_v14  ;;  %v781_v29 = vmul.f32 1.442695, %v766_v21 }
 0x3fb   :  { %v783_v30 = vsel %vm734_vm13, %v4363_v15, 0.0 }
 0x3fc   :  { %4364 = vpow2.f32 %v773_v11  ;;  %784 = vadd.xlane.f32.xlu0 %v783_v30 }
 0x3fd   :  { %4366 = vpow2.f32 %v781_v29 }
 0x402   :  { %v4365_v22 = vpop.eup %4364 }
 0x403   :  { %v792_v17 = vsel %vm734_vm13, %v4365_v22, 0.0  ;;  %v4367_v31 = vpop.eup %4366 }
 0x404   :  { %793 = vadd.xlane.f32.xlu0 %v792_v17  ;;  %v804_v33 = vsel %vm734_vm13, %v4367_v31, 0.0 }
 0x40d   :  { %1467 = vrot.lane.b32.xlu1 %v4912_v46, %s4667_s21 }
 0x415   :  { %1465 = vrot.lane.b32.xlu1 %v4918_v63, %s4667_s21 }
 0x418   :  { %947 = vrot.lane.b32.xlu0 %v4923_v1, %s4677_s5  ;;  %v788_v41 = vpop.xlane.xlu2 %787 }
 0x41b   :  { %v791_v35 = vpop.xlane.xlu1 %790 }
 0x41d   :  { %1506 = vrot.lane.b32.xlu1 %v4930_v9, %s4667_s21 }
 0x420   :  { %992 = vrot.lane.b32.xlu0 %v4930_v9, %s4677_s5  ;;  %v954_v51 = vpop.permute.xlu2 %953 }
 0x425   :  { %1545 = vrot.lane.b32.xlu1 %v4953_v19, %s4667_s21 }
 0x428   :  { %v950_v49 = vpop.permute.xlu2 %949 }
 0x42d   :  { %1500 = vrot.lane.b32.xlu1 %v4941_v12, %s4667_s21 }
 0x433   :  { %v952_v58 = vpop.permute.xlu1 %951 }
 0x43b   :  { %v991_v18 = vpop.permute.xlu1 %990 }
 0x44a   :  { %805 = vadd.xlane.f32.xlu0 %v804_v33 }
 0x45e   :  { %986 = vrot.lane.b32.xlu0 %v4941_v12, %s4677_s5 }
 0x461   :  { %v1125_v28 = vpop.xlane.xlu2 %1124 }
 0x462   :  { %v1139_v36 = vsub.f32 %v1107_v62, %v1125_v28 }
 0x464   :  { %v1151_v8 = vmul.f32 1.442695, %v1139_v36 }
 0x466   :  { %988 = vrot.lane.b32.xlu0 %v4951_v25, %s4677_s5  ;;  %4368 = vpow2.f32 %v1151_v8 }
 0x467   :  { %v1128_v16 = vpop.xlane.xlu1 %1127 }
 0x468   :  { %v1140_v42 = vsub.f32 %v1108_v4, %v1128_v16 }
 0x46a   :  { %v1153_v55 = vmul.f32 1.442695, %v1140_v42 }
 0x46c   :  { %v5138_v53 = vpop.eup %4368  ;;  %4370 = vpow2.f32 %v1153_v55 }
 0x46d   :  { %v1171_v0 = vsel %vm734_vm13, %v5138_v53, 0.0 }
 0x46e   :  { %1172 = vadd.xlane.f32.xlu1 %v1171_v0 }
 0x46f   :  { %v785_v2 = vpop.xlane.xlu0 %784 }
 0x470   :  { %4372 = vrcp.f32 %v785_v2 }
 0x471   :  { %4374 = vrcp.f32 %v788_v41 }
 0x472   :  { %v5142_v52 = vpop.eup %4370  ;;  %4376 = vrcp.f32 %v791_v35 }
 0x473   :  { %v1174_v3 = vsel %vm734_vm13, %v5142_v52, 0.0 }
 0x476   :  { %v4373_v62 = vpop.eup %4372  ;;  %1175 = vadd.xlane.f32.xlu1 %v1174_v3 }
 0x477   :  { %v815_v7 = vmul.f32 %v4373_v62, %v4363_v15  ;;  %v4375_v4 = vpop.eup %4374  ;;  %v794_v14 = vpop.xlane.xlu0 %793 }
 0x478   :  { %v816_v56 = vmul.f32 %v4375_v4, %v5088_v39  ;;  %v4377_v11 = vpop.eup %4376  ;;  %4378 = vrcp.f32 %v794_v14 }
 0x479   :  { %3837 = vmatmul.msk.f32.vlgmr.msra.gmra.mxu3 %vm734_vm13, %v815_v7  ;;  %v817_v30 = vmul.f32 %v4377_v11, %v5092_v43 }
 0x47a   :  { %3845 = vmatpush.xpose.msk.msra.mxu3 %vm567_vm9, %v954_v51 }
 0x47e   :  { %3846 = vmatpush.xpose.msk.msra.mxu3 %vm567_vm9, %v952_v58  ;;  %v4379_v17 = vpop.eup %4378 }
 0x47f   :  { %v818_v21 = vmul.f32 %v4379_v17, %v4365_v22  ;;  %v1468_v7 = vpop.permute.xlu1 %1467 }
 0x481   :  { %3838 = vmatmul.msk.f32.gmra.mxu3 %vm734_vm13, %v816_v56 }
 0x487   :  { %v1466_v4 = vpop.permute.xlu1 %1465 }
 0x489   :  { %3839 = vmatmul.msk.f32.vlgmr.msrb.gmra.mxu3 %vm734_vm13, %v817_v30 }
 0x48a   :  { %v948_v15 = vpop.permute.xlu0 %947 }
 0x48f   :  { %1502 = vrot.lane.b32.xlu1 %v4951_v25, %s4667_s21  ;;  %v1507_v56 = vpop.permute.xlu1 %1506 }
 0x491   :  { %3840 = vmatmul.msk.f32.gmra.mxu3 %vm734_vm13, %v818_v21 }
 0x492   :  { %v993_v29 = vpop.permute.xlu0 %992 }
 0x493   :  { %3849 = vmatpush.xpose.msk.msrb.mxu3 %vm567_vm9, %v993_v29 }
 0x497   :  { %3850 = vmatpush.xpose.msk.msrb.mxu3 %vm567_vm9, %v991_v18  ;;  %1541 = vrot.lane.b32.xlu1 %v4970_v27, %s4667_s21  ;;  %v1546_v14 = vpop.permute.xlu1 %1545 }
 0x499   :  { %3847 = vmatmul.msk.f32.vlgmr.msra.gmra.mxu3 %vm567_vm9, %v948_v15 }
 0x49f   :  { %1578 = vrot.lane.b32.xlu1 %v4986_v40, %s4667_s21  ;;  %v5210_v11 = vpop.permute.xlu1 %1500 }
 0x4a1   :  { %3848 = vmatmul.msk.f32.gmra.mxu3 %vm567_vm9, %v950_v49  ;;  %v5179_v49 = vpop.f32.mrf.mxu1 }
 0x4bd   :  { %v806_v39 = vpop.xlane.xlu0 %805 }
 0x4be   :  { %4380 = vrcp.f32 %v806_v39 }
 0x4c4   :  { %v4381_v43 = vpop.eup %4380 }
 0x4c5   :  { %v822_v22 = vmul.f32 %v4381_v43, %v4367_v31 }
 0x4c7   :  { %3844 = vmatmul.msk.f32.gmra.mxu1 %vm734_vm13, %v822_v22 }
 0x4cf   :  { %3859 = vmatmul.msk.f32.vlgmr.msra.gmra.mxu1 %vm567_vm9, %v5084_v23 }
 0x4d0   :  { %v987_v41 = vpop.permute.xlu0 %986 }
 0x4d1   :  { %3851 = vmatmul.msk.f32.vlgmr.msrb.gmra.mxu3 %vm567_vm9, %v987_v41 }
 0x4d7   :  { %3860 = vmatmul.msk.f32.gmra.mxu1 %vm567_vm9, %v5086_v26 }
 0x4d8   :  { %v989_v33 = vpop.permute.xlu0 %988 }
 0x4d9   :  { %3852 = vmatmul.msk.f32.gmra.mxu3 %vm567_vm9, %v989_v33 }
 0x4e1   :  { %v1173_v30 = vpop.xlane.xlu1 %1172 }
 0x4e9   :  { %v1176_v15 = vpop.xlane.xlu1 %1175 }
 0x4fc   :  { %v5171_v35 = vpop.f32.mrf.mxu3 }
 0x501   :  { %v5212_v17 = vpop.permute.xlu1 %1502 }
 0x504   :  { %v5173_v51 = vpop.f32.mrf.mxu3 }
 0x509   :  { %v5214_v21 = vpop.permute.xlu1 %1541 }
 0x50c   :  { %v5175_v58 = vpop.f32.mrf.mxu3 }
 0x511   :  { %v5216_v22 = vpop.permute.xlu1 %1578 }
 0x514   :  { %v5177_v31 = vpop.f32.mrf.mxu3 }
 0x51c   :  { %v5181_v23 = vpop.f32.mrf.mxu3 }
 0x524   :  { %v5185_v28 = vpop.f32.mrf.mxu3 }
 0x544   :  { %v5183_v18 = vpop.f32.mrf.mxu1 }
 0x54c   :  { %v1097_v26 = vpop.f32.mrf.mxu1 }
 0x54d   :  { %v1109_v36 = vsel %vm5031_vm15, %v1097_v26, -1e+09 }
 0x54e   :  { %v1129_v8 = vsel %vm734_vm13, %v1109_v36, -inf }
 0x54f   :  { %1130 = vmax.xlane.f32.xlu0 %v1129_v8 }
 0x554   :  { %v5190_v16 = vpop.f32.mrf.mxu3  ;;  %v1100_v42 = vpop.f32.mrf.mxu1 }
 0x555   :  { %v1110_v55 = vsel %vm5031_vm15, %v1100_v42, -1e+09 }
 0x556   :  { %v1132_v0 = vsel %vm734_vm13, %v1110_v55, -inf }
 0x557   :  { %1133 = vmax.xlane.f32.xlu2 %v1132_v0 }
 0x55c   :  { %v1022_v2 = vpop.f32.mrf.mxu3 }
 0x55d   :  { %v1106_v62 = vsel %vm5061_vm2, %v1022_v2, -1e+09 }
 0x55e   :  { %v1120_v3 = vsel %vm734_vm13, %v1106_v62, -inf }
 0x55f   :  { %1121 = vmax.xlane.f32.xlu1 %v1120_v3 }
 0x563   :  { %4266 = vrot.lane.b32.xlu0 %v4996_v47, %s4677_s5 }
 0x56b   :  { %1461 = vrot.lane.b32.xlu0 %v4923_v1, %s4667_s21 }
 0x56f   :  { %4261 = vrot.lane.b32.xlu2 %v4967_v24, %s4677_s5 }
 0x573   :  { %1463 = vrot.lane.b32.xlu0 %v4928_v5, %s4667_s21 }
 0x57b   :  { %1504 = vrot.lane.b32.xlu0 %v4936_v10, %s4667_s21 }
 0x583   :  { %1543 = vrot.lane.b32.xlu0 %v4961_v20, %s4667_s21 }
 0x5c2   :  { %v1131_v29 = vpop.xlane.xlu0 %1130 }
 0x5c3   :  { %v1141_v39 = vsub.f32 %v1109_v36, %v1131_v29 }
 0x5c5   :  { %v1155_v43 = vmul.f32 1.442695, %v1141_v39 }
 0x5c7   :  { %4382 = vpow2.f32 %v1155_v43 }
 0x5c8   :  { %4384 = vrcp.f32 %v1173_v30 }
 0x5ca   :  { %v1134_v41 = vpop.xlane.xlu2 %1133 }
 0x5cb   :  { %v1142_v33 = vsub.f32 %v1110_v55, %v1134_v41 }
 0x5cd   :  { %v5218_v26 = vpop.eup %4382  ;;  %v1157_v8 = vmul.f32 1.442695, %v1142_v33 }
 0x5ce   :  { %v1177_v42 = vsel %vm734_vm13, %v5218_v26, 0.0  ;;  %v4385_v3 = vpop.eup %4384 }
 0x5cf   :  { %4386 = vpow2.f32 %v1157_v8  ;;  %1178 = vadd.xlane.f32.xlu0 %v1177_v42  ;;  %v1195_v41 = vmul.f32 %v4385_v3, %v5138_v53 }
 0x5d0   :  { %4388 = vrcp.f32 %v1176_v15 }
 0x5d2   :  { %v4262_v0 = vpop.permute.xlu2 %4261  ;;  %v1122_v2 = vpop.xlane.xlu1 %1121 }
 0x5d3   :  { %v4263_v13 = vunpack.i.l.bf16 %v4262_v0  ;;  %v1138_v36 = vsub.f32 %v1106_v62, %v1122_v2  ;;  %v4264_v39 = vunpack.i.h.bf16 %v4262_v0  ;;  %v5257_v0 = vpack.i.bf16 %v4999_v48, %v4992_v45 }
 0x5d5   :  { %v4387_v29 = vpop.eup %4386  ;;  %v1149_v43 = vmul.f32 1.442695, %v1138_v36  ;;  %1301 = vmatpush.msrb.mxu0 %v4263_v13  ;;  %v4267_v55 = vpop.permute.xlu0 %4266 }
 0x5d6   :  { %v4268_v30 = vunpack.i.l.bf16 %v4267_v55  ;;  %v1180_v33 = vsel %vm734_vm13, %v4387_v29, 0.0  ;;  %v4269_v8 = vunpack.i.h.bf16 %v4267_v55  ;;  %v4389_v62 = vpop.eup %4388 }
 0x5d7   :  { %4390 = vpow2.f32 %v1149_v43  ;;  %1181 = vadd.xlane.f32.xlu2 %v1180_v33  ;;  %1302 = vmatpush.msrb.mxu0 %v4264_v39  ;;  %v1196_v42 = vmul.f32 %v4389_v62, %v5142_v52 }
 0x5d8   :  { %3865 = vmatmul.msk.f32.vlgmr.msrb.gmra.mxu0 %vm734_vm13, %v1195_v41  ;;  %1338 = vmatpush.msrb.mxu1 %v4268_v30 }
 0x5d9   :  { %3893 = vmatpush.xpose.msk.msra.mxu0 %vm567_vm9, %v1468_v7 }
 0x5da   :  { %1339 = vmatpush.msrb.mxu1 %v4269_v8 }
 0x5dc   :  { %3897 = vmatpush.xpose.msk.msra.mxu1 %vm567_vm9, %v1507_v56  ;;  %v1105_v56 = vsel %vm5061_vm2, %v5190_v16, -1e+09 }
 0x5dd   :  { %v5227_v13 = vpop.eup %4390  ;;  %3894 = vmatpush.xpose.msk.msra.mxu0 %vm567_vm9, %v1466_v4  ;;  %v1462_v53 = vpop.permute.xlu0 %1461 }
 0x5de   :  { %v1168_v15 = vsel %vm734_vm13, %v5227_v13, 0.0 }
 0x5df   :  { %1169 = vadd.xlane.f32.xlu1 %v1168_v15 }
 0x5e0   :  { %3866 = vmatmul.msk.f32.gmra.mxu0 %vm734_vm13, %v1196_v42 }
 0x5e1   :  { %3901 = vmatpush.xpose.msk.msrb.mxu0 %vm567_vm9, %v1546_v14  ;;  %v1117_v14 = vsel %vm734_vm13, %v1105_v56, -inf }
 0x5e3   :  { %1584 = vrot.lane.b32.xlu0 %v4974_v32, %s4667_s21 }
 0x5e5   :  { %v1464_v7 = vpop.permute.xlu0 %1463 }
 0x5e8   :  { %3895 = vmatmul.msk.f32.vlgmr.msra.gmra.mxu0 %vm567_vm9, %v1462_v53  ;;  %v5295_v53 = vpack.i.bf16 %v4990_v44, %v4981_v38 }
 0x5eb   :  { %1582 = vrot.lane.b32.xlu0 %v4978_v37, %s4667_s21 }
 0x5ed   :  { %v1505_v4 = vpop.permute.xlu0 %1504 }
 0x5ee   :  { %3898 = vmatpush.xpose.msk.msra.mxu1 %vm567_vm9, %v1505_v4 }
 0x5ef   :  { %1539 = vrot.lane.b32.xlu2 %v4944_v34, %s4667_s21 }
 0x5f0   :  { %3896 = vmatmul.msk.f32.gmra.mxu0 %vm567_vm9, %v1464_v7 }
 0x5f3   :  { %1580 = vrot.lane.b32.xlu0 %v5004_v50, %s4667_s21 }
 0x5f5   :  { %v1544_v52 = vpop.permute.xlu0 %1543 }
 0x5f6   :  { %3902 = vmatpush.xpose.msk.msrb.mxu0 %vm567_vm9, %v1544_v52 }
 0x5f8   :  { %1922 = vrot.lane.b32.xlu1 %v4923_v1, %s4679_s1 }
 0x600   :  { %1961 = vrot.lane.b32.xlu1 %v4941_v12, %s4679_s1 }
 0x618   :  { %1118 = vmax.xlane.f32.xlu2 %v1117_v14 }
 0x630   :  { %4271 = vrot.lane.b32.xlu2 %v5257_v0, %s4677_s5 }
 0x638   :  { %1926 = vrot.lane.b32.xlu2 %v4918_v63, %s4679_s1 }
 0x640   :  { %4286 = vrot.lane.b32.xlu2 %v4967_v24, %s4667_s21 }
 0x642   :  { %v1179_v1 = vpop.xlane.xlu0 %1178 }
 0x643   :  { %4392 = vrcp.f32 %v1179_v1 }
 0x648   :  { %1924 = vrot.lane.b32.xlu2 %v4928_v5, %s4679_s1 }
 0x649   :  { %v4393_v12 = vpop.eup %4392 }
 0x64a   :  { %v1197_v16 = vmul.f32 %v4393_v12, %v5218_v26  ;;  %v1182_v2 = vpop.xlane.xlu2 %1181 }
 0x64b   :  { %4394 = vrcp.f32 %v1182_v2  ;;  %v4182_v2 = vld [vmem:[#allocation4 + $0x8] sm:$0xff] }
 0x64c   :  { %3867 = vmatmul.msk.f32.vlgmr.msrb.gmra.mxu1 %vm734_vm13, %v1197_v16 }
 0x651   :  { %v4395_v45 = vpop.eup %4394 }
 0x652   :  { %v1540_v48 = vpop.permute.xlu2 %1539  ;;  %v1198_v3 = vmul.f32 %v4395_v45, %v4387_v29  ;;  %v4181_v45 = vld [vmem:[#allocation4] sm:$0xff] }
 0x653   :  { %3903 = vmatmul.msk.f32.vlgmr.msrb.gmra.mxu0 %vm567_vm9, %v1540_v48 }
 0x654   :  { %3868 = vmatmul.msk.f32.gmra.mxu1 %vm734_vm13, %v1198_v3 }
 0x655   :  { %v5271_v63 = vpop.f32.mrf.mxu0  ;;  %v1585_v36 = vpop.permute.xlu0 %1584 }
 0x656   :  { %3905 = vmatpush.xpose.msk.msrb.mxu1 %vm567_vm9, %v1585_v36 }
 0x65b   :  { %3904 = vmatmul.msk.f32.gmra.mxu0 %vm567_vm9, %v5214_v21 }
 0x65c   :  { %3899 = vmatmul.msk.f32.vlgmr.msra.gmra.mxu1 %vm567_vm9, %v5210_v11 }
 0x65d   :  { %v5278_v5 = vpop.f32.mrf.mxu0  ;;  %v1583_v26 = vpop.permute.xlu0 %1582 }
 0x65e   :  { %3906 = vmatpush.xpose.msk.msrb.mxu1 %vm567_vm9, %v1583_v26 }
 0x664   :  { %3900 = vmatmul.msk.f32.gmra.mxu1 %vm567_vm9, %v5212_v17 }
 0x665   :  { %v1494_v29 = vpop.f32.mrf.mxu0  ;;  %v1581_v21 = vpop.permute.xlu0 %1580 }
 0x66c   :  { %3907 = vmatmul.msk.f32.vlgmr.msrb.gmra.mxu1 %vm567_vm9, %v5216_v22 }
 0x66d   :  { %v1497_v39 = vpop.f32.mrf.mxu0 }
 0x66e   :  { %v5287_v43 = vsel %vm5054_vm1, %v1497_v39, -1e+09 }
 0x66f   :  { %v1628_v11 = vsel %vm734_vm13, %v5287_v43, -inf }
 0x670   :  { %1629 = vmax.xlane.f32.xlu1 %v1628_v11 }
 0x674   :  { %3908 = vmatmul.msk.f32.gmra.mxu1 %vm567_vm9, %v1581_v21 }
 0x68b   :  { %v1119_v55 = vpop.xlane.xlu2 %1118 }
 0x68c   :  { %v1137_v41 = vsub.f32 %v1105_v56, %v1119_v55 }
 0x68e   :  { %v1147_v30 = vmul.f32 1.442695, %v1137_v41 }
 0x690   :  { %4396 = vpow2.f32 %v1147_v30 }
 0x693   :  { %v4272_v17 = vpop.permute.xlu2 %4271 }
 0x694   :  { %v4273_v33 = vunpack.i.l.bf16 %v4272_v17  ;;  %v4274_v22 = vunpack.i.h.bf16 %v4272_v17 }
 0x696   :  { %v4397_v8 = vpop.eup %4396  ;;  %1264 = vmatpush.msra.mxu3 %v4273_v33 }
 0x697   :  { %v1165_v62 = vsel %vm734_vm13, %v4397_v8, 0.0 }
 0x698   :  { %1265 = vmatpush.msra.mxu3 %v4274_v22  ;;  %1166 = vadd.xlane.f32.xlu0 %v1165_v62 }
 0x69a   :  { %1438 = vmatpush.bf16.msrb.mxu3 %v4182_v2 }
 0x69b   :  { %v1927_v21 = vpop.permute.xlu2 %1926 }
 0x69e   :  { %1439 = vmatpush.bf16.msrb.mxu3 %v4181_v45 }
 0x6a3   :  { %v4287_v17 = vpop.permute.xlu2 %4286 }
 0x6a4   :  { %v4288_v62 = vunpack.i.l.bf16 %v4287_v17 }
 0x6ac   :  { %4276 = vrot.lane.b32.xlu0 %v5295_v53, %s4667_s21 }
 0x6b4   :  { %1928 = vrot.lane.b32.xlu0 %v4912_v46, %s4679_s1 }
 0x6bc   :  { %4281 = vrot.lane.b32.xlu0 %v5257_v0, %s4667_s21 }
 0x6c4   :  { %1967 = vrot.lane.b32.xlu0 %v4930_v9, %s4679_s1 }
 0x6c9   :  { %v5305_v15 = vpop.f32.mrf.mxu1 }
 0x6cc   :  { %4291 = vrot.lane.b32.xlu0 %v4996_v47, %s4667_s21 }
 0x6d0   :  { %v1572_v42 = vpop.f32.mrf.mxu0 }
 0x6d1   :  { %v5311_v38 = vsel %vm5017_vm12, %v1572_v42, -1e+09  ;;  %v5313_v44 = vpop.f32.mrf.mxu1  ;;  %v4289_v42 = vunpack.i.h.bf16 %v4287_v17 }
 0x6d2   :  { %v1637_v46 = vsel %vm734_vm13, %v5311_v38, -inf }
 0x6d3   :  { %1638 = vmax.xlane.f32.xlu1 %v1637_v46 }
 0x6d4   :  { %1965 = vrot.lane.b32.xlu0 %v4936_v10, %s4679_s1  ;;  %v5335_v10 = vsel %vm5054_vm1, %v1494_v29, -1e+09  ;;  %v1170_v29 = vpop.xlane.xlu1 %1169 }
 0x6d5   :  { %v1625_v16 = vsel %vm734_vm13, %v5335_v10, -inf }
 0x6d8   :  { %v1575_v9 = vpop.f32.mrf.mxu0 }
 0x6d9   :  { %v5321_v7 = vsel %vm5017_vm12, %v1575_v9, -1e+09  ;;  %v1533_v4 = vpop.f32.mrf.mxu1 }
 0x6da   :  { %v1640_v52 = vsel %vm734_vm13, %v5321_v7, -inf  ;;  %v5341_v48 = vsel %vm5061_vm2, %v1533_v4, -1e+09 }
 0x6db   :  { %1641 = vmax.xlane.f32.xlu2 %v1640_v52  ;;  %v1631_v3 = vsel %vm734_vm13, %v5341_v48, -inf }
 0x6e1   :  { %v1536_v56 = vpop.f32.mrf.mxu1 }
 0x6e9   :  { %v1611_v14 = vpop.f32.mrf.mxu1 }
 0x6ea   :  { %v5327_v1 = vsel %vm5031_vm15, %v1611_v14, -1e+09 }
 0x6eb   :  { %v1643_v12 = vsel %vm734_vm13, %v5327_v1, -inf }
 0x6ec   :  { %1644 = vmax.xlane.f32.xlu1 %v1643_v12  ;;  %v941_v12 = vpack.c.bf16 %v5108_v54, %v5106_v61 }
 0x6f3   :  { %2006 = vrot.lane.b32.xlu2 %v4953_v19, %s4679_s1  ;;  %v5347_v19 = vsel %vm5061_vm2, %v1536_v56, -1e+09 }
 0x6f4   :  { %v1634_v26 = vsel %vm734_vm13, %v5347_v19, -inf }
 0x6fe   :  { %1626 = vmax.xlane.f32.xlu0 %v1625_v16  ;;  %v1614_v16 = vpop.f32.mrf.mxu1 }
 0x706   :  { %1632 = vmax.xlane.f32.xlu0 %v1631_v3  ;;  %v942_v3 = vpack.c.bf16 %v5183_v18, %v5179_v49  ;;  %v1925_v18 = vpop.permute.xlu2 %1924 }
 0x70b   :  { %v1167_v36 = vpop.xlane.xlu0 %1166 }
 0x70c   :  { %4398 = vrcp.f32 %v1167_v36 }
 0x70d   :  { %4400 = vrcp.f32 %v1170_v29 }
 0x70e   :  { %1635 = vmax.xlane.f32.xlu0 %v1634_v26 }
 0x712   :  { %v4399_v39 = vpop.eup %4398 }
 0x713   :  { %v1193_v11 = vmul.f32 %v4399_v39, %v4397_v8  ;;  %v4401_v55 = vpop.eup %4400  ;;  %v939_v8 = vpack.c.bf16 %v5173_v51, %v5171_v35  ;;  %v1923_v51 = vpop.permute.xlu1 %1922 }
 0x714   :  { %v1194_v41 = vmul.f32 %v4401_v55, %v5227_v13 }
 0x715   :  { %3863 = vmatmul.msk.f32.vlgmr.msra.gmra.mxu3 %vm734_vm13, %v1193_v11 }
 0x71b   :  { %v5369_v2 = vpop.permute.xlu1 %1961 }
 0x71d   :  { %3864 = vmatmul.msk.f32.gmra.mxu3 %vm734_vm13, %v1194_v41 }
 0x71e   :  { %v4277_v30 = vpop.permute.xlu0 %4276 }
 0x71f   :  { %v4278_v33 = vunpack.i.l.bf16 %v4277_v30  ;;  %v4279_v22 = vunpack.i.h.bf16 %v4277_v30 }
 0x721   :  { %1739 = vmatpush.msra.mxu0 %v4278_v33 }
 0x722   :  { %1963 = vrot.lane.b32.xlu0 %v4951_v25, %s4679_s1  ;;  %v940_v25 = vpack.c.bf16 %v5177_v31, %v5175_v58  ;;  %v5373_v58 = vsel %vm5031_vm15, %v1614_v16, -1e+09 }
 0x723   :  { %1740 = vmatpush.msra.mxu0 %v4279_v22  ;;  %v1646_v31 = vsel %vm734_vm13, %v5373_v58, -inf  ;;  %v1630_v45 = vpop.xlane.xlu1 %1629 }
 0x725   :  { %1809 = vmatpush.msrb.mxu0 %v4288_v62  ;;  %3889 = vmatmul.msk.bf16.vlgmr.msrb.gmra.mxu3 %vm567_vm9, %v939_v8 }
 0x726   :  { %v1929_v13 = vpop.permute.xlu0 %1928 }
 0x727   :  { %1810 = vmatpush.msrb.mxu0 %v4289_v42  ;;  %3929 = vmatpush.xpose.msk.msra.mxu3 %vm567_vm9, %v1929_v13 }
 0x72b   :  { %3930 = vmatpush.xpose.msk.msra.mxu3 %vm567_vm9, %v1927_v21 }
 0x72e   :  { %v4282_v46 = vpop.permute.xlu0 %4281 }
 0x72f   :  { %v4283_v9 = vunpack.i.l.bf16 %v4282_v46  ;;  %v4284_v4 = vunpack.i.h.bf16 %v4282_v46 }
 0x731   :  { %1774 = vmatpush.msra.mxu1 %v4283_v9 }
 0x733   :  { %1775 = vmatpush.msra.mxu1 %v4284_v4 }
 0x735   :  { %3890 = vmatmul.msk.bf16.gmra.mxu3 %vm567_vm9, %v940_v25 }
 0x736   :  { %v5364_v35 = vpop.permute.xlu0 %1967 }
 0x73e   :  { %v4292_v52 = vpop.permute.xlu0 %4291 }
 0x73f   :  { %v4293_v56 = vunpack.i.l.bf16 %v4292_v52  ;;  %v4294_v14 = vunpack.i.h.bf16 %v4292_v52 }
 0x741   :  { %1844 = vmatpush.msrb.mxu1 %v4293_v56 }
 0x743   :  { %1845 = vmatpush.msrb.mxu1 %v4294_v14 }
 0x745   :  { %3891 = vmatmul.msk.bf16.gmra.mxu3 %vm567_vm9, %v941_v12 }
 0x746   :  { %v1639_v61 = vpop.xlane.xlu1 %1638  ;;  %v5384_v29 = vpop.permute.xlu0 %1965 }
 0x74c   :  { %1647 = vmax.xlane.f32.xlu0 %v1646_v31 }
 0x755   :  { %3892 = vmatmul.msk.bf16.gmra.mxu3 %vm567_vm9, %v942_v3 }
 0x75f   :  { %v1645_v54 = vpop.xlane.xlu1 %1644 }
 0x760   :  { %v1655_v36 = vsub.f32 %v5327_v1, %v1645_v54  ;;  %2004 = vrot.lane.b32.xlu0 %v4961_v20, %s4679_s1  ;;  %v1650_v20 = vsub.f32 %v5287_v43, %v1630_v45 }
 0x762   :  { %v1669_v26 = vmul.f32 1.442695, %v1655_v36  ;;  %v1659_v55 = vmul.f32 1.442695, %v1650_v20 }
 0x764   :  { %4402 = vpow2.f32 %v1669_v26 }
 0x765   :  { %3931 = vmatmul.msk.f32.vlgmr.msra.gmra.mxu3 %vm567_vm9, %v1923_v51 }
 0x76a   :  { %v5386_v39 = vpop.eup %4402 }
 0x76b   :  { %v1691_v49 = vsel %vm734_vm13, %v5386_v39, 0.0 }
 0x76c   :  { %1692 = vadd.xlane.f32.xlu2 %v1691_v49 }
 0x76d   :  { %3932 = vmatmul.msk.f32.gmra.mxu3 %vm567_vm9, %v1925_v18 }
 0x771   :  { %v1627_v11 = vpop.xlane.xlu0 %1626 }
 0x772   :  { %v1649_v1 = vsub.f32 %v5335_v10, %v1627_v11  ;;  %v1653_v10 = vsub.f32 %v5311_v38, %v1639_v61 }
 0x774   :  { %v1657_v21 = vmul.f32 1.442695, %v1649_v1 }
 0x776   :  { %4404 = vpow2.f32 %v1657_v21 }
 0x777   :  { %4406 = vpow2.f32 %v1659_v55 }
 0x779   :  { %v1633_v41 = vpop.xlane.xlu0 %1632 }
 0x77a   :  { %v1651_v17 = vsub.f32 %v5341_v48, %v1633_v41  ;;  %v1665_v48 = vmul.f32 1.442695, %v1653_v10 }
 0x77c   :  { %v4405_v30 = vpop.eup %4404  ;;  %v1661_v22 = vmul.f32 1.442695, %v1651_v17 }
 0x77d   :  { %v1673_v33 = vsel %vm734_vm13, %v4405_v30, 0.0  ;;  %v4407_v8 = vpop.eup %4406 }
 0x77e   :  { %1674 = vadd.xlane.f32.xlu1 %v1673_v33  ;;  %4408 = vpow2.f32 %v1661_v22  ;;  %v1676_v13 = vsel %vm734_vm13, %v4407_v8, 0.0 }
 0x781   :  { %v1636_v62 = vpop.xlane.xlu0 %1635 }
 0x782   :  { %v1652_v42 = vsub.f32 %v5347_v19, %v1636_v62 }
 0x784   :  { %v1663_v43 = vmul.f32 1.442695, %v1652_v42  ;;  %2045 = vrot.lane.b32.xlu2 %v4974_v32, %s4679_s1  ;;  %v4409_v46 = vpop.eup %4408 }
 0x785   :  { %v1679_v19 = vsel %vm734_vm13, %v4409_v46, 0.0 }
 0x786   :  { %4410 = vpow2.f32 %v1663_v43  ;;  %1677 = vadd.xlane.f32.xlu1 %v1676_v13  ;;  %v1104_v13 = vsel %vm5054_vm1, %v5185_v28, -1e+09 }
 0x787   :  { %4412 = vpow2.f32 %v1665_v48 }
 0x78c   :  { %v5400_v9 = vpop.eup %4410  ;;  %2041 = vrot.lane.b32.xlu2 %v5004_v50, %s4679_s1  ;;  %v1642_v50 = vpop.xlane.xlu2 %1641 }
 0x78d   :  { %v1682_v38 = vsel %vm734_vm13, %v5400_v9, 0.0  ;;  %v4413_v32 = vpop.eup %4412  ;;  %v1654_v51 = vsub.f32 %v5321_v7, %v1642_v50 }
 0x78e   :  { %1680 = vadd.xlane.f32.xlu1 %v1679_v19  ;;  %1683 = vadd.xlane.f32.xlu0 %v1682_v38  ;;  %v1685_v4 = vsel %vm734_vm13, %v4413_v32, 0.0 }
 0x78f   :  { %v1667_v52 = vmul.f32 1.442695, %v1654_v51 }
 0x791   :  { %4414 = vpow2.f32 %v1667_v52 }
 0x794   :  { %v5414_v25 = vpop.permute.xlu0 %1963  ;;  %v2007_v16 = vpop.permute.xlu2 %2006 }
 0x796   :  { %1686 = vadd.xlane.f32.xlu1 %v1685_v4 }
 0x798   :  { %v5436_v3 = vpop.f32.mrf.mxu3 }
 0x7a0   :  { %v5440_v49 = vpop.f32.mrf.mxu3 }
 0x7a2   :  { %2000 = vrot.lane.b32.xlu0 %v4944_v34, %s4679_s1  ;;  %v5421_v34 = vsel %vm5054_vm1, %v5181_v23, -1e+09 }
 0x7a8   :  { %v5448_v21 = vpop.f32.mrf.mxu3 }
 0x7aa   :  { %2043 = vrot.lane.b32.xlu0 %v4978_v37, %s4679_s1  ;;  %v1111_v37 = vsel %vm734_vm13, %v5421_v34, -inf }
 0x7af   :  { %2002 = vrot.lane.b32.xlu1 %v4970_v27, %s4679_s1  ;;  %v5425_v27 = vpop.eup %4414 }
 0x7b0   :  { %v1688_v7 = vsel %vm734_vm13, %v5425_v27, 0.0  ;;  %v5452_v17 = vpop.f32.mrf.mxu3 }
 0x7b8   :  { %v5458_v42 = vpop.f32.mrf.mxu3 }
 0x7bf   :  { %v1648_v56 = vpop.xlane.xlu0 %1647 }
 0x7c0   :  { %v1656_v14 = vsub.f32 %v5373_v58, %v1648_v56  ;;  %v5466_v48 = vpop.f32.mrf.mxu3 }
 0x7c2   :  { %v1671_v12 = vmul.f32 1.442695, %v1656_v14 }
 0x7c4   :  { %4416 = vpow2.f32 %v1671_v12 }
 0x7ca   :  { %v5429_v31 = vpop.eup %4416 }
 0x7cb   :  { %v1694_v23 = vsel %vm734_vm13, %v5429_v31, 0.0 }
 0x7d2   :  { %v2005_v18 = vpop.permute.xlu0 %2004 }
 0x7d4   :  { %1112 = vmax.xlane.f32.xlu0 %v1111_v37 }
 0x7d9   :  { %1689 = vadd.xlane.f32.xlu1 %v1688_v7 }
 0x7df   :  { %v1693_v58 = vpop.xlane.xlu2 %1692 }
 0x7e1   :  { %1695 = vadd.xlane.f32.xlu1 %v1694_v23 }
 0x7e7   :  { %v2046_v45 = vpop.permute.xlu2 %2045 }
 0x7e8   :  { %3941 = vmatpush.xpose.msk.msrb.mxu3 %vm567_vm9, %v2046_v45  ;;  %4296 = vrot.lane.b32.xlu0 %v5295_v53, %s4677_s5 }
 0x7f1   :  { %v1675_v61 = vpop.xlane.xlu1 %1674 }
 0x7f2   :  { %4418 = vrcp.f32 %v1675_v61 }
 0x7f8   :  { %v4419_v54 = vpop.eup %4418 }
 0x7f9   :  { %v1705_v36 = vmul.f32 %v4419_v54, %v4405_v30  ;;  %v1678_v26 = vpop.xlane.xlu1 %1677 }
 0x7fa   :  { %4420 = vrcp.f32 %v1678_v26  ;;  %2039 = vrot.lane.b32.xlu1 %v4986_v40, %s4679_s1 }
 0x7fb   :  { %3909 = vmatmul.msk.f32.vlgmr.msra.gmra.mxu0 %vm734_vm13, %v1705_v36  ;;  %v2042_v36 = vpop.permute.xlu2 %2041 }
 0x7fc   :  { %3933 = vmatpush.xpose.msk.msra.mxu0 %vm567_vm9, %v5364_v35 }
 0x800   :  { %v4421_v11 = vpop.eup %4420  ;;  %3934 = vmatpush.xpose.msk.msra.mxu0 %vm567_vm9, %v5384_v29 }
 0x801   :  { %v1681_v1 = vpop.xlane.xlu1 %1680  ;;  %v1706_v20 = vmul.f32 %v4421_v11, %v4407_v8  ;;  %v1684_v40 = vpop.xlane.xlu0 %1683 }
 0x802   :  { %4422 = vrcp.f32 %v1681_v1 }
 0x803   :  { %3910 = vmatmul.msk.f32.gmra.mxu0 %vm734_vm13, %v1706_v20  ;;  %4424 = vrcp.f32 %v1684_v40 }
 0x808   :  { %v4423_v55 = vpop.eup %4422 }
 0x809   :  { %v1707_v41 = vmul.f32 %v4423_v55, %v4409_v46  ;;  %v1687_v30 = vpop.xlane.xlu1 %1686  ;;  %v4425_v35 = vpop.eup %4424  ;;  %v1114_v46 = vsel %vm734_vm13, %v1104_v13, -inf }
 0x80a   :  { %4426 = vrcp.f32 %v1687_v30  ;;  %v1708_v22 = vmul.f32 %v4425_v35, %v5400_v9  ;;  %v5469_v9 = vpop.f32.mrf.mxu3 }
 0x80b   :  { %3911 = vmatmul.msk.f32.vlgmr.msra.gmra.mxu1 %vm734_vm13, %v1707_v41  ;;  %4428 = vrcp.f32 %v1693_v58 }
 0x80c   :  { %3937 = vmatpush.xpose.msk.msra.mxu1 %vm567_vm9, %v2007_v16 }
 0x810   :  { %v4427_v29 = vpop.eup %4426  ;;  %3938 = vmatpush.xpose.msk.msra.mxu1 %vm567_vm9, %v2005_v18 }
 0x811   :  { %v1709_v33 = vmul.f32 %v4427_v29, %v4413_v32  ;;  %v4429_v8 = vpop.eup %4428 }
 0x812   :  { %v1711_v10 = vmul.f32 %v4429_v8, %v5386_v39  ;;  %v5471_v19 = vpop.f32.mrf.mxu3 }
 0x813   :  { %3912 = vmatmul.msk.f32.gmra.mxu1 %vm734_vm13, %v1708_v22  ;;  %3913 = vmatmul.msk.f32.vlgmr.msrb.gmra.mxu0 %vm734_vm13, %v1709_v33 }
 0x814   :  { %v2001_v62 = vpop.permute.xlu0 %2000 }
 0x81a   :  { %v5473_v38 = vpop.f32.mrf.mxu3 }
 0x81b   :  { %3915 = vmatmul.msk.f32.vlgmr.msrb.gmra.mxu1 %vm734_vm13, %v1711_v10 }
 0x81c   :  { %v2044_v43 = vpop.permute.xlu0 %2043 }
 0x81d   :  { %3942 = vmatpush.xpose.msk.msrb.mxu3 %vm567_vm9, %v2044_v43 }
 0x821   :  { %v2003_v39 = vpop.permute.xlu1 %2002 }
 0x822   :  { %v5476_v51 = vpop.f32.mrf.mxu3 }
 0x824   :  { %1115 = vmax.xlane.f32.xlu1 %v1114_v46 }
 0x82a   :  { %v1955_v16 = vpop.f32.mrf.mxu3 }
 0x832   :  { %v1958_v30 = vpop.f32.mrf.mxu3 }
 0x833   :  { %v2079_v35 = vsel %vm5054_vm1, %v1958_v30, -1e+09 }
 0x834   :  { %v2089_v29 = vsel %vm734_vm13, %v2079_v35, -inf }
 0x847   :  { %v1113_v32 = vpop.xlane.xlu0 %1112 }
 0x848   :  { %v1135_v4 = vsub.f32 %v5421_v34, %v1113_v32  ;;  %v2078_v34 = vsel %vm5054_vm1, %v1955_v16, -1e+09 }
 0x849   :  { %v2086_v23 = vsel %vm734_vm13, %v2078_v34, -inf }
 0x84a   :  { %v1143_v50 = vmul.f32 1.442695, %v1135_v4 }
 0x84c   :  { %4430 = vpow2.f32 %v1143_v50  ;;  %v1690_v28 = vpop.xlane.xlu1 %1689 }
 0x84d   :  { %4432 = vrcp.f32 %v1690_v28 }
 0x852   :  { %v4431_v52 = vpop.eup %4430 }
 0x853   :  { %v4433_v56 = vpop.eup %4432  ;;  %v1159_v14 = vsel %vm734_vm13, %v4431_v52, 0.0 }
 0x854   :  { %v1696_v12 = vpop.xlane.xlu1 %1695  ;;  %1160 = vadd.xlane.f32.xlu2 %v1159_v14  ;;  %v1710_v37 = vmul.f32 %v4433_v56, %v5425_v27 }
 0x855   :  { %4434 = vrcp.f32 %v1696_v12 }
 0x856   :  { %3914 = vmatmul.msk.f32.gmra.mxu0 %vm734_vm13, %v1710_v37 }
 0x85a   :  { %v4297_v7 = vpop.permute.xlu0 %4296 }
 0x85b   :  { %v4435_v58 = vpop.eup %4434  ;;  %v4298_v45 = vunpack.i.l.bf16 %v4297_v7  ;;  %v4299_v54 = vunpack.i.h.bf16 %v4297_v7 }
 0x85c   :  { %2087 = vmax.xlane.f32.xlu2 %v2086_v23  ;;  %v1712_v61 = vmul.f32 %v4435_v58, %v5429_v31 }
 0x85d   :  { %1227 = vmatpush.msrb.mxu2 %v4298_v45 }
 0x85e   :  { %3916 = vmatmul.msk.f32.gmra.mxu1 %vm734_vm13, %v1712_v61  ;;  %3935 = vmatmul.msk.f32.vlgmr.msra.gmra.mxu0 %vm567_vm9, %v5369_v2 }
 0x85f   :  { %1228 = vmatpush.msrb.mxu2 %v4299_v54 }
 0x866   :  { %3936 = vmatmul.msk.f32.gmra.mxu0 %vm567_vm9, %v5414_v25  ;;  %3939 = vmatmul.msk.f32.vlgmr.msra.gmra.mxu1 %vm567_vm9, %v2001_v62 }
 0x86c   :  { %v2040_v27 = vpop.permute.xlu1 %2039 }
 0x86d   :  { %3943 = vmatmul.msk.f32.vlgmr.msrb.gmra.mxu3 %vm567_vm9, %v2040_v27 }
 0x86e   :  { %3940 = vmatmul.msk.f32.gmra.mxu1 %vm567_vm9, %v2003_v39 }
 0x875   :  { %3944 = vmatmul.msk.f32.gmra.mxu3 %vm567_vm9, %v2042_v36 }
 0x878   :  { %v5494_v31 = vpop.f32.mrf.mxu0 }
 0x880   :  { %v5496_v26 = vpop.f32.mrf.mxu0 }
 0x881   :  { %v1853_v2 = vpack.c.bf16 %v5496_v26, %v5494_v31 }
 0x888   :  { %v5500_v18 = vpop.f32.mrf.mxu1 }
 0x890   :  { %v5502_v25 = vpop.f32.mrf.mxu1  ;;  %v5510_v22 = vpop.f32.mrf.mxu0 }
 0x891   :  { %v1854_v11 = vpack.c.bf16 %v5502_v25, %v5500_v18 }
 0x897   :  { %v1116_v1 = vpop.xlane.xlu1 %1115 }
 0x898   :  { %v1136_v20 = vsub.f32 %v1104_v13, %v1116_v1  ;;  %v5513_v46 = vpop.f32.mrf.mxu1 }
 0x89a   :  { %v1145_v40 = vmul.f32 1.442695, %v1136_v20 }
 0x89c   :  { %4436 = vpow2.f32 %v1145_v40 }
 0x8a2   :  { %v4437_v55 = vpop.eup %4436 }
 0x8a3   :  { %v1162_v41 = vsel %vm734_vm13, %v4437_v55, 0.0 }
 0x8a4   :  { %1163 = vadd.xlane.f32.xlu1 %v1162_v41 }
 0x8ac   :  { %2090 = vmax.xlane.f32.xlu1 %v2089_v29 }
 0x8c7   :  { %v1161_v33 = vpop.xlane.xlu2 %1160 }
 0x8c8   :  { %4438 = vrcp.f32 %v1161_v33 }
 0x8ce   :  { %v4439_v62 = vpop.eup %4438 }
 0x8cf   :  { %v2088_v8 = vpop.xlane.xlu2 %2087  ;;  %v1191_v10 = vmul.f32 %v4439_v62, %v4431_v52 }
 0x8d0   :  { %v2110_v43 = vsub.f32 %v2078_v34, %v2088_v8 }
 0x8d1   :  { %3861 = vmatmul.msk.f32.vlgmr.msrb.gmra.mxu2 %vm734_vm13, %v1191_v10 }
 0x8d2   :  { %v2118_v13 = vmul.f32 1.442695, %v2110_v43 }
 0x8d3   :  { %v5515_v39 = vpop.f32.mrf.mxu0 }
 0x8d4   :  { %4440 = vpow2.f32 %v2118_v13  ;;  %v1855_v57 = vpack.c.bf16 %v5515_v39, %v5510_v22 }
 0x8da   :  { %v4441_v32 = vpop.eup %4440 }
 0x8db   :  { %v5519_v4 = vpop.f32.mrf.mxu1  ;;  %v2134_v50 = vsel %vm734_vm13, %v4441_v32, 0.0  ;;  %v1994_v52 = vpop.f32.mrf.mxu0 }
 0x8dc   :  { %v1856_v28 = vpack.c.bf16 %v5519_v4, %v5513_v46  ;;  %2135 = vadd.xlane.f32.xlu2 %v2134_v50  ;;  %v2080_v56 = vsel %vm5061_vm2, %v1994_v52, -1e+09 }
 0x8dd   :  { %v2092_v12 = vsel %vm734_vm13, %v2080_v56, -inf }
 0x8e3   :  { %v2033_v14 = vpop.f32.mrf.mxu1  ;;  %v1997_v36 = vpop.f32.mrf.mxu0 }
 0x8e4   :  { %2093 = vmax.xlane.f32.xlu2 %v2092_v12  ;;  %v2082_v37 = vsel %vm5017_vm12, %v2033_v14, -1e+09  ;;  %v2081_v1 = vsel %vm5061_vm2, %v1997_v36, -1e+09 }
 0x8e5   :  { %v2098_v34 = vsel %vm734_vm13, %v2082_v37, -inf  ;;  %v2095_v20 = vsel %vm734_vm13, %v2081_v1, -inf }
 0x8eb   :  { %v2036_v16 = vpop.f32.mrf.mxu1 }
 0x8ec   :  { %v5532_v7 = vsel %vm5017_vm12, %v2036_v16, -1e+09  ;;  %2099 = vmax.xlane.f32.xlu2 %v2098_v34 }
 0x8ed   :  { %v2101_v58 = vsel %vm734_vm13, %v5532_v7, -inf }
 0x8ee   :  { %2102 = vmax.xlane.f32.xlu0 %v2101_v58 }
 0x8f0   :  { %v2072_v23 = vpop.f32.mrf.mxu3 }
 0x8f1   :  { %v5538_v45 = vsel %vm5031_vm15, %v2072_v23, -1e+09 }
 0x8f2   :  { %v2104_v61 = vsel %vm734_vm13, %v5538_v45, -inf }
 0x8f3   :  { %2105 = vmax.xlane.f32.xlu1 %v2104_v61 }
 0x8f8   :  { %v2075_v54 = vpop.f32.mrf.mxu3 }
 0x8f9   :  { %v5544_v59 = vsel %vm5031_vm15, %v2075_v54, -1e+09 }
 0x8fa   :  { %v2107_v27 = vsel %vm734_vm13, %v5544_v59, -inf }
 0x8fb   :  { %2108 = vmax.xlane.f32.xlu1 %v2107_v27 }
 0x903   :  { %2096 = vmax.xlane.f32.xlu1 %v2095_v20  ;;  %v4184_v20 = vld [vmem:[#allocation4 + $0x18] sm:$0xff] }
 0x904   :  { %4301 = vrot.lane.b32.xlu2 %v5295_v53, %s4679_s1  ;;  %1385 = vmatpush.bf16.msra.mxu2 %v4184_v20  ;;  %v4187_v20 = vld [vmem:[#allocation4 + $0x30] sm:$0xff] }
 0x917   :  { %v1164_v40 = vpop.xlane.xlu1 %1163 }
 0x918   :  { %4442 = vrcp.f32 %v1164_v40 }
 0x91e   :  { %v4443_v41 = vpop.eup %4442 }
 0x91f   :  { %v2091_v6 = vpop.xlane.xlu1 %2090  ;;  %v1192_v30 = vmul.f32 %v4443_v41, %v4437_v55  ;;  %v4183_v41 = vld [vmem:[#allocation4 + $0x10] sm:$0xff] }
 0x920   :  { %v2111_v29 = vsub.f32 %v2079_v35, %v2091_v6  ;;  %1386 = vmatpush.bf16.msra.mxu2 %v4183_v41 }
 0x921   :  { %3862 = vmatmul.msk.f32.gmra.mxu2 %vm734_vm13, %v1192_v30 }
 0x922   :  { %v2120_v33 = vmul.f32 1.442695, %v2111_v29 }
 0x924   :  { %4444 = vpow2.f32 %v2120_v33 }
 0x92a   :  { %v4445_v62 = vpop.eup %4444 }
 0x92b   :  { %v2137_v60 = vsel %vm734_vm13, %v4445_v62, 0.0 }
 0x92c   :  { %2138 = vadd.xlane.f32.xlu1 %v2137_v60 }
 0x94f   :  { %v2136_v8 = vpop.xlane.xlu2 %2135 }
 0x957   :  { %v2094_v10 = vpop.xlane.xlu2 %2093 }
 0x958   :  { %v2112_v43 = vsub.f32 %v2080_v56, %v2094_v10 }
 0x95a   :  { %v2122_v13 = vmul.f32 1.442695, %v2112_v43 }
 0x95c   :  { %4446 = vpow2.f32 %v2122_v13 }
 0x95d   :  { %4448 = vrcp.f32 %v2136_v8 }
 0x95f   :  { %v2100_v53 = vpop.xlane.xlu2 %2099 }
 0x960   :  { %v2114_v50 = vsub.f32 %v2082_v37, %v2100_v53 }
 0x961   :  { %v2103_v6 = vpop.xlane.xlu0 %2102 }
 0x962   :  { %v5555_v52 = vpop.eup %4446  ;;  %v2126_v55 = vmul.f32 1.442695, %v2114_v50  ;;  %v1348_v50 = vpack.c.bf16 %v5440_v49, %v5436_v3  ;;  %v1350_v3 = vpack.c.bf16 %v5313_v44, %v5305_v15 }
 0x963   :  { %v2140_v35 = vsel %vm734_vm13, %v5555_v52, 0.0  ;;  %v4449_v16 = vpop.eup %4448 }
 0x964   :  { %4450 = vpow2.f32 %v2126_v55  ;;  %2141 = vadd.xlane.f32.xlu1 %v2140_v35  ;;  %v2166_v23 = vmul.f32 %v4449_v16, %v4441_v32  ;;  %v1349_v16 = vpack.c.bf16 %v5278_v5, %v5271_v63 }
 0x966   :  { %v2106_v14 = vpop.xlane.xlu1 %2105 }
 0x967   :  { %v4302_v12 = vpop.permute.xlu2 %4301  ;;  %v2116_v30 = vsub.f32 %v5538_v45, %v2106_v14  ;;  %v4186_v14 = vld [vmem:[#allocation4 + $0x28] sm:$0xff] }
 0x968   :  { %v4303_v34 = vunpack.i.l.bf16 %v4302_v12  ;;  %v4304_v56 = vunpack.i.h.bf16 %v4302_v12  ;;  %1891 = vmatpush.bf16.msrb.mxu2 %v4186_v14  ;;  %v4185_v12 = vld [vmem:[#allocation4 + $0x20] sm:$0xff] }
 0x96a   :  { %v5559_v58 = vpop.eup %4450  ;;  %2200 = vmatpush.msrb.mxu0 %v4303_v34 }
 0x96b   :  { %v2146_v37 = vsel %vm734_vm13, %v5559_v58, 0.0 }
 0x96c   :  { %2147 = vadd.xlane.f32.xlu0 %v2146_v37  ;;  %2201 = vmatpush.msrb.mxu0 %v4304_v56 }
 0x96d   :  { %3945 = vmatmul.msk.f32.vlgmr.msrb.gmra.mxu0 %vm734_vm13, %v2166_v23  ;;  %1892 = vmatpush.bf16.msrb.mxu2 %v4185_v12 }
 0x96e   :  { %v2109_v61 = vpop.xlane.xlu1 %2108 }
 0x96f   :  { %v2117_v53 = vsub.f32 %v5544_v59, %v2109_v61 }
 0x971   :  { %v2132_v55 = vmul.f32 1.442695, %v2117_v53  ;;  %v5638_v53 = vld [vmem:[%s6227_s7] ss:$0 sm:$0xff] }
 0x976   :  { %v2097_v54 = vpop.xlane.xlu1 %2096 }
 0x977   :  { %v2113_v27 = vsub.f32 %v2081_v1, %v2097_v54  ;;  %v2115_v1 = vsub.f32 %v5532_v7, %v2103_v6 }
 0x979   :  { %v2124_v36 = vmul.f32 1.442695, %v2113_v27  ;;  %v2128_v29 = vmul.f32 1.442695, %v2115_v1 }
 0x97b   :  { %4452 = vpow2.f32 %v2124_v36 }
 0x97c   :  { %4454 = vpow2.f32 %v2128_v29 }
 0x97d   :  { %4306 = vrot.lane.b32.xlu1 %v5257_v0, %s4679_s1  ;;  %v2130_v0 = vmul.f32 1.442695, %v2116_v30 }
 0x97f   :  { %4456 = vpow2.f32 %v2130_v0 }
 0x980   :  { %4311 = vrot.lane.b32.xlu0 %v4967_v24, %s4679_s1  ;;  %v1230_v24 = vpop.f32.mrf.mxu2 }
 0x981   :  { %v5568_v32 = vpop.eup %4452 }
 0x982   :  { %v2143_v40 = vsel %vm734_vm13, %v5568_v32, 0.0  ;;  %v5576_v60 = vpop.eup %4454 }
 0x983   :  { %2144 = vadd.xlane.f32.xlu2 %v2143_v40  ;;  %v2149_v7 = vsel %vm734_vm13, %v5576_v60, 0.0 }
 0x985   :  { %v5578_v10 = vpop.eup %4456 }
 0x99b   :  { %4316 = vrot.lane.b32.xlu2 %v4996_v47, %s4679_s1  ;;  %v2152_v47 = vsel %vm734_vm13, %v5578_v10, 0.0 }
 0x99f   :  { %v2139_v33 = vpop.xlane.xlu1 %2138 }
 0x9a0   :  { %4458 = vrcp.f32 %v2139_v33 }
 0x9a1   :  { %4460 = vpow2.f32 %v2132_v55 }
 0x9a4   :  { %v1233_v8 = vpop.f32.mrf.mxu2 }
 0x9a5   :  { %v1347_v43 = vpack.c.bf16 %v1233_v8, %v1230_v24 }
 0x9a6   :  { %v4459_v13 = vpop.eup %4458 }
 0x9a7   :  { %2150 = vadd.xlane.f32.xlu1 %v2149_v7  ;;  %3877 = vmatmul.msk.bf16.vlgmr.msra.gmra.mxu2 %vm567_vm9, %v1347_v43  ;;  %v2167_v45 = vmul.f32 %v4459_v13, %v4445_v62  ;;  %v5590_v35 = vpop.eup %4460 }
 0x9a8   :  { %v2155_v62 = vsel %vm734_vm13, %v5590_v35, 0.0 }
 0x9a9   :  { %3946 = vmatmul.msk.f32.gmra.mxu0 %vm734_vm13, %v2167_v45 }
 0x9aa   :  { %2153 = vadd.xlane.f32.xlu0 %v2152_v47 }
 0x9b7   :  { %3878 = vmatmul.msk.bf16.gmra.mxu2 %vm567_vm9, %v1348_v50 }
 0x9c4   :  { %2156 = vadd.xlane.f32.xlu2 %v2155_v62 }
 0x9c7   :  { %3879 = vmatmul.msk.bf16.gmra.mxu2 %vm567_vm9, %v1349_v16 }
 0x9d7   :  { %3880 = vmatmul.msk.bf16.gmra.mxu2 %vm567_vm9, %v1350_v3  ;;  %v2142_v49 = vpop.xlane.xlu1 %2141 }
 0x9d8   :  { %4462 = vrcp.f32 %v2142_v49 }
 0x9de   :  { %v4463_v56 = vpop.eup %4462 }
 0x9df   :  { %v2148_v59 = vpop.xlane.xlu0 %2147  ;;  %v2168_v15 = vmul.f32 %v4463_v56, %v5555_v52 }
 0x9e0   :  { %4464 = vrcp.f32 %v2148_v59 }
 0x9e6   :  { %v4465_v37 = vpop.eup %4464 }
 0x9e7   :  { %3925 = vmatmul.msk.bf16.vlgmr.msrb.gmra.mxu2 %vm567_vm9, %v1853_v2  ;;  %v2170_v31 = vmul.f32 %v4465_v37, %v5559_v58  ;;  %v4188_v58 = vld [vmem:[#allocation4 + $0x38] sm:$0xff] }
 0x9ef   :  { %v4307_v34 = vpop.permute.xlu1 %4306 }
 0x9f0   :  { %v4308_v63 = vunpack.i.l.bf16 %v4307_v34  ;;  %v4309_v5 = vunpack.i.h.bf16 %v4307_v34 }
 0x9f2   :  { %2235 = vmatpush.msrb.mxu1 %v4308_v63  ;;  %v4312_v23 = vpop.permute.xlu0 %4311 }
 0x9f3   :  { %v4313_v44 = vunpack.i.l.bf16 %v4312_v23  ;;  %v4314_v61 = vunpack.i.h.bf16 %v4312_v23 }
 0x9f4   :  { %2236 = vmatpush.msrb.mxu1 %v4309_v5 }
 0x9f5   :  { %3947 = vmatmul.msk.f32.vlgmr.msrb.gmra.mxu1 %vm734_vm13, %v2168_v15  ;;  %2270 = vmatpush.msra.mxu3 %v4313_v44 }
 0x9f6   :  { %v2145_v26 = vpop.xlane.xlu2 %2144  ;;  %2352 = vmatpush.bf16.msra.mxu1 %v4188_v58 }
 0x9f7   :  { %4466 = vrcp.f32 %v2145_v26  ;;  %3926 = vmatmul.msk.bf16.gmra.mxu2 %vm567_vm9, %v1854_v11  ;;  %2271 = vmatpush.msra.mxu3 %v4314_v61  ;;  %v2203_v11 = vpop.f32.mrf.mxu0 }
 0x9f8   :  { %3949 = vmatmul.msk.f32.vlgmr.msra.gmra.mxu3 %vm734_vm13, %v2170_v31 }
 0x9fa   :  { %2353 = vmatpush.bf16.msra.mxu1 %v4187_v20 }
 0x9fd   :  { %v4467_v2 = vpop.eup %4466 }
 0x9fe   :  { %v4317_v52 = vpop.permute.xlu2 %4316  ;;  %v2169_v54 = vmul.f32 %v4467_v2, %v5568_v32 }
 0x9ff   :  { %v4318_v27 = vunpack.i.l.bf16 %v4317_v52  ;;  %v4319_v36 = vunpack.i.h.bf16 %v4317_v52 }
 0xa00   :  { %3948 = vmatmul.msk.f32.gmra.mxu1 %vm734_vm13, %v2169_v54 }
 0xa01   :  { %2305 = vmatpush.msra.mxu0 %v4318_v27 }
 0xa03   :  { %2306 = vmatpush.msra.mxu0 %v4319_v36 }
 0xa07   :  { %3927 = vmatmul.msk.bf16.gmra.mxu2 %vm567_vm9, %v1855_v57 }
 0xa17   :  { %3928 = vmatmul.msk.bf16.gmra.mxu2 %vm567_vm9, %v1856_v28 }
 0xa1a   :  { %v2151_v18 = vpop.xlane.xlu1 %2150 }
 0xa1b   :  { %4468 = vrcp.f32 %v2151_v18 }
 0xa1d   :  { %v2154_v25 = vpop.xlane.xlu0 %2153 }
 0xa1e   :  { %4470 = vrcp.f32 %v2154_v25  ;;  %v6248_v25 = vld [vmem:[#allocation12_spill] sm:$0xff] }
 0xa21   :  { %v4469_v32 = vpop.eup %4468 }
 0xa22   :  { %v2171_v40 = vmul.f32 %v4469_v32, %v5576_v60 }
 0xa24   :  { %v4471_v41 = vpop.eup %4470  ;;  %3950 = vmatmul.msk.f32.gmra.mxu3 %vm734_vm13, %v2171_v40 }
 0xa25   :  { %v2172_v22 = vmul.f32 %v4471_v41, %v5578_v10 }
 0xa26   :  { %v2206_v39 = vpop.f32.mrf.mxu0 }
 0xa27   :  { %v2314_v57 = vpack.c.bf16 %v2206_v39, %v2203_v11  ;;  %3951 = vmatmul.msk.f32.vlgmr.msra.gmra.mxu0 %vm734_vm13, %v2172_v22 }
 0xa29   :  { %3961 = vmatmul.msk.bf16.vlgmr.msra.gmra.mxu1 %vm567_vm9, %v2314_v57 }
 0xa2a   :  { %v1388_v6 = vpop.f32.mrf.mxu2 }
 0xa2b   :  { %v1442_v45 = vadd.f32 %v5448_v21, %v1388_v6 }
 0xa32   :  { %v1390_v1 = vpop.f32.mrf.mxu2 }
 0xa33   :  { %v1444_v16 = vadd.f32 %v5452_v17, %v1390_v1 }
 0xa37   :  { %v2157_v46 = vpop.xlane.xlu2 %2156 }
 0xa38   :  { %4472 = vrcp.f32 %v2157_v46 }
 0xa3a   :  { %v1393_v30 = vpop.f32.mrf.mxu2 }
 0xa3b   :  { %v1447_v23 = vadd.f32 %v5458_v42, %v1393_v30 }
 0xa3e   :  { %v4473_v4 = vpop.eup %4472 }
 0xa3f   :  { %v2173_v28 = vmul.f32 %v4473_v4, %v5590_v35 }
 0xa41   :  { %3952 = vmatmul.msk.f32.gmra.mxu0 %vm734_vm13, %v2173_v28 }
 0xa42   :  { %v1395_v29 = vpop.f32.mrf.mxu2 }
 0xa43   :  { %v1449_v31 = vadd.f32 %v5466_v48, %v1395_v29 }
 0xa4a   :  { %v1398_v24 = vpop.f32.mrf.mxu2 }
 0xa4b   :  { %v1452_v36 = vadd.f32 %v5469_v9, %v1398_v24 }
 0xa52   :  { %v1400_v8 = vpop.f32.mrf.mxu2 }
 0xa53   :  { %v1454_v48 = vadd.f32 %v5471_v19, %v1400_v8 }
 0xa5a   :  { %v5630_v10 = vpop.f32.mrf.mxu2 }
 0xa5b   :  { %v1457_v30 = vadd.f32 %v5473_v38, %v5630_v10 }
 0xa62   :  { %v5632_v43 = vpop.f32.mrf.mxu2 }
 0xa63   :  { %v1459_v8 = vadd.f32 %v5476_v51, %v5632_v43 }
 0xa6a   :  { %v1894_v7 = vpop.f32.mrf.mxu2 }
 0xa6b   :  { %v1914_v47 = vadd.f32 %v1894_v7, %v1442_v45 }
 0xa72   :  { %v2238_v0 = vpop.f32.mrf.mxu1  ;;  %v1896_v12 = vpop.f32.mrf.mxu2 }
 0xa73   :  { %v1915_v3 = vadd.f32 %v1896_v12, %v1444_v16 }
 0xa7a   :  { %v1899_v5 = vpop.f32.mrf.mxu2 }
 0xa7b   :  { %v2273_v13 = vpop.f32.mrf.mxu3  ;;  %v1916_v37 = vadd.f32 %v1899_v5, %v1447_v23 }
 0xa7d   :  { %v2241_v33 = vpop.f32.mrf.mxu1 }
 0xa7e   :  { %v2315_v60 = vpack.c.bf16 %v2241_v33, %v2238_v0 }
 0xa80   :  { %3962 = vmatmul.msk.bf16.gmra.mxu1 %vm567_vm9, %v2315_v60 }
 0xa82   :  { %v1901_v61 = vpop.f32.mrf.mxu2 }
 0xa83   :  { %v1917_v26 = vadd.f32 %v1901_v61, %v1449_v31 }
 0xa8a   :  { %v1904_v27 = vpop.f32.mrf.mxu2 }
 0xa8b   :  { %v1918_v58 = vadd.f32 %v1904_v27, %v1452_v36 }
 0xa92   :  { %v1906_v40 = vpop.f32.mrf.mxu2 }
 0xa93   :  { %v1919_v41 = vadd.f32 %v1906_v40, %v1454_v48  ;;  %v5705_v40 = vld [vmem:[%s6223_s3 + $0x1] ss:$0 sm:$0xff] }
 0xa9a   :  { %v1909_v1 = vpop.f32.mrf.mxu2 }
 0xa9b   :  { %v1920_v29 = vadd.f32 %v1909_v1, %v1457_v30 }
 0xaa2   :  { %v1911_v60 = vpop.f32.mrf.mxu2 }
 0xaa4   :  { %v2308_v34 = vpop.f32.mrf.mxu0 }
 0xaa6   :  { %v2355_v50 = vpop.f32.mrf.mxu1 }
 0xaa7   :  { %v2375_v55 = vadd.f32 %v2355_v50, %v1914_v47  ;;  %v2276_v35 = vpop.f32.mrf.mxu3 }
 0xaa8   :  { %v2316_v14 = vpack.c.bf16 %v2276_v35, %v2273_v13  ;;  %v1921_v13 = vadd.f32 %v1911_v60, %v1459_v8 }
 0xaa9   :  { %v2387_v62 = vadd.f32 %v5638_v53, %v2375_v55 }
 0xaaa   :  { %3963 = vmatmul.msk.bf16.gmra.mxu1 %vm567_vm9, %v2316_v14 }
 0xaab   :  { %2397 = vadd.xlane.f32.xlu1 %v2387_v62 }
 0xaae   :  { %v2357_v21 = vpop.f32.mrf.mxu1 }
 0xaaf   :  { %v2376_v49 = vadd.f32 %v2357_v21, %v1915_v3 }
 0xab1   :  { %v2388_v59 = vadd.f32 %v5638_v53, %v2376_v49 }
 0xab3   :  { %2399 = vadd.xlane.f32.xlu0 %v2388_v59 }
 0xabe   :  { %v2311_v56 = vpop.f32.mrf.mxu0 }
 0xabf   :  { %v2317_v63 = vpack.c.bf16 %v2311_v56, %v2308_v34 }
 0xac1   :  { %3964 = vmatmul.msk.bf16.gmra.mxu1 %vm567_vm9, %v2317_v63 }
 0xafd   :  { %v2360_v15 = vpop.f32.mrf.mxu1 }
 0xafe   :  { %v2377_v44 = vadd.f32 %v2360_v15, %v1916_v37 }
 0xb00   :  { %v2389_v17 = vadd.f32 %v5638_v53, %v2377_v44 }
 0xb02   :  { %2401 = vadd.xlane.f32.xlu1 %v2389_v17 }
 0xb05   :  { %v2362_v2 = vpop.f32.mrf.mxu1 }
 0xb06   :  { %v2378_v52 = vadd.f32 %v2362_v2, %v1917_v26 }
 0xb08   :  { %v2390_v54 = vadd.f32 %v5638_v53, %v2378_v52 }
 0xb0a   :  { %2403 = vadd.xlane.f32.xlu0 %v2390_v54 }
 0xb1e   :  { %v2398_v42 = vpop.xlane.xlu1 %2397 }
 0xb1f   :  { %v2413_v11 = vmul.f32 %v2398_v42, %v6248_v25  ;;  %v5699_v42 = vld [vmem:[%s6222_s2 + $0x1] ss:$0 sm:$0xff] }
 0xb21   :  { %v5653_v22 = vsub.f32 %v2387_v62, %v2413_v11 }
 0xb23   :  { %v2429_v28 = vmul.f32 %v5653_v22, %v5653_v22 }
 0xb26   :  { %v2400_v39 = vpop.xlane.xlu0 %2399 }
 0xb27   :  { %v2365_v20 = vpop.f32.mrf.mxu1  ;;  %v2414_v9 = vmul.f32 %v2400_v39, %v6248_v25 }
 0xb28   :  { %v2379_v18 = vadd.f32 %v2365_v20, %v1918_v58 }
 0xb29   :  { %v5659_v6 = vsub.f32 %v2388_v59, %v2414_v9 }
 0xb2a   :  { %v2391_v32 = vadd.f32 %v5638_v53, %v2379_v18 }
 0xb2b   :  { %v2430_v19 = vmul.f32 %v5659_v6, %v5659_v6 }
 0xb2c   :  { %2405 = vadd.xlane.f32.xlu1 %v2391_v32 }
 0xb2f   :  { %v2367_v57 = vpop.f32.mrf.mxu1 }
 0xb30   :  { %v2380_v46 = vadd.f32 %v2367_v57, %v1919_v41 }
 0xb32   :  { %v2392_v4 = vadd.f32 %v5638_v53, %v2380_v46 }
 0xb34   :  { %2437 = vadd.xlane.f32.xlu1 %v2429_v28  ;;  %2407 = vadd.xlane.f32.xlu0 %v2392_v4  ;;  %v4556_v28 = vld [vmem:[%s6220_s0] sm:$0xff] }
 0xb3c   :  { %2439 = vadd.xlane.f32.xlu0 %v2430_v19 }
 0xb3e   :  { %v2370_v0 = vpop.f32.mrf.mxu1 }
 0xb3f   :  { %v2381_v24 = vadd.f32 %v2370_v0, %v1920_v29 }
 0xb41   :  { %v2393_v33 = vadd.f32 %v5638_v53, %v2381_v24  ;;  %v4557_v24 = vld [vmem:[%s6220_s0 + $0x8] sm:$0xff] }
 0xb43   :  { %2409 = vadd.xlane.f32.xlu1 %v2393_v33 }
 0xb46   :  { %v2372_v7 = vpop.f32.mrf.mxu1 }
 0xb47   :  { %v2382_v45 = vadd.f32 %v2372_v7, %v1921_v13 }
 0xb49   :  { %v2394_v47 = vadd.f32 %v5638_v53, %v2382_v45 }
 0xb4b   :  { %2411 = vadd.xlane.f32.xlu2 %v2394_v47 }
 0xb75   :  { %v2402_v50 = vpop.xlane.xlu1 %2401 }
 0xb76   :  { %v2415_v38 = vmul.f32 %v2402_v50, %v6248_v25 }
 0xb78   :  { %v5670_v10 = vsub.f32 %v2389_v17, %v2415_v38 }
 0xb7a   :  { %v2431_v55 = vmul.f32 %v5670_v10, %v5670_v10 }
 0xb7c   :  { %2441 = vadd.xlane.f32.xlu0 %v2431_v55 }
 0xb7d   :  { %v2404_v35 = vpop.xlane.xlu0 %2403 }
 0xb7e   :  { %v2416_v14 = vmul.f32 %v2404_v35, %v6248_v25 }
 0xb80   :  { %v5675_v51 = vsub.f32 %v2390_v54, %v2416_v14 }
 0xb82   :  { %v2432_v43 = vmul.f32 %v5675_v51, %v5675_v51 }
 0xb84   :  { %2443 = vadd.xlane.f32.xlu1 %v2432_v43 }
 0xb9f   :  { %v2406_v53 = vpop.xlane.xlu1 %2405 }
 0xba0   :  { %v2417_v62 = vmul.f32 %v2406_v53, %v6248_v25 }
 0xba2   :  { %v5680_v12 = vsub.f32 %v2391_v32, %v2417_v62 }
 0xba4   :  { %v2433_v16 = vmul.f32 %v5680_v12, %v5680_v12 }
 0xba6   :  { %2445 = vadd.xlane.f32.xlu2 %v2433_v16 }
 0xba7   :  { %v2438_v3 = vpop.xlane.xlu1 %2437  ;;  %v2408_v21 = vpop.xlane.xlu0 %2407 }
 0xba8   :  { %v2453_v49 = vmul.f32 %v2438_v3, %v6248_v25  ;;  %v2418_v59 = vmul.f32 %v2408_v21, %v6248_v25 }
 0xbaa   :  { %v2461_v34 = vadd.f32 1e-05, %v2453_v49  ;;  %v5686_v56 = vsub.f32 %v2392_v4, %v2418_v59 }
 0xbac   :  { %4474 = vrsqrt.f32 %v2461_v34  ;;  %v2434_v63 = vmul.f32 %v5686_v56, %v5686_v56  ;;  %vm2475_vm4 = vweird.f32 %v2461_v34 }
 0xbae   :  { %2447 = vadd.xlane.f32.xlu0 %v2434_v63 }
 0xbaf   :  { %v2440_v5 = vpop.xlane.xlu0 %2439 }
 0xbb0   :  { %v2454_v23 = vmul.f32 %v2440_v5, %v6248_v25  ;;  %v4558_v5 = vld [vmem:[%s6220_s0 + $0x10] sm:$0xff] }
 0xbb2   :  { %v4475_v37 = vpop.eup %4474  ;;  %v2462_v15 = vadd.f32 1e-05, %v2454_v23 }
 0xbb3   :  { %v2470_v44 = vmul.f32 %v4475_v37, %v2461_v34  ;;  %vm2476_vm3 = vweird.f32 %v4475_v37 }
 0xbb4   :  { %4476 = vrsqrt.f32 %v2462_v15  ;;  %vm2477_vm5 = vmor %vm2475_vm4, %vm2476_vm3  ;;  %vm2485_vm7 = vweird.f32 %v2462_v15 }
 0xbb5   :  { %v2471_v17 = vmul.f32 %v4475_v37, %v2470_v44 }
 0xbb6   :  { %v2410_v61 = vpop.xlane.xlu1 %2409 }
 0xbb7   :  { %v2472_v31 = vmul.f32 0.5, %v2471_v17  ;;  %v2419_v26 = vmul.f32 %v2410_v61, %v6248_v25  ;;  %v4559_v17 = vld [vmem:[%s6220_s0 + $0x18] sm:$0xff] }
 0xbb9   :  { %v2473_v2 = vsub.f32 1.5, %v2472_v31  ;;  %v5692_v52 = vsub.f32 %v2393_v33, %v2419_v26 }
 0xbba   :  { %v4477_v54 = vpop.eup %4476 }
 0xbbb   :  { %v2474_v27 = vmul.f32 %v4475_v37, %v2473_v2  ;;  %v2480_v36 = vmul.f32 %v4477_v54, %v2462_v15  ;;  %v2435_v58 = vmul.f32 %v5692_v52, %v5692_v52  ;;  %vm2486_vm6 = vweird.f32 %v4477_v54 }
 0xbbc   :  { %vm2487_vm8 = vmor %vm2485_vm7, %vm2486_vm6 }
 0xbbd   :  { %v2478_v20 = vsel %vm2477_vm5, %v4475_v37, %v2474_v27  ;;  %v2481_v18 = vmul.f32 %v4477_v54, %v2480_v36  ;;  %2449 = vadd.xlane.f32.xlu1 %v2435_v58 }
 0xbbe   :  { %v2549_v11 = vmul.f32 %v2478_v20, %v5653_v22  ;;  %v2412_v32 = vpop.xlane.xlu2 %2411 }
 0xbbf   :  { %v2482_v48 = vmul.f32 0.5, %v2481_v18  ;;  %v2420_v41 = vmul.f32 %v2412_v32, %v6248_v25 }
 0xbc0   :  { %v2558_v39 = vmul.f32 %v5699_v42, %v2549_v11 }
 0xbc1   :  { %v2483_v57 = vsub.f32 1.5, %v2482_v48  ;;  %v5709_v46 = vsub.f32 %v2394_v47, %v2420_v41 }
 0xbc2   :  { %v2567_v9 = vadd.f32 %v5705_v40, %v2558_v39 }
 0xbc3   :  { %v2484_v4 = vmul.f32 %v4477_v54, %v2483_v57  ;;  %v2436_v22 = vmul.f32 %v5709_v46, %v5709_v46 }
 0xbc4   :  { %v5717_v1 = vadd.f32 %v4556_v28, %v2567_v9 }
 0xbc5   :  { %v2488_v19 = vsel %vm2487_vm8, %v4477_v54, %v2484_v4  ;;  %2451 = vadd.xlane.f32.xlu2 %v2436_v22 }
 0xbc6   :  { %v2550_v30 = vmul.f32 %v2488_v19, %v5659_v6  ;;  %2585 = vadd.xlane.f32.xlu0 %v5717_v1 }
 0xbc8   :  { %v2559_v29 = vmul.f32 %v5699_v42, %v2550_v30 }
 0xbca   :  { %v2568_v0 = vadd.f32 %v5705_v40, %v2559_v29 }
 0xbcc   :  { %v5726_v33 = vadd.f32 %v4557_v24, %v2568_v0 }
 0xbce   :  { %2587 = vadd.xlane.f32.xlu1 %v5726_v33 }
 0xbef   :  { %v2442_v60 = vpop.xlane.xlu0 %2441 }
 0xbf0   :  { %v2455_v8 = vmul.f32 %v2442_v60, %v6248_v25  ;;  %v4560_v60 = vld [vmem:[%s6220_s0 + $0x20] sm:$0xff] }
 0xbf2   :  { %v2463_v13 = vadd.f32 1e-05, %v2455_v8 }
 0xbf4   :  { %4478 = vrsqrt.f32 %v2463_v13  ;;  %vm2495_vm10 = vweird.f32 %v2463_v13 }
 0xbf7   :  { %v2444_v6 = vpop.xlane.xlu1 %2443 }
 0xbf8   :  { %v2456_v7 = vmul.f32 %v2444_v6, %v6248_v25 }
 0xbfa   :  { %v4479_v45 = vpop.eup %4478  ;;  %v2464_v47 = vadd.f32 1e-05, %v2456_v7 }
 0xbfb   :  { %v2490_v50 = vmul.f32 %v4479_v45, %v2463_v13  ;;  %vm2496_vm9 = vweird.f32 %v4479_v45 }
 0xbfc   :  { %4480 = vrsqrt.f32 %v2464_v47  ;;  %vm2497_vm11 = vmor %vm2495_vm10, %vm2496_vm9  ;;  %vm2505_vm13 = vweird.f32 %v2464_v47 }
 0xbfd   :  { %v2491_v38 = vmul.f32 %v4479_v45, %v2490_v50 }
 0xbff   :  { %v2492_v55 = vmul.f32 0.5, %v2491_v38 }
 0xc01   :  { %v2493_v35 = vsub.f32 1.5, %v2492_v55 }
 0xc02   :  { %v4481_v14 = vpop.eup %4480 }
 0xc03   :  { %v2494_v43 = vmul.f32 %v4479_v45, %v2493_v35  ;;  %v2500_v53 = vmul.f32 %v4481_v14, %v2464_v47  ;;  %vm2506_vm12 = vweird.f32 %v4481_v14 }
 0xc04   :  { %vm2507_vm14 = vmor %vm2505_vm13, %vm2506_vm12 }
 0xc05   :  { %v2498_v62 = vsel %vm2497_vm11, %v4479_v45, %v2494_v43  ;;  %v2501_v16 = vmul.f32 %v4481_v14, %v2500_v53 }
 0xc06   :  { %v2551_v3 = vmul.f32 %v2498_v62, %v5670_v10  ;;  %v4561_v62 = vld [vmem:[%s6220_s0 + $0x28] sm:$0xff] }
 0xc07   :  { %v2502_v21 = vmul.f32 0.5, %v2501_v16 }
 0xc08   :  { %v2560_v49 = vmul.f32 %v5699_v42, %v2551_v3 }
 0xc09   :  { %v2503_v59 = vsub.f32 1.5, %v2502_v21 }
 0xc0a   :  { %v2569_v34 = vadd.f32 %v5705_v40, %v2560_v49 }
 0xc0b   :  { %v2504_v63 = vmul.f32 %v4481_v14, %v2503_v59 }
 0xc0c   :  { %v5737_v23 = vadd.f32 %v4558_v5, %v2569_v34 }
 0xc0d   :  { %v2508_v37 = vsel %vm2507_vm14, %v4481_v14, %v2504_v63 }
 0xc0e   :  { %v2552_v15 = vmul.f32 %v2508_v37, %v5675_v51  ;;  %2589 = vadd.xlane.f32.xlu2 %v5737_v23 }
 0xc10   :  { %v2561_v10 = vmul.f32 %v5699_v42, %v2552_v15 }
 0xc12   :  { %v2570_v44 = vadd.f32 %v5705_v40, %v2561_v10 }
 0xc14   :  { %v5746_v61 = vadd.f32 %v4559_v17, %v2570_v44 }
 0xc16   :  { %2591 = vadd.xlane.f32.xlu0 %v5746_v61 }
 0xc19   :  { %v2446_v31 = vpop.xlane.xlu2 %2445 }
 0xc1a   :  { %v2457_v26 = vmul.f32 %v2446_v31, %v6248_v25 }
 0xc1c   :  { %v2465_v2 = vadd.f32 1e-05, %v2457_v26 }
 0xc1e   :  { %4482 = vrsqrt.f32 %v2465_v2  ;;  %vm2515_vm0 = vweird.f32 %v2465_v2 }
 0xc21   :  { %v2448_v51 = vpop.xlane.xlu0 %2447 }
 0xc22   :  { %v2458_v54 = vmul.f32 %v2448_v51, %v6248_v25 }
 0xc24   :  { %v4483_v27 = vpop.eup %4482  ;;  %v2466_v36 = vadd.f32 1e-05, %v2458_v54 }
 0xc25   :  { %v2510_v58 = vmul.f32 %v4483_v27, %v2465_v2  ;;  %vm2516_vm15 = vweird.f32 %v4483_v27 }
 0xc26   :  { %4484 = vrsqrt.f32 %v2466_v36  ;;  %vm2517_vm1 = vmor %vm2515_vm0, %vm2516_vm15  ;;  %vm2525_vm3 = vweird.f32 %v2466_v36 }
 0xc27   :  { %v2511_v20 = vmul.f32 %v4483_v27, %v2510_v58 }
 0xc29   :  { %v2512_v18 = vmul.f32 0.5, %v2511_v20 }
 0xc2b   :  { %v2513_v11 = vsub.f32 1.5, %v2512_v18 }
 0xc2c   :  { %v4485_v32 = vpop.eup %4484 }
 0xc2d   :  { %v2514_v48 = vmul.f32 %v4483_v27, %v2513_v11  ;;  %v2520_v41 = vmul.f32 %v4485_v32, %v2466_v36  ;;  %vm2526_vm2 = vweird.f32 %v4485_v32  ;;  %v4563_v11 = vld [vmem:[%s6220_s0 + $0x38] sm:$0xff] }
 0xc2e   :  { %vm2527_vm4 = vmor %vm2525_vm3, %vm2526_vm2 }
 0xc2f   :  { %v2518_v39 = vsel %vm2517_vm1, %v4483_v27, %v2514_v48  ;;  %v2521_v57 = vmul.f32 %v4485_v32, %v2520_v41  ;;  %v4562_v27 = vld [vmem:[%s6220_s0 + $0x30] sm:$0xff] }
 0xc30   :  { %v2553_v9 = vmul.f32 %v2518_v39, %v5680_v12  ;;  %v2450_v4 = vpop.xlane.xlu1 %2449 }
 0xc31   :  { %v2522_v22 = vmul.f32 0.5, %v2521_v57  ;;  %v2459_v28 = vmul.f32 %v2450_v4, %v6248_v25  ;;  %v4079_v4 = vld [vmem:[#allocation6 + $0xe0] sm:$0xf] }
 0xc32   :  { %v2562_v19 = vmul.f32 %v5699_v42, %v2553_v9 }
 0xc33   :  { %v2523_v30 = vsub.f32 1.5, %v2522_v22  ;;  %v2467_v29 = vadd.f32 1e-05, %v2459_v28  ;;  %v4219_v22 = vld [vmem:[#allocation6 + $0xec] sm:$0xf0] }
 0xc34   :  { %v2571_v0 = vadd.f32 %v5705_v40, %v2562_v19  ;;  %v4217_v28 = vld [vmem:[#allocation6 + $0xe4] sm:$0xf]  ;;  %v4080_v19 = vor.u32 %v4219_v22, %v4079_v4  ;;  %v4001_v22 = vld [vmem:[#allocation6 + $0x50] sm:$0xf0] }
 0xc35   :  { %v2524_v24 = vmul.f32 %v4485_v32, %v2523_v30  ;;  %4486 = vrsqrt.f32 %v2467_v29  ;;  %vm2535_vm6 = vweird.f32 %v2467_v29  ;;  %v4081_v30 = vld [vmem:[#allocation6 + $0xf0] sm:$0xf0] }
 0xc36   :  { %v5758_v12 = vadd.f32 %v4560_v60, %v2571_v0  ;;  %v4089_v0 = vld [vmem:[#allocation6 + $0xf8] sm:$0xf0]  ;;  %2969 = vmatpush.bf16.msra.mxu2 %v4080_v19 }
 0xc37   :  { %v2528_v8 = vsel %vm2527_vm4, %v4485_v32, %v2524_v24  ;;  %v4084_v24 = vor.u32 %v4217_v28, %v4081_v30  ;;  %v4198_v28 = vld [vmem:[#allocation6 + $0x4c] sm:$0xf]  ;;  %v4009_v19 = vld [vmem:[#allocation6 + $0x58] sm:$0xf0] }
 0xc38   :  { %v2554_v13 = vmul.f32 %v2528_v8, %v5686_v56  ;;  %2593 = vadd.xlane.f32.xlu1 %v5758_v12  ;;  %v2452_v6 = vpop.xlane.xlu2 %2451  ;;  %v4063_v8 = vld [vmem:[#allocation6 + $0xc0] sm:$0xf] }
 0xc39   :  { %v2460_v7 = vmul.f32 %v2452_v6, %v6248_v25  ;;  %v2586_v45 = vpop.xlane.xlu0 %2585  ;;  %2998 = vmatpush.bf16.msrb.mxu0 %v4084_v24  ;;  %v4213_v6 = vld [vmem:[#allocation6 + $0xc4] sm:$0xf]  ;;  %4237 = vmatpush.bf16.msrb.mxu3 %v4084_v24  ;;  %v3983_v24 = vld [vmem:[#allocation6 + $0x20] sm:$0xf] }
 0xc3a   :  { %v2601_v47 = vmul.f32 %v2586_v45, %v6248_v25  ;;  %v2563_v50 = vmul.f32 %v5699_v42, %v2554_v13  ;;  %v4215_v13 = vld [vmem:[#allocation6 + $0xcc] sm:$0xf0]  ;;  %v4065_v45 = vld [vmem:[#allocation6 + $0xd0] sm:$0xf0] }
 0xc3b   :  { %v4487_v38 = vpop.eup %4486  ;;  %v2468_v55 = vadd.f32 1e-05, %v2460_v7  ;;  %v4064_v7 = vor.u32 %v4215_v13, %v4063_v8  ;;  %v4193_v8 = vld [vmem:[#allocation6 + $0x24] sm:$0xf] }
 0xc3c   :  { %v2530_v35 = vmul.f32 %v4487_v38, %v2467_v29  ;;  %v5766_v14 = vsub.f32 %v5717_v1, %v2601_v47  ;;  %v2572_v43 = vadd.f32 %v5705_v40, %v2563_v50  ;;  %vm2536_vm5 = vweird.f32 %v4487_v38  ;;  %v4218_v29 = vld [vmem:[#allocation6 + $0xec] sm:$0xf]  ;;  %v4073_v50 = vld [vmem:[#allocation6 + $0xd8] sm:$0xf0] }
 0xc3d   :  { %4488 = vrsqrt.f32 %v2468_v55  ;;  %vm2537_vm7 = vmor %vm2535_vm6, %vm2536_vm5  ;;  %vm2545_vm9 = vweird.f32 %v2468_v55  ;;  %v4092_v60 = vor.u32 %v4218_v29, %v4089_v0  ;;  %v4214_v47 = vld [vmem:[#allocation6 + $0xcc] sm:$0xf]  ;;  %2970 = vmatpush.bf16.msra.mxu2 %v4064_v7  ;;  %v4012_v0 = vor.u32 %v4198_v28, %v4009_v19 }
 0xc3e   :  { %v2531_v56 = vmul.f32 %v4487_v38, %v2530_v35  ;;  %v2617_v53 = vmul.f32 %v5766_v14, %v5766_v14  ;;  %v5774_v16 = vadd.f32 %v4561_v62, %v2572_v43  ;;  %v4047_v35 = vld [vmem:[#allocation6 + $0xa0] sm:$0xf]  ;;  %v4211_v43 = vld [vmem:[#allocation6 + $0xac] sm:$0xf0]  ;;  %v4049_v62 = vld [vmem:[#allocation6 + $0xb0] sm:$0xf0] }
 0xc3f   :  { %3056 = vmatpush.bf16.msrb.mxu1 %v4092_v60  ;;  %v4195_v60 = vld [vmem:[#allocation6 + $0x2c] sm:$0xf0] }
 0xc40   :  { %v2532_v3 = vmul.f32 0.5, %v2531_v56  ;;  %2625 = vadd.xlane.f32.xlu0 %v2617_v53  ;;  %2595 = vadd.xlane.f32.xlu2 %v5774_v16  ;;  %v4209_v56 = vld [vmem:[#allocation6 + $0xa4] sm:$0xf]  ;;  %v4048_v53 = vor.u32 %v4211_v43, %v4047_v35  ;;  %v3984_v7 = vor.u32 %v4195_v60, %v3983_v24 }
 0xc41   :  { %v2588_v21 = vpop.xlane.xlu1 %2587 }
 0xc42   :  { %v2533_v49 = vsub.f32 1.5, %v2532_v3  ;;  %v2602_v59 = vmul.f32 %v2588_v21, %v6248_v25  ;;  %v4210_v3 = vld [vmem:[#allocation6 + $0xac] sm:$0xf]  ;;  %v4057_v21 = vld [vmem:[#allocation6 + $0xb8] sm:$0xf0]  ;;  %2971 = vmatpush.bf16.msra.mxu2 %v4048_v53 }
 0xc43   :  { %v4489_v34 = vpop.eup %4488 }
 0xc44   :  { %v2534_v63 = vmul.f32 %v4487_v38, %v2533_v49  ;;  %v2540_v5 = vmul.f32 %v4489_v34, %v2468_v55  ;;  %v5779_v37 = vsub.f32 %v5726_v33, %v2602_v59  ;;  %vm2546_vm8 = vweird.f32 %v4489_v34 }
 0xc45   :  { %vm2547_vm10 = vmor %vm2545_vm9, %vm2546_vm8  ;;  %v4076_v55 = vor.u32 %v4214_v47, %v4073_v50  ;;  %v4052_v49 = vor.u32 %v4209_v56, %v4049_v62  ;;  %v4060_v59 = vor.u32 %v4210_v3, %v4057_v21  ;;  %v4194_v47 = vld [vmem:[#allocation6 + $0x2c] sm:$0xf]  ;;  %v3993_v50 = vld [vmem:[#allocation6 + $0x38] sm:$0xf0] }
 0xc46   :  { %v2538_v15 = vsel %vm2537_vm7, %v4487_v38, %v2534_v63  ;;  %v2541_v10 = vmul.f32 %v4489_v34, %v2540_v5  ;;  %v2618_v44 = vmul.f32 %v5779_v37, %v5779_v37  ;;  %v4068_v38 = vor.u32 %v4213_v6, %v4065_v45  ;;  %v4207_v63 = vld [vmem:[#allocation6 + $0x8c] sm:$0xf0]  ;;  %v4205_v5 = vld [vmem:[#allocation6 + $0x84] sm:$0xf]  ;;  %v3985_v45 = vld [vmem:[#allocation6 + $0x30] sm:$0xf0] }
 0xc47   :  { %v2555_v17 = vmul.f32 %v2538_v15, %v5692_v52  ;;  %3057 = vmatpush.bf16.msrb.mxu1 %v4076_v55  ;;  %v3988_v35 = vor.u32 %v4193_v8, %v3985_v45  ;;  %v3996_v43 = vor.u32 %v4194_v47, %v3993_v50  ;;  %v3967_v62 = vld [vmem:[#allocation6] sm:$0xf]  ;;  %v4191_v3 = vld [vmem:[#allocation6 + $0xc] sm:$0xf0]  ;;  %v4087_v50 = vld [vmem:[#allocation6 + $0xe8] sm:$0xf] }
 0xc48   :  { %v2542_v31 = vmul.f32 0.5, %v2541_v10  ;;  %2627 = vadd.xlane.f32.xlu1 %v2618_v44  ;;  %2999 = vmatpush.bf16.msrb.mxu0 %v4068_v38  ;;  %v4033_v10 = vld [vmem:[#allocation6 + $0x90] sm:$0xf0]  ;;  %v4206_v44 = vld [vmem:[#allocation6 + $0x8c] sm:$0xf]  ;;  %v3968_v21 = vor.u32 %v4191_v3, %v3967_v62 }
 0xc49   :  { %v2564_v26 = vmul.f32 %v5699_v42, %v2555_v17  ;;  %4238 = vmatpush.bf16.msrb.mxu3 %v4068_v38  ;;  %v4041_v17 = vld [vmem:[#allocation6 + $0x98] sm:$0xf0]  ;;  %v5848_v8 = vld [vmem:[%s6223_s3 + $0x2] ss:$0 sm:$0xff]  ;;  %v4212_v62 = vld [vmem:[#allocation6 + $0xb4] sm:$0xf0] }
 0xc4a   :  { %v2543_v2 = vsub.f32 1.5, %v2542_v31  ;;  %v4036_v31 = vor.u32 %v4205_v5, %v4033_v10  ;;  %v4039_v3 = vld [vmem:[#allocation6 + $0x88] sm:$0xf] }
 0xc4b   :  { %v2573_v51 = vadd.f32 %v5705_v40, %v2564_v26  ;;  %3058 = vmatpush.bf16.msrb.mxu1 %v4060_v59  ;;  %v4044_v26 = vor.u32 %v4206_v44, %v4041_v17  ;;  %v3969_v59 = vld [vmem:[#allocation6 + $0x10] sm:$0xf0] }
 0xc4c   :  { %v2544_v54 = vmul.f32 %v4489_v34, %v2543_v2  ;;  %3000 = vmatpush.bf16.msrb.mxu0 %v4052_v49  ;;  %v4015_v2 = vld [vmem:[#allocation6 + $0x60] sm:$0xf] }
 0xc4d   :  { %v5789_v36 = vadd.f32 %v4562_v27, %v2573_v51  ;;  %4239 = vmatpush.bf16.msrb.mxu3 %v4052_v49  ;;  %v4203_v51 = vld [vmem:[#allocation6 + $0x6c] sm:$0xf0]  ;;  %v4189_v49 = vld [vmem:[#allocation6 + $0x4] sm:$0xf] }
 0xc4e   :  { %v2548_v58 = vsel %vm2547_vm10, %v4489_v34, %v2544_v54  ;;  %v4031_v34 = vld [vmem:[#allocation6 + $0x80] sm:$0xf]  ;;  %v4201_v54 = vld [vmem:[#allocation6 + $0x64] sm:$0xf]  ;;  %v3972_v5 = vor.u32 %v4189_v49, %v3969_v59  ;;  %v4208_v59 = vld [vmem:[#allocation6 + $0x94] sm:$0xf0] }
 0xc4f   :  { %v2556_v52 = vmul.f32 %v2548_v58, %v5709_v46  ;;  %2597 = vadd.xlane.f32.xlu2 %v5789_v36  ;;  %v4032_v15 = vor.u32 %v4207_v63, %v4031_v34  ;;  %3059 = vmatpush.bf16.msrb.mxu1 %v4044_v26  ;;  %v4016_v58 = vor.u32 %v4203_v51, %v4015_v2  ;;  %v4190_v34 = vld [vmem:[#allocation6 + $0xc] sm:$0xf] }
 0xc50   :  { %3001 = vmatpush.bf16.msrb.mxu0 %v4036_v31 }
 0xc51   :  { %v2565_v20 = vmul.f32 %v5699_v42, %v2556_v52  ;;  %2972 = vmatpush.bf16.msra.mxu2 %v4032_v15  ;;  %v4017_v52 = vld [vmem:[#allocation6 + $0x70] sm:$0xf0]  ;;  %4240 = vmatpush.bf16.msrb.mxu3 %v4036_v31  ;;  %v3977_v15 = vld [vmem:[#allocation6 + $0x18] sm:$0xf0] }
 0xc52   :  { %v3980_v10 = vor.u32 %v4190_v34, %v3977_v15  ;;  %v4023_v15 = vld [vmem:[#allocation6 + $0x68] sm:$0xf] }
 0xc53   :  { %v2574_v18 = vadd.f32 %v5705_v40, %v2565_v20  ;;  %v4202_v20 = vld [vmem:[#allocation6 + $0x6c] sm:$0xf] }
 0xc55   :  { %v5798_v32 = vadd.f32 %v4563_v11, %v2574_v18  ;;  %v4025_v18 = vld [vmem:[#allocation6 + $0x78] sm:$0xf0]  ;;  %2973 = vmatpush.bf16.msra.mxu2 %v4016_v58 }
 0xc57   :  { %2599 = vadd.xlane.f32.xlu0 %v5798_v32 }
 0xc81   :  { %v2590_v48 = vpop.xlane.xlu2 %2589 }
 0xc82   :  { %v2603_v41 = vmul.f32 %v2590_v48, %v6248_v25  ;;  %v4020_v48 = vor.u32 %v4201_v54, %v4017_v52 }
 0xc84   :  { %v5803_v39 = vsub.f32 %v5737_v23, %v2603_v41  ;;  %v4028_v41 = vor.u32 %v4202_v20, %v4025_v18  ;;  %3002 = vmatpush.bf16.msrb.mxu0 %v4020_v48  ;;  %4241 = vmatpush.bf16.msrb.mxu3 %v4020_v48 }
 0xc86   :  { %v2619_v46 = vmul.f32 %v5803_v39, %v5803_v39  ;;  %3060 = vmatpush.bf16.msrb.mxu1 %v4028_v41 }
 0xc88   :  { %2629 = vadd.xlane.f32.xlu1 %v2619_v46 }
 0xc89   :  { %v2592_v42 = vpop.xlane.xlu0 %2591 }
 0xc8a   :  { %v2604_v40 = vmul.f32 %v2592_v42, %v6248_v25  ;;  %v3999_v42 = vld [vmem:[#allocation6 + $0x40] sm:$0xf]  ;;  %3061 = vmatpush.bf16.msrb.mxu1 %v4012_v0 }
 0xc8c   :  { %v5809_v57 = vsub.f32 %v5746_v61, %v2604_v40  ;;  %v4199_v40 = vld [vmem:[#allocation6 + $0x4c] sm:$0xf0] }
 0xc8d   :  { %v4000_v4 = vor.u32 %v4199_v40, %v3999_v42 }
 0xc8e   :  { %v2620_v9 = vmul.f32 %v5809_v57, %v5809_v57  ;;  %3062 = vmatpush.bf16.msrb.mxu1 %v3996_v43 }
 0xc8f   :  { %2974 = vmatpush.bf16.msra.mxu2 %v4000_v4 }
 0xc90   :  { %2631 = vadd.xlane.f32.xlu2 %v2620_v9  ;;  %v4197_v9 = vld [vmem:[#allocation6 + $0x44] sm:$0xf] }
 0xc91   :  { %v4004_v29 = vor.u32 %v4197_v9, %v4001_v22 }
 0xc92   :  { %3063 = vmatpush.bf16.msrb.mxu1 %v3980_v10  ;;  %v4204_v10 = vld [vmem:[#allocation6 + $0x74] sm:$0xf0] }
 0xc93   :  { %3003 = vmatpush.bf16.msrb.mxu0 %v4004_v29  ;;  %4242 = vmatpush.bf16.msrb.mxu3 %v4004_v29 }
 0xc94   :  { %2975 = vmatpush.bf16.msra.mxu2 %v3984_v7 }
 0xc97   :  { %3004 = vmatpush.bf16.msrb.mxu0 %v3988_v35  ;;  %4243 = vmatpush.bf16.msrb.mxu3 %v3988_v35  ;;  %v4071_v35 = vld [vmem:[#allocation6 + $0xc8] sm:$0xf] }
 0xc98   :  { %2976 = vmatpush.bf16.msra.mxu2 %v3968_v21 }
 0xc9b   :  { %3005 = vmatpush.bf16.msrb.mxu0 %v3972_v5  ;;  %4244 = vmatpush.bf16.msrb.mxu3 %v3972_v5 }
 0xcab   :  { %v2594_v27 = vpop.xlane.xlu1 %2593 }
 0xcac   :  { %v2605_v11 = vmul.f32 %v2594_v27, %v6248_v25 }
 0xcae   :  { %v5815_v46 = vsub.f32 %v5758_v12, %v2605_v11 }
 0xcb0   :  { %v2621_v30 = vmul.f32 %v5815_v46, %v5815_v46 }
 0xcb2   :  { %2633 = vadd.xlane.f32.xlu0 %v2621_v30  ;;  %v5840_v30 = vld [vmem:[%s6222_s2 + $0x2] ss:$0 sm:$0xff] }
 0xcb3   :  { %v2626_v13 = vpop.xlane.xlu0 %2625  ;;  %v2596_v6 = vpop.xlane.xlu2 %2595 }
 0xcb4   :  { %v2641_v38 = vmul.f32 %v2626_v13, %v6248_v25  ;;  %v2606_v55 = vmul.f32 %v2596_v6, %v6248_v25 }
 0xcb6   :  { %v2649_v56 = vadd.f32 1e-05, %v2641_v38  ;;  %v5822_v53 = vsub.f32 %v5774_v16, %v2606_v55  ;;  %v4220_v38 = vld [vmem:[#allocation6 + $0xf4] sm:$0xf0] }
 0xcb7   :  { %v4088_v55 = vor.u32 %v4220_v38, %v4087_v50 }
 0xcb8   :  { %4490 = vrsqrt.f32 %v2649_v56  ;;  %v2622_v63 = vmul.f32 %v5822_v53, %v5822_v53  ;;  %vm2663_vm12 = vweird.f32 %v2649_v56 }
 0xcb9   :  { %3027 = vmatpush.bf16.msra.mxu0 %v4088_v55 }
 0xcba   :  { %2635 = vadd.xlane.f32.xlu1 %v2622_v63  ;;  %v4040_v63 = vor.u32 %v4208_v59, %v4039_v3 }
 0xcbb   :  { %v2628_v44 = vpop.xlane.xlu1 %2627 }
 0xcbc   :  { %v2642_v17 = vmul.f32 %v2628_v44, %v6248_v25 }
 0xcbe   :  { %v4491_v31 = vpop.eup %4490  ;;  %v2650_v26 = vadd.f32 1e-05, %v2642_v17  ;;  %v4024_v17 = vor.u32 %v4204_v10, %v4023_v15 }
 0xcbf   :  { %v2658_v2 = vmul.f32 %v4491_v31, %v2649_v56  ;;  %vm2664_vm11 = vweird.f32 %v4491_v31  ;;  %v4055_v56 = vld [vmem:[#allocation6 + $0xa8] sm:$0xf] }
 0xcc0   :  { %4492 = vrsqrt.f32 %v2650_v26  ;;  %vm2665_vm13 = vmor %vm2663_vm12, %vm2664_vm11  ;;  %vm2673_vm15 = vweird.f32 %v2650_v26  ;;  %v4056_v49 = vor.u32 %v4212_v62, %v4055_v56 }
 0xcc1   :  { %v2659_v51 = vmul.f32 %v4491_v31, %v2658_v2 }
 0xcc2   :  { %v2598_v54 = vpop.xlane.xlu2 %2597 }
 0xcc3   :  { %v2660_v27 = vmul.f32 0.5, %v2659_v51  ;;  %v2607_v58 = vmul.f32 %v2598_v54, %v6248_v25  ;;  %v4007_v51 = vld [vmem:[#allocation6 + $0x48] sm:$0xf]  ;;  %v4200_v54 = vld [vmem:[#allocation6 + $0x54] sm:$0xf0] }
 0xcc5   :  { %v2661_v52 = vsub.f32 1.5, %v2660_v27  ;;  %v5829_v20 = vsub.f32 %v5789_v36, %v2607_v58  ;;  %v4008_v58 = vor.u32 %v4200_v54, %v4007_v51 }
 0xcc6   :  { %v4493_v18 = vpop.eup %4492 }
 0xcc7   :  { %v2662_v11 = vmul.f32 %v4491_v31, %v2661_v52  ;;  %v2668_v48 = vmul.f32 %v4493_v18, %v2650_v26  ;;  %v2623_v41 = vmul.f32 %v5829_v20, %v5829_v20  ;;  %vm2674_vm14 = vweird.f32 %v4493_v18 }
 0xcc8   :  { %vm2675_vm0 = vmor %vm2673_vm15, %vm2674_vm14 }
 0xcc9   :  { %v2669_v42 = vmul.f32 %v4493_v18, %v2668_v48  ;;  %2637 = vadd.xlane.f32.xlu2 %v2623_v41  ;;  %v2666_v9 = vsel %vm2665_vm13, %v4491_v31, %v2662_v11  ;;  %v4196_v11 = vld [vmem:[#allocation6 + $0x34] sm:$0xf0] }
 0xcca   :  { %v2600_v40 = vpop.xlane.xlu0 %2599  ;;  %v2737_v29 = vmul.f32 %v2666_v9, %v5766_v14  ;;  %v3975_v9 = vld [vmem:[#allocation6 + $0x8] sm:$0xf] }
 0xccb   :  { %v2670_v4 = vmul.f32 0.5, %v2669_v42  ;;  %v2608_v22 = vmul.f32 %v2600_v40, %v6248_v25 }
 0xccc   :  { %v2746_v13 = vmul.f32 %v5840_v30, %v2737_v29 }
 0xccd   :  { %v2671_v28 = vsub.f32 1.5, %v2670_v4  ;;  %v5835_v19 = vsub.f32 %v5798_v32, %v2608_v22  ;;  %v4192_v4 = vld [vmem:[#allocation6 + $0x14] sm:$0xf0] }
 0xcce   :  { %v2755_v14 = vadd.f32 %v5848_v8, %v2746_v13  ;;  %v3976_v29 = vor.u32 %v4192_v4, %v3975_v9 }
 0xccf   :  { %v2672_v0 = vmul.f32 %v4493_v18, %v2671_v28  ;;  %v2624_v24 = vmul.f32 %v5835_v19, %v5835_v19 }
 0xcd1   :  { %v2676_v60 = vsel %vm2675_vm0, %v4493_v18, %v2672_v0  ;;  %2639 = vadd.xlane.f32.xlu0 %v2624_v24  ;;  %v3991_v18 = vld [vmem:[#allocation6 + $0x28] sm:$0xf] }
 0xcd2   :  { %v2738_v6 = vmul.f32 %v2676_v60, %v5779_v37  ;;  %v4216_v37 = vld [vmem:[#allocation6 + $0xd4] sm:$0xf0]  ;;  %v3992_v41 = vor.u32 %v4196_v11, %v3991_v18 }
 0xcd3   :  { %v4072_v43 = vor.u32 %v4216_v37, %v4071_v35 }
 0xcd4   :  { %v2747_v7 = vmul.f32 %v5840_v30, %v2738_v6 }
 0xcd5   :  { %3028 = vmatpush.bf16.msra.mxu0 %v4072_v43 }
 0xcd6   :  { %v2756_v45 = vadd.f32 %v5848_v8, %v2747_v7 }
 0xcd8   :  { %v5855_v47 = vpack.c.bf16 %v2756_v45, %v2755_v14 }
 0xcd9   :  { %3029 = vmatpush.bf16.msra.mxu0 %v4056_v49 }
 0xcda   :  { %2977 = vmatmul.bf16.vlgmr.msra.gmra.mxu2 %v5855_v47  ;;  %3006 = vmatmul.bf16.vlgmr.msrb.gmra.mxu0 %v5855_v47 }
 0xcdb   :  { %3064 = vmatmul.bf16.vlgmr.msrb.gmra.mxu1 %v5855_v47 }
 0xcdd   :  { %3030 = vmatpush.bf16.msra.mxu0 %v4040_v63 }
 0xce1   :  { %3031 = vmatpush.bf16.msra.mxu0 %v4024_v17 }
 0xce5   :  { %3032 = vmatpush.bf16.msra.mxu0 %v4008_v58 }
 0xce9   :  { %3033 = vmatpush.bf16.msra.mxu0 %v3992_v41 }
 0xced   :  { %3034 = vmatpush.bf16.msra.mxu0 %v3976_v29 }
 0xcfb   :  { %v2630_v21 = vpop.xlane.xlu1 %2629 }
 0xcfc   :  { %v2643_v34 = vmul.f32 %v2630_v21, %v6248_v25 }
 0xcfe   :  { %v2651_v5 = vadd.f32 1e-05, %v2643_v34 }
 0xd00   :  { %4494 = vrsqrt.f32 %v2651_v5  ;;  %vm2683_vm2 = vweird.f32 %v2651_v5 }
 0xd03   :  { %v2632_v44 = vpop.xlane.xlu2 %2631 }
 0xd04   :  { %v2644_v31 = vmul.f32 %v2632_v44, %v6248_v25 }
 0xd06   :  { %v4495_v26 = vpop.eup %4494  ;;  %v2652_v2 = vadd.f32 1e-05, %v2644_v31 }
 0xd07   :  { %v2678_v27 = vmul.f32 %v4495_v26, %v2651_v5  ;;  %vm2684_vm1 = vweird.f32 %v4495_v26 }
 0xd08   :  { %4496 = vrsqrt.f32 %v2652_v2  ;;  %vm2685_vm3 = vmor %vm2683_vm2, %vm2684_vm1  ;;  %vm2693_vm5 = vweird.f32 %v2652_v2 }
 0xd09   :  { %v2679_v52 = vmul.f32 %v4495_v26, %v2678_v27 }
 0xd0b   :  { %v2680_v48 = vmul.f32 0.5, %v2679_v52 }
 0xd0d   :  { %v2681_v42 = vsub.f32 1.5, %v2680_v48 }
 0xd0e   :  { %v4497_v40 = vpop.eup %4496 }
 0xd0f   :  { %v2682_v22 = vmul.f32 %v4495_v26, %v2681_v42  ;;  %v2688_v28 = vmul.f32 %v4497_v40, %v2652_v2  ;;  %vm2694_vm4 = vweird.f32 %v4497_v40 }
 0xd10   :  { %vm2695_vm6 = vmor %vm2693_vm5, %vm2694_vm4 }
 0xd11   :  { %v2689_v0 = vmul.f32 %v4497_v40, %v2688_v28  ;;  %v2686_v24 = vsel %vm2685_vm3, %v4495_v26, %v2682_v22 }
 0xd12   :  { %v2739_v6 = vmul.f32 %v2686_v24, %v5803_v39 }
 0xd13   :  { %v2690_v60 = vmul.f32 0.5, %v2689_v0 }
 0xd14   :  { %v2748_v50 = vmul.f32 %v5840_v30, %v2739_v6 }
 0xd15   :  { %v2691_v13 = vsub.f32 1.5, %v2690_v60 }
 0xd16   :  { %v2757_v55 = vadd.f32 %v5848_v8, %v2748_v50 }
 0xd17   :  { %v2692_v7 = vmul.f32 %v4497_v40, %v2691_v13 }
 0xd19   :  { %v2696_v14 = vsel %vm2695_vm6, %v4497_v40, %v2692_v7 }
 0xd1a   :  { %v2740_v45 = vmul.f32 %v2696_v14, %v5809_v57 }
 0xd1c   :  { %v2749_v38 = vmul.f32 %v5840_v30, %v2740_v45 }
 0xd1e   :  { %v2758_v35 = vadd.f32 %v5848_v8, %v2749_v38 }
 0xd20   :  { %v2764_v37 = vpack.c.bf16 %v2758_v35, %v2757_v55 }
 0xd22   :  { %2982 = vmatmul.bf16.gmra.mxu2 %v2764_v37  ;;  %3011 = vmatmul.bf16.gmra.mxu0 %v2764_v37 }
 0xd23   :  { %3069 = vmatmul.bf16.gmra.mxu1 %v2764_v37 }
 0xd25   :  { %v2634_v43 = vpop.xlane.xlu0 %2633 }
 0xd26   :  { %v2645_v39 = vmul.f32 %v2634_v43, %v6248_v25 }
 0xd28   :  { %v2653_v56 = vadd.f32 1e-05, %v2645_v39 }
 0xd2a   :  { %4498 = vrsqrt.f32 %v2653_v56  ;;  %vm2703_vm8 = vweird.f32 %v2653_v56 }
 0xd2d   :  { %v2636_v62 = vpop.xlane.xlu1 %2635 }
 0xd2e   :  { %v2646_v57 = vmul.f32 %v2636_v62, %v6248_v25 }
 0xd30   :  { %v4499_v3 = vpop.eup %4498  ;;  %v2654_v21 = vadd.f32 1e-05, %v2646_v57 }
 0xd31   :  { %v2698_v49 = vmul.f32 %v4499_v3, %v2653_v56  ;;  %vm2704_vm7 = vweird.f32 %v4499_v3 }
 0xd32   :  { %4500 = vrsqrt.f32 %v2654_v21  ;;  %3035 = vmatmul.bf16.vlgmr.msra.gmra.mxu0 %v5855_v47  ;;  %vm2705_vm9 = vmor %vm2703_vm8, %vm2704_vm7  ;;  %vm2713_vm11 = vweird.f32 %v2654_v21 }
 0xd33   :  { %v2699_v59 = vmul.f32 %v4499_v3, %v2698_v49 }
 0xd35   :  { %v2700_v34 = vmul.f32 0.5, %v2699_v59 }
 0xd37   :  { %v2701_v63 = vsub.f32 1.5, %v2700_v34 }
 0xd38   :  { %v4501_v5 = vpop.eup %4500 }
 0xd39   :  { %v2702_v15 = vmul.f32 %v4499_v3, %v2701_v63  ;;  %v2708_v10 = vmul.f32 %v4501_v5, %v2654_v21  ;;  %vm2714_vm10 = vweird.f32 %v4501_v5 }
 0xd3a   :  { %vm2715_vm12 = vmor %vm2713_vm11, %vm2714_vm10 }
 0xd3b   :  { %v2709_v44 = vmul.f32 %v4501_v5, %v2708_v10  ;;  %v2706_v31 = vsel %vm2705_vm9, %v4499_v3, %v2702_v15 }
 0xd3c   :  { %v2638_v17 = vpop.xlane.xlu2 %2637  ;;  %v2741_v47 = vmul.f32 %v2706_v31, %v5815_v46 }
 0xd3d   :  { %v2710_v26 = vmul.f32 0.5, %v2709_v44  ;;  %v2647_v2 = vmul.f32 %v2638_v17, %v6248_v25 }
 0xd3e   :  { %v2750_v11 = vmul.f32 %v5840_v30, %v2741_v47 }
 0xd3f   :  { %v2711_v51 = vsub.f32 1.5, %v2710_v26  ;;  %v2655_v54 = vadd.f32 1e-05, %v2647_v2 }
 0xd40   :  { %v2759_v46 = vadd.f32 %v5848_v8, %v2750_v11 }
 0xd41   :  { %v2712_v27 = vmul.f32 %v4501_v5, %v2711_v51  ;;  %4502 = vrsqrt.f32 %v2655_v54  ;;  %vm2723_vm14 = vweird.f32 %v2655_v54 }
 0xd42   :  { %3040 = vmatmul.bf16.gmra.mxu0 %v2764_v37 }
 0xd43   :  { %v2716_v58 = vsel %vm2715_vm12, %v4501_v5, %v2712_v27 }
 0xd44   :  { %v2742_v52 = vmul.f32 %v2716_v58, %v5822_v53  ;;  %v2640_v18 = vpop.xlane.xlu0 %2639 }
 0xd45   :  { %v2648_v48 = vmul.f32 %v2640_v18, %v6248_v25 }
 0xd46   :  { %v2751_v41 = vmul.f32 %v5840_v30, %v2742_v52 }
 0xd47   :  { %v4503_v42 = vpop.eup %4502  ;;  %v2656_v40 = vadd.f32 1e-05, %v2648_v48 }
 0xd48   :  { %v2718_v9 = vmul.f32 %v4503_v42, %v2655_v54  ;;  %v2760_v4 = vadd.f32 %v5848_v8, %v2751_v41  ;;  %vm2724_vm13 = vweird.f32 %v4503_v42 }
 0xd49   :  { %4504 = vrsqrt.f32 %v2656_v40  ;;  %vm2725_vm15 = vmor %vm2723_vm14, %vm2724_vm13  ;;  %vm2733_vm1 = vweird.f32 %v2656_v40 }
 0xd4a   :  { %v2719_v22 = vmul.f32 %v4503_v42, %v2718_v9  ;;  %v2765_v28 = vpack.c.bf16 %v2760_v4, %v2759_v46 }
 0xd4c   :  { %v2720_v29 = vmul.f32 0.5, %v2719_v22  ;;  %2987 = vmatmul.bf16.gmra.mxu2 %v2765_v28  ;;  %3016 = vmatmul.bf16.vlgmr.msrb.gmra.mxu3 %v2765_v28 }
 0xd4d   :  { %3074 = vmatmul.bf16.gmra.mxu1 %v2765_v28 }
 0xd4e   :  { %v2721_v53 = vsub.f32 1.5, %v2720_v29 }
 0xd4f   :  { %v4505_v0 = vpop.eup %4504 }
 0xd50   :  { %v2722_v24 = vmul.f32 %v4503_v42, %v2721_v53  ;;  %v2728_v25 = vmul.f32 %v4505_v0, %v2656_v40  ;;  %vm2734_vm0 = vweird.f32 %v4505_v0 }
 0xd51   :  { %vm2735_vm2 = vmor %vm2733_vm1, %vm2734_vm0 }
 0xd52   :  { %v2729_v60 = vmul.f32 %v4505_v0, %v2728_v25  ;;  %3045 = vmatmul.bf16.gmra.mxu0 %v2765_v28  ;;  %v2726_v13 = vsel %vm2725_vm15, %v4503_v42, %v2722_v24 }
 0xd53   :  { %v2743_v14 = vmul.f32 %v2726_v13, %v5829_v20  ;;  %v2799_v20 = vld [vmem:[%s6229_s9] sm:$0xf] }
 0xd54   :  { %v2730_v6 = vmul.f32 0.5, %v2729_v60  ;;  %v5888_v62 = vperm.slane %v2799_v20, 1  ;;  %v5890_v57 = vperm.slane %v2799_v20, 0 }
 0xd55   :  { %v2752_v55 = vmul.f32 %v5840_v30, %v2743_v14 }
 0xd56   :  { %v2731_v7 = vsub.f32 1.5, %v2730_v6 }
 0xd57   :  { %v2761_v37 = vadd.f32 %v5848_v8, %v2752_v55  ;;  %v3007_v56 = vpop.f32.mrf.mxu0 }
 0xd58   :  { %v2732_v45 = vmul.f32 %v4505_v0, %v2731_v7  ;;  %v3065_v7 = vpop.f32.mrf.mxu1 }
 0xd5a   :  { %v2736_v50 = vsel %vm2735_vm2, %v4505_v0, %v2732_v45 }
 0xd5b   :  { %v2744_v38 = vmul.f32 %v2736_v50, %v5835_v19 }
 0xd5d   :  { %v2753_v35 = vmul.f32 %v5840_v30, %v2744_v38  ;;  %v2978_v19 = vpop.f32.mrf.mxu2  ;;  %v3008_v30 = vadd.f32 %v3007_v56, %v5888_v62 }
 0xd5e   :  { %v5894_v3 = vadd.f32 %v2978_v19, %v5890_v57  ;;  %v5935_v19 = vperm.slane %v2799_v20, 2 }
 0xd5f   :  { %v2762_v43 = vadd.f32 %v5848_v8, %v2753_v35  ;;  %v3086_v8 = vmul.f32 %v3008_v30, %v3008_v30  ;;  %v3009_v21 = vpop.f32.mrf.mxu0  ;;  %v5932_v35 = vperm.slane %v2799_v20, 3 }
 0xd60   :  { %v3085_v49 = vmul.f32 %v5894_v3, %v5894_v3  ;;  %v5899_v63 = vadd.f32 %v3009_v21, %v5888_v62 }
 0xd61   :  { %v2766_v39 = vpack.c.bf16 %v2762_v43, %v2761_v37  ;;  %v3102_v34 = vmul.f32 %v3086_v8, %v3008_v30 }
 0xd62   :  { %v3101_v5 = vmul.f32 %v3085_v49, %v5894_v3  ;;  %v3088_v44 = vmul.f32 %v5899_v63, %v5899_v63 }
 0xd63   :  { %2992 = vmatmul.bf16.gmra.mxu2 %v2766_v39  ;;  %3021 = vmatmul.bf16.gmra.mxu3 %v2766_v39  ;;  %v3118_v10 = vmul.f32 0.044715, %v3102_v34 }
 0xd64   :  { %3050 = vmatmul.bf16.gmra.mxu0 %v2766_v39  ;;  %3079 = vmatmul.bf16.gmra.mxu1 %v2766_v39  ;;  %v3117_v17 = vmul.f32 0.044715, %v3101_v5  ;;  %v3104_v2 = vmul.f32 %v3088_v44, %v5899_v63 }
 0xd65   :  { %v2980_v59 = vpop.f32.mrf.mxu2  ;;  %v3134_v26 = vadd.f32 %v3118_v10, %v3008_v30  ;;  %v3066_v10 = vadd.f32 %v3065_v7, %v5932_v35 }
 0xd66   :  { %v5903_v15 = vadd.f32 %v2980_v59, %v5890_v57  ;;  %v3133_v51 = vadd.f32 %v3117_v17, %v5894_v3  ;;  %v3120_v27 = vmul.f32 0.044715, %v3104_v2 }
 0xd67   :  { %v3150_v47 = vmul.f32 0.7978846, %v3134_v26 }
 0xd68   :  { %v3087_v31 = vmul.f32 %v5903_v15, %v5903_v15  ;;  %v3149_v58 = vmul.f32 0.7978846, %v3133_v51  ;;  %v3136_v18 = vadd.f32 %v3120_v27, %v5899_v63 }
 0xd69   :  { %4506 = vtanh.f32 %v3150_v47 }
 0xd6a   :  { %v3103_v54 = vmul.f32 %v3087_v31, %v5903_v15  ;;  %4508 = vtanh.f32 %v3149_v58  ;;  %v3152_v41 = vmul.f32 0.7978846, %v3136_v18  ;;  %v3067_v18 = vpop.f32.mrf.mxu1 }
 0xd6c   :  { %v3119_v52 = vmul.f32 0.044715, %v3103_v54  ;;  %4510 = vtanh.f32 %v3152_v41 }
 0xd6e   :  { %v3135_v11 = vadd.f32 %v3119_v52, %v5903_v15 }
 0xd6f   :  { %v4507_v40 = vpop.eup %4506 }
 0xd70   :  { %v3151_v9 = vmul.f32 0.7978846, %v3135_v11  ;;  %v4509_v4 = vpop.eup %4508  ;;  %v3182_v28 = vadd.f32 1.0, %v4507_v40 }
 0xd71   :  { %v3181_v25 = vadd.f32 1.0, %v4509_v4 }
 0xd72   :  { %4512 = vtanh.f32 %v3151_v9  ;;  %v3198_v14 = vmul.f32 0.5, %v3182_v28  ;;  %v4511_v45 = vpop.eup %4510 }
 0xd73   :  { %v3197_v37 = vmul.f32 0.5, %v3181_v25  ;;  %v3184_v21 = vadd.f32 1.0, %v4511_v45 }
 0xd74   :  { %v3214_v8 = vmul.f32 %v3198_v14, %v3008_v30 }
 0xd75   :  { %v3213_v17 = vmul.f32 %v3197_v37, %v5894_v3  ;;  %v3200_v54 = vmul.f32 0.5, %v3184_v21 }
 0xd76   :  { %v5943_v51 = vmul.f32 %v3214_v8, %v3066_v10 }
 0xd77   :  { %v3216_v41 = vmul.f32 %v3200_v54, %v5899_v63 }
 0xd78   :  { %v4513_v43 = vpop.eup %4512 }
 0xd79   :  { %v3183_v31 = vadd.f32 1.0, %v4513_v43 }
 0xd9f   :  { %v3012_v48 = vpop.f32.mrf.mxu0 }
 0xda0   :  { %v5915_v42 = vadd.f32 %v3012_v48, %v5888_v62  ;;  %v3199_v48 = vmul.f32 0.5, %v3183_v31  ;;  %v3070_v7 = vpop.f32.mrf.mxu1 }
 0xda2   :  { %v3090_v46 = vmul.f32 %v5915_v42, %v5915_v42 }
 0xda4   :  { %v3106_v22 = vmul.f32 %v3090_v46, %v5915_v42 }
 0xda5   :  { %v2983_v29 = vpop.f32.mrf.mxu2 }
 0xda6   :  { %v3122_v53 = vmul.f32 0.044715, %v3106_v22  ;;  %v5921_v0 = vadd.f32 %v2983_v29, %v5890_v57  ;;  %v3068_v22 = vadd.f32 %v3067_v18, %v5932_v35 }
 0xda7   :  { %v3014_v24 = vpop.f32.mrf.mxu0 }
 0xda8   :  { %v3138_v60 = vadd.f32 %v3122_v53, %v5915_v42  ;;  %v3089_v13 = vmul.f32 %v5921_v0, %v5921_v0  ;;  %v5927_v6 = vadd.f32 %v3014_v24, %v5888_v62  ;;  %v3215_v53 = vmul.f32 %v3199_v48, %v5903_v15 }
 0xda9   :  { %v5953_v25 = vmul.f32 %v3216_v41, %v3068_v22  ;;  %v3071_v15 = vadd.f32 %v3070_v7, %v5932_v35 }
 0xdaa   :  { %v3154_v50 = vmul.f32 0.7978846, %v3138_v60  ;;  %v3105_v38 = vmul.f32 %v3089_v13, %v5921_v0  ;;  %v3092_v55 = vmul.f32 %v5927_v6, %v5927_v6 }
 0xdac   :  { %v3121_v39 = vmul.f32 0.044715, %v3105_v38  ;;  %v3108_v56 = vmul.f32 %v3092_v55, %v5927_v6  ;;  %4514 = vtanh.f32 %v3154_v50 }
 0xdad   :  { %v2985_v49 = vpop.f32.mrf.mxu2 }
 0xdae   :  { %v3137_v59 = vadd.f32 %v3121_v39, %v5921_v0  ;;  %v3124_v34 = vmul.f32 0.044715, %v3108_v56  ;;  %v2986_v5 = vadd.f32 %v2985_v49, %v5890_v57 }
 0xdaf   :  { %v3036_v44 = vpop.f32.mrf.mxu0 }
 0xdb0   :  { %v3153_v26 = vmul.f32 0.7978846, %v3137_v59  ;;  %v3140_v2 = vadd.f32 %v3124_v34, %v5927_v6  ;;  %v3091_v20 = vmul.f32 %v2986_v5, %v2986_v5  ;;  %v3037_v30 = vadd.f32 %v3036_v44, %v5935_v19  ;;  %v3072_v34 = vpop.f32.mrf.mxu1 }
 0xdb2   :  { %v3156_v47 = vmul.f32 0.7978846, %v3140_v2  ;;  %v3107_v27 = vmul.f32 %v3091_v20, %v2986_v5  ;;  %v5945_v58 = vmul.f32 %v3213_v17, %v3037_v30  ;;  %4516 = vtanh.f32 %v3153_v26  ;;  %v4515_v52 = vpop.eup %4514 }
 0xdb3   :  { %v3186_v40 = vadd.f32 1.0, %v4515_v52  ;;  %v3073_v17 = vadd.f32 %v3072_v34, %v5932_v35 }
 0xdb4   :  { %v3123_v11 = vmul.f32 0.044715, %v3107_v27  ;;  %v3247_v3 = vadd.f32 %v5943_v51, %v5945_v58  ;;  %4518 = vtanh.f32 %v3156_v47 }
 0xdb5   :  { %v3202_v60 = vmul.f32 0.5, %v3186_v40 }
 0xdb6   :  { %v3139_v9 = vadd.f32 %v3123_v11, %v2986_v5  ;;  %3248 = vadd.xlane.f32.xlu1 %v3247_v3 }
 0xdb7   :  { %v3038_v46 = vpop.f32.mrf.mxu0  ;;  %v3218_v50 = vmul.f32 %v3202_v60, %v5915_v42 }
 0xdb8   :  { %v4517_v4 = vpop.eup %4516  ;;  %v3155_v28 = vmul.f32 0.7978846, %v3139_v9  ;;  %v3039_v29 = vadd.f32 %v3038_v46, %v5935_v19 }
 0xdb9   :  { %v3185_v24 = vadd.f32 1.0, %v4517_v4  ;;  %v5963_v8 = vmul.f32 %v3218_v50, %v3071_v15 }
 0xdba   :  { %v5955_v13 = vmul.f32 %v3215_v53, %v3039_v29  ;;  %4520 = vtanh.f32 %v3155_v28  ;;  %v4519_v63 = vpop.eup %4518 }
 0xdbb   :  { %v3201_v45 = vmul.f32 0.5, %v3185_v24  ;;  %v3188_v38 = vadd.f32 1.0, %v4519_v63 }
 0xdbc   :  { %v3250_v14 = vadd.f32 %v5953_v25, %v5955_v13 }
 0xdbd   :  { %v3217_v39 = vmul.f32 %v3201_v45, %v5921_v0  ;;  %v3204_v21 = vmul.f32 0.5, %v3188_v38 }
 0xdbe   :  { %3251 = vadd.xlane.f32.xlu2 %v3250_v14 }
 0xdbf   :  { %v3041_v55 = vpop.f32.mrf.mxu0  ;;  %v3220_v10 = vmul.f32 %v3204_v21, %v5927_v6 }
 0xdc0   :  { %v4521_v37 = vpop.eup %4520  ;;  %v3042_v43 = vadd.f32 %v3041_v55, %v5935_v19 }
 0xdc1   :  { %v3187_v56 = vadd.f32 1.0, %v4521_v37  ;;  %v5972_v26 = vmul.f32 %v3220_v10, %v3073_v17 }
 0xdc2   :  { %v5965_v49 = vmul.f32 %v3217_v39, %v3042_v43 }
 0xdc3   :  { %v3203_v42 = vmul.f32 0.5, %v3187_v56 }
 0xdc4   :  { %v3253_v59 = vadd.f32 %v5963_v8, %v5965_v49 }
 0xdc5   :  { %v3219_v0 = vmul.f32 %v3203_v42, %v2986_v5 }
 0xdc6   :  { %3254 = vadd.xlane.f32.xlu0 %v3253_v59 }
 0xdc7   :  { %v3043_v44 = vpop.f32.mrf.mxu0 }
 0xdc8   :  { %v3044_v31 = vadd.f32 %v3043_v44, %v5935_v19 }
 0xdca   :  { %v5974_v2 = vmul.f32 %v3219_v0, %v3044_v31  ;;  %v3075_v15 = vpop.f32.mrf.mxu1 }
 0xdcb   :  { %v3076_v10 = vadd.f32 %v3075_v15, %v5932_v35 }
 0xdcc   :  { %v3256_v20 = vadd.f32 %v5972_v26, %v5974_v2 }
 0xdce   :  { %3257 = vadd.xlane.f32.xlu1 %v3256_v20 }
 0xdcf   :  { %v2988_v30 = vpop.f32.mrf.mxu2  ;;  %v3017_v54 = vpop.f32.mrf.mxu3 }
 0xdd0   :  { %v2989_v47 = vadd.f32 %v2988_v30, %v5890_v57  ;;  %v3018_v6 = vadd.f32 %v3017_v54, %v5888_v62  ;;  %v3046_v43 = vpop.f32.mrf.mxu0 }
 0xdd1   :  { %v3047_v0 = vadd.f32 %v3046_v43, %v5935_v19 }
 0xdd2   :  { %v3093_v27 = vmul.f32 %v2989_v47, %v2989_v47  ;;  %v3094_v52 = vmul.f32 %v3018_v6, %v3018_v6 }
 0xdd4   :  { %v3109_v18 = vmul.f32 %v3093_v27, %v2989_v47  ;;  %v3110_v11 = vmul.f32 %v3094_v52, %v3018_v6 }
 0xdd6   :  { %v3125_v3 = vmul.f32 0.044715, %v3109_v18  ;;  %v3126_v5 = vmul.f32 0.044715, %v3110_v11 }
 0xdd7   :  { %v2990_v48 = vpop.f32.mrf.mxu2  ;;  %v3019_v41 = vpop.f32.mrf.mxu3 }
 0xdd8   :  { %v3141_v40 = vadd.f32 %v3125_v3, %v2989_v47  ;;  %v3142_v9 = vadd.f32 %v3126_v5, %v3018_v6  ;;  %v2991_v46 = vadd.f32 %v2990_v48, %v5890_v57  ;;  %v3020_v4 = vadd.f32 %v3019_v41, %v5888_v62 }
 0xdda   :  { %v3157_v22 = vmul.f32 0.7978846, %v3141_v40  ;;  %v3158_v28 = vmul.f32 0.7978846, %v3142_v9  ;;  %v3095_v29 = vmul.f32 %v2991_v46, %v2991_v46  ;;  %v3096_v53 = vmul.f32 %v3020_v4, %v3020_v4  ;;  %v3077_v40 = vpop.f32.mrf.mxu1 }
 0xddc   :  { %4522 = vtanh.f32 %v3158_v28  ;;  %v3111_v24 = vmul.f32 %v3095_v29, %v2991_v46  ;;  %v3112_v60 = vmul.f32 %v3096_v53, %v3020_v4 }
 0xddd   :  { %4524 = vtanh.f32 %v3157_v22 }
 0xdde   :  { %v3127_v63 = vmul.f32 0.044715, %v3111_v24  ;;  %v3128_v7 = vmul.f32 0.044715, %v3112_v60 }
 0xde0   :  { %v3143_v14 = vadd.f32 %v3127_v63, %v2991_v46  ;;  %v3144_v45 = vadd.f32 %v3128_v7, %v3020_v4 }
 0xde2   :  { %v4523_v50 = vpop.eup %4522  ;;  %v3159_v38 = vmul.f32 0.7978846, %v3143_v14  ;;  %v3160_v55 = vmul.f32 0.7978846, %v3144_v45  ;;  %v3078_v45 = vadd.f32 %v3077_v40, %v5932_v35 }
 0xde3   :  { %v4525_v37 = vpop.eup %4524  ;;  %v3190_v39 = vadd.f32 1.0, %v4523_v50 }
 0xde4   :  { %v3189_v56 = vadd.f32 1.0, %v4525_v37  ;;  %4526 = vtanh.f32 %v3160_v55 }
 0xde5   :  { %4528 = vtanh.f32 %v3159_v38  ;;  %v3206_v21 = vmul.f32 0.5, %v3190_v39 }
 0xde6   :  { %v3205_v59 = vmul.f32 0.5, %v3189_v56  ;;  %v2993_v42 = vpop.f32.mrf.mxu2  ;;  %v3022_v34 = vpop.f32.mrf.mxu3 }
 0xde7   :  { %v2994_v44 = vadd.f32 %v2993_v42, %v5890_v57  ;;  %v5985_v17 = vadd.f32 %v3022_v34, %v5888_v62  ;;  %v3222_v31 = vmul.f32 %v3206_v21, %v3018_v6 }
 0xde8   :  { %v3221_v20 = vmul.f32 %v3205_v59, %v2989_v47  ;;  %v3048_v47 = vpop.f32.mrf.mxu0 }
 0xde9   :  { %v3097_v30 = vmul.f32 %v2994_v44, %v2994_v44  ;;  %v3098_v54 = vmul.f32 %v5985_v17, %v5985_v17  ;;  %v5990_v27 = vmul.f32 %v3222_v31, %v3076_v10  ;;  %v3049_v50 = vadd.f32 %v3048_v47, %v5935_v19 }
 0xdea   :  { %v4527_v52 = vpop.eup %4526  ;;  %v5992_v18 = vmul.f32 %v3221_v20, %v3047_v0 }
 0xdeb   :  { %v4529_v11 = vpop.eup %4528  ;;  %v3113_v3 = vmul.f32 %v3097_v30, %v2994_v44  ;;  %v3114_v5 = vmul.f32 %v3098_v54, %v5985_v17  ;;  %v3192_v48 = vadd.f32 1.0, %v4527_v52  ;;  %v3080_v54 = vpop.f32.mrf.mxu1 }
 0xdec   :  { %v3191_v41 = vadd.f32 1.0, %v4529_v11  ;;  %v3259_v6 = vadd.f32 %v5990_v27, %v5992_v18 }
 0xded   :  { %v3129_v9 = vmul.f32 0.044715, %v3113_v3  ;;  %v3130_v22 = vmul.f32 0.044715, %v3114_v5  ;;  %v3208_v28 = vmul.f32 0.5, %v3192_v48 }
 0xdee   :  { %v3207_v29 = vmul.f32 0.5, %v3191_v41  ;;  %3260 = vadd.xlane.f32.xlu2 %v3259_v6  ;;  %v2995_v53 = vpop.f32.mrf.mxu2  ;;  %v3024_v24 = vpop.f32.mrf.mxu3  ;;  %v3081_v6 = vadd.f32 %v3080_v54, %v5932_v35 }
 0xdef   :  { %v3145_v60 = vadd.f32 %v3129_v9, %v2994_v44  ;;  %v3146_v63 = vadd.f32 %v3130_v22, %v5985_v17  ;;  %v2996_v7 = vadd.f32 %v2995_v53, %v5890_v57  ;;  %v3025_v14 = vadd.f32 %v3024_v24, %v5888_v62 }
 0xdf0   :  { %v3223_v38 = vmul.f32 %v3207_v29, %v2991_v46  ;;  %v3224_v55 = vmul.f32 %v3208_v28, %v3020_v4  ;;  %v3051_v31 = vpop.f32.mrf.mxu0 }
 0xdf1   :  { %v3161_v37 = vmul.f32 0.7978846, %v3145_v60  ;;  %v3162_v15 = vmul.f32 0.7978846, %v3146_v63  ;;  %v3099_v43 = vmul.f32 %v2996_v7, %v2996_v7  ;;  %v3100_v39 = vmul.f32 %v3025_v14, %v3025_v14 }
 0xdf2   :  { %v6002_v56 = vmul.f32 %v3223_v38, %v3049_v50  ;;  %v6004_v21 = vmul.f32 %v3224_v55, %v3078_v45  ;;  %v3052_v48 = vadd.f32 %v3051_v31, %v5935_v19 }
 0xdf3   :  { %4530 = vtanh.f32 %v3161_v37  ;;  %v3115_v59 = vmul.f32 %v3099_v43, %v2996_v7  ;;  %v3116_v42 = vmul.f32 %v3100_v39, %v3025_v14  ;;  %v3082_v63 = vpop.f32.mrf.mxu1  ;;  %v4680_v39 = vmov 256.0  }
 0xdf4   :  { %4532 = vtanh.f32 %v3162_v15  ;;  %v3262_v62 = vadd.f32 %v6004_v21, %v6002_v56 }
 0xdf5   :  { %v3131_v57 = vmul.f32 0.044715, %v3115_v59  ;;  %v3132_v34 = vmul.f32 0.044715, %v3116_v42 }
 0xdf6   :  { %3263 = vadd.xlane.f32.xlu0 %v3262_v62 }
 0xdf7   :  { %v3147_v46 = vadd.f32 %v3131_v57, %v2996_v7  ;;  %v3148_v4 = vadd.f32 %v3132_v34, %v3025_v14 }
 0xdf8   :  { %v3053_v53 = vpop.f32.mrf.mxu0 }
 0xdf9   :  { %v4531_v10 = vpop.eup %4530  ;;  %v3163_v0 = vmul.f32 0.7978846, %v3147_v46  ;;  %v3164_v20 = vmul.f32 0.7978846, %v3148_v4  ;;  %v3054_v50 = vadd.f32 %v3053_v53, %v5935_v19 }
 0xdfa   :  { %v4533_v30 = vpop.eup %4532  ;;  %v3193_v52 = vadd.f32 1.0, %v4531_v10 }
 0xdfb   :  { %4534 = vtanh.f32 %v3163_v0  ;;  %v3194_v11 = vadd.f32 1.0, %v4533_v30 }
 0xdfc   :  { %4536 = vtanh.f32 %v3164_v20  ;;  %v3209_v3 = vmul.f32 0.5, %v3193_v52 }
 0xdfd   :  { %v3210_v5 = vmul.f32 0.5, %v3194_v11  ;;  %4538 = vrcp.f32 %v4680_v39 }
 0xdfe   :  { %v3225_v41 = vmul.f32 %v3209_v3, %v2994_v44 }
 0xdff   :  { %v3226_v40 = vmul.f32 %v3210_v5, %v5985_v17  ;;  %v3083_v17 = vadd.f32 %v3082_v63, %v5932_v35 }
 0xe00   :  { %v6011_v47 = vmul.f32 %v3225_v41, %v3052_v48 }
 0xe01   :  { %v4535_v9 = vpop.eup %4534  ;;  %v6013_v22 = vmul.f32 %v3226_v40, %v3081_v6 }
 0xe02   :  { %v4537_v28 = vpop.eup %4536  ;;  %v3195_v29 = vadd.f32 1.0, %v4535_v9 }
 0xe03   :  { %v3265_v24 = vadd.f32 %v6013_v22, %v6011_v47  ;;  %v3196_v60 = vadd.f32 1.0, %v4537_v28  ;;  %v4539_v59 = vpop.eup %4538 }
 0xe04   :  { %v3211_v45 = vmul.f32 0.5, %v3195_v29  ;;  %v3272_v42 = vmul.f32 256.0, %v4539_v59  ;;  %vm3276_vm3 = vweird.f32 %v4539_v59 }
 0xe05   :  { %3266 = vadd.xlane.f32.xlu1 %v3265_v24  ;;  %v3212_v44 = vmul.f32 0.5, %v3196_v60 }
 0xe06   :  { %v3227_v38 = vmul.f32 %v3211_v45, %v2996_v7  ;;  %v3273_v62 = vsub.f32 1.0, %v3272_v42 }
 0xe07   :  { %v3228_v55 = vmul.f32 %v3212_v44, %v3025_v14 }
 0xe08   :  { %v6019_v37 = vmul.f32 %v3227_v38, %v3054_v50  ;;  %v3274_v57 = vmul.f32 %v4539_v59, %v3273_v62 }
 0xe09   :  { %v6021_v15 = vmul.f32 %v3228_v55, %v3083_v17 }
 0xe0a   :  { %v3275_v34 = vadd.f32 %v4539_v59, %v3274_v57 }
 0xe0b   :  { %v3268_v43 = vadd.f32 %v6021_v15, %v6019_v37 }
 0xe0c   :  { %v6025_v19 = vsel %vm3276_vm3, %v4539_v59, %v3275_v34 }
 0xe0d   :  { %3269 = vadd.xlane.f32.xlu2 %v3268_v43 }
 0xe29   :  { %v3249_v35 = vpop.xlane.xlu1 %3248 }
 0xe2a   :  { %v3278_v7 = vmul.f32 %v6025_v19, %v3249_v35 }
 0xe2c   :  { %v6029_v14 = vsub.f32 %v5945_v58, %v3278_v7  ;;  %v6032_v46 = vsub.f32 %v5943_v51, %v3278_v7 }
 0xe2e   :  { %v3302_v4 = vmul.f32 %v6029_v14, %v6029_v14  ;;  %v3303_v10 = vmul.f32 %v6032_v46, %v6032_v46 }
 0xe30   :  { %v3318_v31 = vadd.f32 %v3303_v10, %v3302_v4  ;;  %v4228_v10 = vld [vmem:[#allocation7 + $0x38] sm:$0xff] }
 0xe31   :  { %v3252_v0 = vpop.xlane.xlu2 %3251  ;;  %3632 = vmatpush.bf16.msrb.mxu2 %v4228_v10 }
 0xe32   :  { %v3279_v20 = vmul.f32 %v6025_v19, %v3252_v0  ;;  %3319 = vadd.xlane.f32.xlu0 %v3318_v31  ;;  %v4236_v31 = vld [vmem:[#allocation7 + $0x78] sm:$0xff]  ;;  %v4227_v0 = vld [vmem:[#allocation7 + $0x30] sm:$0xff] }
 0xe33   :  { %3661 = vmatpush.bf16.msra.mxu3 %v4236_v31 }
 0xe34   :  { %v6040_v30 = vsub.f32 %v5955_v13, %v3279_v20  ;;  %v6043_v58 = vsub.f32 %v5953_v25, %v3279_v20  ;;  %v4235_v20 = vld [vmem:[#allocation7 + $0x70] sm:$0xff] }
 0xe35   :  { %3633 = vmatpush.bf16.msrb.mxu2 %v4227_v0 }
 0xe36   :  { %v3304_v51 = vmul.f32 %v6040_v30, %v6040_v30  ;;  %v3305_v54 = vmul.f32 %v6043_v58, %v6043_v58 }
 0xe37   :  { %3662 = vmatpush.bf16.msra.mxu3 %v4235_v20  ;;  %v3246_v20 = vld [vmem:[%s6231_s11] sm:$0x3] }
 0xe38   :  { %v3321_v52 = vadd.f32 %v3305_v54, %v3304_v51  ;;  %v4234_v51 = vld [vmem:[#allocation7 + $0x68] sm:$0xff]  ;;  %v4233_v54 = vld [vmem:[#allocation7 + $0x60] sm:$0xff] }
 0xe39   :  { %v3255_v11 = vpop.xlane.xlu0 %3254 }
 0xe3a   :  { %v3280_v3 = vmul.f32 %v6025_v19, %v3255_v11  ;;  %3322 = vadd.xlane.f32.xlu1 %v3321_v52  ;;  %v4224_v52 = vld [vmem:[#allocation7 + $0x18] sm:$0xff] }
 0xe3b   :  { %3663 = vmatpush.bf16.msra.mxu3 %v4234_v51  ;;  %v4232_v11 = vld [vmem:[#allocation7 + $0x58] sm:$0xff] }
 0xe3c   :  { %v6051_v5 = vsub.f32 %v5965_v49, %v3280_v3  ;;  %v6054_v13 = vsub.f32 %v5963_v8, %v3280_v3  ;;  %v4223_v3 = vld [vmem:[#allocation7 + $0x10] sm:$0xff] }
 0xe3e   :  { %v3306_v25 = vmul.f32 %v6051_v5, %v6051_v5  ;;  %v3307_v48 = vmul.f32 %v6054_v13, %v6054_v13 }
 0xe3f   :  { %3664 = vmatpush.bf16.msra.mxu3 %v4233_v54 }
 0xe40   :  { %v3324_v41 = vadd.f32 %v3307_v48, %v3306_v25  ;;  %v4231_v25 = vld [vmem:[#allocation7 + $0x50] sm:$0xff] }
 0xe41   :  { %v3258_v6 = vpop.xlane.xlu1 %3257 }
 0xe42   :  { %v3281_v40 = vmul.f32 %v6025_v19, %v3258_v6  ;;  %3325 = vadd.xlane.f32.xlu2 %v3324_v41  ;;  %v4222_v41 = vld [vmem:[#allocation7 + $0x8] sm:$0xff] }
 0xe43   :  { %3665 = vmatpush.bf16.msra.mxu3 %v4232_v11  ;;  %v4230_v6 = vld [vmem:[#allocation7 + $0x48] sm:$0xff] }
 0xe44   :  { %v6062_v9 = vsub.f32 %v5974_v2, %v3281_v40  ;;  %v6065_v49 = vsub.f32 %v5972_v26, %v3281_v40 }
 0xe46   :  { %v3308_v8 = vmul.f32 %v6062_v9, %v6062_v9  ;;  %v3309_v28 = vmul.f32 %v6065_v49, %v6065_v49 }
 0xe47   :  { %3666 = vmatpush.bf16.msra.mxu3 %v4231_v25  ;;  %v6133_v25 = vperm.slane %v3246_v20, 1 }
 0xe48   :  { %v3327_v29 = vadd.f32 %v3309_v28, %v3308_v8  ;;  %v4221_v28 = vld [vmem:[#allocation7] sm:$0xff] }
 0xe4a   :  { %3328 = vadd.xlane.f32.xlu0 %v3327_v29  ;;  %v4229_v29 = vld [vmem:[#allocation7 + $0x40] sm:$0xff] }
 0xe4b   :  { %3667 = vmatpush.bf16.msra.mxu3 %v4230_v6 }
 0xe4f   :  { %3668 = vmatpush.bf16.msra.mxu3 %v4229_v29 }
 0xe61   :  { %v3261_v53 = vpop.xlane.xlu2 %3260 }
 0xe62   :  { %v3282_v24 = vmul.f32 %v6025_v19, %v3261_v53 }
 0xe64   :  { %v6073_v60 = vsub.f32 %v5992_v18, %v3282_v24  ;;  %v6076_v2 = vsub.f32 %v5990_v27, %v3282_v24 }
 0xe66   :  { %v3310_v26 = vmul.f32 %v6073_v60, %v6073_v60  ;;  %v3311_v63 = vmul.f32 %v6076_v2, %v6076_v2 }
 0xe68   :  { %v3330_v45 = vadd.f32 %v3311_v63, %v3310_v26 }
 0xe69   :  { %v3264_v44 = vpop.xlane.xlu0 %3263 }
 0xe6a   :  { %v3283_v50 = vmul.f32 %v6025_v19, %v3264_v44  ;;  %3331 = vadd.xlane.f32.xlu1 %v3330_v45 }
 0xe6c   :  { %v6084_v38 = vsub.f32 %v6002_v56, %v3283_v50  ;;  %v6087_v18 = vsub.f32 %v6004_v21, %v3283_v50 }
 0xe6e   :  { %v3312_v27 = vmul.f32 %v6084_v38, %v6084_v38  ;;  %v3313_v17 = vmul.f32 %v6087_v18, %v6087_v18 }
 0xe70   :  { %v3333_v55 = vadd.f32 %v3313_v17, %v3312_v27 }
 0xe72   :  { %3334 = vadd.xlane.f32.xlu2 %v3333_v55 }
 0xe78   :  { %v3267_v43 = vpop.xlane.xlu1 %3266 }
 0xe79   :  { %v3284_v39 = vmul.f32 %v6025_v19, %v3267_v43 }
 0xe7b   :  { %v6095_v59 = vsub.f32 %v6011_v47, %v3284_v39  ;;  %v6098_v56 = vsub.f32 %v6013_v22, %v3284_v39 }
 0xe7d   :  { %v3314_v21 = vmul.f32 %v6095_v59, %v6095_v59  ;;  %v3315_v42 = vmul.f32 %v6098_v56, %v6098_v56 }
 0xe7f   :  { %v3336_v62 = vadd.f32 %v3315_v42, %v3314_v21 }
 0xe80   :  { %v3270_v57 = vpop.xlane.xlu2 %3269 }
 0xe81   :  { %v3285_v34 = vmul.f32 %v6025_v19, %v3270_v57  ;;  %3337 = vadd.xlane.f32.xlu0 %v3336_v62  ;;  %v3245_v57 = vld [vmem:[%s6230_s10] sm:$0x3] }
 0xe82   :  { %v6122_v10 = vperm.slane %v3245_v57, 0 }
 0xe83   :  { %v6106_v35 = vsub.f32 %v6019_v37, %v3285_v34  ;;  %v6109_v47 = vsub.f32 %v6021_v15, %v3285_v34  ;;  %v4226_v37 = vld [vmem:[#allocation7 + $0x28] sm:$0xff]  ;;  %v4225_v15 = vld [vmem:[#allocation7 + $0x20] sm:$0xff] }
 0xe84   :  { %3634 = vmatpush.bf16.msrb.mxu2 %v4226_v37  ;;  %v6127_v37 = vperm.slane %v3245_v57, 1 }
 0xe85   :  { %v3316_v22 = vmul.f32 %v6106_v35, %v6106_v35  ;;  %v3317_v7 = vmul.f32 %v6109_v47, %v6109_v47 }
 0xe87   :  { %v3339_v4 = vadd.f32 %v3317_v7, %v3316_v22 }
 0xe88   :  { %3635 = vmatpush.bf16.msrb.mxu2 %v4225_v15 }
 0xe89   :  { %3340 = vadd.xlane.f32.xlu1 %v3339_v4 }
 0xe8c   :  { %3636 = vmatpush.bf16.msrb.mxu2 %v4224_v52 }
 0xe90   :  { %3637 = vmatpush.bf16.msrb.mxu2 %v4223_v3  ;;  %v6131_v3 = vperm.slane %v3246_v20, 0 }
 0xe94   :  { %3638 = vmatpush.bf16.msrb.mxu2 %v4222_v41 }
 0xe98   :  { %3639 = vmatpush.bf16.msrb.mxu2 %v4221_v28 }
 0xea5   :  { %v3320_v48 = vpop.xlane.xlu0 %3319 }
 0xea6   :  { %v3342_v40 = vmul.f32 %v3320_v48, %v6025_v19 }
 0xea8   :  { %v3350_v8 = vadd.f32 1e-05, %v3342_v40 }
 0xeaa   :  { %4540 = vrsqrt.f32 %v3350_v8  ;;  %vm3364_vm5 = vweird.f32 %v3350_v8 }
 0xead   :  { %v3323_v53 = vpop.xlane.xlu1 %3322 }
 0xeae   :  { %v3343_v24 = vmul.f32 %v3323_v53, %v6025_v19 }
 0xeb0   :  { %v4541_v26 = vpop.eup %4540  ;;  %v3351_v63 = vadd.f32 1e-05, %v3343_v24 }
 0xeb1   :  { %v3359_v45 = vmul.f32 %v4541_v26, %v3350_v8  ;;  %vm3365_vm4 = vweird.f32 %v4541_v26 }
 0xeb2   :  { %4542 = vrsqrt.f32 %v3351_v63  ;;  %vm3366_vm6 = vmor %vm3364_vm5, %vm3365_vm4  ;;  %vm3374_vm8 = vweird.f32 %v3351_v63 }
 0xeb3   :  { %v3360_v44 = vmul.f32 %v4541_v26, %v3359_v45 }
 0xeb5   :  { %v3361_v50 = vmul.f32 0.5, %v3360_v44  ;;  %v3326_v27 = vpop.xlane.xlu2 %3325 }
 0xeb6   :  { %v3344_v17 = vmul.f32 %v3326_v27, %v6025_v19 }
 0xeb7   :  { %v3362_v55 = vsub.f32 1.5, %v3361_v50 }
 0xeb8   :  { %v4543_v43 = vpop.eup %4542  ;;  %v3352_v39 = vadd.f32 1e-05, %v3344_v17 }
 0xeb9   :  { %v3363_v21 = vmul.f32 %v4541_v26, %v3362_v55  ;;  %v3369_v42 = vmul.f32 %v4543_v43, %v3351_v63  ;;  %vm3375_vm7 = vweird.f32 %v4543_v43 }
 0xeba   :  { %4544 = vrsqrt.f32 %v3352_v39  ;;  %vm3376_vm9 = vmor %vm3374_vm8, %vm3375_vm7  ;;  %vm3384_vm11 = vweird.f32 %v3352_v39 }
 0xebb   :  { %v3370_v62 = vmul.f32 %v4543_v43, %v3369_v42  ;;  %v3367_v34 = vsel %vm3366_vm6, %v4541_v26, %v3363_v21 }
 0xebc   :  { %v3438_v51 = vmul.f32 %v3367_v34, %v6029_v14  ;;  %v3439_v15 = vmul.f32 %v3367_v34, %v6032_v46 }
 0xebd   :  { %v3371_v22 = vmul.f32 0.5, %v3370_v62  ;;  %v3329_v7 = vpop.xlane.xlu0 %3328 }
 0xebe   :  { %v3345_v4 = vmul.f32 %v3329_v7, %v6025_v19  ;;  %v3459_v6 = vmul.f32 %v6122_v10, %v3438_v51  ;;  %v3460_v40 = vmul.f32 %v6127_v37, %v3439_v15 }
 0xebf   :  { %v3372_v31 = vsub.f32 1.5, %v3371_v22 }
 0xec0   :  { %v4545_v0 = vpop.eup %4544  ;;  %v3353_v54 = vadd.f32 1e-05, %v3345_v4  ;;  %v3480_v26 = vadd.f32 %v6131_v3, %v3459_v6  ;;  %v3481_v63 = vadd.f32 %v6133_v25, %v3460_v40 }
 0xec1   :  { %v3373_v52 = vmul.f32 %v4543_v43, %v3372_v31  ;;  %v3379_v11 = vmul.f32 %v4545_v0, %v3352_v39  ;;  %vm3385_vm10 = vweird.f32 %v4545_v0 }
 0xec2   :  { %4546 = vrsqrt.f32 %v3353_v54  ;;  %vm3386_vm12 = vmor %vm3384_vm11, %vm3385_vm10  ;;  %vm3394_vm14 = vweird.f32 %v3353_v54 }
 0xec3   :  { %v3377_v48 = vsel %vm3376_vm9, %v4543_v43, %v3373_v52  ;;  %v3380_v41 = vmul.f32 %v4545_v0, %v3379_v11 }
 0xec4   :  { %v3440_v14 = vmul.f32 %v3377_v48, %v6040_v30  ;;  %v3441_v46 = vmul.f32 %v3377_v48, %v6043_v58 }
 0xec5   :  { %v3381_v8 = vmul.f32 0.5, %v3380_v41 }
 0xec6   :  { %v3461_v28 = vmul.f32 %v6122_v10, %v3440_v14  ;;  %v3462_v29 = vmul.f32 %v6127_v37, %v3441_v46 }
 0xec7   :  { %v3382_v53 = vsub.f32 1.5, %v3381_v8 }
 0xec8   :  { %v4547_v24 = vpop.eup %4546  ;;  %v3482_v45 = vadd.f32 %v6131_v3, %v3461_v28  ;;  %v3483_v44 = vadd.f32 %v6133_v25, %v3462_v29 }
 0xec9   :  { %v3383_v50 = vmul.f32 %v4545_v0, %v3382_v53  ;;  %v3389_v30 = vmul.f32 %v4547_v24, %v3353_v54  ;;  %vm3395_vm13 = vweird.f32 %v4547_v24 }
 0xeca   :  { %v3496_v27 = vpack.c.bf16 %v3482_v45, %v3480_v26  ;;  %v3497_v58 = vpack.c.bf16 %v3483_v44, %v3481_v63  ;;  %vm3396_vm15 = vmor %vm3394_vm14, %vm3395_vm13 }
 0xecb   :  { %v3390_v17 = vmul.f32 %v4547_v24, %v3389_v30  ;;  %v3387_v55 = vsel %vm3386_vm12, %v4545_v0, %v3383_v50 }
 0xecc   :  { %3640 = vmatmul.bf16.vlgmr.msrb.gmra.mxu2 %v3496_v27  ;;  %3669 = vmatmul.bf16.vlgmr.msra.gmra.mxu3 %v3497_v58  ;;  %v3442_v42 = vmul.f32 %v3387_v55, %v6051_v5  ;;  %v3443_v62 = vmul.f32 %v3387_v55, %v6054_v13 }
 0xecd   :  { %v3391_v43 = vmul.f32 0.5, %v3390_v17 }
 0xece   :  { %v3463_v7 = vmul.f32 %v6122_v10, %v3442_v42  ;;  %v3464_v4 = vmul.f32 %v6127_v37, %v3443_v62 }
 0xecf   :  { %v3392_v21 = vsub.f32 1.5, %v3391_v43 }
 0xed0   :  { %v3484_v5 = vadd.f32 %v6131_v3, %v3463_v7  ;;  %v3485_v20 = vadd.f32 %v6133_v25, %v3464_v4 }
 0xed1   :  { %v3393_v57 = vmul.f32 %v4547_v24, %v3392_v21 }
 0xed3   :  { %v3397_v34 = vsel %vm3396_vm15, %v4547_v24, %v3393_v57 }
 0xed4   :  { %v3444_v22 = vmul.f32 %v3397_v34, %v6062_v9  ;;  %v3445_v39 = vmul.f32 %v3397_v34, %v6065_v49 }
 0xed6   :  { %v3465_v31 = vmul.f32 %v6122_v10, %v3444_v22  ;;  %v3466_v0 = vmul.f32 %v6127_v37, %v3445_v39 }
 0xed8   :  { %v3486_v13 = vadd.f32 %v6131_v3, %v3465_v31  ;;  %v3487_v51 = vadd.f32 %v6133_v25, %v3466_v0 }
 0xeda   :  { %v3498_v15 = vpack.c.bf16 %v3486_v13, %v3484_v5  ;;  %v3499_v9 = vpack.c.bf16 %v3487_v51, %v3485_v20 }
 0xedc   :  { %3645 = vmatmul.bf16.gmra.mxu2 %v3498_v15  ;;  %3674 = vmatmul.bf16.gmra.mxu3 %v3499_v9 }
 0xedd   :  { %v3332_v49 = vpop.xlane.xlu1 %3331 }
 0xede   :  { %v3346_v54 = vmul.f32 %v3332_v49, %v6025_v19 }
 0xee0   :  { %v3354_v52 = vadd.f32 1e-05, %v3346_v54 }
 0xee2   :  { %4548 = vrsqrt.f32 %v3354_v52  ;;  %vm3404_vm1 = vweird.f32 %v3354_v52 }
 0xee5   :  { %v3335_v11 = vpop.xlane.xlu2 %3334 }
 0xee6   :  { %v3347_v48 = vmul.f32 %v3335_v11, %v6025_v19 }
 0xee8   :  { %v4549_v41 = vpop.eup %4548  ;;  %v3355_v6 = vadd.f32 1e-05, %v3347_v48 }
 0xee9   :  { %v3399_v40 = vmul.f32 %v4549_v41, %v3354_v52  ;;  %vm3405_vm0 = vweird.f32 %v4549_v41 }
 0xeea   :  { %4550 = vrsqrt.f32 %v3355_v6  ;;  %vm3406_vm2 = vmor %vm3404_vm1, %vm3405_vm0  ;;  %vm3414_vm4 = vweird.f32 %v3355_v6 }
 0xeeb   :  { %v3400_v14 = vmul.f32 %v4549_v41, %v3399_v40 }
 0xeed   :  { %v3401_v46 = vmul.f32 0.5, %v3400_v14 }
 0xeef   :  { %v3402_v8 = vsub.f32 1.5, %v3401_v46 }
 0xef0   :  { %v4551_v28 = vpop.eup %4550 }
 0xef1   :  { %v3403_v29 = vmul.f32 %v4549_v41, %v3402_v8  ;;  %v3409_v53 = vmul.f32 %v4551_v28, %v3355_v6  ;;  %vm3415_vm3 = vweird.f32 %v4551_v28 }
 0xef2   :  { %vm3416_vm5 = vmor %vm3414_vm4, %vm3415_vm3 }
 0xef3   :  { %v3410_v24 = vmul.f32 %v4551_v28, %v3409_v53  ;;  %v3407_v26 = vsel %vm3406_vm2, %v4549_v41, %v3403_v29 }
 0xef4   :  { %v3338_v63 = vpop.xlane.xlu0 %3337  ;;  %v3446_v50 = vmul.f32 %v3407_v26, %v6073_v60  ;;  %v3447_v58 = vmul.f32 %v3407_v26, %v6076_v2 }
 0xef5   :  { %v3411_v45 = vmul.f32 0.5, %v3410_v24  ;;  %v3348_v44 = vmul.f32 %v3338_v63, %v6025_v19 }
 0xef6   :  { %v3467_v43 = vmul.f32 %v6122_v10, %v3446_v50  ;;  %v3468_v57 = vmul.f32 %v6127_v37, %v3447_v58 }
 0xef7   :  { %v3412_v30 = vsub.f32 1.5, %v3411_v45  ;;  %v3356_v27 = vadd.f32 1e-05, %v3348_v44 }
 0xef8   :  { %v3488_v7 = vadd.f32 %v6131_v3, %v3467_v43 }
 0xef9   :  { %v3413_v17 = vmul.f32 %v4551_v28, %v3412_v30  ;;  %4552 = vrsqrt.f32 %v3356_v27  ;;  %vm3424_vm7 = vweird.f32 %v3356_v27 }
 0xefb   :  { %v3417_v55 = vsel %vm3416_vm5, %v4551_v28, %v3413_v17 }
 0xefc   :  { %v3448_v21 = vmul.f32 %v3417_v55, %v6084_v38  ;;  %v3449_v42 = vmul.f32 %v3417_v55, %v6087_v18  ;;  %v3341_v62 = vpop.xlane.xlu1 %3340  ;;  %v3489_v38 = vadd.f32 %v6133_v25, %v3468_v57 }
 0xefd   :  { %v3349_v60 = vmul.f32 %v3341_v62, %v6025_v19 }
 0xefe   :  { %v3469_v34 = vmul.f32 %v6122_v10, %v3448_v21  ;;  %v3470_v2 = vmul.f32 %v6127_v37, %v3449_v42 }
 0xeff   :  { %v4553_v22 = vpop.eup %4552  ;;  %v3357_v39 = vadd.f32 1e-05, %v3349_v60 }
 0xf00   :  { %v3419_v4 = vmul.f32 %v4553_v22, %v3356_v27  ;;  %v3490_v31 = vadd.f32 %v6131_v3, %v3469_v34  ;;  %v3491_v18 = vadd.f32 %v6133_v25, %v3470_v2  ;;  %vm3425_vm6 = vweird.f32 %v4553_v22 }
 0xf01   :  { %4554 = vrsqrt.f32 %v3357_v39  ;;  %vm3426_vm8 = vmor %vm3424_vm7, %vm3425_vm6  ;;  %vm3434_vm10 = vweird.f32 %v3357_v39 }
 0xf02   :  { %v3420_v0 = vmul.f32 %v4553_v22, %v3419_v4  ;;  %v3500_v5 = vpack.c.bf16 %v3490_v31, %v3488_v7  ;;  %v3501_v13 = vpack.c.bf16 %v3491_v18, %v3489_v38 }
 0xf04   :  { %v3421_v19 = vmul.f32 0.5, %v3420_v0  ;;  %3650 = vmatmul.bf16.gmra.mxu2 %v3500_v5  ;;  %3679 = vmatmul.bf16.gmra.mxu3 %v3501_v13 }
 0xf06   :  { %v3422_v20 = vsub.f32 1.5, %v3421_v19 }
 0xf07   :  { %v4555_v51 = vpop.eup %4554 }
 0xf08   :  { %v3423_v15 = vmul.f32 %v4553_v22, %v3422_v20  ;;  %v3429_v9 = vmul.f32 %v4555_v51, %v3357_v39  ;;  %vm3435_vm9 = vweird.f32 %v4555_v51 }
 0xf09   :  { %vm3436_vm11 = vmor %vm3434_vm10, %vm3435_vm9 }
 0xf0a   :  { %v3430_v49 = vmul.f32 %v4555_v51, %v3429_v9  ;;  %v3427_v54 = vsel %vm3426_vm8, %v4553_v22, %v3423_v15 }
 0xf0b   :  { %v3450_v48 = vmul.f32 %v3427_v54, %v6095_v59  ;;  %v3451_v41 = vmul.f32 %v3427_v54, %v6098_v56 }
 0xf0c   :  { %v3431_v52 = vmul.f32 0.5, %v3430_v49 }
 0xf0d   :  { %v3471_v8 = vmul.f32 %v6122_v10, %v3450_v48  ;;  %v3472_v28 = vmul.f32 %v6127_v37, %v3451_v41 }
 0xf0e   :  { %v3432_v11 = vsub.f32 1.5, %v3431_v52 }
 0xf0f   :  { %v3492_v59 = vadd.f32 %v6131_v3, %v3471_v8  ;;  %v3493_v24 = vadd.f32 %v6133_v25, %v3472_v28 }
 0xf10   :  { %v3433_v6 = vmul.f32 %v4555_v51, %v3432_v11 }
 0xf12   :  { %v3437_v40 = vsel %vm3436_vm11, %v4555_v51, %v3433_v6 }
 0xf13   :  { %v3452_v14 = vmul.f32 %v3437_v40, %v6106_v35  ;;  %v3453_v46 = vmul.f32 %v3437_v40, %v6109_v47 }
 0xf15   :  { %v3473_v29 = vmul.f32 %v6122_v10, %v3452_v14  ;;  %v3474_v53 = vmul.f32 %v6127_v37, %v3453_v46  ;;  %v4327_v10 = vld [vmem:[%s6233_s13] ss:$0 sm:$0xff] }
 0xf17   :  { %v3494_v56 = vadd.f32 %v6131_v3, %v3473_v29  ;;  %v3495_v26 = vadd.f32 %v6133_v25, %v3474_v53 }
 0xf19   :  { %v3502_v63 = vpack.c.bf16 %v3494_v56, %v3492_v59  ;;  %v3503_v35 = vpack.c.bf16 %v3495_v26, %v3493_v24 }
 0xf1b   :  { %3655 = vmatmul.bf16.gmra.mxu2 %v3502_v63  ;;  %3684 = vmatmul.bf16.gmra.mxu3 %v3503_v35 }
 0xf4f   :  { %v3641_v47 = vpop.f32.mrf.mxu2  ;;  %v3670_v45 = vpop.f32.mrf.mxu3 }
 0xf50   :  { %v3671_v44 = vadd.f32 %v3670_v45, %v3641_v47 }
 0xf52   :  { %v3690_v37 = vadd.f32 %v3671_v44, %v5717_v1 }
 0xf54   :  { %v3702_v50 = vadd.f32 %v4327_v10, %v3690_v37 }
 0xf56   :  { %3710 = vst [vmem:[%s6234_s14] sm:$0xff] %v3702_v50 }
 0xf57   :  { %v3643_v3 = vpop.f32.mrf.mxu2  ;;  %v3672_v25 = vpop.f32.mrf.mxu3 }
 0xf58   :  { %v3673_v30 = vadd.f32 %v3672_v25, %v3643_v3 }
 0xf5a   :  { %v3691_v27 = vadd.f32 %v3673_v30, %v5726_v33 }
 0xf5c   :  { %v3703_v58 = vadd.f32 %v4327_v10, %v3691_v27 }
 0xf5e   :  { %3711 = vst [vmem:[%s6234_s14 + $0x8] sm:$0xff] %v3703_v58 }
 0xf5f   :  { %v3646_v17 = vpop.f32.mrf.mxu2  ;;  %v3675_v55 = vpop.f32.mrf.mxu3 }
 0xf60   :  { %v3676_v43 = vadd.f32 %v3675_v55, %v3646_v17 }
 0xf62   :  { %v3692_v1 = vadd.f32 %v3676_v43, %v5737_v23 }
 0xf64   :  { %v3704_v21 = vadd.f32 %v4327_v10, %v3692_v1 }
 0xf66   :  { %3712 = vst [vmem:[%s6234_s14 + $0x10] sm:$0xff] %v3704_v21 }
 0xf67   :  { %v3648_v42 = vpop.f32.mrf.mxu2  ;;  %v3677_v62 = vpop.f32.mrf.mxu3 }
 0xf68   :  { %v3678_v57 = vadd.f32 %v3677_v62, %v3648_v42 }
 0xf6a   :  { %v3693_v33 = vadd.f32 %v3678_v57, %v5746_v61 }
 0xf6c   :  { %v3705_v60 = vadd.f32 %v4327_v10, %v3693_v33 }
 0xf6e   :  { %3713 = vst [vmem:[%s6234_s14 + $0x18] sm:$0xff] %v3705_v60 }
 0xf87   :  { %v3651_v34 = vpop.f32.mrf.mxu2  ;;  %v3680_v2 = vpop.f32.mrf.mxu3 }
 0xf88   :  { %v3681_v22 = vadd.f32 %v3680_v2, %v3651_v34 }
 0xf8a   :  { %v3694_v23 = vadd.f32 %v3681_v22, %v5758_v12 }
 0xf8c   :  { %v3706_v39 = vadd.f32 %v4327_v10, %v3694_v23 }
 0xf8e   :  { %3714 = vst [vmem:[%s6234_s14 + $0x20] sm:$0xff] %v3706_v39 }
 0xf8f   :  { %v3653_v7 = vpop.f32.mrf.mxu2  ;;  %v3682_v4 = vpop.f32.mrf.mxu3 }
 0xf90   :  { %v3683_v31 = vadd.f32 %v3682_v4, %v3653_v7 }
 0xf92   :  { %v3695_v61 = vadd.f32 %v3683_v31, %v5774_v16 }
 0xf94   :  { %v3707_v38 = vadd.f32 %v4327_v10, %v3695_v61 }
 0xf96   :  { %3715 = vst [vmem:[%s6234_s14 + $0x28] sm:$0xff] %v3707_v38 }
 0xf9e   :  { %v3656_v18 = vpop.f32.mrf.mxu2  ;;  %v3685_v0 = vpop.f32.mrf.mxu3 }
 0xf9f   :  { %v3686_v5 = vadd.f32 %v3685_v0, %v3656_v18 }
 0xfa1   :  { %v3696_v12 = vadd.f32 %v3686_v5, %v5789_v36 }
 0xfa3   :  { %v3708_v13 = vadd.f32 %v4327_v10, %v3696_v12 }
 0xfa5   :  { %3716 = vst [vmem:[%s6234_s14 + $0x30] sm:$0xff] %v3708_v13 }
 0xfa6   :  { %v3658_v19 = vpop.f32.mrf.mxu2  ;;  %v3687_v20 = vpop.f32.mrf.mxu3 }
 0xfa7   :  { %v3688_v51 = vadd.f32 %v3687_v20, %v3658_v19 }
 0xfa9   :  { %v3697_v16 = vadd.f32 %v3688_v51, %v5798_v32 }
 0xfab   :  { %v3709_v15 = vadd.f32 %v4327_v10, %v3697_v16 }
 0xfad   :  { %3717 = vst [vmem:[%s6234_s14 + $0x38] sm:$0xff] %v3709_v15 }
 0xfae   :  { %3722 = vsyncpa [#allocation3], 1 }
 0xfaf   :  { %3723 = vsyncpa [#allocation5], 1 }
 0xfb0   :  { %3724 = vsyncpa [#allocation8], 1 }

// kernel: closed_call.56
= control target key start
LH: loop header
LB: loop body
LE: loop exit
PB: predicated region body
PF: predicated region fallthrough
CT: control target
= control target key end

     0   :  { %v45_v0 = vmov 0   ;;  %v46_v8 = vmov 0.0   ;;  %s79_s2 = inlined_call_operand.vmem [shape: f32[2,1], index: 2, kind: input, shape index: {}]   ;;  %s80_s1 = inlined_call_operand.vmem [shape: f32[2,1], index: 1, kind: input, shape index: {}]   ;;  %s81_s0 = inlined_call_operand.vmem [shape: f32[2,128], index: 0, kind: input, shape index: {}]   ;;  %s82_s3 = inlined_call_operand.vmem [shape: f32[2,128], index: 3, kind: output, shape index: {}]  }
   0x1   :  { %42 = vset.pattern.permute.xlu0 %v45_v0  ;;  %v24_v1 = vld [vmem:[%s79_s2] sm:$0x3] }
   0x2   :  { %27 = vperm.xlu0 %42, %v24_v1   ;;  %v15_v2 = vld [vmem:[%s80_s1] sm:$0x3] }
   0x3   :  { %v14_v3 = vld [vmem:[%s81_s0] sm:$0x3] }
   0xa   :  { %18 = vperm.xlu0 %42, %v15_v2  }
  0x74   :  { %v28_v4 = vpop.permute.xlu0 %27 }
  0x75   :  { %v30_v5 = vsub.f32 %v14_v3, %v28_v4 }
  0x77   :  { %v31_v6 = vmul.f32 1.442695, %v30_v5 }
  0x79   :  { %43 = vpow2.f32 %v31_v6 }
  0x7c   :  { %v19_v7 = vpop.permute.xlu0 %18 }
  0x7d   :  { %vm21_vm0 = vcmp.ge.f32.partialorder %v14_v3, %v19_v7 }
  0x7e   :  { %v39_v9 = vsel %vm21_vm0, 1.0, %v46_v8 }
  0x7f   :  { %v44_v10 = vpop.eup %43 }
  0x80   :  { %v33_v11 = vmul.f32 %v44_v10, %v39_v9 }
  0x82   :  { %34 = vst [vmem:[%s82_s3] sm:$0x3] %v33_v11 }

// kernel: closed_call.53
= control target key start
LH: loop header
LB: loop body
LE: loop exit
PB: predicated region body
PF: predicated region fallthrough
CT: control target
= control target key end

     0   :  { %s5801_s0 = inlined_call_operand.<no memory space> [shape: s32[1], index: 0, kind: input, shape index: {}]   ;;  %s5802_s1 = inlined_call_operand.vmem [shape: f32[4,128], index: 1, kind: input, shape index: {}]   ;;  %s5803_s2 = inlined_call_operand.vmem [shape: f32[8,2,4,128], index: 2, kind: input, shape index: {}, may-alias: {2,22}]   ;;  %s5804_s3 = inlined_call_operand.vmem [shape: f32[4,16,256], index: 3, kind: input, shape index: {}]   ;;  %s5805_s4 = inlined_call_operand.vmem [shape: f32[4,16], index: 4, kind: input, shape index: {}]   ;;  %s5806_s5 = inlined_call_operand.vmem [shape: f32[5,128], index: 5, kind: input, shape index: {}]   ;;  %s5807_s6 = inlined_call_operand.vmem [shape: f32[5,128], index: 6, kind: input, shape index: {}]   ;;  %s5808_s7 = inlined_call_operand.vmem [shape: bf16[128,384], index: 7, kind: input, shape index: {}]   ;;  %s5809_s8 = inlined_call_operand.vmem [shape: f32[1,384], index: 8, kind: input, shape index: {}]   ;;  %s5810_s9 = inlined_call_operand.vmem [shape: bf16[128,128], index: 9, kind: input, shape index: {}]   ;;  %s5811_s10 = inlined_call_operand.vmem [shape: f32[1,128], index: 10, kind: input, shape index: {}, may-alias: {10,12,14,20}]   ;;  %s5812_s11 = inlined_call_operand.vmem [shape: bf16[128,128], index: 11, kind: input, shape index: {}]   ;;  %s5813_s12 = inlined_call_operand.vmem [shape: f32[1,128], index: 12, kind: input, shape index: {}, may-alias: {10,12,14,20}]   ;;  %s5814_s13 = inlined_call_operand.vmem [shape: bf16[128,128], index: 13, kind: input, shape index: {}]   ;;  %s5815_s14 = inlined_call_operand.vmem [shape: f32[1,128], index: 14, kind: input, shape index: {}, may-alias: {10,12,14,20}]   ;;  %s5816_s15 = inlined_call_operand.vmem [shape: bf16[128,512], index: 15, kind: input, shape index: {}]   ;;  %s5817_s16 = inlined_call_operand.vmem [shape: f32[1,512], index: 16, kind: input, shape index: {}]   ;;  %s5818_s17 = inlined_call_operand.vmem [shape: f32[1,256], index: 17, kind: input, shape index: {}]   ;;  %s5819_s18 = inlined_call_operand.vmem [shape: f32[1,256], index: 18, kind: input, shape index: {}]   ;;  %s5820_s19 = inlined_call_operand.vmem [shape: bf16[256,128], index: 19, kind: input, shape index: {}]   ;;  %s5821_s20 = inlined_call_operand.vmem [shape: f32[1,128], index: 20, kind: input, shape index: {}, may-alias: {10,12,14,20}]   ;;  %s5822_s21 = inlined_call_operand.vmem [shape: f32[4,128], index: 21, kind: output, shape index: {0}]   ;;  %s5823_s22 = inlined_call_operand.vmem [shape: f32[8,2,4,128], index: 22, kind: output, shape index: {1}, may-alias: {2,22}]   ;;  %s5824_s23 = inlined_call_operand.hbm [shape: f32[1,2,4,128], index: 23, kind: output, shape index: {2}]  }
   0x1   :  { %5836 = sst [smem:[#allocation13_spill]] %s5801_s0 }
   0x2   :  { %5837 = sst [smem:[#allocation14_spill]] %s5802_s1 }
   0x3   :  { %5838 = sst [smem:[#allocation15_spill]] %s5803_s2 }
   0x4   :  { %5839 = sst [smem:[#allocation16_spill]] %s5804_s3 }
   0x5   :  { %5840 = sst [smem:[#allocation17_spill]] %s5805_s4 }
   0x6   :  { %5841 = sst [smem:[#allocation18_spill]] %s5806_s5 }
   0x7   :  { %5842 = sst [smem:[#allocation19_spill]] %s5807_s6 }
   0x8   :  { %5843 = sst [smem:[#allocation20_spill]] %s5808_s7 }
   0x9   :  { %30 = vsyncpa [#allocation7], 0  ;;  %s5844_s24 = sld [smem:[#allocation15_spill]]  ;;  %vm5831_vm0 = vcmask 1043456  }
   0xa   :  { %s5845_s1 = sld [smem:[#allocation14_spill]] }
   0xf   :  { %v81_v0 = vld [vmem:[%s5844_s24] sm:$0xff]  ;;  %v83_v1 = vld [vmem:[%s5844_s24 + $0x8] sm:$0xff]  ;;  %v85_v2 = vld [vmem:[%s5844_s24 + $0x10] sm:$0xff] }
  0x10   :  { %82 = vst [vmem:[#allocation2] sm:$0xff] %v81_v0  ;;  %v87_v3 = vld [vmem:[%s5844_s24 + $0x18] sm:$0xff]  ;;  %v89_v4 = vld [vmem:[%s5844_s24 + $0x20] sm:$0xff]  ;;  %v91_v5 = vld [vmem:[%s5844_s24 + $0x28] sm:$0xff] }
  0x11   :  { %84 = vst [vmem:[#allocation2 + $0x8] sm:$0xff] %v83_v1  ;;  %v93_v6 = vld [vmem:[%s5844_s24 + $0x30] sm:$0xff]  ;;  %v95_v7 = vld [vmem:[%s5844_s24 + $0x38] sm:$0xff]  ;;  %v4347_v8 = vld [vmem:[%s5845_s1] sm:$0xf] }
  0x12   :  { %86 = vst [vmem:[#allocation2 + $0x10] sm:$0xff] %v85_v2 }
  0x13   :  { %88 = vst [vmem:[#allocation2 + $0x18] sm:$0xff] %v87_v3 }
  0x14   :  { %90 = vst [vmem:[#allocation2 + $0x20] sm:$0xff] %v89_v4 }
  0x15   :  { %92 = vst [vmem:[#allocation2 + $0x28] sm:$0xff] %v91_v5 }
  0x16   :  { %94 = vst [vmem:[#allocation2 + $0x30] sm:$0xff] %v93_v6 }
  0x17   :  { %96 = vst [vmem:[#allocation2 + $0x38] sm:$0xff] %v95_v7 }
  0x18   :  { %102 = vsyncadd [#allocation3], 1024  ;;  %v107_v9 = vsel %vm5831_vm0, %v4347_v8, 0.0  ;;  %v4192_v10 = vmov 128.0   ;;  %s5846_s6 = sld [smem:[#allocation20_spill]] }
  0x19   :  { %108 = vadd.xlane.f32.xlu0 %v107_v9  ;;  %3987 = vrcp.f32 %v4192_v10  ;;  %s5847_s1 = sld [smem:[#allocation18_spill]] }
  0x1a   :  { %s5848_s24 = sld [smem:[#allocation19_spill]] }
  0x1e   :  { %v3508_v11 = vld [vmem:[%s5846_s6 + $0xa8] sm:$0xf]  ;;  %v3903_v12 = vld [vmem:[%s5846_s6 + $0xb0] sm:$0xf0]  ;;  %v3902_v13 = vld [vmem:[%s5846_s6 + $0xac] sm:$0xf] }
  0x1f   :  { %v3509_v14 = vor.u32 %v3903_v12, %v3508_v11  ;;  %v3510_v15 = vld [vmem:[%s5846_s6 + $0xb4] sm:$0xf0]  ;;  %v3516_v16 = vld [vmem:[%s5846_s6 + $0xb0] sm:$0xf]  ;;  %v3904_v17 = vld [vmem:[%s5846_s6 + $0xb8] sm:$0xf0]  ;;  %v3988_v20 = vpop.eup %3987 }
  0x20   :  { %v3513_v18 = vor.u32 %v3902_v13, %v3510_v15  ;;  %v3517_v19 = vor.u32 %v3904_v17, %v3516_v16  ;;  %v111_v21 = vmul.f32 128.0, %v3988_v20  ;;  %vm115_vm1 = vweird.f32 %v3988_v20  ;;  %v3496_v31 = vld [vmem:[%s5846_s6 + $0x90] sm:$0xf]  ;;  %v3900_v32 = vld [vmem:[%s5846_s6 + $0x98] sm:$0xf0] }
  0x21   :  { %309 = vmatpush.bf16.msra.mxu0 %v3509_v14  ;;  %v3899_v33 = vld [vmem:[%s5846_s6 + $0x94] sm:$0xf]  ;;  %v3497_v34 = vor.u32 %v3900_v32, %v3496_v31  ;;  %v3498_v35 = vld [vmem:[%s5846_s6 + $0x9c] sm:$0xf0]  ;;  %v3504_v36 = vld [vmem:[%s5846_s6 + $0x98] sm:$0xf] }
  0x22   :  { %322 = vmatpush.bf16.msra.mxu1 %v3513_v18  ;;  %335 = vmatpush.bf16.msra.mxu2 %v3517_v19  ;;  %v112_v22 = vsub.f32 1.0, %v111_v21  ;;  %v3901_v37 = vld [vmem:[%s5846_s6 + $0xa0] sm:$0xf0]  ;;  %v3501_v38 = vor.u32 %v3899_v33, %v3498_v35  ;;  %v3484_v40 = vld [vmem:[%s5846_s6 + $0x78] sm:$0xf] }
  0x23   :  { %v3505_v39 = vor.u32 %v3901_v37, %v3504_v36  ;;  %v3897_v41 = vld [vmem:[%s5846_s6 + $0x80] sm:$0xf0]  ;;  %v3896_v42 = vld [vmem:[%s5846_s6 + $0x7c] sm:$0xf]  ;;  %v3486_v44 = vld [vmem:[%s5846_s6 + $0x84] sm:$0xf0] }
  0x24   :  { %v113_v23 = vmul.f32 %v3988_v20, %v112_v22  ;;  %v3485_v43 = vor.u32 %v3897_v41, %v3484_v40  ;;  %v3492_v45 = vld [vmem:[%s5846_s6 + $0x80] sm:$0xf]  ;;  %v3898_v46 = vld [vmem:[%s5846_s6 + $0x88] sm:$0xf0]  ;;  %v3489_v47 = vor.u32 %v3896_v42, %v3486_v44  ;;  %v3893_v51 = vld [vmem:[%s5846_s6 + $0x64] sm:$0xf] }
  0x25   :  { %310 = vmatpush.bf16.msra.mxu0 %v3497_v34  ;;  %v3493_v48 = vor.u32 %v3898_v46, %v3492_v45  ;;  %v3472_v49 = vld [vmem:[%s5846_s6 + $0x60] sm:$0xf]  ;;  %v3894_v50 = vld [vmem:[%s5846_s6 + $0x68] sm:$0xf0]  ;;  %v3474_v53 = vld [vmem:[%s5846_s6 + $0x6c] sm:$0xf0] }
  0x26   :  { %v114_v24 = vadd.f32 %v3988_v20, %v113_v23  ;;  %323 = vmatpush.bf16.msra.mxu1 %v3501_v38  ;;  %336 = vmatpush.bf16.msra.mxu2 %v3505_v39  ;;  %v3473_v52 = vor.u32 %v3894_v50, %v3472_v49  ;;  %v3480_v54 = vld [vmem:[%s5846_s6 + $0x68] sm:$0xf]  ;;  %v3895_v55 = vld [vmem:[%s5846_s6 + $0x70] sm:$0xf0]  ;;  %v3477_v56 = vor.u32 %v3893_v51, %v3474_v53  ;;  %v3890_v60 = vld [vmem:[%s5846_s6 + $0x4c] sm:$0xf] }
  0x27   :  { %v3481_v57 = vor.u32 %v3895_v55, %v3480_v54  ;;  %v3460_v58 = vld [vmem:[%s5846_s6 + $0x48] sm:$0xf]  ;;  %v3891_v59 = vld [vmem:[%s5846_s6 + $0x50] sm:$0xf0]  ;;  %v3462_v62 = vld [vmem:[%s5846_s6 + $0x54] sm:$0xf0] }
  0x28   :  { %v4369_v25 = vsel %vm115_vm1, %v3988_v20, %v114_v24  ;;  %v3461_v61 = vor.u32 %v3891_v59, %v3460_v58  ;;  %v3468_v63 = vld [vmem:[%s5846_s6 + $0x50] sm:$0xf]  ;;  %v3892_v0 = vld [vmem:[%s5846_s6 + $0x58] sm:$0xf0]  ;;  %v3465_v1 = vor.u32 %v3890_v60, %v3462_v62  ;;  %v3887_v5 = vld [vmem:[%s5846_s6 + $0x34] sm:$0xf] }
  0x29   :  { %311 = vmatpush.bf16.msra.mxu0 %v3485_v43  ;;  %v3469_v2 = vor.u32 %v3892_v0, %v3468_v63  ;;  %v3448_v3 = vld [vmem:[%s5846_s6 + $0x30] sm:$0xf]  ;;  %v3888_v4 = vld [vmem:[%s5846_s6 + $0x38] sm:$0xf0]  ;;  %v3450_v7 = vld [vmem:[%s5846_s6 + $0x3c] sm:$0xf0] }
  0x2a   :  { %324 = vmatpush.bf16.msra.mxu1 %v3489_v47  ;;  %337 = vmatpush.bf16.msra.mxu2 %v3493_v48  ;;  %v3449_v6 = vor.u32 %v3888_v4, %v3448_v3  ;;  %v3456_v9 = vld [vmem:[%s5846_s6 + $0x38] sm:$0xf]  ;;  %v3889_v10 = vld [vmem:[%s5846_s6 + $0x40] sm:$0xf0]  ;;  %v3453_v11 = vor.u32 %v3887_v5, %v3450_v7  ;;  %v3884_v15 = vld [vmem:[%s5846_s6 + $0x1c] sm:$0xf] }
  0x2b   :  { %v3457_v12 = vor.u32 %v3889_v10, %v3456_v9  ;;  %v3436_v13 = vld [vmem:[%s5846_s6 + $0x18] sm:$0xf]  ;;  %v3885_v14 = vld [vmem:[%s5846_s6 + $0x20] sm:$0xf0]  ;;  %v3438_v17 = vld [vmem:[%s5846_s6 + $0x24] sm:$0xf0] }
  0x2c   :  { %v3437_v16 = vor.u32 %v3885_v14, %v3436_v13  ;;  %v3444_v18 = vld [vmem:[%s5846_s6 + $0x20] sm:$0xf]  ;;  %v3886_v19 = vld [vmem:[%s5846_s6 + $0x28] sm:$0xf0]  ;;  %v3441_v20 = vor.u32 %v3884_v15, %v3438_v17  ;;  %v3881_v24 = vld [vmem:[%s5846_s6 + $0x4] sm:$0xf] }
  0x2d   :  { %312 = vmatpush.bf16.msra.mxu0 %v3473_v52  ;;  %v3445_v21 = vor.u32 %v3886_v19, %v3444_v18  ;;  %v3424_v22 = vld [vmem:[%s5846_s6] sm:$0xf]  ;;  %v3882_v23 = vld [vmem:[%s5846_s6 + $0x8] sm:$0xf0] }
  0x2e   :  { %325 = vmatpush.bf16.msra.mxu1 %v3477_v56  ;;  %338 = vmatpush.bf16.msra.mxu2 %v3481_v57  ;;  %v3985_v42 = vld [vmem:[%s5847_s1] ss:$0 sm:$0xff] }
  0x2f   :  { %v3986_v45 = vld [vmem:[%s5848_s24] ss:$0 sm:$0xff] }
  0x30   :  { %v173_v49 = vld [vmem:[%s5809_s8] sm:$0x7] }
  0x31   :  { %313 = vmatpush.bf16.msra.mxu0 %v3461_v61  ;;  %v175_v50 = vperm.slane %v173_v49, 0  ;;  %v176_v51 = vperm.slane %v173_v49, 1  ;;  %v177_v55 = vperm.slane %v173_v49, 2 }
  0x32   :  { %326 = vmatpush.bf16.msra.mxu1 %v3465_v1  ;;  %339 = vmatpush.bf16.msra.mxu2 %v3469_v2 }
  0x35   :  { %314 = vmatpush.bf16.msra.mxu0 %v3449_v6 }
  0x36   :  { %327 = vmatpush.bf16.msra.mxu1 %v3453_v11  ;;  %340 = vmatpush.bf16.msra.mxu2 %v3457_v12 }
  0x39   :  { %315 = vmatpush.bf16.msra.mxu0 %v3437_v16 }
  0x3a   :  { %328 = vmatpush.bf16.msra.mxu1 %v3441_v20  ;;  %341 = vmatpush.bf16.msra.mxu2 %v3445_v21 }
  0x8c   :  { %v109_v26 = vpop.xlane.xlu0 %108 }
  0x8d   :  { %v117_v27 = vmul.f32 %v4369_v25, %v109_v26  ;;  %v3425_v26 = vor.u32 %v3882_v23, %v3424_v22 }
  0x8f   :  { %v4373_v28 = vsub.f32 %v4347_v8, %v117_v27  ;;  %v3426_v27 = vld [vmem:[%s5846_s6 + $0xc] sm:$0xf0]  ;;  %316 = vmatpush.bf16.msra.mxu0 %v3425_v26 }
  0x90   :  { %v3429_v31 = vor.u32 %v3881_v24, %v3426_v27 }
  0x91   :  { %v119_v29 = vmul.f32 %v4373_v28, %v4373_v28 }
  0x92   :  { %329 = vmatpush.bf16.msra.mxu1 %v3429_v31 }
  0x93   :  { %v120_v30 = vsel %vm5831_vm0, %v119_v29, 0.0  ;;  %v3432_v29 = vld [vmem:[%s5846_s6 + $0x8] sm:$0xf] }
  0x94   :  { %121 = vadd.xlane.f32.xlu0 %v120_v30  ;;  %v3883_v30 = vld [vmem:[%s5846_s6 + $0x10] sm:$0xf0] }
  0x95   :  { %v3433_v32 = vor.u32 %v3883_v30, %v3432_v29 }
  0x97   :  { %342 = vmatpush.bf16.msra.mxu2 %v3433_v32 }
 0x107   :  { %v122_v33 = vpop.xlane.xlu0 %121 }
 0x108   :  { %v123_v34 = vmul.f32 %v122_v33, %v4369_v25 }
 0x10a   :  { %v124_v35 = vadd.f32 1e-05, %v123_v34 }
 0x10c   :  { %3989 = vrsqrt.f32 %v124_v35  ;;  %vm131_vm3 = vweird.f32 %v124_v35 }
 0x112   :  { %v3990_v36 = vpop.eup %3989 }
 0x113   :  { %v126_v37 = vmul.f32 %v3990_v36, %v124_v35  ;;  %vm132_vm2 = vweird.f32 %v3990_v36 }
 0x114   :  { %vm133_vm4 = vmor %vm131_vm3, %vm132_vm2 }
 0x115   :  { %v127_v38 = vmul.f32 %v3990_v36, %v126_v37 }
 0x117   :  { %v128_v39 = vmul.f32 0.5, %v127_v38 }
 0x119   :  { %v129_v40 = vsub.f32 1.5, %v128_v39 }
 0x11b   :  { %v130_v41 = vmul.f32 %v3990_v36, %v129_v40 }
 0x11d   :  { %v134_v43 = vsel %vm133_vm4, %v3990_v36, %v130_v41 }
 0x11e   :  { %v135_v44 = vmul.f32 %v134_v43, %v4373_v28 }
 0x120   :  { %v137_v46 = vmul.f32 %v3985_v42, %v135_v44 }
 0x122   :  { %v139_v47 = vadd.f32 %v3986_v45, %v137_v46 }
 0x124   :  { %v140_v48 = vpack.c.bf16 %v139_v47, %v139_v47 }
 0x126   :  { %317 = vmatmul.bf16.vlgmr.msra.gmra.mxu0 %v140_v48  ;;  %330 = vmatmul.bf16.vlgmr.msra.gmra.mxu1 %v140_v48 }
 0x127   :  { %343 = vmatmul.bf16.vlgmr.msra.gmra.mxu2 %v140_v48 }
 0x1a3   :  { %v318_v52 = vpop.f32.mrf.mxu0  ;;  %v331_v53 = vpop.f32.mrf.mxu1 }
 0x1a4   :  { %v4515_v54 = vadd.f32 %v318_v52, %v175_v50  ;;  %v4517_v28 = vadd.f32 %v331_v53, %v176_v51 }
 0x1a6   :  { %348 = vst [vmem:[#allocation6] sm:$0xf] %v4517_v28 }
 0x1aa   :  { %v344_v56 = vpop.f32.mrf.mxu2 }
 0x1ab   :  { %v4520_v57 = vadd.f32 %v344_v56, %v177_v55  ;;  %v320_v58 = vpop.f32.mrf.mxu0  ;;  %v333_v59 = vpop.f32.mrf.mxu1 }
 0x1ad   :  { %350 = vst [vmem:[#allocation6 + $0x4] sm:$0xf] %v4520_v57 }
 0x1b2   :  { %v346_v60 = vpop.f32.mrf.mxu2 }
 0x1b3   :  { %4186 = dma.done.wait [#allocation3], 1024 }
 0x1b4   :  { %4187 = vsyncadd [#allocation3], 4294966272  ;;  %s5849_s29 = sld [smem:[#allocation13_spill]]  ;;  %v385_v61 = vld [vmem:[#allocation6] sm:$0xff]  ;;  %v409_v62 = vlaneseq }
 0x1b6   :  { %v4533_v0 = vshrl.u32 %v409_v62, 7 }
 0x1ba   :  { %s3518_s3 = sshll.u32 %s5849_s29, 3  ;;  %v411_v63 = vstv %s5849_s29 }
 0x1bb   :  { %s357_s30 = scalar_lea.vmem %s5823_s22, %s3518_s3 }
 0x1bc   :  { %386 = vst [vmem:[%s357_s30] sm:$0xff] %v385_v61 }
 0x1bd   :  { %392 = vsyncadd [#allocation3 + $0x1], 128  ;;  %v397_v1 = vld [vmem:[#allocation2 + $0x10] sm:$0xf]  ;;  %vm412_vm5 = vcmp.eq.s32.totalorder %v4533_v0, %v411_v63  ;;  %v393_v2 = vld [vmem:[#allocation2] sm:$0xf]  ;;  %3993 = vset.pattern.permute.xlu2 %v4533_v0  ;;  %3992 = vset.pattern.permute.xlu1 %v4533_v0 }
 0x1be   :  { %v4193_v3 = vmov 0   ;;  %3991 = vset.pattern.permute.xlu0 %v4533_v0  ;;  %v401_v10 = vld [vmem:[#allocation2 + $0x20] sm:$0xf]  ;;  %v399_v14 = vld [vmem:[#allocation2 + $0x18] sm:$0xf]  ;;  %s4194_s22 = smov 96  }
 0x1bf   :  { %v413_v4 = vsel %vm412_vm5, 1, %v4193_v3  ;;  %v395_v21 = vld [vmem:[#allocation2 + $0x8] sm:$0xf]  ;;  %v407_v37 = vld [vmem:[#allocation2 + $0x38] sm:$0xf]  ;;  %s4195_s2 = smov 64  }
 0x1c0   :  { %v416_v5 = vperm.slane %v413_v4, 2  ;;  %v414_v6 = vperm.slane %v413_v4, 0  ;;  %v417_v7 = vperm.slane %v413_v4, 3  ;;  %v415_v9 = vperm.slane %v413_v4, 1  ;;  %v403_v30 = vld [vmem:[#allocation2 + $0x28] sm:$0xf] }
 0x1c1   :  { %v418_v11 = vperm.slane %v413_v4, 4  ;;  %v419_v15 = vperm.slane %v413_v4, 5  ;;  %v421_v32 = vperm.slane %v413_v4, 7  ;;  %v420_v33 = vperm.slane %v413_v4, 6  ;;  %v405_v39 = vld [vmem:[#allocation2 + $0x30] sm:$0xf] }
 0x1c2   :  { %vm4544_vm6 = vcmp.ne.s32.totalorder %v416_v5, 0  ;;  %vm4548_vm7 = vcmp.ne.s32.totalorder %v414_v6, 0  ;;  %vm4564_vm8 = vcmp.ne.s32.totalorder %v417_v7, 0  ;;  %vm4568_vm9 = vcmp.ne.s32.totalorder %v415_v9, 0  ;;  %s4196_s27 = smov 32   ;;  %s5890_s28 = sld [smem:[#allocation16_spill]] }
 0x1c3   :  { %v448_v16 = vsel %vm4544_vm6, %v4517_v28, %v397_v1  ;;  %v446_v17 = vsel %vm4548_vm7, %v4517_v28, %v393_v2  ;;  %vm4572_vm10 = vcmp.ne.s32.totalorder %v418_v11, 0  ;;  %v449_v26 = vsel %vm4564_vm8, %v4517_v28, %v399_v14  ;;  %v400_v13 = vld [vmem:[#allocation2 + $0x1c] sm:$0xf]  ;;  %s5891_s30 = sld [smem:[#allocation17_spill]] }
 0x1c4   :  { %v4559_v18 = vmul.f32 %v448_v16, %v4515_v54  ;;  %v4562_v19 = vmul.f32 %v446_v17, %v4515_v54  ;;  %v450_v24 = vsel %vm4572_vm10, %v4517_v28, %v401_v10  ;;  %v447_v27 = vsel %vm4568_vm9, %v4517_v28, %v395_v21 }
 0x1c5   :  { %v4590_v29 = vmul.f32 %v450_v24, %v4515_v54  ;;  %vm4592_vm11 = vcmp.ne.s32.totalorder %v419_v15, 0  ;;  %v4599_v34 = vmul.f32 %v449_v26, %v4515_v54  ;;  %v4602_v35 = vmul.f32 %v447_v27, %v4515_v54 }
 0x1c6   :  { %648 = vrot.lane.b32.xlu1 %v4559_v18, %s4194_s22  ;;  %644 = vrot.lane.b32.xlu0 %v4562_v19, %s4194_s22  ;;  %v451_v36 = vsel %vm4592_vm11, %v4517_v28, %v403_v30  ;;  %vm4607_vm12 = vcmp.ne.s32.totalorder %v421_v32, 0  ;;  %vm4611_vm13 = vcmp.ne.s32.totalorder %v420_v33, 0  ;;  %vm5832_vm14 = vcmask 257024  }
 0x1c7   :  { %652 = vrot.lane.b32.xlu2 %v4590_v29, %s4194_s22  ;;  %v4616_v41 = vmul.f32 %v451_v36, %v4515_v54  ;;  %v453_v42 = vsel %vm4607_vm12, %v4517_v28, %v407_v37  ;;  %v452_v43 = vsel %vm4611_vm13, %v4517_v28, %v405_v39  ;;  %vm516_vm15 = vcmask 1041409  }
 0x1c8   :  { %v4631_v44 = vmul.f32 %v453_v42, %v4515_v54  ;;  %v4634_v45 = vmul.f32 %v452_v43, %v4515_v54  ;;  %vm5835_vm1 = vcmask 1042434   ;;  %vm520_vm2 = vcmask 1043459  }
 0x1c9   :  { %vm5833_vm3 = vcmask 1044484   ;;  %vm524_vm4 = vcmask 1045509   ;;  %vm526_vm5 = vcmask 1046534   ;;  %vm528_vm0 = vcmask 1047559  }
 0x1ce   :  { %650 = vrot.lane.b32.xlu1 %v4599_v34, %s4194_s22  ;;  %646 = vrot.lane.b32.xlu0 %v4602_v35, %s4194_s22 }
 0x1cf   :  { %654 = vrot.lane.b32.xlu2 %v4616_v41, %s4194_s22 }
 0x1d6   :  { %658 = vrot.lane.b32.xlu1 %v4631_v44, %s4194_s22  ;;  %656 = vrot.lane.b32.xlu0 %v4634_v45, %s4194_s22 }
 0x1d7   :  { %881 = vrot.lane.b32.xlu2 %v4562_v19, %s4195_s2 }
 0x1de   :  { %883 = vrot.lane.b32.xlu0 %v4602_v35, %s4195_s2  ;;  %885 = vrot.lane.b32.xlu1 %v4559_v18, %s4195_s2 }
 0x1df   :  { %887 = vrot.lane.b32.xlu2 %v4599_v34, %s4195_s2 }
 0x1e6   :  { %889 = vrot.lane.b32.xlu0 %v4590_v29, %s4195_s2  ;;  %891 = vrot.lane.b32.xlu1 %v4616_v41, %s4195_s2 }
 0x1e7   :  { %893 = vrot.lane.b32.xlu2 %v4634_v45, %s4195_s2 }
 0x1ee   :  { %895 = vrot.lane.b32.xlu0 %v4631_v44, %s4195_s2  ;;  %1096 = vrot.lane.b32.xlu1 %v4599_v34, %s4196_s27 }
 0x1ef   :  { %1094 = vrot.lane.b32.xlu2 %v4559_v18, %s4196_s27 }
 0x1f6   :  { %1090 = vrot.lane.b32.xlu0 %v4562_v19, %s4196_s27 }
 0x1fe   :  { %1092 = vrot.lane.b32.xlu0 %v4602_v35, %s4196_s27 }
 0x221   :  { %v653_v50 = vpop.permute.xlu2 %652 }
 0x222   :  { %v680_v56 = vsel %vm5832_vm14, %v653_v50, 0.0 }
 0x229   :  { %v655_v28 = vpop.permute.xlu2 %654 }
 0x22a   :  { %v683_v55 = vsel %vm5832_vm14, %v655_v28, 0.0 }
 0x231   :  { %v882_v5 = vpop.permute.xlu2 %881 }
 0x232   :  { %v905_v7 = vsel %vm5832_vm14, %v882_v5, 0.0 }
 0x238   :  { %v649_v46 = vpop.permute.xlu1 %648  ;;  %v645_v47 = vpop.permute.xlu0 %644 }
 0x239   :  { %v674_v48 = vsel %vm5832_vm14, %v649_v46, 0.0  ;;  %v668_v49 = vsel %vm5832_vm14, %v645_v47, 0.0  ;;  %v888_v14 = vpop.permute.xlu2 %887 }
 0x23a   :  { %675 = vadd.xlane.f32.xlu0 %v674_v48  ;;  %669 = vadd.xlane.f32.xlu1 %v668_v49  ;;  %v914_v16 = vsel %vm5832_vm14, %v888_v14, 0.0 }
 0x240   :  { %v651_v51 = vpop.permute.xlu1 %650  ;;  %v647_v52 = vpop.permute.xlu0 %646 }
 0x241   :  { %v677_v53 = vsel %vm5832_vm14, %v651_v51, 0.0  ;;  %v671_v54 = vsel %vm5832_vm14, %v647_v52, 0.0  ;;  %v894_v33 = vpop.permute.xlu2 %893 }
 0x242   :  { %678 = vadd.xlane.f32.xlu1 %v677_v53  ;;  %672 = vadd.xlane.f32.xlu2 %v671_v54  ;;  %v923_v36 = vsel %vm5832_vm14, %v894_v33, 0.0 }
 0x248   :  { %v659_v58 = vpop.permute.xlu1 %658  ;;  %v657_v60 = vpop.permute.xlu0 %656 }
 0x249   :  { %v689_v59 = vsel %vm5832_vm14, %v659_v58, 0.0  ;;  %v686_v2 = vsel %vm5832_vm14, %v657_v60, 0.0  ;;  %v1095_v37 = vpop.permute.xlu2 %1094  ;;  %v472_v58 = vsel %vm5832_vm14, %v4562_v19, 0.0  ;;  %v490_v19 = vsel %vm5832_vm14, %v4634_v45, 0.0 }
 0x24a   :  { %684 = vadd.xlane.f32.xlu1 %v683_v55  ;;  %681 = vadd.xlane.f32.xlu2 %v680_v56  ;;  %v1120_v46 = vsel %vm5832_vm14, %v1095_v37, 0.0  ;;  %v475_v56 = vsel %vm5832_vm14, %v4602_v35, 0.0 }
 0x24e   :  { %1098 = vrot.lane.b32.xlu0 %v4590_v29, %s4196_s27 }
 0x250   :  { %v884_v61 = vpop.permute.xlu0 %883  ;;  %v886_v9 = vpop.permute.xlu1 %885 }
 0x251   :  { %v908_v6 = vsel %vm5832_vm14, %v884_v61, 0.0  ;;  %v911_v11 = vsel %vm5832_vm14, %v886_v9, 0.0  ;;  %v481_v61 = vsel %vm5832_vm14, %v4599_v34, 0.0 }
 0x252   :  { %690 = vadd.xlane.f32.xlu1 %v689_v59  ;;  %v484_v59 = vsel %vm5832_vm14, %v4590_v29, 0.0  ;;  %v478_v29 = vsel %vm5832_vm14, %v4559_v18, 0.0 }
 0x256   :  { %1100 = vrot.lane.b32.xlu0 %v4616_v41, %s4196_s27 }
 0x258   :  { %v890_v1 = vpop.permute.xlu0 %889  ;;  %v892_v17 = vpop.permute.xlu1 %891 }
 0x259   :  { %v917_v24 = vsel %vm5832_vm14, %v890_v1, 0.0  ;;  %v920_v30 = vsel %vm5832_vm14, %v892_v17, 0.0  ;;  %v493_v1 = vsel %vm5832_vm14, %v4631_v44, 0.0 }
 0x260   :  { %v896_v4 = vpop.permute.xlu0 %895  ;;  %v1097_v27 = vpop.permute.xlu1 %1096 }
 0x261   :  { %v926_v15 = vsel %vm5832_vm14, %v896_v4, 0.0  ;;  %v1123_v32 = vsel %vm5832_vm14, %v1097_v27, 0.0  ;;  %v4711_v4 = vand.u32 127, %v409_v62 }
 0x262   :  { %1102 = vrot.lane.b32.xlu2 %v4634_v45, %s4196_s27  ;;  %v487_v45 = vsel %vm5832_vm14, %v4616_v41, 0.0 }
 0x268   :  { %v1091_v10 = vpop.permute.xlu0 %1090 }
 0x269   :  { %v1114_v39 = vsel %vm5832_vm14, %v1091_v10, 0.0 }
 0x26b   :  { %1104 = vrot.lane.b32.xlu1 %v4631_v44, %s4196_s27 }
 0x270   :  { %v1093_v21 = vpop.permute.xlu0 %1092 }
 0x271   :  { %v1117_v26 = vsel %vm5832_vm14, %v1093_v21, 0.0 }
 0x280   :  { %687 = vadd.xlane.f32.xlu0 %v686_v2 }
 0x288   :  { %909 = vadd.xlane.f32.xlu0 %v908_v6 }
 0x28b   :  { %906 = vadd.xlane.f32.xlu2 %v905_v7 }
 0x290   :  { %912 = vadd.xlane.f32.xlu0 %v911_v11 }
 0x293   :  { %927 = vadd.xlane.f32.xlu2 %v926_v15 }
 0x295   :  { %915 = vadd.xlane.f32.xlu1 %v914_v16 }
 0x298   :  { %918 = vadd.xlane.f32.xlu0 %v917_v24 }
 0x29b   :  { %1118 = vadd.xlane.f32.xlu2 %v1117_v26 }
 0x2a0   :  { %921 = vadd.xlane.f32.xlu0 %v920_v30 }
 0x2a3   :  { %1124 = vadd.xlane.f32.xlu2 %v1123_v32 }
 0x2a8   :  { %924 = vadd.xlane.f32.xlu0 %v923_v36 }
 0x2ad   :  { %v670_v43 = vpop.xlane.xlu1 %669  ;;  %v676_v47 = vpop.xlane.xlu0 %675 }
 0x2ae   :  { %v700_v44 = vperm.slane %v670_v43, %v4711_v4  ;;  %v702_v6 = vperm.slane %v676_v47, %v4711_v4 }
 0x2b0   :  { %1115 = vadd.xlane.f32.xlu0 %v1114_v39 }
 0x2b5   :  { %v673_v42 = vpop.xlane.xlu2 %672  ;;  %v679_v50 = vpop.xlane.xlu1 %678 }
 0x2b6   :  { %v701_v34 = vperm.slane %v673_v42, %v4711_v4  ;;  %v703_v18 = vperm.slane %v679_v50, %v4711_v4 }
 0x2b8   :  { %1121 = vadd.xlane.f32.xlu0 %v1120_v46  ;;  %v708_v5 = vsel %vm516_vm15, %v701_v34, %v700_v44 }
 0x2b9   :  { %v709_v7 = vsel %vm5835_vm1, %v702_v6, %v708_v5 }
 0x2ba   :  { %v710_v10 = vsel %vm520_vm2, %v703_v18, %v709_v7 }
 0x2bd   :  { %v682_v48 = vpop.xlane.xlu2 %681  ;;  %v685_v55 = vpop.xlane.xlu1 %684 }
 0x2be   :  { %v704_v62 = vperm.slane %v682_v48, %v4711_v4  ;;  %v705_v9 = vperm.slane %v685_v55, %v4711_v4 }
 0x2c0   :  { %v1099_v49 = vpop.permute.xlu0 %1098  ;;  %v711_v11 = vsel %vm5833_vm3, %v704_v62, %v710_v10  ;;  %vm5834_vm3 = vcmask 31744  }
 0x2c1   :  { %v1126_v51 = vsel %vm5832_vm14, %v1099_v49, 0.0  ;;  %v712_v17 = vsel %vm524_vm4, %v705_v9, %v711_v11 }
 0x2c2   :  { %1127 = vadd.xlane.f32.xlu0 %v1126_v51 }
 0x2c5   :  { %v1103_v52 = vpop.permute.xlu2 %1102  ;;  %v691_v60 = vpop.xlane.xlu1 %690 }
 0x2c6   :  { %v1132_v53 = vsel %vm5832_vm14, %v1103_v52, 0.0  ;;  %v707_v15 = vperm.slane %v691_v60, %v4711_v4 }
 0x2c7   :  { %1133 = vadd.xlane.f32.xlu2 %v1132_v53 }
 0x2c8   :  { %v1101_v54 = vpop.permute.xlu0 %1100 }
 0x2c9   :  { %v1129_v28 = vsel %vm5832_vm14, %v1101_v54, 0.0 }
 0x2ca   :  { %1130 = vadd.xlane.f32.xlu1 %v1129_v28 }
 0x2cf   :  { %476 = vadd.xlane.f32.xlu2 %v475_v56 }
 0x2d2   :  { %473 = vadd.xlane.f32.xlu1 %v472_v58 }
 0x2d7   :  { %485 = vadd.xlane.f32.xlu2 %v484_v59 }
 0x2da   :  { %482 = vadd.xlane.f32.xlu1 %v481_v61 }
 0x2dd   :  { %v1105_v2 = vpop.permute.xlu1 %1104 }
 0x2de   :  { %v1135_v35 = vsel %vm5832_vm14, %v1105_v2, 0.0  ;;  %vm4732_vm14 = vcmp.le.s32.totalorder %v4533_v0, %v411_v63 }
 0x2df   :  { %1136 = vadd.xlane.f32.xlu0 %v1135_v35  ;;  %494 = vadd.xlane.f32.xlu2 %v493_v1 }
 0x2e2   :  { %491 = vadd.xlane.f32.xlu1 %v490_v19 }
 0x2e7   :  { %479 = vadd.xlane.f32.xlu0 %v478_v29 }
 0x2ef   :  { %488 = vadd.xlane.f32.xlu0 %v487_v45 }
 0x2f3   :  { %v688_v14 = vpop.xlane.xlu0 %687 }
 0x2f4   :  { %v706_v41 = vperm.slane %v688_v14, %v4711_v4 }
 0x2f6   :  { %v713_v21 = vsel %vm526_vm5, %v706_v41, %v712_v17 }
 0x2f7   :  { %v714_v24 = vsel %vm528_vm0, %v707_v15, %v713_v21 }
 0x2f8   :  { %v716_v26 = vsel %vm4732_vm14, %v714_v24, -1e+09 }
 0x2f9   :  { %v717_v27 = vsel %vm5834_vm3, %v716_v26, -inf }
 0x2fa   :  { %v718_v30 = vrot.slane %v717_v27, 4 }
 0x2fb   :  { %v910_v32 = vpop.xlane.xlu0 %909 }
 0x2fc   :  { %v719_v33 = vmax.f32 %v717_v27, %v718_v30  ;;  %v938_v56 = vperm.slane %v910_v32, %v4711_v4 }
 0x2fe   :  { %v720_v36 = vrot.slane %v719_v33, 2  ;;  %v907_v48 = vpop.xlane.xlu2 %906 }
 0x2ff   :  { %v937_v54 = vperm.slane %v907_v48, %v4711_v4 }
 0x300   :  { %v721_v63 = vmax.f32 %v719_v33, %v720_v36 }
 0x301   :  { %v945_v61 = vsel %vm516_vm15, %v938_v56, %v937_v54 }
 0x302   :  { %v722_v0 = vrot.slane %v721_v63, 1 }
 0x303   :  { %v913_v37 = vpop.xlane.xlu0 %912 }
 0x304   :  { %v723_v39 = vmax.f32 %v721_v63, %v722_v0  ;;  %v939_v55 = vperm.slane %v913_v37, %v4711_v4 }
 0x306   :  { %v724_v42 = vsub.f32 %v716_v26, %v723_v39  ;;  %v946_v35 = vsel %vm5835_vm1, %v939_v55, %v945_v61  ;;  %v928_v19 = vpop.xlane.xlu2 %927  ;;  %vm5869_vm1 = vcmask 31744  }
 0x307   :  { %v944_v45 = vperm.slane %v928_v19, %v4711_v4 }
 0x308   :  { %v725_v43 = vmul.f32 1.442695, %v724_v42  ;;  %v916_v53 = vpop.xlane.xlu1 %915 }
 0x309   :  { %v940_v58 = vperm.slane %v916_v53, %v4711_v4 }
 0x30a   :  { %4066 = vpow2.f32 %v725_v43 }
 0x30b   :  { %v919_v46 = vpop.xlane.xlu0 %918  ;;  %v947_v29 = vsel %vm520_vm2, %v940_v58, %v946_v35 }
 0x30c   :  { %v941_v60 = vperm.slane %v919_v46, %v4711_v4 }
 0x30e   :  { %v1119_v39 = vpop.xlane.xlu2 %1118 }
 0x30f   :  { %v1147_v61 = vperm.slane %v1119_v39, %v4711_v4 }
 0x310   :  { %v4067_v47 = vpop.eup %4066 }
 0x311   :  { %v727_v49 = vsel %vm5834_vm3, %v4067_v47, 0.0  ;;  %vm5868_vm3 = vcmask 1044484  }
 0x312   :  { %v728_v50 = vrot.slane %v727_v49, 4  ;;  %v948_v5 = vsel %vm5868_vm3, %v941_v60, %v947_v29  ;;  %vm5870_vm3 = vcmask 1042434  }
 0x313   :  { %v922_v51 = vpop.xlane.xlu0 %921 }
 0x314   :  { %v729_v52 = vadd.f32 %v728_v50, %v727_v49  ;;  %v942_v1 = vperm.slane %v922_v51, %v4711_v4 }
 0x316   :  { %v730_v28 = vrot.slane %v729_v52, 2  ;;  %v949_v7 = vsel %vm524_vm4, %v942_v1, %v948_v5  ;;  %v1125_v50 = vpop.xlane.xlu2 %1124 }
 0x317   :  { %v1149_v5 = vperm.slane %v1125_v50, %v4711_v4 }
 0x318   :  { %v731_v59 = vadd.f32 %v730_v28, %v729_v52 }
 0x31a   :  { %v732_v2 = vrot.slane %v731_v59, 1 }
 0x31b   :  { %v925_v34 = vpop.xlane.xlu0 %924 }
 0x31c   :  { %v733_v44 = vadd.f32 %v732_v2, %v731_v59  ;;  %v943_v6 = vperm.slane %v925_v34, %v4711_v4 }
 0x31e   :  { %4068 = vrcp.f32 %v733_v44  ;;  %v950_v62 = vsel %vm526_vm5, %v943_v6, %v949_v7 }
 0x31f   :  { %v951_v18 = vsel %vm528_vm0, %v944_v45, %v950_v62 }
 0x320   :  { %v953_v9 = vsel %vm4732_vm14, %v951_v18, -1e+09 }
 0x321   :  { %v954_v10 = vsel %vm5869_vm1, %v953_v9, -inf }
 0x322   :  { %v955_v11 = vrot.slane %v954_v10, 4 }
 0x323   :  { %v1116_v42 = vpop.xlane.xlu0 %1115 }
 0x324   :  { %v4069_v14 = vpop.eup %4068  ;;  %v956_v41 = vmax.f32 %v954_v10, %v955_v11  ;;  %v1146_v59 = vperm.slane %v1116_v42, %v4711_v4 }
 0x325   :  { %v735_v15 = vmul.f32 %v4069_v14, %v4067_v47 }
 0x326   :  { %v957_v17 = vrot.slane %v956_v41, 2  ;;  %v1154_v2 = vsel %vm516_vm15, %v1147_v61, %v1146_v59 }
 0x327   :  { %v750_v21 = vperm.slane %v735_v15, 2  ;;  %v736_v24 = vperm.slane %v735_v15, 0  ;;  %v743_v26 = vperm.slane %v735_v15, 1  ;;  %v764_v36 = vperm.slane %v735_v15, 4 }
 0x328   :  { %v958_v27 = vmax.f32 %v956_v41, %v957_v17  ;;  %v785_v63 = vperm.slane %v735_v15, 7  ;;  %v757_v37 = vperm.slane %v735_v15, 3  ;;  %v778_v43 = vperm.slane %v735_v15, 6 }
 0x329   :  { %755 = vperm.xlu2 %3993, %v750_v21   ;;  %741 = vperm.xlu0 %3991, %v736_v24   ;;  %v771_v47 = vperm.slane %v735_v15, 5 }
 0x32a   :  { %v959_v30 = vrot.slane %v958_v27, 1  ;;  %748 = vperm.xlu1 %3992, %v743_v26  }
 0x32b   :  { %v1122_v54 = vpop.xlane.xlu0 %1121 }
 0x32c   :  { %v960_v32 = vmax.f32 %v958_v27, %v959_v30  ;;  %v1148_v60 = vperm.slane %v1122_v54, %v4711_v4 }
 0x32e   :  { %v961_v33 = vsub.f32 %v953_v9, %v960_v32  ;;  %v1155_v29 = vsel %vm5870_vm3, %v1148_v60, %v1154_v2  ;;  %vm5872_vm3 = vcmask 31744  }
 0x32f   :  { %v1156_v7 = vsel %vm520_vm2, %v1149_v5, %v1155_v29 }
 0x330   :  { %v962_v0 = vmul.f32 1.442695, %v961_v33 }
 0x331   :  { %769 = vperm.xlu2 %3993, %v764_v36   ;;  %790 = vperm.xlu0 %3991, %v785_v63  }
 0x332   :  { %4070 = vpow2.f32 %v962_v0  ;;  %762 = vperm.xlu1 %3992, %v757_v37  }
 0x335   :  { %v1128_v1 = vpop.xlane.xlu0 %1127 }
 0x336   :  { %v1150_v34 = vperm.slane %v1128_v1, %v4711_v4 }
 0x338   :  { %v4071_v46 = vpop.eup %4070 }
 0x339   :  { %v964_v48 = vsel %vm5869_vm1, %v4071_v46, 0.0  ;;  %783 = vperm.xlu2 %3993, %v778_v43   ;;  %vm5871_vm1 = vcmask 1044484  }
 0x33a   :  { %v965_v49 = vrot.slane %v964_v48, 4  ;;  %776 = vperm.xlu1 %3992, %v771_v47   ;;  %v1134_v58 = vpop.xlane.xlu2 %1133  ;;  %v1157_v10 = vsel %vm5871_vm1, %v1150_v34, %v1156_v7  ;;  %vm5873_vm1 = vcmask 1042434  }
 0x33b   :  { %v1152_v11 = vperm.slane %v1134_v58, %v4711_v4 }
 0x33c   :  { %v966_v51 = vadd.f32 %v965_v49, %v964_v48 }
 0x33d   :  { %v1131_v55 = vpop.xlane.xlu1 %1130 }
 0x33e   :  { %v967_v52 = vrot.slane %v966_v51, 2  ;;  %v1151_v45 = vperm.slane %v1131_v55, %v4711_v4 }
 0x340   :  { %v968_v53 = vadd.f32 %v967_v52, %v966_v51  ;;  %v1158_v14 = vsel %vm524_vm4, %v1151_v45, %v1157_v10 }
 0x341   :  { %v1159_v17 = vsel %vm526_vm5, %v1152_v11, %v1158_v14 }
 0x342   :  { %v969_v28 = vrot.slane %v968_v53, 1  ;;  %v477_v44 = vpop.xlane.xlu2 %476 }
 0x343   :  { %v509_v30 = vperm.slane %v477_v44, %v4711_v4 }
 0x344   :  { %v970_v56 = vadd.f32 %v969_v28, %v968_v53 }
 0x345   :  { %v474_v35 = vpop.xlane.xlu1 %473 }
 0x346   :  { %4072 = vrcp.f32 %v970_v56  ;;  %v508_v27 = vperm.slane %v474_v35, %v4711_v4 }
 0x348   :  { %v517_v42 = vsel %vm516_vm15, %v509_v30, %v508_v27 }
 0x34a   :  { %v486_v32 = vpop.xlane.xlu2 %485 }
 0x34b   :  { %v512_v51 = vperm.slane %v486_v32, %v4711_v4 }
 0x34c   :  { %v4073_v19 = vpop.eup %4072 }
 0x34d   :  { %v4769_v6 = vmul.f32 %v4073_v19, %v4071_v46  ;;  %v483_v24 = vpop.xlane.xlu1 %482 }
 0x34e   :  { %v511_v47 = vperm.slane %v483_v24, %v4711_v4 }
 0x34f   :  { %v987_v62 = vperm.slane %v4769_v6, 2  ;;  %v980_v18 = vperm.slane %v4769_v6, 1  ;;  %v973_v9 = vperm.slane %v4769_v6, 0  ;;  %v1008_v36 = vperm.slane %v4769_v6, 5 }
 0x350   :  { %v1001_v63 = vperm.slane %v4769_v6, 4  ;;  %v994_v37 = vperm.slane %v4769_v6, 3  ;;  %v1015_v53 = vperm.slane %v4769_v6, 6 }
 0x351   :  { %992 = vperm.xlu0 %3991, %v987_v62   ;;  %985 = vperm.xlu2 %3993, %v980_v18  }
 0x352   :  { %978 = vperm.xlu1 %3992, %v973_v9   ;;  %v1137_v41 = vpop.xlane.xlu0 %1136  ;;  %v495_v55 = vpop.xlane.xlu2 %494 }
 0x353   :  { %v1153_v15 = vperm.slane %v1137_v41, %v4711_v4  ;;  %v515_v1 = vperm.slane %v495_v55, %v4711_v4 }
 0x355   :  { %v1160_v21 = vsel %vm528_vm0, %v1153_v15, %v1159_v17  ;;  %v492_v54 = vpop.xlane.xlu1 %491 }
 0x356   :  { %v1162_v26 = vsel %vm4732_vm14, %v1160_v21, -1e+09  ;;  %v514_v60 = vperm.slane %v492_v54, %v4711_v4 }
 0x357   :  { %v1163_v33 = vsel %vm5872_vm3, %v1162_v26, -inf  ;;  %vm5874_vm3 = vcmask 1044484  }
 0x358   :  { %v1164_v0 = vrot.slane %v1163_v33, 4 }
 0x359   :  { %1013 = vperm.xlu0 %3991, %v1008_v36   ;;  %1006 = vperm.xlu2 %3993, %v1001_v63  }
 0x35a   :  { %v1165_v39 = vmax.f32 %v1163_v33, %v1164_v0  ;;  %999 = vperm.xlu1 %3992, %v994_v37   ;;  %v480_v43 = vpop.xlane.xlu0 %479 }
 0x35b   :  { %v510_v46 = vperm.slane %v480_v43, %v4711_v4 }
 0x35c   :  { %v1166_v48 = vrot.slane %v1165_v39, 2 }
 0x35d   :  { %v519_v49 = vsel %vm5873_vm1, %v510_v46, %v517_v42  ;;  %vm5875_vm1 = vcmask 31744  }
 0x35e   :  { %v1167_v50 = vmax.f32 %v1165_v39, %v1166_v48  ;;  %v521_v52 = vsel %vm520_vm2, %v511_v47, %v519_v49  ;;  %v1022_v49 = vperm.slane %v4769_v6, 7 }
 0x35f   :  { %v523_v58 = vsel %vm5874_vm3, %v512_v51, %v521_v52  ;;  %vm5876_vm3 = vmmov %vm5875_vm1 }
 0x360   :  { %v1168_v28 = vrot.slane %v1167_v50, 1 }
 0x361   :  { %1020 = vperm.xlu0 %3991, %v1015_v53  }
 0x362   :  { %v1169_v56 = vmax.f32 %v1167_v50, %v1168_v28  ;;  %v489_v59 = vpop.xlane.xlu0 %488 }
 0x363   :  { %v513_v61 = vperm.slane %v489_v59, %v4711_v4 }
 0x364   :  { %v1170_v2 = vsub.f32 %v1162_v26, %v1169_v56  ;;  %v394_v56 = vld [vmem:[#allocation2 + $0x4] sm:$0xf] }
 0x365   :  { %v525_v35 = vsel %vm524_vm4, %v513_v61, %v523_v58  ;;  %v396_v58 = vld [vmem:[#allocation2 + $0xc] sm:$0xf]  ;;  %v4816_v6 = vsel %vm4548_vm7, %v4520_v57, %v394_v56  ;;  %vm800_vm7 = vcmask 519424  }
 0x366   :  { %v1171_v19 = vmul.f32 1.442695, %v1170_v2  ;;  %v527_v29 = vsel %vm526_vm5, %v514_v60, %v525_v35  ;;  %v4821_v59 = vsel %vm4568_vm9, %v4520_v57, %v396_v58  ;;  %v398_v2 = vld [vmem:[#allocation2 + $0x14] sm:$0xf]  ;;  %vm836_vm9 = vcmask 261120  }
 0x367   :  { %v529_v34 = vsel %vm528_vm0, %v515_v1, %v527_v29  ;;  %vm5877_vm0 = vmmov %vm5875_vm1  ;;  %v4830_v22 = vsel %vm4544_vm6, %v4520_v57, %v398_v2  ;;  %vm1037_vm6 = vcmask 781824  }
 0x368   :  { %4074 = vpow2.f32 %v1171_v19  ;;  %v531_v44 = vsel %vm4732_vm14, %v529_v34, -1e+09 }
 0x369   :  { %v533_v5 = vsel %vm5875_vm1, %v531_v44, -inf }
 0x36a   :  { %v534_v45 = vrot.slane %v533_v5, 4 }
 0x36c   :  { %v535_v7 = vmax.f32 %v533_v5, %v534_v45 }
 0x36e   :  { %v4075_v62 = vpop.eup %4074  ;;  %v536_v18 = vrot.slane %v535_v7, 2 }
 0x36f   :  { %v1173_v4 = vsel %vm5876_vm3, %v4075_v62, 0.0  ;;  %vm5886_vm3 = vcmask 1043456  }
 0x370   :  { %v1174_v9 = vrot.slane %v1173_v4, 4  ;;  %v537_v10 = vmax.f32 %v535_v7, %v536_v18  ;;  %v4837_v7 = vsel %vm4564_vm8, %v4520_v57, %v400_v13  ;;  %v402_v18 = vld [vmem:[#allocation2 + $0x24] sm:$0xf]  ;;  %vm1246_vm8 = vcmask 1044224  }
 0x372   :  { %v1175_v11 = vadd.f32 %v1174_v9, %v1173_v4  ;;  %v538_v14 = vrot.slane %v537_v10, 1 }
 0x374   :  { %v1176_v41 = vrot.slane %v1175_v11, 2  ;;  %v539_v15 = vmax.f32 %v537_v10, %v538_v14  ;;  %v4846_v14 = vsel %vm4572_vm10, %v4520_v57, %v402_v18  ;;  %vm5878_vm10 = vcmask 257024  }
 0x375   :  { %vm5882_vm14 = vmmov %vm5878_vm10 }
 0x376   :  { %v1177_v17 = vadd.f32 %v1176_v41, %v1175_v11  ;;  %v540_v21 = vsub.f32 %v531_v44, %v539_v15  ;;  %v406_v41 = vld [vmem:[#allocation2 + $0x34] sm:$0xf]  ;;  %vm5883_vm4 = vmmov %vm5878_vm10 }
 0x377   :  { %vm5884_vm5 = vmmov %vm5883_vm4 }
 0x378   :  { %v1178_v24 = vrot.slane %v1177_v17, 1  ;;  %v541_v26 = vmul.f32 1.442695, %v540_v21  ;;  %vm5885_vm1 = vmmov %vm5883_vm4 }
 0x37a   :  { %v1179_v16 = vadd.f32 %v1178_v24, %v1177_v17  ;;  %4076 = vpow2.f32 %v541_v26  ;;  %v404_v17 = vld [vmem:[#allocation2 + $0x2c] sm:$0xf]  ;;  %v408_v26 = vld [vmem:[#allocation2 + $0x3c] sm:$0xf] }
 0x37c   :  { %4078 = vrcp.f32 %v1179_v16  ;;  %v4854_v16 = vsel %vm4611_vm13, %v4520_v57, %v406_v41  ;;  %vm5881_vm13 = vmmov %vm5878_vm10 }
 0x380   :  { %v4077_v27 = vpop.eup %4076 }
 0x381   :  { %v543_v30 = vsel %vm5877_vm0, %v4077_v27, 0.0  ;;  %vm5887_vm0 = vmmov %vm5886_vm3 }
 0x382   :  { %v4079_v32 = vpop.eup %4078  ;;  %v544_v33 = vrot.slane %v543_v30, 4 }
 0x383   :  { %v1181_v36 = vmul.f32 %v4079_v32, %v4075_v62  ;;  %v756_v54 = vpop.permute.xlu2 %755  ;;  %v4864_v32 = vsel %vm4607_vm12, %v4520_v57, %v408_v26  ;;  %vm5880_vm12 = vmmov %vm5878_vm10 }
 0x384   :  { %v545_v63 = vadd.f32 %v544_v33, %v543_v30  ;;  %v794_v62 = vmul.f32 %v756_v54, %v4830_v22  ;;  %v4859_v30 = vsel %vm4592_vm11, %v4520_v57, %v404_v17  ;;  %v3908_v17 = vld [vmem:[%s5810_s9 + $0x18] sm:$0xff]  ;;  %vm5879_vm11 = vmmov %vm5878_vm10 }
 0x385   :  { %v1203_v0 = vperm.slane %v1181_v36, 3  ;;  %v1189_v37 = vperm.slane %v1181_v36, 1  ;;  %v1182_v39 = vperm.slane %v1181_v36, 0  ;;  %v1224_v48 = vperm.slane %v1181_v36, 6  ;;  %846 = vmatpush.bf16.msra.mxu3 %v3908_v17 }
 0x386   :  { %v546_v42 = vrot.slane %v545_v63, 2  ;;  %v1196_v50 = vperm.slane %v1181_v36, 2  ;;  %v1217_v53 = vperm.slane %v1181_v36, 5  ;;  %v1210_v28 = vperm.slane %v1181_v36, 4 }
 0x387   :  { %1208 = vperm.xlu0 %3991, %v1203_v0   ;;  %1194 = vperm.xlu2 %3993, %v1189_v37   ;;  %v1231_v34 = vperm.slane %v1181_v36, 7  ;;  %v804_v20 = vsel %vm800_vm7, %v794_v62, 0.0 }
 0x388   :  { %v547_v43 = vadd.f32 %v546_v42, %v545_v63  ;;  %1187 = vperm.xlu1 %3992, %v1182_v39  }
 0x38a   :  { %v548_v46 = vrot.slane %v547_v43, 1 }
 0x38b   :  { %v770_v44 = vpop.permute.xlu2 %769 }
 0x38c   :  { %v549_v47 = vadd.f32 %v548_v46, %v547_v43  ;;  %v796_v24 = vmul.f32 %v770_v44, %v4846_v14 }
 0x38e   :  { %4080 = vrcp.f32 %v549_v47  ;;  %v808_v40 = vsel %vm800_vm7, %v796_v24, 0.0 }
 0x38f   :  { %1229 = vperm.xlu0 %3991, %v1224_v48   ;;  %1027 = vperm.xlu2 %3993, %v1022_v49  }
 0x390   :  { %1201 = vperm.xlu1 %3992, %v1196_v50  }
 0x393   :  { %v784_v23 = vpop.permute.xlu2 %783 }
 0x394   :  { %v4081_v51 = vpop.eup %4080  ;;  %v798_v0 = vmul.f32 %v784_v23, %v4854_v16  ;;  %v3907_v23 = vld [vmem:[%s5810_s9 + $0x10] sm:$0xff] }
 0x395   :  { %v4810_v52 = vmul.f32 %v4081_v51, %v4077_v27  ;;  %847 = vmatpush.bf16.msra.mxu3 %v3907_v23 }
 0x396   :  { %v812_v57 = vsel %vm800_vm7, %v798_v0, 0.0 }
 0x397   :  { %1222 = vperm.xlu2 %3993, %v1217_v53   ;;  %v559_v55 = vperm.slane %v4810_v52, 1  ;;  %v552_v61 = vperm.slane %v4810_v52, 0  ;;  %v573_v29 = vperm.slane %v4810_v52, 3  ;;  %v566_v9 = vperm.slane %v4810_v52, 2 }
 0x398   :  { %1215 = vperm.xlu1 %3992, %v1210_v28   ;;  %v594_v11 = vperm.slane %v4810_v52, 6  ;;  %v580_v63 = vperm.slane %v4810_v52, 4  ;;  %v601_v47 = vperm.slane %v4810_v52, 7  ;;  %v587_v50 = vperm.slane %v4810_v52, 5 }
 0x399   :  { %564 = vperm.xlu0 %3991, %v559_v55  }
 0x39b   :  { %v742_v60 = vpop.permute.xlu0 %741 }
 0x39c   :  { %v749_v1 = vpop.permute.xlu1 %748  ;;  %v792_v35 = vmul.f32 %v742_v60, %v4816_v6 }
 0x39d   :  { %v793_v19 = vmul.f32 %v749_v1, %v4821_v59 }
 0x39e   :  { %v801_v5 = vsel %vm800_vm7, %v792_v35, 0.0 }
 0x39f   :  { %557 = vperm.xlu2 %3993, %v552_v61   ;;  %v802_v45 = vsel %vm800_vm7, %v793_v19, 0.0 }
 0x3a0   :  { %1236 = vperm.xlu1 %3992, %v1231_v34   ;;  %v803_v4 = vadd.f32 %v802_v45, %v801_v5 }
 0x3a1   :  { %578 = vperm.xlu0 %3991, %v573_v29  }
 0x3a2   :  { %v805_v21 = vadd.f32 %v804_v20, %v803_v4 }
 0x3a3   :  { %v791_v33 = vpop.permute.xlu0 %790 }
 0x3a4   :  { %v763_v12 = vpop.permute.xlu1 %762  ;;  %v799_v31 = vmul.f32 %v791_v33, %v4864_v32 }
 0x3a5   :  { %v795_v10 = vmul.f32 %v763_v12, %v4837_v7 }
 0x3a6   :  { %v814_v46 = vsel %vm800_vm7, %v799_v31, 0.0 }
 0x3a7   :  { %v806_v15 = vsel %vm800_vm7, %v795_v10, 0.0 }
 0x3a8   :  { %571 = vperm.xlu1 %3992, %v566_v9   ;;  %v807_v27 = vadd.f32 %v806_v15, %v805_v21 }
 0x3a9   :  { %599 = vperm.xlu0 %3991, %v594_v11  }
 0x3aa   :  { %v809_v39 = vadd.f32 %v808_v40, %v807_v27 }
 0x3ab   :  { %v986_v54 = vpop.permute.xlu2 %985 }
 0x3ac   :  { %v777_v36 = vpop.permute.xlu1 %776  ;;  %v1030_v55 = vmul.f32 %v986_v54, %v4821_v59 }
 0x3ad   :  { %v797_v37 = vmul.f32 %v777_v36, %v4859_v30 }
 0x3ae   :  { %v1039_v1 = vsel %vm1037_vm6, %v1030_v55, 0.0 }
 0x3af   :  { %v810_v42 = vsel %vm800_vm7, %v797_v37, 0.0 }
 0x3b0   :  { %v811_v43 = vadd.f32 %v810_v42, %v809_v39  ;;  %585 = vperm.xlu1 %3992, %v580_v63  }
 0x3b2   :  { %v813_v38 = vadd.f32 %v812_v57, %v811_v43 }
 0x3b3   :  { %v1007_v61 = vpop.permute.xlu2 %1006 }
 0x3b4   :  { %v815_v48 = vadd.f32 %v814_v46, %v813_v38  ;;  %v1033_v13 = vmul.f32 %v1007_v61, %v4846_v14 }
 0x3b6   :  { %v816_v49 = vpack.c.bf16 %v815_v48, %v815_v48  ;;  %v1045_v62 = vsel %vm1037_vm6, %v1033_v13, 0.0  ;;  %v3909_v13 = vld [vmem:[%s5810_s9 + $0x20] sm:$0xff] }
 0x3b8   :  { %606 = vperm.xlu1 %3992, %v601_v47   ;;  %822 = vrot.lane.b32.xlu2 %v816_v49, %s4194_s22  ;;  %v3906_v49 = vld [vmem:[%s5810_s9 + $0x8] sm:$0xff] }
 0x3b9   :  { %874 = vmatpush.bf16.msrb.mxu3 %v3906_v49 }
 0x3c0   :  { %592 = vperm.xlu2 %3993, %v587_v50  }
 0x3c3   :  { %v993_v51 = vpop.permute.xlu0 %992 }
 0x3c4   :  { %v979_v53 = vpop.permute.xlu1 %978  ;;  %v1031_v2 = vmul.f32 %v993_v51, %v4830_v22 }
 0x3c5   :  { %v1029_v28 = vmul.f32 %v979_v53, %v4816_v6 }
 0x3c6   :  { %v1041_v19 = vsel %vm1037_vm6, %v1031_v2, 0.0 }
 0x3c7   :  { %v1038_v60 = vsel %vm1037_vm6, %v1029_v28, 0.0 }
 0x3c8   :  { %v1040_v35 = vadd.f32 %v1039_v1, %v1038_v60 }
 0x3ca   :  { %v1042_v34 = vadd.f32 %v1041_v19, %v1040_v35  ;;  %v3910_v35 = vld [vmem:[%s5810_s9 + $0x28] sm:$0xff] }
 0x3cb   :  { %v1014_v56 = vpop.permute.xlu0 %1013 }
 0x3cc   :  { %v1000_v58 = vpop.permute.xlu1 %999  ;;  %v1034_v18 = vmul.f32 %v1014_v56, %v4859_v30  ;;  %v3905_v56 = vld [vmem:[%s5810_s9] sm:$0xff] }
 0x3cd   :  { %v1032_v52 = vmul.f32 %v1000_v58, %v4837_v7  ;;  %875 = vmatpush.bf16.msrb.mxu3 %v3905_v56 }
 0x3ce   :  { %v1047_v9 = vsel %vm1037_vm6, %v1034_v18, 0.0 }
 0x3cf   :  { %v1043_v29 = vsel %vm1037_vm6, %v1032_v52, 0.0 }
 0x3d0   :  { %v1044_v44 = vadd.f32 %v1043_v29, %v1042_v34 }
 0x3d2   :  { %v1046_v12 = vadd.f32 %v1045_v62, %v1044_v44 }
 0x3d3   :  { %v1021_v5 = vpop.permute.xlu0 %1020 }
 0x3d4   :  { %v1035_v4 = vmul.f32 %v1021_v5, %v4854_v16  ;;  %v1048_v11 = vadd.f32 %v1047_v9, %v1046_v12 }
 0x3d6   :  { %v1049_v10 = vsel %vm1037_vm6, %v1035_v4, 0.0 }
 0x3d7   :  { %v1050_v15 = vadd.f32 %v1049_v10, %v1048_v11 }
 0x3e1   :  { %v1195_v45 = vpop.permute.xlu2 %1194 }
 0x3e2   :  { %v1239_v40 = vmul.f32 %v1195_v45, %v4821_v59 }
 0x3e4   :  { %v1248_v31 = vsel %vm1246_vm8, %v1239_v40, 0.0 }
 0x3e9   :  { %v1028_v20 = vpop.permute.xlu2 %1027 }
 0x3ea   :  { %v1036_v41 = vmul.f32 %v1028_v20, %v4864_v32 }
 0x3ec   :  { %v1051_v21 = vsel %vm1037_vm6, %v1036_v41, 0.0 }
 0x3ed   :  { %v1052_v24 = vadd.f32 %v1051_v21, %v1050_v15 }
 0x3ef   :  { %v1053_v26 = vpack.c.bf16 %v1052_v24, %v1052_v24 }
 0x3f1   :  { %1059 = vrot.lane.b32.xlu2 %v1053_v26, %s4195_s2  ;;  %v1223_v63 = vpop.permute.xlu2 %1222 }
 0x3f2   :  { %v1243_v50 = vmul.f32 %v1223_v63, %v4859_v30 }
 0x3f4   :  { %v1256_v58 = vsel %vm1246_vm8, %v1243_v50, 0.0 }
 0x3f9   :  { %v1209_v33 = vpop.permute.xlu0 %1208  ;;  %v558_v47 = vpop.permute.xlu2 %557 }
 0x3fa   :  { %v1188_v27 = vpop.permute.xlu1 %1187  ;;  %v1241_v57 = vmul.f32 %v1209_v33, %v4837_v7  ;;  %v608_v18 = vmul.f32 %v558_v47, %v4816_v6 }
 0x3fb   :  { %v1238_v36 = vmul.f32 %v1188_v27, %v4816_v6 }
 0x3fc   :  { %v1252_v51 = vsel %vm1246_vm8, %v1241_v57, 0.0  ;;  %v616_v11 = vsel %vm5879_vm11, %v608_v18, 0.0  ;;  %v4055_v18 = vld [vmem:[%s5847_s1 + $0x1] ss:$0 sm:$0xff]  ;;  %vm5889_vm11 = vmmov %vm5887_vm0 }
 0x3fd   :  { %v1247_v37 = vsel %vm1246_vm8, %v1238_v36, 0.0 }
 0x3fe   :  { %v1249_v43 = vadd.f32 %v1248_v31, %v1247_v37 }
 0x401   :  { %v1230_v38 = vpop.permute.xlu0 %1229 }
 0x402   :  { %v1202_v0 = vpop.permute.xlu1 %1201  ;;  %v1244_v60 = vmul.f32 %v1230_v38, %v4854_v16 }
 0x403   :  { %v1240_v39 = vmul.f32 %v1202_v0, %v4830_v22 }
 0x404   :  { %v1258_v19 = vsel %vm1246_vm8, %v1244_v60, 0.0 }
 0x405   :  { %v1250_v42 = vsel %vm1246_vm8, %v1240_v39, 0.0 }
 0x406   :  { %v1251_v46 = vadd.f32 %v1250_v42, %v1249_v43  ;;  %v3911_v42 = vld [vmem:[%s5810_s9 + $0x30] sm:$0xff] }
 0x408   :  { %v1253_v54 = vadd.f32 %v1252_v51, %v1251_v46 }
 0x40a   :  { %v1216_v48 = vpop.permute.xlu1 %1215 }
 0x40b   :  { %v1242_v53 = vmul.f32 %v1216_v48, %v4846_v14  ;;  %v565_v1 = vpop.permute.xlu0 %564 }
 0x40c   :  { %v609_v45 = vmul.f32 %v565_v1, %v4821_v59 }
 0x40d   :  { %v1254_v28 = vsel %vm1246_vm8, %v1242_v53, 0.0  ;;  %v4054_v53 = vld [vmem:[%s5811_s10] ss:$0 sm:$0xff] }
 0x40e   :  { %v1255_v55 = vadd.f32 %v1254_v28, %v1253_v54  ;;  %v617_v9 = vsel %vm5878_vm10, %v609_v45, 0.0  ;;  %vm5888_vm10 = vmmov %vm5887_vm0 }
 0x40f   :  { %v618_v41 = vadd.f32 %v617_v9, %v616_v11  ;;  %v4056_v9 = vld [vmem:[%s5848_s24 + $0x1] ss:$0 sm:$0xff] }
 0x410   :  { %v1257_v61 = vadd.f32 %v1256_v58, %v1255_v55 }
 0x412   :  { %v823_v2 = vpop.permute.xlu2 %822  ;;  %v1237_v52 = vpop.permute.xlu1 %1236  ;;  %v1259_v34 = vadd.f32 %v1258_v19, %v1257_v61 }
 0x413   :  { %v1245_v29 = vmul.f32 %v1237_v52, %v4864_v32  ;;  %3527 = vmatmul.msk.bf16.vlgmr.msra.gmra.mxu3 %vm836_vm9, %v823_v2  ;;  %v579_v4 = vpop.permute.xlu0 %578 }
 0x414   :  { %1082 = vmatpush.bf16.msra.mxu3 %v3910_v35  ;;  %v611_v15 = vmul.f32 %v579_v4, %v4837_v7 }
 0x415   :  { %v1260_v44 = vsel %vm1246_vm8, %v1245_v29, 0.0 }
 0x416   :  { %v1261_v5 = vadd.f32 %v1260_v44, %v1259_v34  ;;  %v621_v6 = vsel %vm5881_vm13, %v611_v15, 0.0  ;;  %v3920_v15 = vld [vmem:[%s5812_s11 + $0x38] sm:$0xff] }
 0x417   :  { %1430 = vmatpush.bf16.msrb.mxu1 %v3920_v15 }
 0x418   :  { %v1262_v62 = vpack.c.bf16 %v1261_v5, %v1261_v5  ;;  %1083 = vmatpush.bf16.msra.mxu3 %v3909_v13 }
 0x41a   :  { %1268 = vrot.lane.b32.xlu0 %v1262_v62, %s4196_s27  ;;  %v572_v12 = vpop.permute.xlu1 %571  ;;  %v593_v59 = vpop.permute.xlu2 %592 }
 0x41b   :  { %v610_v10 = vmul.f32 %v572_v12, %v4830_v22  ;;  %v613_v24 = vmul.f32 %v593_v59, %v4859_v30  ;;  %v600_v23 = vpop.permute.xlu0 %599 }
 0x41c   :  { %v614_v63 = vmul.f32 %v600_v23, %v4854_v16  ;;  %v3917_v23 = vld [vmem:[%s5812_s11 + $0x20] sm:$0xff] }
 0x41d   :  { %v619_v20 = vsel %vm5880_vm12, %v610_v10, 0.0  ;;  %v625_v36 = vsel %vm5883_vm4, %v613_v24, 0.0 }
 0x41e   :  { %v620_v17 = vadd.f32 %v619_v20, %v618_v41  ;;  %v627_v0 = vsel %vm5884_vm5, %v614_v63, 0.0  ;;  %v5003_v63 = vld [vmem:[%s5890_s28 + $0x10] sm:$0xff]  ;;  %vm1588_vm5 = vcmask 122880  }
 0x420   :  { %v622_v27 = vadd.f32 %v621_v6, %v620_v17 }
 0x422   :  { %v586_v21 = vpop.permute.xlu1 %585 }
 0x423   :  { %v612_v26 = vmul.f32 %v586_v21, %v4846_v14  ;;  %v3912_v14 = vld [vmem:[%s5810_s9 + $0x38] sm:$0xff] }
 0x424   :  { %1291 = vmatpush.bf16.msrb.mxu0 %v3912_v14 }
 0x425   :  { %v623_v22 = vsel %vm5882_vm14, %v612_v26, 0.0  ;;  %v3918_v26 = vld [vmem:[%s5812_s11 + $0x28] sm:$0xff] }
 0x426   :  { %v624_v33 = vadd.f32 %v623_v22, %v622_v27  ;;  %v3916_v27 = vld [vmem:[%s5812_s11 + $0x18] sm:$0xff]  ;;  %v3915_v22 = vld [vmem:[%s5812_s11 + $0x10] sm:$0xff] }
 0x428   :  { %v626_v40 = vadd.f32 %v625_v36, %v624_v33  ;;  %1292 = vmatpush.bf16.msrb.mxu0 %v3911_v42  ;;  %v3914_v33 = vld [vmem:[%s5812_s11 + $0x8] sm:$0xff]  ;;  %v3913_v36 = vld [vmem:[%s5812_s11] sm:$0xff] }
 0x42a   :  { %v607_v7 = vpop.permute.xlu1 %606  ;;  %v628_v39 = vadd.f32 %v627_v0, %v626_v40  ;;  %v5008_v40 = vld [vmem:[%s5890_s28 + $0x30] sm:$0xff] }
 0x42b   :  { %v615_v37 = vmul.f32 %v607_v7, %v4864_v32  ;;  %v5013_v7 = vld [vmem:[%s5890_s28 + $0x50] sm:$0xff]  ;;  %3590 = vmatpush.xpose.msk.msrb.mxu2 %vm836_vm9, %v5008_v40 }
 0x42c   :  { %3587 = vmatpush.xpose.msk.msra.mxu0 %vm836_vm9, %v5003_v63 }
 0x42d   :  { %v629_v30 = vsel %vm5885_vm1, %v615_v37, 0.0 }
 0x42e   :  { %v630_v31 = vadd.f32 %v629_v30, %v628_v39 }
 0x430   :  { %v631_v16 = vpack.c.bf16 %v630_v31, %v630_v31 }
 0x432   :  { %3536 = vmatmul.msk.bf16.vlgmr.msrb.gmra.mxu3 %vm836_vm9, %v631_v16 }
 0x433   :  { %3593 = vmatpush.xpose.msk.msrb.mxu3 %vm836_vm9, %v5013_v7 }
 0x44b   :  { %v1060_v43 = vpop.permute.xlu2 %1059 }
 0x44c   :  { %3545 = vmatmul.msk.bf16.vlgmr.msra.gmra.mxu3 %vm836_vm9, %v1060_v43 }
 0x48c   :  { %v1269_v32 = vpop.permute.xlu0 %1268 }
 0x48d   :  { %3554 = vmatmul.msk.bf16.vlgmr.msrb.gmra.mxu0 %vm836_vm9, %v1269_v32  ;;  %v4057_v32 = vld [vmem:[%s5847_s1 + $0x2] ss:$0 sm:$0xff] }
 0x496   :  { %v849_v57 = vpop.f32.mrf.mxu3 }
 0x49e   :  { %v851_v38 = vpop.f32.mrf.mxu3 }
 0x4b5   :  { %v877_v46 = vpop.f32.mrf.mxu3 }
 0x4b6   :  { %v878_v47 = vadd.f32 %v877_v46, %v849_v57  ;;  %v4058_v46 = vld [vmem:[%s5848_s24 + $0x2] ss:$0 sm:$0xff] }
 0x4bd   :  { %v879_v48 = vpop.f32.mrf.mxu3 }
 0x4cf   :  { %v1085_v49 = vpop.f32.mrf.mxu3 }
 0x4d0   :  { %v1089_v51 = vadd.f32 %v1085_v49, %v878_v47 }
 0x4d7   :  { %v1087_v50 = vpop.f32.mrf.mxu3 }
 0x4d8   :  { %v5031_v50 = vld [vmem:[%s5890_s28] sm:$0xff] }
 0x4d9   :  { %3588 = vmatpush.xpose.msk.msra.mxu0 %vm836_vm9, %v5031_v50 }
 0x50a   :  { %v1294_v54 = vpop.f32.mrf.mxu0 }
 0x50b   :  { %v1298_v28 = vadd.f32 %v1294_v54, %v1089_v51  ;;  %v5038_v51 = vld [vmem:[%s5890_s28 + $0x20] sm:$0xff]  ;;  %v5052_v54 = vld [vmem:[%s5890_s28 + $0x70] sm:$0xff] }
 0x50c   :  { %3591 = vmatpush.xpose.msk.msrb.mxu2 %vm836_vm9, %v5038_v51  ;;  %3596 = vmatpush.xpose.msk.msrb.mxu0 %vm836_vm9, %v5052_v54 }
 0x50d   :  { %v1303_v55 = vadd.f32 %v4054_v53, %v1298_v28  ;;  %v5043_v53 = vld [vmem:[%s5890_s28 + $0x40] sm:$0xff] }
 0x50e   :  { %3594 = vmatpush.xpose.msk.msrb.mxu3 %vm836_vm9, %v5043_v53  ;;  %v5059_v28 = vld [vmem:[%s5890_s28 + $0x60] sm:$0xff] }
 0x50f   :  { %v1306_v56 = vsel %vm5886_vm3, %v1303_v55, 0.0 }
 0x510   :  { %1307 = vadd.xlane.f32.xlu1 %v1306_v56  ;;  %3597 = vmatpush.xpose.msk.msrb.mxu0 %vm836_vm9, %v5059_v28 }
 0x512   :  { %v1296_v58 = vpop.f32.mrf.mxu0 }
 0x583   :  { %v1308_v60 = vpop.xlane.xlu1 %1307 }
 0x584   :  { %v1309_v61 = vmul.f32 %v1308_v60, %v4369_v25 }
 0x586   :  { %v1310_v1 = vsub.f32 %v1303_v55, %v1309_v61  ;;  %v4059_v55 = vld [vmem:[%s5813_s12] ss:$0 sm:$0xff] }
 0x588   :  { %v1311_v2 = vmul.f32 %v1310_v1, %v1310_v1 }
 0x58a   :  { %v1312_v52 = vsel %vm5887_vm0, %v1311_v2, 0.0  ;;  %vm1633_vm0 = vcmask 130048  }
 0x58b   :  { %1313 = vadd.xlane.f32.xlu2 %v1312_v52  ;;  %v5081_v52 = vld [vmem:[%s5891_s30] sm:$0xf] }
 0x58c   :  { %vm1460_vm4 = vcmp.gt.f32.partialorder %v5081_v52, 0.0 }
 0x5fe   :  { %v1314_v35 = vpop.xlane.xlu2 %1313 }
 0x5ff   :  { %v1315_v19 = vmul.f32 %v1314_v35, %v4369_v25 }
 0x601   :  { %v1316_v29 = vadd.f32 1e-05, %v1315_v19  ;;  %v5087_v19 = vsel %vm1460_vm4, 1, %v4193_v3 }
 0x603   :  { %4082 = vrsqrt.f32 %v1316_v29  ;;  %vm1323_vm6 = vweird.f32 %v1316_v29 }
 0x609   :  { %v4083_v34 = vpop.eup %4082 }
 0x60a   :  { %v1318_v13 = vmul.f32 %v4083_v34, %v1316_v29  ;;  %vm1324_vm7 = vweird.f32 %v4083_v34 }
 0x60b   :  { %vm1325_vm8 = vmor %vm1323_vm6, %vm1324_vm7  ;;  %vm5898_vm6 = vcmask 1042434  }
 0x60c   :  { %v1319_v44 = vmul.f32 %v4083_v34, %v1318_v13  ;;  %v1464_v13 = vrot.slane %v5087_v19, 3 }
 0x60e   :  { %v1320_v5 = vmul.f32 0.5, %v1319_v44  ;;  %vm5093_vm1 = vcmp.ne.s32.totalorder %v1464_v13, 0 }
 0x610   :  { %v1321_v45 = vsub.f32 1.5, %v1320_v5 }
 0x612   :  { %v1322_v62 = vmul.f32 %v4083_v34, %v1321_v45 }
 0x614   :  { %v1326_v4 = vsel %vm1325_vm8, %v4083_v34, %v1322_v62  ;;  %vm5899_vm8 = vmmov %vm5898_vm6 }
 0x615   :  { %v1327_v12 = vmul.f32 %v1326_v4, %v1310_v1 }
 0x617   :  { %v1329_v10 = vmul.f32 %v4055_v18, %v1327_v12  ;;  %v1463_v18 = vrot.slane %v5087_v19, 2 }
 0x619   :  { %v1331_v11 = vadd.f32 %v4056_v9, %v1329_v10  ;;  %vm5109_vm3 = vcmp.ne.s32.totalorder %v1463_v18, 0 }
 0x61b   :  { %v4969_v20 = vadd.f32 %v1331_v11, %v4347_v8  ;;  %v3919_v8 = vld [vmem:[%s5812_s11 + $0x30] sm:$0xff]  ;;  %v5121_v11 = vld [vmem:[%s5890_s28 + $0x68] sm:$0xff] }
 0x61c   :  { %1431 = vmatpush.bf16.msrb.mxu1 %v3919_v8 }
 0x61d   :  { %v1335_v41 = vsel %vm5888_vm10, %v4969_v20, 0.0  ;;  %vm5900_vm10 = vmmov %vm5898_vm6 }
 0x61e   :  { %1336 = vadd.xlane.f32.xlu0 %v1335_v41  ;;  %v5126_v41 = vld [vmem:[%s5890_s28 + $0x78] sm:$0xff] }
 0x61f   :  { %v3994_v15 = vpack.i.bf16 %v5121_v11, %v5126_v41 }
 0x620   :  { %1432 = vmatpush.bf16.msrb.mxu1 %v3918_v26 }
 0x624   :  { %1433 = vmatpush.bf16.msrb.mxu1 %v3917_v23 }
 0x628   :  { %1434 = vmatpush.bf16.msrb.mxu1 %v3916_v27 }
 0x62c   :  { %1435 = vmatpush.bf16.msrb.mxu1 %v3915_v22 }
 0x630   :  { %1436 = vmatpush.bf16.msrb.mxu1 %v3914_v33 }
 0x634   :  { %1437 = vmatpush.bf16.msrb.mxu1 %v3913_v36 }
 0x691   :  { %v1337_v59 = vpop.xlane.xlu0 %1336 }
 0x692   :  { %v1338_v17 = vmul.f32 %v1337_v59, %v4369_v25  ;;  %v5133_v59 = vld [vmem:[%s5890_s28 + $0x58] sm:$0xff] }
 0x694   :  { %v1339_v21 = vsub.f32 %v4969_v20, %v1338_v17  ;;  %v5140_v17 = vld [vmem:[%s5890_s28 + $0x48] sm:$0xff] }
 0x696   :  { %v1340_v6 = vmul.f32 %v1339_v21, %v1339_v21 }
 0x698   :  { %v1341_v24 = vsel %vm5889_vm11, %v1340_v6, 0.0  ;;  %vm5901_vm11 = vmmov %vm5898_vm6 }
 0x699   :  { %1342 = vadd.xlane.f32.xlu1 %v1341_v24 }
 0x6b2   :  { %1836 = vrot.lane.b32.xlu1 %v5059_v28, %s4194_s22 }
 0x70c   :  { %v1343_v0 = vpop.xlane.xlu1 %1342 }
 0x70d   :  { %v1344_v37 = vmul.f32 %v1343_v0, %v4369_v25 }
 0x70f   :  { %v1345_v39 = vadd.f32 1e-05, %v1344_v37 }
 0x711   :  { %4084 = vrsqrt.f32 %v1345_v39  ;;  %vm1352_vm13 = vweird.f32 %v1345_v39 }
 0x717   :  { %v4085_v14 = vpop.eup %4084 }
 0x718   :  { %v1347_v30 = vmul.f32 %v4085_v14, %v1345_v39  ;;  %vm1353_vm12 = vweird.f32 %v4085_v14 }
 0x719   :  { %vm1354_vm14 = vmor %vm1352_vm13, %vm1353_vm12  ;;  %vm5902_vm12 = vcmask 1043456  }
 0x71a   :  { %v1348_v31 = vmul.f32 %v4085_v14, %v1347_v30 }
 0x71c   :  { %v1349_v42 = vmul.f32 0.5, %v1348_v31 }
 0x71e   :  { %v1350_v16 = vsub.f32 1.5, %v1349_v42 }
 0x720   :  { %v1351_v43 = vmul.f32 %v4085_v14, %v1350_v16 }
 0x722   :  { %v1355_v57 = vsel %vm1354_vm14, %v4085_v14, %v1351_v43  ;;  %vm5904_vm14 = vmmov %vm5902_vm12 }
 0x723   :  { %v1356_v38 = vmul.f32 %v1355_v57, %v1339_v21  ;;  %v3999_v21 = vpack.i.bf16 %v5140_v17, %v5133_v59  ;;  %v5169_v57 = vld [vmem:[%s5890_s28 + $0x18] sm:$0xff] }
 0x724   :  { %1651 = vmatpush.msra.mxu2 %v5169_v57 }
 0x725   :  { %v1358_v47 = vmul.f32 %v4057_v32, %v1356_v38  ;;  %v5174_v38 = vld [vmem:[%s5890_s28 + $0x8] sm:$0xff] }
 0x726   :  { %1652 = vmatpush.msra.mxu2 %v5174_v38 }
 0x727   :  { %v1360_v48 = vadd.f32 %v4058_v46, %v1358_v47  ;;  %v1837_v46 = vpop.permute.xlu1 %1836 }
 0x729   :  { %v1361_v49 = vpack.c.bf16 %v1360_v48, %v1360_v48 }
 0x72b   :  { %1438 = vmatmul.bf16.vlgmr.msrb.gmra.mxu1 %v1361_v49 }
 0x7a8   :  { %v1439_v56 = vpop.f32.mrf.mxu1 }
 0x7a9   :  { %v5068_v58 = vadd.f32 %v4059_v55, %v1439_v56 }
 0x7ab   :  { %3589 = vmatmul.msk.f32.vlgmr.msra.gmra.mxu0 %vm836_vm9, %v5068_v58  ;;  %v1469_v60 = vrot.slane %v5068_v58, 1  ;;  %v1470_v61 = vrot.slane %v5068_v58, 2  ;;  %v1471_v2 = vrot.slane %v5068_v58, 3 }
 0x7ac   :  { %1697 = vmatpush.msra.mxu0 %v5133_v59 }
 0x7ad   :  { %3592 = vmatmul.msk.f32.vlgmr.msrb.gmra.mxu2 %vm836_vm9, %v1469_v60  ;;  %3595 = vmatmul.msk.f32.vlgmr.msrb.gmra.mxu3 %vm836_vm9, %v1470_v61  ;;  %v5100_v3 = vperm.slane %v1471_v2, 0  ;;  %v5155_v14 = vperm.slane %v1470_v61, 0  ;;  %v5157_v30 = vperm.slane %v1469_v60, 0 }
 0x7ae   :  { %1698 = vmatpush.msra.mxu0 %v5140_v17  ;;  %1720 = vmatpush.msrb.mxu2 %v5126_v41 }
 0x7b0   :  { %v1441_v1 = vpop.f32.mrf.mxu1  ;;  %1721 = vmatpush.msrb.mxu2 %v5121_v11 }
 0x7b1   :  { %v1462_v1 = vrot.slane %v5087_v19, 1 }
 0x7b3   :  { %3598 = vmatmul.msk.f32.vlgmr.msrb.gmra.mxu0 %vm836_vm9, %v1471_v2  ;;  %vm5188_vm7 = vcmp.ne.s32.totalorder %v1462_v1, 0 }
 0x828   :  { %v1497_v35 = vpop.f32.mrf.mxu0 }
 0x829   :  { %v1584_v29 = vsel %vm1460_vm4, %v1497_v35, -1e+09 }
 0x82a   :  { %v1589_v34 = vsel %vm1588_vm5, %v1584_v29, -inf }
 0x82b   :  { %1590 = vmax.xlane.f32.xlu2 %v1589_v34 }
 0x830   :  { %v1581_v5 = vpop.f32.mrf.mxu0  ;;  %v1553_v12 = vpop.f32.mrf.mxu3 }
 0x831   :  { %v1587_v45 = vsel %vm5093_vm1, %v1581_v5, -1e+09  ;;  %v1586_v9 = vsel %vm5109_vm3, %v1553_v12, -1e+09 }
 0x832   :  { %v1598_v62 = vsel %vm1588_vm5, %v1587_v45, -inf  ;;  %v1595_v10 = vsel %vm1588_vm5, %v1586_v9, -inf }
 0x833   :  { %1599 = vmax.xlane.f32.xlu0 %v1598_v62 }
 0x843   :  { %1834 = vrot.lane.b32.xlu2 %v5100_v3, %s4194_s22 }
 0x847   :  { %1838 = vrot.lane.b32.xlu0 %v5052_v54, %s4194_s22 }
 0x84f   :  { %1805 = vrot.lane.b32.xlu0 %v5013_v7, %s4194_s22 }
 0x879   :  { %1596 = vmax.xlane.f32.xlu0 %v1595_v10 }
 0x88d   :  { %1770 = vrot.lane.b32.xlu0 %v5038_v51, %s4194_s22 }
 0x895   :  { %3995 = vrot.lane.b32.xlu0 %v3994_v15, %s4194_s22 }
 0x89d   :  { %4000 = vrot.lane.b32.xlu0 %v3999_v21, %s4194_s22 }
 0x89e   :  { %v1591_v6 = vpop.xlane.xlu2 %1590 }
 0x89f   :  { %v1601_v24 = vsub.f32 %v1584_v29, %v1591_v6 }
 0x8a1   :  { %v1605_v8 = vmul.f32 1.442695, %v1601_v24 }
 0x8a3   :  { %4086 = vpow2.f32 %v1605_v8 }
 0x8a5   :  { %2136 = vrot.lane.b32.xlu0 %v5003_v63, %s4195_s2 }
 0x8a6   :  { %v1600_v26 = vpop.xlane.xlu0 %1599  ;;  %v1835_v49 = vpop.permute.xlu2 %1834 }
 0x8a7   :  { %v1604_v23 = vsub.f32 %v1587_v45, %v1600_v26  ;;  %v1525_v45 = vpop.f32.mrf.mxu2 }
 0x8a8   :  { %v5195_v62 = vsel %vm5188_vm7, %v1525_v45, -1e+09 }
 0x8a9   :  { %v4087_v27 = vpop.eup %4086  ;;  %v1611_v22 = vmul.f32 1.442695, %v1604_v23 }
 0x8aa   :  { %v1613_v33 = vsel %vm1588_vm5, %v4087_v27, 0.0 }
 0x8ab   :  { %1614 = vadd.xlane.f32.xlu1 %v1613_v33  ;;  %4088 = vpow2.f32 %v1611_v22  ;;  %v5217_v22 = vperm.slane %v5068_v58, 0 }
 0x8ad   :  { %2134 = vrot.lane.b32.xlu0 %v5031_v50, %s4195_s2 }
 0x8b1   :  { %v4089_v36 = vpop.eup %4088 }
 0x8b2   :  { %v1622_v0 = vsel %vm1588_vm5, %v4089_v36, 0.0 }
 0x8b3   :  { %1623 = vadd.xlane.f32.xlu2 %v1622_v0 }
 0x8b9   :  { %v1839_v37 = vpop.permute.xlu0 %1838 }
 0x8c1   :  { %v1806_v39 = vpop.permute.xlu0 %1805 }
 0x8c2   :  { %3609 = vmatpush.xpose.msk.msra.mxu1 %vm836_vm9, %v1806_v39 }
 0x8c4   :  { %1803 = vrot.lane.b32.xlu1 %v5043_v53, %s4194_s22 }
 0x8cb   :  { %1801 = vrot.lane.b32.xlu2 %v5155_v14, %s4194_s22 }
 0x8cc   :  { %1768 = vrot.lane.b32.xlu1 %v5157_v30, %s4194_s22 }
 0x8d4   :  { %2232 = vrot.lane.b32.xlu1 %v5052_v54, %s4195_s2 }
 0x8ec   :  { %v1597_v31 = vpop.xlane.xlu0 %1596 }
 0x8ed   :  { %v1603_v42 = vsub.f32 %v1586_v9, %v1597_v31  ;;  %v1592_v9 = vsel %vm1588_vm5, %v5195_v62, -inf }
 0x8ef   :  { %v1609_v16 = vmul.f32 1.442695, %v1603_v42 }
 0x8f1   :  { %4090 = vpow2.f32 %v1609_v16 }
 0x8f7   :  { %v4091_v43 = vpop.eup %4090 }
 0x8f8   :  { %v1619_v32 = vsel %vm1588_vm5, %v4091_v43, 0.0 }
 0x8f9   :  { %1620 = vadd.xlane.f32.xlu0 %v1619_v32 }
 0x8ff   :  { %v5182_v48 = vpop.permute.xlu0 %1770 }
 0x907   :  { %v3996_v60 = vpop.permute.xlu0 %3995 }
 0x908   :  { %v3997_v35 = vunpack.i.l.bf16 %v3996_v60  ;;  %v3998_v13 = vunpack.i.h.bf16 %v3996_v60 }
 0x90d   :  { %2200 = vrot.lane.b32.xlu0 %v5013_v7, %s4195_s2 }
 0x90f   :  { %v4001_v29 = vpop.permute.xlu0 %4000 }
 0x910   :  { %v4002_v19 = vunpack.i.l.bf16 %v4001_v29  ;;  %v4003_v10 = vunpack.i.h.bf16 %v4001_v29 }
 0x917   :  { %v2137_v12 = vpop.permute.xlu0 %2136 }
 0x91e   :  { %v1615_v47 = vpop.xlane.xlu1 %1614 }
 0x91f   :  { %4092 = vrcp.f32 %v1615_v47  ;;  %v2135_v21 = vpop.permute.xlu0 %2134 }
 0x925   :  { %v4093_v55 = vpop.eup %4092 }
 0x926   :  { %v1629_v56 = vmul.f32 %v4093_v55, %v4087_v27  ;;  %v1624_v61 = vpop.xlane.xlu2 %1623 }
 0x927   :  { %4094 = vrcp.f32 %v1624_v61 }
 0x928   :  { %3599 = vmatmul.msk.f32.vlgmr.msra.gmra.mxu2 %vm1633_vm0, %v1629_v56 }
 0x929   :  { %3612 = vmatpush.xpose.msk.msra.mxu2 %vm836_vm9, %v1839_v37 }
 0x92d   :  { %3613 = vmatpush.xpose.msk.msra.mxu2 %vm836_vm9, %v1837_v46  ;;  %v4095_v2 = vpop.eup %4094 }
 0x92e   :  { %v1632_v34 = vmul.f32 %v4095_v2, %v4089_v36  ;;  %v1802_v15 = vpop.permute.xlu2 %1801 }
 0x930   :  { %3602 = vmatmul.msk.f32.vlgmr.msrb.gmra.mxu2 %vm1633_vm0, %v1632_v34 }
 0x931   :  { %2032 = vmatpush.msrb.mxu2 %v3997_v35 }
 0x933   :  { %2033 = vmatpush.msrb.mxu2 %v3998_v13 }
 0x936   :  { %v1804_v18 = vpop.permute.xlu1 %1803 }
 0x937   :  { %3610 = vmatpush.xpose.msk.msra.mxu1 %vm836_vm9, %v1804_v18  ;;  %1593 = vmax.xlane.f32.xlu0 %v1592_v9 }
 0x938   :  { %3614 = vmatmul.msk.f32.vlgmr.msra.gmra.mxu2 %vm836_vm9, %v1835_v49 }
 0x93a   :  { %3611 = vmatmul.msk.f32.vlgmr.msra.gmra.mxu1 %vm836_vm9, %v1802_v15 }
 0x93b   :  { %2001 = vmatpush.msrb.mxu1 %v4002_v19 }
 0x93d   :  { %2002 = vmatpush.msrb.mxu1 %v4003_v10 }
 0x93f   :  { %3637 = vmatpush.xpose.msk.msra.mxu1 %vm836_vm9, %v2137_v12 }
 0x943   :  { %3638 = vmatpush.xpose.msk.msra.mxu1 %vm836_vm9, %v2135_v21 }
 0x96c   :  { %v1621_v6 = vpop.xlane.xlu0 %1620 }
 0x96d   :  { %4096 = vrcp.f32 %v1621_v6 }
 0x973   :  { %v4097_v24 = vpop.eup %4096 }
 0x974   :  { %v1631_v8 = vmul.f32 %v4097_v24, %v4091_v43  ;;  %v1769_v43 = vpop.permute.xlu1 %1768 }
 0x976   :  { %3601 = vmatmul.msk.f32.vlgmr.msra.gmra.mxu0 %vm1633_vm0, %v1631_v8 }
 0x97f   :  { %v2201_v29 = vpop.permute.xlu0 %2200 }
 0x9aa   :  { %v1594_v10 = vpop.xlane.xlu0 %1593 }
 0x9ab   :  { %v5231_v58 = vpop.f32.mrf.mxu2  ;;  %v1602_v15 = vsub.f32 %v5195_v62, %v1594_v10 }
 0x9ad   :  { %v1607_v21 = vmul.f32 1.442695, %v1602_v15 }
 0x9b3   :  { %v5233_v37 = vpop.f32.mrf.mxu2 }
 0x9b7   :  { %v1830_v26 = vpop.f32.mrf.mxu1 }
 0x9b8   :  { %v1868_v23 = vsel %vm5109_vm3, %v1830_v26, -1e+09 }
 0x9b9   :  { %v1876_v27 = vsel %vm1588_vm5, %v1868_v23, -inf }
 0x9ba   :  { %1877 = vmax.xlane.f32.xlu2 %v1876_v27 }
 0x9bb   :  { %v1863_v16 = vpop.f32.mrf.mxu2 }
 0x9bc   :  { %v1869_v46 = vsel %vm5093_vm1, %v1863_v16, -1e+09 }
 0x9bd   :  { %v1879_v47 = vsel %vm1588_vm5, %v1869_v46, -inf }
 0x9d2   :  { %1772 = vrot.lane.b32.xlu2 %v5008_v40, %s4194_s22 }
 0x9da   :  { %2168 = vrot.lane.b32.xlu2 %v5008_v40, %s4195_s2 }
 0x9e2   :  { %2166 = vrot.lane.b32.xlu2 %v5038_v51, %s4195_s2 }
 0x9ea   :  { %2164 = vrot.lane.b32.xlu2 %v5157_v30, %s4195_s2 }
 0x9f2   :  { %2132 = vrot.lane.b32.xlu2 %v5217_v22, %s4195_s2 }
 0x9f3   :  { %v5247_v56 = vpop.f32.mrf.mxu0 }
 0x9fa   :  { %2228 = vrot.lane.b32.xlu2 %v5100_v3, %s4195_s2 }
 0xa02   :  { %2196 = vrot.lane.b32.xlu2 %v5155_v14, %s4195_s2 }
 0xa0a   :  { %1739 = vrot.lane.b32.xlu2 %v5003_v63, %s4194_s22 }
 0xa12   :  { %1737 = vrot.lane.b32.xlu2 %v5031_v50, %s4194_s22 }
 0xa1a   :  { %1735 = vrot.lane.b32.xlu2 %v5217_v22, %s4194_s22 }
 0xa2d   :  { %v1878_v33 = vpop.xlane.xlu2 %1877 }
 0xa2e   :  { %v1884_v36 = vsub.f32 %v1868_v23, %v1878_v33 }
 0xa30   :  { %v1890_v0 = vmul.f32 1.442695, %v1884_v36 }
 0xa32   :  { %4098 = vpow2.f32 %v1890_v0 }
 0xa35   :  { %v1773_v39 = vpop.permute.xlu2 %1772 }
 0xa36   :  { %3606 = vmatpush.xpose.msk.msrb.mxu0 %vm836_vm9, %v1773_v39  ;;  %v5270_v39 = vld [vmem:[%s5890_s28 + $0x38] sm:$0xff] }
 0xa37   :  { %1674 = vmatpush.msra.mxu3 %v5270_v39  ;;  %v4009_v15 = vpack.i.bf16 %v5133_v59, %v5270_v39 }
 0xa38   :  { %v4099_v31 = vpop.eup %4098 }
 0xa39   :  { %v1900_v42 = vsel %vm1588_vm5, %v4099_v31, 0.0 }
 0xa3a   :  { %1901 = vadd.xlane.f32.xlu1 %v1900_v42  ;;  %3607 = vmatpush.xpose.msk.msrb.mxu0 %vm836_vm9, %v5182_v48  ;;  %v2233_v48 = vpop.permute.xlu1 %2232 }
 0xa3d   :  { %v2169_v32 = vpop.permute.xlu2 %2168  ;;  %3608 = vmatmul.msk.f32.vlgmr.msrb.gmra.mxu0 %vm836_vm9, %v1769_v43 }
 0xa3e   :  { %3640 = vmatpush.xpose.msk.msra.mxu2 %vm836_vm9, %v2169_v32 }
 0xa42   :  { %1880 = vmax.xlane.f32.xlu1 %v1879_v47 }
 0xa45   :  { %v2167_v49 = vpop.permute.xlu2 %2166 }
 0xa46   :  { %3641 = vmatpush.xpose.msk.msra.mxu2 %vm836_vm9, %v2167_v49 }
 0xa4d   :  { %v2165_v61 = vpop.permute.xlu2 %2164 }
 0xa55   :  { %v2133_v18 = vpop.permute.xlu2 %2132 }
 0xa5b   :  { %2230 = vrot.lane.b32.xlu1 %v5059_v28, %s4195_s2 }
 0xa5d   :  { %v2229_v33 = vpop.permute.xlu2 %2228 }
 0xa65   :  { %v2197_v36 = vpop.permute.xlu2 %2196 }
 0xa6d   :  { %v1740_v0 = vpop.permute.xlu2 %1739 }
 0xa75   :  { %v1738_v42 = vpop.permute.xlu2 %1737 }
 0xa7d   :  { %v1736_v49 = vpop.permute.xlu2 %1735 }
 0xaad   :  { %v1902_v55 = vpop.xlane.xlu1 %1901 }
 0xaae   :  { %4100 = vrcp.f32 %v1902_v55 }
 0xab4   :  { %v4101_v60 = vpop.eup %4100 }
 0xab5   :  { %v1912_v1 = vmul.f32 %v4101_v60, %v4099_v31  ;;  %v1881_v2 = vpop.xlane.xlu1 %1880  ;;  %v5276_v31 = vld [vmem:[%s5890_s28 + $0x28] sm:$0xff] }
 0xab6   :  { %v1885_v35 = vsub.f32 %v1869_v46, %v1881_v2  ;;  %1675 = vmatpush.msra.mxu3 %v5276_v31  ;;  %v4004_v16 = vpack.i.bf16 %v5276_v31, %v5270_v39  ;;  %v4014_v43 = vpack.i.bf16 %v5126_v41, %v5276_v31 }
 0xab7   :  { %3617 = vmatmul.msk.f32.vlgmr.msrb.gmra.mxu1 %vm1633_vm0, %v1912_v1 }
 0xab8   :  { %v1892_v34 = vmul.f32 1.442695, %v1885_v35  ;;  %3643 = vmatpush.xpose.msk.msrb.mxu1 %vm836_vm9, %v2201_v29  ;;  %3603 = vmatpush.xpose.msk.msrb.mxu3 %vm836_vm9, %v1740_v0 }
 0xab9   :  { %4005 = vrot.lane.b32.xlu0 %v4004_v16, %s4194_s22 }
 0xaba   :  { %4102 = vpow2.f32 %v1892_v34  ;;  %v1797_v13 = vpop.f32.mrf.mxu0 }
 0xabb   :  { %v1867_v45 = vsel %vm5188_vm7, %v1797_v13, -1e+09  ;;  %4104 = vpow2.f32 %v1607_v21  ;;  %v5316_v21 = vpack.i.bf16 %v5121_v11, %v5140_v17  ;;  %v1729_v11 = vpack.c.bf16 %v5233_v37, %v5233_v37 }
 0xabc   :  { %v1873_v19 = vsel %vm1588_vm5, %v1867_v45, -inf  ;;  %3604 = vmatpush.xpose.msk.msrb.mxu3 %vm836_vm9, %v1738_v42 }
 0xabd   :  { %1874 = vmax.xlane.f32.xlu2 %v1873_v19 }
 0xabf   :  { %3639 = vmatmul.msk.f32.vlgmr.msra.gmra.mxu1 %vm836_vm9, %v2133_v18 }
 0xac0   :  { %v4103_v12 = vpop.eup %4102 }
 0xac1   :  { %v1903_v9 = vsel %vm1588_vm5, %v4103_v12, 0.0  ;;  %v4105_v6 = vpop.eup %4104  ;;  %4015 = vrot.lane.b32.xlu0 %v4014_v43, %s4195_s2 }
 0xac2   :  { %1904 = vadd.xlane.f32.xlu1 %v1903_v9  ;;  %v1616_v24 = vsel %vm1588_vm5, %v4105_v6, 0.0 }
 0xac9   :  { %2480 = vrot.lane.b32.xlu0 %v5003_v63, %s4196_s27 }
 0xacd   :  { %v2231_v8 = vpop.permute.xlu1 %2230 }
 0xad5   :  { %4020 = vrot.lane.b32.xlu2 %v5316_v21, %s4195_s2 }
 0xadb   :  { %2198 = vrot.lane.b32.xlu1 %v5043_v53, %s4195_s2 }
 0xadd   :  { %2510 = vrot.lane.b32.xlu2 %v5038_v51, %s4196_s27 }
 0xb05   :  { %1617 = vadd.xlane.f32.xlu1 %v1616_v24 }
 0xb30   :  { %v1875_v60 = vpop.xlane.xlu2 %1874 }
 0xb31   :  { %v1883_v1 = vsub.f32 %v1867_v45, %v1875_v60 }
 0xb33   :  { %v1888_v35 = vmul.f32 1.442695, %v1883_v1 }
 0xb35   :  { %v1905_v26 = vpop.xlane.xlu1 %1904 }
 0xb36   :  { %4106 = vrcp.f32 %v1905_v26 }
 0xb3c   :  { %v4107_v23 = vpop.eup %4106 }
 0xb3d   :  { %v1913_v27 = vmul.f32 %v4107_v23, %v4103_v12  ;;  %v1726_v23 = vpack.c.bf16 %v5231_v58, %v5231_v58  ;;  %v3922_v58 = vld [vmem:[%s5814_s13 + $0x8] sm:$0xff] }
 0xb3f   :  { %3618 = vmatmul.msk.f32.vlgmr.msrb.gmra.mxu2 %vm1633_vm0, %v1913_v27  ;;  %v2093_v51 = vunpack.c.l.b16 %v1726_v23 }
 0xb40   :  { %3646 = vmatpush.xpose.msk.msrb.mxu2 %vm836_vm9, %v2233_v48  ;;  %v5291_v48 = vpop.f32.mrf.mxu1 }
 0xb44   :  { %3647 = vmatpush.xpose.msk.msrb.mxu2 %vm836_vm9, %v2231_v8 }
 0xb47   :  { %3642 = vmatmul.msk.f32.vlgmr.msra.gmra.mxu2 %vm836_vm9, %v2165_v61 }
 0xb48   :  { %v5295_v61 = vpop.f32.mrf.mxu1 }
 0xb4d   :  { %v2199_v62 = vpop.permute.xlu1 %2198 }
 0xb4e   :  { %3644 = vmatpush.xpose.msk.msrb.mxu1 %vm836_vm9, %v2199_v62 }
 0xb4f   :  { %3648 = vmatmul.msk.f32.vlgmr.msrb.gmra.mxu2 %vm836_vm9, %v2229_v33 }
 0xb51   :  { %3645 = vmatmul.msk.f32.vlgmr.msrb.gmra.mxu1 %vm836_vm9, %v2197_v36 }
 0xb78   :  { %v1618_v32 = vpop.xlane.xlu1 %1617 }
 0xb79   :  { %4108 = vrcp.f32 %v1618_v32 }
 0xb7a   :  { %4110 = vpow2.f32 %v1888_v35 }
 0xb7f   :  { %v4109_v46 = vpop.eup %4108 }
 0xb80   :  { %v1630_v47 = vmul.f32 %v4109_v46, %v4105_v6  ;;  %v4111_v9 = vpop.eup %4110  ;;  %v4006_v6 = vpop.permute.xlu0 %4005 }
 0xb81   :  { %v1897_v10 = vsel %vm1588_vm5, %v4111_v9, 0.0  ;;  %v4008_v24 = vunpack.i.h.bf16 %v4006_v6  ;;  %v4007_v8 = vunpack.i.l.bf16 %v4006_v6 }
 0xb82   :  { %3600 = vmatmul.msk.f32.vlgmr.msra.gmra.mxu3 %vm1633_vm0, %v1630_v47 }
 0xb83   :  { %1970 = vmatpush.msra.mxu0 %v4007_v8 }
 0xb85   :  { %1971 = vmatpush.msra.mxu0 %v4008_v24 }
 0xb87   :  { %2125 = vmatpush.bf16.msrb.mxu0 %v3922_v58  ;;  %v2260_v58 = vsel %vm1460_vm4, %v5295_v61, -1e+09 }
 0xb8a   :  { %3605 = vmatmul.msk.f32.vlgmr.msrb.gmra.mxu3 %vm836_vm9, %v1736_v49 }
 0xbc2   :  { %v5293_v55 = vpop.f32.mrf.mxu2 }
 0xbca   :  { %v2193_v2 = vpop.f32.mrf.mxu2 }
 0xbcb   :  { %v5299_v63 = vsel %vm5188_vm7, %v2193_v2, -1e+09 }
 0xbcc   :  { %v2267_v29 = vsel %vm1588_vm5, %v5299_v63, -inf }
 0xbcd   :  { %2268 = vmax.xlane.f32.xlu0 %v2267_v29 }
 0xbce   :  { %v2225_v34 = vpop.f32.mrf.mxu1 }
 0xbcf   :  { %v2262_v13 = vsel %vm5109_vm3, %v2225_v34, -1e+09 }
 0xbd0   :  { %v2270_v19 = vsel %vm1588_vm5, %v2262_v13, -inf }
 0xbd1   :  { %2271 = vmax.xlane.f32.xlu1 %v2270_v19 }
 0xbd2   :  { %v2257_v18 = vpop.f32.mrf.mxu2 }
 0xbd3   :  { %v2263_v45 = vsel %vm5093_vm1, %v2257_v18, -1e+09 }
 0xbd4   :  { %v2273_v12 = vsel %vm1588_vm5, %v2263_v45, -inf }
 0xbd5   :  { %2274 = vmax.xlane.f32.xlu0 %v2273_v12 }
 0xbd9   :  { %1898 = vadd.xlane.f32.xlu1 %v1897_v10 }
 0xbe9   :  { %2512 = vrot.lane.b32.xlu0 %v5008_v40, %s4196_s27  ;;  %v4016_v40 = vpop.permute.xlu0 %4015 }
 0xbea   :  { %v4018_v26 = vunpack.i.h.bf16 %v4016_v40  ;;  %v4017_v6 = vunpack.i.l.bf16 %v4016_v40 }
 0xbec   :  { %2418 = vmatpush.msra.mxu2 %v4018_v26 }
 0xbf1   :  { %2544 = vrot.lane.b32.xlu0 %v5013_v7, %s4196_s27  ;;  %v1728_v7 = vpack.c.bf16 %v5247_v56, %v5247_v56  ;;  %v2481_v16 = vpop.permute.xlu0 %2480 }
 0xbf2   :  { %4010 = vrot.lane.b32.xlu1 %v4009_v15, %s4195_s2 }
 0xbf3   :  { %v2095_v33 = vunpack.c.l.b16 %v1728_v7 }
 0xbf9   :  { %2542 = vrot.lane.b32.xlu0 %v5043_v53, %s4196_s27  ;;  %v2096_v53 = vunpack.c.l.b16 %v1729_v11  ;;  %v4021_v11 = vpop.permute.xlu2 %4020 }
 0xbfa   :  { %v4022_v23 = vunpack.i.l.bf16 %v4021_v11 }
 0xbfb   :  { %v2101_v0 = vrot.slane %v2096_v53, 5 }
 0xc01   :  { %2540 = vrot.lane.b32.xlu0 %v5155_v14, %s4196_s27  ;;  %v2099_v14 = vrot.slane %v2095_v33, 6  ;;  %v5372_v33 = vpack.i.bf16 %v5174_v38, %v5169_v57 }
 0xc05   :  { %v1677_v17 = vpop.f32.mrf.mxu3 }
 0xc06   :  { %v1727_v27 = vpack.c.bf16 %v1677_v17, %v1677_v17  ;;  %v4023_v17 = vunpack.i.h.bf16 %v4021_v11 }
 0xc08   :  { %v2094_v62 = vunpack.c.l.b16 %v1727_v27  ;;  %2419 = vmatpush.msra.mxu2 %v4023_v17  ;;  %v2511_v27 = vpop.permute.xlu2 %2510 }
 0xc09   :  { %2574 = vrot.lane.b32.xlu0 %v5059_v28, %s4196_s27  ;;  %v3921_v28 = vld [vmem:[%s5814_s13] sm:$0xff] }
 0xc0a   :  { %v2097_v36 = vrot.slane %v2094_v62, 7  ;;  %2126 = vmatpush.bf16.msrb.mxu0 %v3921_v28  ;;  %v2264_v28 = vsel %vm1588_vm5, %v2260_v58, -inf }
 0xc0c   :  { %v2098_v56 = vsel %vm516_vm15, %v2097_v36, %v2093_v51 }
 0xc0d   :  { %v2100_v42 = vsel %vm5898_vm6, %v2099_v14, %v2098_v56  ;;  %v1764_v26 = vpop.f32.mrf.mxu3 }
 0xc0e   :  { %v2102_v37 = vsel %vm520_vm2, %v2101_v0, %v2100_v42  ;;  %v1866_v40 = vsel %vm1460_vm4, %v1764_v26, -1e+09 }
 0xc40   :  { %v2269_v43 = vpop.xlane.xlu0 %2268 }
 0xc41   :  { %v2277_v24 = vsub.f32 %v5299_v63, %v2269_v43 }
 0xc43   :  { %v2282_v8 = vmul.f32 1.442695, %v2277_v24 }
 0xc44   :  { %v2272_v32 = vpop.xlane.xlu1 %2271 }
 0xc45   :  { %v2278_v46 = vsub.f32 %v2262_v13, %v2272_v32  ;;  %v2103_v13 = vpack.c.b16 %v2102_v37, %v2102_v37 }
 0xc47   :  { %v2284_v47 = vmul.f32 1.442695, %v2278_v46 }
 0xc48   :  { %v2275_v49 = vpop.xlane.xlu0 %2274 }
 0xc49   :  { %4112 = vpow2.f32 %v2284_v47  ;;  %v2279_v60 = vsub.f32 %v2263_v45, %v2275_v49 }
 0xc4b   :  { %v2286_v1 = vmul.f32 1.442695, %v2279_v60 }
 0xc4c   :  { %v1899_v2 = vpop.xlane.xlu1 %1898 }
 0xc4d   :  { %4114 = vpow2.f32 %v2286_v1 }
 0xc4e   :  { %4116 = vrcp.f32 %v1899_v2 }
 0xc4f   :  { %v4113_v35 = vpop.eup %4112  ;;  %4118 = vpow2.f32 %v2282_v8 }
 0xc50   :  { %v2294_v29 = vsel %vm1588_vm5, %v4113_v35, 0.0 }
 0xc51   :  { %2295 = vadd.xlane.f32.xlu1 %v2294_v29 }
 0xc53   :  { %v4115_v34 = vpop.eup %4114 }
 0xc54   :  { %v4117_v19 = vpop.eup %4116  ;;  %v2297_v18 = vsel %vm1588_vm5, %v4115_v34, 0.0 }
 0xc55   :  { %v1911_v12 = vmul.f32 %v4117_v19, %v4111_v9  ;;  %2298 = vadd.xlane.f32.xlu2 %v2297_v18 }
 0xc57   :  { %3616 = vmatmul.msk.f32.vlgmr.msra.gmra.mxu0 %vm1633_vm0, %v1911_v12 }
 0xc5b   :  { %v2513_v9 = vpop.permute.xlu0 %2512 }
 0xc5f   :  { %3636 = vmatmul.msk.bf16.vlgmr.msrb.gmra.mxu0 %vm836_vm9, %v2103_v13 }
 0xc63   :  { %v2545_v7 = vpop.permute.xlu0 %2544 }
 0xc64   :  { %v4011_v45 = vpop.permute.xlu1 %4010  ;;  %3668 = vmatpush.xpose.msk.msrb.mxu2 %vm836_vm9, %v2545_v7 }
 0xc65   :  { %v4013_v10 = vunpack.i.h.bf16 %v4011_v45  ;;  %v4012_v15 = vunpack.i.l.bf16 %v4011_v45 }
 0xc67   :  { %2360 = vmatpush.msra.mxu0 %v4012_v15  ;;  %2389 = vmatpush.msra.mxu1 %v4013_v10 }
 0xc69   :  { %2361 = vmatpush.msra.mxu0 %v4017_v6  ;;  %2390 = vmatpush.msra.mxu1 %v4022_v23 }
 0xc6a   :  { %2478 = vrot.lane.b32.xlu1 %v5031_v50, %s4196_s27  ;;  %v1870_v50 = vsel %vm1588_vm5, %v1866_v40, -inf }
 0xc6b   :  { %3662 = vmatpush.xpose.msk.msrb.mxu0 %vm836_vm9, %v2481_v16  ;;  %3665 = vmatpush.xpose.msk.msrb.mxu1 %vm836_vm9, %v2513_v9  ;;  %v2543_v63 = vpop.permute.xlu0 %2542 }
 0xc6c   :  { %3669 = vmatpush.xpose.msk.msrb.mxu2 %vm836_vm9, %v2543_v63 }
 0xc6d   :  { %2508 = vrot.lane.b32.xlu2 %v5157_v30, %s4196_s27  ;;  %v4119_v30 = vpop.eup %4118 }
 0xc6f   :  { %3666 = vmatpush.xpose.msk.msrb.mxu1 %vm836_vm9, %v2511_v27 }
 0xc72   :  { %2476 = vrot.lane.b32.xlu1 %v5217_v22, %s4196_s27  ;;  %v2291_v22 = vsel %vm1588_vm5, %v4119_v30, 0.0 }
 0xc73   :  { %v2541_v56 = vpop.permute.xlu0 %2540 }
 0xc7b   :  { %v2575_v29 = vpop.permute.xlu0 %2574 }
 0xc96   :  { %1871 = vmax.xlane.f32.xlu2 %v1870_v50 }
 0xc9c   :  { %2292 = vadd.xlane.f32.xlu1 %v2291_v22 }
 0xcb5   :  { %2576 = vrot.lane.b32.xlu1 %v5052_v54, %s4196_s27 }
 0xcbd   :  { %2572 = vrot.lane.b32.xlu1 %v5100_v3, %s4196_s27 }
 0xcc4   :  { %v2296_v53 = vpop.xlane.xlu1 %2295 }
 0xcc5   :  { %4120 = vrcp.f32 %v2296_v53  ;;  %4025 = vrot.lane.b32.xlu1 %v5372_v33, %s4194_s22 }
 0xcc8   :  { %v2299_v62 = vpop.xlane.xlu2 %2298 }
 0xcc9   :  { %4122 = vrcp.f32 %v2299_v62 }
 0xccb   :  { %v4121_v51 = vpop.eup %4120 }
 0xccc   :  { %v2306_v36 = vmul.f32 %v4121_v51, %v4113_v35 }
 0xcce   :  { %3651 = vmatmul.msk.f32.vlgmr.msra.gmra.mxu1 %vm1633_vm0, %v2306_v36  ;;  %v4034_v36 = vpack.i.bf16 %v5270_v39, %v5169_v57  ;;  %v3923_v57 = vld [vmem:[%s5814_s13 + $0x10] sm:$0xff] }
 0xccf   :  { %v4123_v14 = vpop.eup %4122 }
 0xcd0   :  { %v2307_v54 = vmul.f32 %v4123_v14, %v4115_v34  ;;  %v2509_v0 = vpop.permute.xlu2 %2508 }
 0xcd2   :  { %3652 = vmatmul.msk.f32.vlgmr.msra.gmra.mxu2 %vm1633_vm0, %v2307_v54 }
 0xcd4   :  { %v5378_v3 = vpop.f32.mrf.mxu0 }
 0xcd6   :  { %3667 = vmatmul.msk.f32.vlgmr.msrb.gmra.mxu1 %vm836_vm9, %v2509_v0  ;;  %v3924_v0 = vld [vmem:[%s5814_s13 + $0x18] sm:$0xff] }
 0xcda   :  { %3670 = vmatmul.msk.f32.vlgmr.msrb.gmra.mxu2 %vm836_vm9, %v2541_v56 }
 0xcdc   :  { %v5382_v42 = vpop.f32.mrf.mxu0  ;;  %v2479_v37 = vpop.permute.xlu1 %2478 }
 0xcdd   :  { %3663 = vmatpush.xpose.msk.msrb.mxu0 %vm836_vm9, %v2479_v37 }
 0xce4   :  { %v2130_v16 = vpop.f32.mrf.mxu0  ;;  %v2477_v43 = vpop.permute.xlu1 %2476 }
 0xcef   :  { %2265 = vmax.xlane.f32.xlu1 %v2264_v28  ;;  %v2039_v28 = vpack.c.bf16 %v5378_v3, %v5378_v3 }
 0xd08   :  { %4035 = vrot.lane.b32.xlu1 %v4034_v36, %s4196_s27 }
 0xd09   :  { %v1872_v32 = vpop.xlane.xlu2 %1871 }
 0xd0a   :  { %v1882_v46 = vsub.f32 %v1866_v40, %v1872_v32  ;;  %v2041_v32 = vpack.c.bf16 %v5293_v55, %v5293_v55 }
 0xd0c   :  { %v1886_v47 = vmul.f32 1.442695, %v1882_v46 }
 0xd0e   :  { %4124 = vpow2.f32 %v1886_v47  ;;  %v2051_v47 = vunpack.c.l.b16 %v2039_v28 }
 0xd0f   :  { %v2293_v49 = vpop.xlane.xlu1 %2292 }
 0xd10   :  { %4126 = vrcp.f32 %v2293_v49 }
 0xd14   :  { %v4125_v60 = vpop.eup %4124 }
 0xd15   :  { %v1894_v1 = vsel %vm1588_vm5, %v4125_v60, 0.0 }
 0xd16   :  { %v4127_v2 = vpop.eup %4126  ;;  %1895 = vadd.xlane.f32.xlu0 %v1894_v1 }
 0xd17   :  { %v2305_v35 = vmul.f32 %v4127_v2, %v4119_v30  ;;  %v2053_v2 = vunpack.c.l.b16 %v2041_v32 }
 0xd19   :  { %3650 = vmatmul.msk.f32.vlgmr.msra.gmra.mxu0 %vm1633_vm0, %v2305_v35 }
 0xd21   :  { %3664 = vmatmul.msk.f32.vlgmr.msrb.gmra.mxu0 %vm836_vm9, %v2477_v43  ;;  %v2040_v43 = vpack.c.bf16 %v5291_v48, %v5291_v48 }
 0xd27   :  { %v2577_v61 = vpop.permute.xlu1 %2576 }
 0xd28   :  { %3671 = vmatpush.xpose.msk.msra.mxu0 %vm836_vm9, %v2577_v61 }
 0xd2c   :  { %3672 = vmatpush.xpose.msk.msra.mxu0 %vm836_vm9, %v2575_v29  ;;  %v2058_v29 = vrot.slane %v2053_v2, 5 }
 0xd2f   :  { %v2573_v34 = vpop.permute.xlu1 %2572 }
 0xd30   :  { %3673 = vmatmul.msk.f32.vlgmr.msra.gmra.mxu0 %vm836_vm9, %v2573_v34 }
 0xd37   :  { %v4026_v19 = vpop.permute.xlu1 %4025 }
 0xd38   :  { %v4028_v18 = vunpack.i.h.bf16 %v4026_v19  ;;  %v4027_v12 = vunpack.i.l.bf16 %v4026_v19 }
 0xd3a   :  { %1939 = vmatpush.msra.mxu3 %v4027_v12 }
 0xd3c   :  { %1940 = vmatpush.msra.mxu3 %v4028_v18 }
 0xd3e   :  { %2082 = vmatpush.bf16.msrb.mxu3 %v3924_v0 }
 0xd42   :  { %2083 = vmatpush.bf16.msrb.mxu3 %v3923_v57 }
 0xd4b   :  { %v5395_v13 = vpop.f32.mrf.mxu1 }
 0xd4c   :  { %v2426_v57 = vpack.c.bf16 %v5395_v13, %v5395_v13 }
 0xd53   :  { %v2537_v45 = vpop.f32.mrf.mxu1 }
 0xd54   :  { %v2605_v10 = vsel %vm5188_vm7, %v2537_v45, -1e+09 }
 0xd55   :  { %v2611_v15 = vsel %vm1588_vm5, %v2605_v10, -inf  ;;  %v5400_v6 = vpop.f32.mrf.mxu2 }
 0xd56   :  { %2612 = vmax.xlane.f32.xlu2 %v2611_v15 }
 0xd5d   :  { %v2569_v9 = vpop.f32.mrf.mxu2 }
 0xd5e   :  { %v5404_v24 = vsel %vm5109_vm3, %v2569_v9, -1e+09 }
 0xd5f   :  { %v2614_v8 = vsel %vm1588_vm5, %v5404_v24, -inf }
 0xd60   :  { %2615 = vmax.xlane.f32.xlu0 %v2614_v8 }
 0xd62   :  { %v2266_v26 = vpop.xlane.xlu1 %2265 }
 0xd63   :  { %v2276_v40 = vsub.f32 %v2260_v58, %v2266_v26  ;;  %v4044_v58 = vpack.i.bf16 %v5126_v41, %v5133_v59  ;;  %v2054_v41 = vrot.slane %v2051_v47, 7 }
 0xd65   :  { %v2280_v7 = vmul.f32 1.442695, %v2276_v40 }
 0xd67   :  { %4128 = vpow2.f32 %v2280_v7 }
 0xd6d   :  { %v5408_v5 = vpop.eup %4128 }
 0xd6e   :  { %v2288_v50 = vsel %vm1588_vm5, %v5408_v5, 0.0 }
 0xd6f   :  { %2289 = vadd.xlane.f32.xlu0 %v2288_v50 }
 0xd83   :  { %4030 = vrot.lane.b32.xlu0 %v5372_v33, %s4195_s2 }
 0xd89   :  { %v1896_v11 = vpop.xlane.xlu0 %1895 }
 0xd8a   :  { %4130 = vrcp.f32 %v1896_v11 }
 0xd8b   :  { %4045 = vrot.lane.b32.xlu0 %v4044_v58, %s4196_s27  ;;  %v2438_v58 = vunpack.c.l.b16 %v2426_v57 }
 0xd90   :  { %v4131_v17 = vpop.eup %4130 }
 0xd91   :  { %v1910_v4 = vmul.f32 %v4131_v17, %v4125_v60  ;;  %v2052_v60 = vunpack.c.l.b16 %v2040_v43 }
 0xd93   :  { %3615 = vmatmul.msk.f32.vlgmr.msra.gmra.mxu3 %vm1633_vm0, %v1910_v4  ;;  %v2056_v3 = vrot.slane %v2052_v60, 6 }
 0xd96   :  { %v5415_v23 = vpop.f32.mrf.mxu0 }
 0xd9e   :  { %v2505_v30 = vpop.f32.mrf.mxu0 }
 0xd9f   :  { %v2604_v22 = vsel %vm1460_vm4, %v2505_v30, -1e+09  ;;  %vm5905_vm4 = vmmov %vm5902_vm12 }
 0xda0   :  { %v2608_v63 = vsel %vm1588_vm5, %v2604_v22, -inf }
 0xda1   :  { %2609 = vmax.xlane.f32.xlu2 %v2608_v63 }
 0xdad   :  { %v2601_v27 = vpop.f32.mrf.mxu0 }
 0xdae   :  { %v2607_v53 = vsel %vm5093_vm1, %v2601_v27, -1e+09  ;;  %v3926_v27 = vld [vmem:[%s5814_s13 + $0x28] sm:$0xff] }
 0xdaf   :  { %v2617_v62 = vsel %vm1588_vm5, %v2607_v53, -inf }
 0xdb0   :  { %2618 = vmax.xlane.f32.xlu2 %v2617_v62 }
 0xdc9   :  { %v2613_v51 = vpop.xlane.xlu2 %2612 }
 0xdca   :  { %v2621_v33 = vsub.f32 %v2605_v10, %v2613_v51 }
 0xdcc   :  { %v2626_v14 = vmul.f32 1.442695, %v2621_v33 }
 0xdce   :  { %4132 = vpow2.f32 %v2626_v14 }
 0xdd3   :  { %v2616_v44 = vpop.xlane.xlu0 %2615 }
 0xdd4   :  { %v5426_v52 = vpop.eup %4132  ;;  %v2622_v15 = vsub.f32 %v5404_v24, %v2616_v44  ;;  %v4036_v24 = vpop.permute.xlu1 %4035  ;;  %v2425_v44 = vpack.c.bf16 %v5415_v23, %v5415_v23 }
 0xdd5   :  { %v2635_v54 = vsel %vm1588_vm5, %v5426_v52, 0.0  ;;  %v4038_v4 = vunpack.i.h.bf16 %v4036_v24  ;;  %v4037_v30 = vunpack.i.l.bf16 %v4036_v24 }
 0xdd6   :  { %2636 = vadd.xlane.f32.xlu2 %v2635_v54  ;;  %v2628_v8 = vmul.f32 1.442695, %v2622_v15 }
 0xdd7   :  { %2675 = vmatpush.msra.mxu1 %v4037_v30  ;;  %2704 = vmatpush.msra.mxu2 %v4038_v4 }
 0xde2   :  { %v2290_v39 = vpop.xlane.xlu0 %2289 }
 0xdf5   :  { %v4031_v56 = vpop.permute.xlu0 %4030 }
 0xdf6   :  { %v4033_v37 = vunpack.i.h.bf16 %v4031_v56  ;;  %v4032_v16 = vunpack.i.l.bf16 %v4031_v56 }
 0xdf8   :  { %2331 = vmatpush.msra.mxu3 %v4032_v16  ;;  %v2437_v16 = vunpack.c.l.b16 %v2425_v44 }
 0xdfa   :  { %2332 = vmatpush.msra.mxu3 %v4033_v37 }
 0xe14   :  { %v2610_v46 = vpop.xlane.xlu2 %2609 }
 0xe15   :  { %v2620_v49 = vsub.f32 %v2604_v22, %v2610_v46  ;;  %v4046_v22 = vpop.permute.xlu0 %4045 }
 0xe16   :  { %v1942_v1 = vpop.f32.mrf.mxu3  ;;  %v4048_v63 = vunpack.i.h.bf16 %v4046_v22  ;;  %v4047_v43 = vunpack.i.l.bf16 %v4046_v22 }
 0xe17   :  { %v2624_v35 = vmul.f32 1.442695, %v2620_v49  ;;  %v2038_v61 = vpack.c.bf16 %v1942_v1, %v1942_v1 }
 0xe18   :  { %2762 = vmatpush.msrb.mxu0 %v4048_v63 }
 0xe19   :  { %4134 = vpow2.f32 %v2624_v35  ;;  %v2050_v59 = vunpack.c.l.b16 %v2038_v61  ;;  %v2442_v35 = vrot.slane %v2438_v58, 6 }
 0xe1a   :  { %4136 = vrcp.f32 %v2290_v39  ;;  %v2427_v39 = vpack.c.bf16 %v5400_v6, %v5400_v6  ;;  %v2440_v6 = vrot.slane %v2437_v16, 7 }
 0xe1b   :  { %v2055_v48 = vsel %vm516_vm15, %v2054_v41, %v2050_v59 }
 0xe1c   :  { %v2057_v34 = vsel %vm5899_vm8, %v2056_v3, %v2055_v48  ;;  %v2439_v28 = vunpack.c.l.b16 %v2427_v39 }
 0xe1d   :  { %v2059_v19 = vsel %vm520_vm2, %v2058_v29, %v2057_v34  ;;  %v3928_v34 = vld [vmem:[%s5814_s13 + $0x38] sm:$0xff] }
 0xe1e   :  { %v2060_v55 = vpack.c.b16 %v2059_v19, %v2059_v19  ;;  %v2444_v61 = vrot.slane %v2439_v28, 5  ;;  %v3927_v19 = vld [vmem:[%s5814_s13 + $0x30] sm:$0xff] }
 0xe1f   :  { %v5448_v18 = vpop.eup %4134 }
 0xe20   :  { %3627 = vmatmul.msk.bf16.vlgmr.msrb.gmra.mxu3 %vm836_vm9, %v2060_v55  ;;  %v2632_v12 = vsel %vm1588_vm5, %v5448_v18, 0.0  ;;  %v4137_v26 = vpop.eup %4136 }
 0xe21   :  { %2633 = vadd.xlane.f32.xlu1 %v2632_v12  ;;  %v2304_v7 = vmul.f32 %v4137_v26, %v5408_v5  ;;  %v4039_v5 = vpack.i.bf16 %v5276_v31, %v5174_v38  ;;  %2468 = vmatpush.bf16.msrb.mxu3 %v3926_v27 }
 0xe23   :  { %v2619_v45 = vpop.xlane.xlu2 %2618 }
 0xe24   :  { %v2623_v10 = vsub.f32 %v2607_v53, %v2619_v45 }
 0xe26   :  { %v2630_v9 = vmul.f32 1.442695, %v2623_v10 }
 0xe28   :  { %4138 = vpow2.f32 %v2630_v9 }
 0xe29   :  { %4140 = vpow2.f32 %v2628_v8 }
 0xe2e   :  { %v4139_v40 = vpop.eup %4138 }
 0xe2f   :  { %v2641_v50 = vsel %vm1588_vm5, %v4139_v40, 0.0  ;;  %v5457_v11 = vpop.eup %4140 }
 0xe30   :  { %3649 = vmatmul.msk.f32.vlgmr.msra.gmra.mxu3 %vm1633_vm0, %v2304_v7  ;;  %2642 = vadd.xlane.f32.xlu2 %v2641_v50  ;;  %v2638_v17 = vsel %vm1588_vm5, %v5457_v11, 0.0 }
 0xe38   :  { %2639 = vadd.xlane.f32.xlu2 %v2638_v17 }
 0xe3a   :  { %4050 = vrot.lane.b32.xlu1 %v5316_v21, %s4196_s27  ;;  %v3925_v21 = vld [vmem:[%s5814_s13 + $0x20] sm:$0xff] }
 0xe3b   :  { %2469 = vmatpush.bf16.msrb.mxu3 %v3925_v21 }
 0xe49   :  { %v2637_v53 = vpop.xlane.xlu2 %2636 }
 0xe50   :  { %4040 = vrot.lane.b32.xlu2 %v4039_v5, %s4196_s27 }
 0xe94   :  { %v2634_v38 = vpop.xlane.xlu1 %2633 }
 0xea3   :  { %v5472_v62 = vpop.f32.mrf.mxu3  ;;  %v2643_v51 = vpop.xlane.xlu2 %2642 }
 0xea4   :  { %4142 = vrcp.f32 %v2643_v51  ;;  %v2129_v7 = vadd.f32 %v5382_v42, %v5472_v62  ;;  %v4060_v42 = vld [vmem:[%s5815_s14] ss:$0 sm:$0xff] }
 0xea5   :  { %4144 = vrcp.f32 %v2637_v53 }
 0xea6   :  { %4146 = vrcp.f32 %v2634_v38 }
 0xeaa   :  { %v4143_v31 = vpop.eup %4142 }
 0xeab   :  { %v2087_v33 = vpop.f32.mrf.mxu3  ;;  %v2640_v36 = vpop.xlane.xlu2 %2639  ;;  %v2651_v0 = vmul.f32 %v4143_v31, %v4139_v40 }
 0xeac   :  { %v4051_v14 = vpop.permute.xlu1 %4050  ;;  %v4145_v56 = vpop.eup %4144  ;;  %4148 = vrcp.f32 %v2640_v36 }
 0xead   :  { %v4053_v54 = vunpack.i.h.bf16 %v4051_v14  ;;  %v4147_v37 = vpop.eup %4146  ;;  %v2649_v13 = vmul.f32 %v4145_v56, %v5426_v52  ;;  %v4052_v1 = vunpack.i.l.bf16 %v4051_v14 }
 0xeae   :  { %v2648_v60 = vmul.f32 %v4147_v37, %v5448_v18 }
 0xeaf   :  { %2763 = vmatpush.msrb.mxu0 %v4053_v54 }
 0xeb0   :  { %3677 = vmatmul.msk.f32.vlgmr.msrb.gmra.mxu0 %vm1633_vm0, %v2651_v0 }
 0xeb2   :  { %v4149_v3 = vpop.eup %4148 }
 0xeb3   :  { %v2334_v32 = vpop.f32.mrf.mxu3  ;;  %v4041_v46 = vpop.permute.xlu2 %4040  ;;  %v2650_v48 = vmul.f32 %v4149_v3, %v5457_v11  ;;  %v3960_v3 = vld [vmem:[%s5816_s15 + $0xf4] sm:$0xf0] }
 0xeb4   :  { %v2424_v23 = vpack.c.bf16 %v2334_v32, %v2334_v32  ;;  %v4043_v47 = vunpack.i.h.bf16 %v4041_v46  ;;  %v4042_v49 = vunpack.i.l.bf16 %v4041_v46  ;;  %v4061_v46 = vld [vmem:[%s5847_s1 + $0x3] ss:$0 sm:$0xff] }
 0xeb6   :  { %v2436_v2 = vunpack.c.l.b16 %v2424_v23  ;;  %2676 = vmatpush.msra.mxu1 %v4042_v49  ;;  %2705 = vmatpush.msra.mxu2 %v4043_v47  ;;  %v4062_v49 = vld [vmem:[%s5848_s24 + $0x3] ss:$0 sm:$0xff] }
 0xeb7   :  { %3674 = vmatmul.msk.f32.vlgmr.msra.gmra.mxu1 %vm1633_vm0, %v2648_v60  ;;  %3675 = vmatmul.msk.f32.vlgmr.msra.gmra.mxu2 %vm1633_vm0, %v2649_v13 }
 0xeb8   :  { %v2441_v41 = vsel %vm516_vm15, %v2440_v6, %v2436_v2  ;;  %2733 = vmatpush.msrb.mxu1 %v4047_v43  ;;  %v3801_v2 = vld [vmem:[%s5816_s15 + $0xe0] sm:$0xf] }
 0xeb9   :  { %v2443_v59 = vsel %vm5900_vm10, %v2442_v35, %v2441_v41  ;;  %v3959_v35 = vld [vmem:[%s5816_s15 + $0xec] sm:$0xf0] }
 0xeba   :  { %v2445_v52 = vsel %vm520_vm2, %v2444_v61, %v2443_v59  ;;  %2734 = vmatpush.msrb.mxu1 %v4052_v1  ;;  %v3957_v61 = vld [vmem:[%s5816_s15 + $0xe4] sm:$0xf]  ;;  %v3802_v41 = vor.u32 %v3959_v35, %v3801_v2  ;;  %v3809_v59 = vld [vmem:[%s5816_s15 + $0xe8] sm:$0xf]  ;;  %v3942_v2 = vld [vmem:[%s5816_s15 + $0x6c] sm:$0xf] }
 0xebb   :  { %v2446_v29 = vpack.c.b16 %v2445_v52, %v2445_v52  ;;  %v3747_v35 = vld [vmem:[%s5816_s15 + $0x78] sm:$0xf0] }
 0xebc   :  { %2812 = vmatpush.bf16.msra.mxu1 %v3928_v34  ;;  %v3811_v34 = vld [vmem:[%s5816_s15 + $0xf8] sm:$0xf0]  ;;  %3085 = vmatpush.bf16.msrb.mxu2 %v3802_v41  ;;  %v3721_v41 = vld [vmem:[%s5816_s15 + $0x40] sm:$0xf] }
 0xebd   :  { %3661 = vmatmul.msk.bf16.vlgmr.msrb.gmra.mxu3 %vm836_vm9, %v2446_v29  ;;  %v3810_v29 = vor.u32 %v3960_v3, %v3809_v59  ;;  %v3937_v59 = vld [vmem:[%s5816_s15 + $0x44] sm:$0xf] }
 0xebf   :  { %3676 = vmatmul.msk.f32.vlgmr.msrb.gmra.mxu1 %vm1633_vm0, %v2650_v48  ;;  %v3958_v48 = vld [vmem:[%s5816_s15 + $0xec] sm:$0xf]  ;;  %3111 = vmatpush.bf16.msra.mxu0 %v3810_v29  ;;  %v3729_v29 = vld [vmem:[%s5816_s15 + $0x48] sm:$0xf]  ;;  %vm5906_vm0 = vmmov %vm5905_vm4 }
 0xec0   :  { %2813 = vmatpush.bf16.msra.mxu1 %v3927_v19  ;;  %v3814_v19 = vor.u32 %v3958_v48, %v3811_v34  ;;  %v3940_v48 = vld [vmem:[%s5816_s15 + $0x54] sm:$0xf0]  ;;  %vm5907_vm7 = vmmov %vm5906_vm0 }
 0xec1   :  { %vm5908_vm8 = vmmov %vm5906_vm0 }
 0xec2   :  { %vm5909_vm10 = vmmov %vm5906_vm0 }
 0xec4   :  { %3124 = vmatpush.bf16.msrb.mxu1 %v3814_v19  ;;  %v3730_v19 = vor.u32 %v3940_v48, %v3729_v29 }
 0xf2d   :  { %v2765_v18 = vpop.f32.mrf.mxu0 }
 0xf2e   :  { %v2771_v12 = vpack.c.bf16 %v2765_v18, %v2765_v18 }
 0xf30   :  { %v2783_v40 = vunpack.c.l.b16 %v2771_v12 }
 0xf32   :  { %v2788_v22 = vrot.slane %v2783_v40, 5  ;;  %v3787_v40 = vld [vmem:[%s5816_s15 + $0xd0] sm:$0xf0] }
 0xf34   :  { %v2678_v55 = vpop.f32.mrf.mxu1 }
 0xf35   :  { %v2768_v10 = vpack.c.bf16 %v2678_v55, %v2678_v55 }
 0xf37   :  { %v2780_v50 = vunpack.c.l.b16 %v2768_v10 }
 0xf3a   :  { %v2707_v45 = vpop.f32.mrf.mxu2 }
 0xf3b   :  { %v2769_v15 = vpack.c.bf16 %v2707_v45, %v2707_v45 }
 0xf3c   :  { %v2736_v9 = vpop.f32.mrf.mxu1 }
 0xf3d   :  { %v2781_v8 = vunpack.c.l.b16 %v2769_v15  ;;  %v2770_v26 = vpack.c.bf16 %v2736_v9, %v2736_v9  ;;  %v3785_v15 = vld [vmem:[%s5816_s15 + $0xc0] sm:$0xf]  ;;  %v3955_v9 = vld [vmem:[%s5816_s15 + $0xcc] sm:$0xf0] }
 0xf3f   :  { %v2784_v11 = vrot.slane %v2781_v8, 7  ;;  %v2782_v17 = vunpack.c.l.b16 %v2770_v26  ;;  %v3953_v8 = vld [vmem:[%s5816_s15 + $0xc4] sm:$0xf]  ;;  %v3786_v26 = vor.u32 %v3955_v9, %v3785_v15  ;;  %v3935_v15 = vld [vmem:[%s5816_s15 + $0x2c] sm:$0xf0] }
 0xf40   :  { %v2471_v24 = vpop.f32.mrf.mxu3  ;;  %v3933_v9 = vld [vmem:[%s5816_s15 + $0x24] sm:$0xf] }
 0xf41   :  { %v2785_v4 = vsel %vm516_vm15, %v2784_v11, %v2780_v50  ;;  %v2786_v30 = vrot.slane %v2782_v17, 6  ;;  %v2475_v5 = vadd.f32 %v2471_v24, %v2129_v7  ;;  %vm5903_vm15 = vmmov %vm5902_vm12  ;;  %v3793_v7 = vld [vmem:[%s5816_s15 + $0xc8] sm:$0xf]  ;;  %v3956_v50 = vld [vmem:[%s5816_s15 + $0xd4] sm:$0xf0]  ;;  %v3790_v11 = vor.u32 %v3953_v8, %v3787_v40  ;;  %3086 = vmatpush.bf16.msrb.mxu2 %v3786_v26 }
 0xf42   :  { %v3794_v17 = vor.u32 %v3956_v50, %v3793_v7  ;;  %v3954_v24 = vld [vmem:[%s5816_s15 + $0xcc] sm:$0xf]  ;;  %v3707_v26 = vld [vmem:[%s5816_s15 + $0x30] sm:$0xf0]  ;;  %v3713_v40 = vld [vmem:[%s5816_s15 + $0x28] sm:$0xf] }
 0xf43   :  { %v2787_v63 = vsel %vm5901_vm11, %v2786_v30, %v2785_v4  ;;  %v3795_v4 = vld [vmem:[%s5816_s15 + $0xd8] sm:$0xf0]  ;;  %v3936_v7 = vld [vmem:[%s5816_s15 + $0x34] sm:$0xf0]  ;;  %v3710_v50 = vor.u32 %v3933_v9, %v3707_v26 }
 0xf44   :  { %v2789_v27 = vsel %vm520_vm2, %v2788_v22, %v2787_v63  ;;  %v3798_v30 = vor.u32 %v3954_v24, %v3795_v4  ;;  %3112 = vmatpush.bf16.msra.mxu0 %v3794_v17  ;;  %v3951_v22 = vld [vmem:[%s5816_s15 + $0xac] sm:$0xf0]  ;;  %v3949_v63 = vld [vmem:[%s5816_s15 + $0xa4] sm:$0xf]  ;;  %v3934_v17 = vld [vmem:[%s5816_s15 + $0x2c] sm:$0xf] }
 0xf45   :  { %v2790_v21 = vpack.c.b16 %v2789_v27, %v2789_v27  ;;  %v3715_v24 = vld [vmem:[%s5816_s15 + $0x38] sm:$0xf0]  ;;  %v3689_v4 = vld [vmem:[%s5816_s15] sm:$0xf] }
 0xf46   :  { %3125 = vmatpush.bf16.msrb.mxu1 %v3798_v30  ;;  %v3718_v30 = vor.u32 %v3934_v17, %v3715_v24 }
 0xf47   :  { %3686 = vmatmul.msk.bf16.vlgmr.msra.gmra.mxu1 %vm836_vm9, %v2790_v21  ;;  %v3771_v21 = vld [vmem:[%s5816_s15 + $0xb0] sm:$0xf0] }
 0xf48   :  { %v2473_v53 = vpop.f32.mrf.mxu3 }
 0xf49   :  { %v3777_v53 = vld [vmem:[%s5816_s15 + $0xa8] sm:$0xf] }
 0xfc4   :  { %v2815_v62 = vpop.f32.mrf.mxu1 }
 0xfc5   :  { %v2819_v51 = vadd.f32 %v2815_v62, %v2475_v5  ;;  %v3769_v5 = vld [vmem:[%s5816_s15 + $0xa0] sm:$0xf]  ;;  %v3774_v62 = vor.u32 %v3949_v63, %v3771_v21  ;;  %v3691_v63 = vld [vmem:[%s5816_s15 + $0x10] sm:$0xf0] }
 0xfc6   :  { %v3770_v27 = vor.u32 %v3951_v22, %v3769_v5  ;;  %v3931_v5 = vld [vmem:[%s5816_s15 + $0xc] sm:$0xf0]  ;;  %v3929_v22 = vld [vmem:[%s5816_s15 + $0x4] sm:$0xf] }
 0xfc7   :  { %v2824_v38 = vadd.f32 %v4060_v42, %v2819_v51  ;;  %v3952_v42 = vld [vmem:[%s5816_s15 + $0xb4] sm:$0xf0]  ;;  %v3694_v21 = vor.u32 %v3929_v22, %v3691_v63 }
 0xfc8   :  { %v3778_v51 = vor.u32 %v3952_v42, %v3777_v53  ;;  %3087 = vmatpush.bf16.msrb.mxu2 %v3770_v27  ;;  %v3690_v27 = vor.u32 %v3931_v5, %v3689_v4  ;;  %v3697_v53 = vld [vmem:[%s5816_s15 + $0x8] sm:$0xf]  ;;  %v3932_v42 = vld [vmem:[%s5816_s15 + $0x14] sm:$0xf0] }
 0xfc9   :  { %v2827_v31 = vsel %vm5902_vm12, %v2824_v38, 0.0 }
 0xfca   :  { %2828 = vadd.xlane.f32.xlu0 %v2827_v31  ;;  %v3779_v31 = vld [vmem:[%s5816_s15 + $0xb8] sm:$0xf0]  ;;  %3113 = vmatpush.bf16.msra.mxu0 %v3778_v51  ;;  %v3698_v51 = vor.u32 %v3932_v42, %v3697_v53 }
 0xfcb   :  { %v3968_v53 = vld [vmem:[%s5820_s19 + $0x38] sm:$0xff] }
 0xfcc   :  { %v2817_v33 = vpop.f32.mrf.mxu1  ;;  %v3976_v42 = vld [vmem:[%s5820_s19 + $0x78] sm:$0xff] }
0x103d   :  { %v2829_v36 = vpop.xlane.xlu0 %2828 }
0x103e   :  { %v2830_v14 = vmul.f32 %v2829_v36, %v4369_v25  ;;  %v3753_v36 = vld [vmem:[%s5816_s15 + $0x80] sm:$0xf] }
0x1040   :  { %v2831_v54 = vsub.f32 %v2824_v38, %v2830_v14  ;;  %v3950_v38 = vld [vmem:[%s5816_s15 + $0xac] sm:$0xf]  ;;  %v3947_v14 = vld [vmem:[%s5816_s15 + $0x8c] sm:$0xf0] }
0x1041   :  { %v3782_v33 = vor.u32 %v3950_v38, %v3779_v31  ;;  %v3699_v38 = vld [vmem:[%s5816_s15 + $0x18] sm:$0xf0] }
0x1042   :  { %v2832_v44 = vmul.f32 %v2831_v54, %v2831_v54 }
0x1043   :  { %3126 = vmatpush.bf16.msrb.mxu1 %v3782_v33 }
0x1044   :  { %v2833_v0 = vsel %vm5903_vm15, %v2832_v44, 0.0  ;;  %v3754_v44 = vor.u32 %v3947_v14, %v3753_v36 }
0x1045   :  { %2834 = vadd.xlane.f32.xlu1 %v2833_v0  ;;  %v3755_v0 = vld [vmem:[%s5816_s15 + $0x90] sm:$0xf0] }
0x1046   :  { %3088 = vmatpush.bf16.msrb.mxu2 %v3754_v44 }
0x10b8   :  { %v2835_v57 = vpop.xlane.xlu1 %2834 }
0x10b9   :  { %v2836_v39 = vmul.f32 %v2835_v57, %v4369_v25  ;;  %v3761_v57 = vld [vmem:[%s5816_s15 + $0x88] sm:$0xf] }
0x10bb   :  { %v2837_v56 = vadd.f32 1e-05, %v2836_v39  ;;  %v3948_v39 = vld [vmem:[%s5816_s15 + $0x94] sm:$0xf0] }
0x10bd   :  { %4150 = vrsqrt.f32 %v2837_v56  ;;  %vm2844_vm9 = vweird.f32 %v2837_v56 }
0x10c3   :  { %v4151_v37 = vpop.eup %4150 }
0x10c4   :  { %v2839_v16 = vmul.f32 %v4151_v37, %v2837_v56  ;;  %vm2845_vm2 = vweird.f32 %v4151_v37 }
0x10c5   :  { %vm2846_vm13 = vmor %vm2844_vm9, %vm2845_vm2 }
0x10c6   :  { %v2840_v58 = vmul.f32 %v4151_v37, %v2839_v16  ;;  %v3946_v16 = vld [vmem:[%s5816_s15 + $0x8c] sm:$0xf] }
0x10c8   :  { %v2841_v28 = vmul.f32 0.5, %v2840_v58  ;;  %v3763_v58 = vld [vmem:[%s5816_s15 + $0x98] sm:$0xf0] }
0x10ca   :  { %v2842_v43 = vsub.f32 1.5, %v2841_v28  ;;  %v3766_v28 = vor.u32 %v3946_v16, %v3763_v58 }
0x10cc   :  { %v2843_v32 = vmul.f32 %v4151_v37, %v2842_v43  ;;  %v3737_v43 = vld [vmem:[%s5816_s15 + $0x60] sm:$0xf]  ;;  %3127 = vmatpush.bf16.msrb.mxu1 %v3766_v28 }
0x10ce   :  { %v2847_v23 = vsel %vm2846_vm13, %v4151_v37, %v2843_v32  ;;  %v3762_v37 = vor.u32 %v3948_v39, %v3761_v57  ;;  %v3943_v32 = vld [vmem:[%s5816_s15 + $0x6c] sm:$0xf0] }
0x10cf   :  { %v2848_v47 = vmul.f32 %v2847_v23, %v2831_v54  ;;  %v3945_v54 = vld [vmem:[%s5816_s15 + $0x84] sm:$0xf]  ;;  %v3738_v23 = vor.u32 %v3943_v32, %v3737_v43 }
0x10d0   :  { %v3758_v56 = vor.u32 %v3945_v54, %v3755_v0  ;;  %3114 = vmatpush.bf16.msra.mxu0 %v3762_v37  ;;  %v4063_v37 = vld [vmem:[%s5847_s1 + $0x4] ss:$0 sm:$0xff] }
0x10d1   :  { %v2850_v13 = vmul.f32 %v4061_v46, %v2848_v47  ;;  %v3941_v46 = vld [vmem:[%s5816_s15 + $0x64] sm:$0xf]  ;;  %v3739_v47 = vld [vmem:[%s5816_s15 + $0x70] sm:$0xf0]  ;;  %3089 = vmatpush.bf16.msrb.mxu2 %v3738_v23 }
0x10d3   :  { %v2852_v60 = vadd.f32 %v4062_v49, %v2850_v13  ;;  %v3745_v49 = vld [vmem:[%s5816_s15 + $0x68] sm:$0xf]  ;;  %v3944_v13 = vld [vmem:[%s5816_s15 + $0x74] sm:$0xf0] }
0x10d5   :  { %v5517_v6 = vadd.f32 %v2852_v60, %v4969_v20  ;;  %v3803_v20 = vld [vmem:[%s5816_s15 + $0xf0] sm:$0xf0]  ;;  %v3742_v60 = vor.u32 %v3941_v46, %v3739_v47  ;;  %v2915_v47 = vld [vmem:[%s5817_s16] sm:$0xf] }
0x10d6   :  { %v3806_v52 = vor.u32 %v3957_v61, %v3803_v20  ;;  %v3750_v61 = vor.u32 %v3942_v2, %v3747_v35  ;;  %v3939_v20 = vld [vmem:[%s5816_s15 + $0x4c] sm:$0xf0]  ;;  %v2919_v9 = vperm.slane %v2915_v47, 2  ;;  %v2920_v26 = vperm.slane %v2915_v47, 3 }
0x10d7   :  { %v2856_v1 = vsel %vm5904_vm14, %v5517_v6, 0.0  ;;  %v3722_v3 = vor.u32 %v3939_v20, %v3721_v41 }
0x10d8   :  { %2857 = vadd.xlane.f32.xlu2 %v2856_v1  ;;  %3098 = vmatpush.bf16.msra.mxu3 %v3806_v52  ;;  %v3746_v1 = vor.u32 %v3944_v13, %v3745_v49  ;;  %v3723_v52 = vld [vmem:[%s5816_s15 + $0x50] sm:$0xf0]  ;;  %v2917_v49 = vperm.slane %v2915_v47, 0  ;;  %v2918_v13 = vperm.slane %v2915_v47, 1  ;;  %v3972_v47 = vld [vmem:[%s5820_s19 + $0x58] sm:$0xff] }
0x10d9   :  { %3128 = vmatpush.bf16.msrb.mxu1 %v3750_v61  ;;  %v3726_v34 = vor.u32 %v3937_v59, %v3723_v52  ;;  %3090 = vmatpush.bf16.msrb.mxu2 %v3722_v3 }
0x10da   :  { %3115 = vmatpush.bf16.msra.mxu0 %v3746_v1 }
0x10dc   :  { %3099 = vmatpush.bf16.msra.mxu3 %v3790_v11  ;;  %v3714_v11 = vor.u32 %v3936_v7, %v3713_v40 }
0x10de   :  { %3116 = vmatpush.bf16.msra.mxu0 %v3730_v19 }
0x10e0   :  { %3100 = vmatpush.bf16.msra.mxu3 %v3774_v62  ;;  %v3930_v62 = vld [vmem:[%s5816_s15 + $0xc] sm:$0xf] }
0x10e1   :  { %v3702_v31 = vor.u32 %v3930_v62, %v3699_v38 }
0x10e2   :  { %3117 = vmatpush.bf16.msra.mxu0 %v3714_v11 }
0x10e4   :  { %3101 = vmatpush.bf16.msra.mxu3 %v3758_v56 }
0x10e6   :  { %3118 = vmatpush.bf16.msra.mxu0 %v3698_v51 }
0x10e8   :  { %3102 = vmatpush.bf16.msra.mxu3 %v3742_v60 }
0x10ec   :  { %3103 = vmatpush.bf16.msra.mxu3 %v3726_v34 }
0x10f0   :  { %3104 = vmatpush.bf16.msra.mxu3 %v3710_v50 }
0x10f4   :  { %3105 = vmatpush.bf16.msra.mxu3 %v3694_v21  ;;  %v4197_v21 = vmov 256.0  }
0x10f8   :  { %3352 = vmatpush.bf16.msrb.mxu3 %v3976_v42 }
0x114b   :  { %v2858_v55 = vpop.xlane.xlu2 %2857 }
0x114c   :  { %v2859_v18 = vmul.f32 %v2858_v55, %v4369_v25  ;;  %v3938_v55 = vld [vmem:[%s5816_s15 + $0x4c] sm:$0xf] }
0x114e   :  { %v5547_v12 = vsub.f32 %v5517_v6, %v2859_v18  ;;  %v3731_v18 = vld [vmem:[%s5816_s15 + $0x58] sm:$0xf0] }
0x1150   :  { %v2861_v45 = vmul.f32 %v5547_v12, %v5547_v12 }
0x1152   :  { %v2862_v10 = vsel %vm5905_vm4, %v2861_v45, 0.0  ;;  %v3734_v45 = vor.u32 %v3938_v55, %v3731_v18 }
0x1153   :  { %2863 = vadd.xlane.f32.xlu0 %v2862_v10  ;;  %v3705_v10 = vld [vmem:[%s5816_s15 + $0x20] sm:$0xf] }
0x1154   :  { %3129 = vmatpush.bf16.msrb.mxu1 %v3734_v45  ;;  %v3706_v8 = vor.u32 %v3935_v15, %v3705_v10 }
0x1156   :  { %3091 = vmatpush.bf16.msrb.mxu2 %v3706_v8 }
0x1158   :  { %3130 = vmatpush.bf16.msrb.mxu1 %v3718_v30 }
0x115a   :  { %3092 = vmatpush.bf16.msrb.mxu2 %v3690_v27 }
0x115c   :  { %3131 = vmatpush.bf16.msrb.mxu1 %v3702_v31 }
0x115e   :  { %3339 = vmatpush.bf16.msra.mxu2 %v3968_v53 }
0x11c6   :  { %v2864_v33 = vpop.xlane.xlu0 %2863 }
0x11c7   :  { %v2865_v36 = vmul.f32 %v2864_v33, %v4369_v25  ;;  %v4064_v25 = vld [vmem:[%s5848_s24 + $0x4] ss:$0 sm:$0xff] }
0x11c9   :  { %v2866_v14 = vadd.f32 1e-05, %v2865_v36 }
0x11cb   :  { %4152 = vrsqrt.f32 %v2866_v14  ;;  %vm2873_vm1 = vweird.f32 %v2866_v14 }
0x11d1   :  { %v4153_v54 = vpop.eup %4152 }
0x11d2   :  { %v2868_v44 = vmul.f32 %v4153_v54, %v2866_v14  ;;  %vm2874_vm5 = vweird.f32 %v4153_v54 }
0x11d3   :  { %vm2875_vm3 = vmor %vm2873_vm1, %vm2874_vm5 }
0x11d4   :  { %v2869_v0 = vmul.f32 %v4153_v54, %v2868_v44 }
0x11d6   :  { %v2870_v57 = vmul.f32 0.5, %v2869_v0 }
0x11d8   :  { %v2871_v39 = vsub.f32 1.5, %v2870_v57 }
0x11da   :  { %v2872_v56 = vmul.f32 %v4153_v54, %v2871_v39 }
0x11dc   :  { %v2876_v16 = vsel %vm2875_vm3, %v4153_v54, %v2872_v56 }
0x11dd   :  { %v2877_v58 = vmul.f32 %v2876_v16, %v5547_v12 }
0x11df   :  { %v2879_v28 = vmul.f32 %v4063_v37, %v2877_v58  ;;  %v3967_v58 = vld [vmem:[%s5820_s19 + $0x30] sm:$0xff] }
0x11e0   :  { %3340 = vmatpush.bf16.msra.mxu2 %v3967_v58 }
0x11e1   :  { %v2881_v43 = vadd.f32 %v4064_v25, %v2879_v28  ;;  %v3975_v25 = vld [vmem:[%s5820_s19 + $0x70] sm:$0xff]  ;;  %v3966_v28 = vld [vmem:[%s5820_s19 + $0x28] sm:$0xff] }
0x11e2   :  { %3353 = vmatpush.bf16.msrb.mxu3 %v3975_v25 }
0x11e3   :  { %v2882_v32 = vpack.c.bf16 %v2881_v43, %v2881_v43  ;;  %v3974_v43 = vld [vmem:[%s5820_s19 + $0x68] sm:$0xff] }
0x11e4   :  { %3341 = vmatpush.bf16.msra.mxu2 %v3966_v28 }
0x11e5   :  { %3093 = vmatmul.bf16.vlgmr.msrb.gmra.mxu2 %v2882_v32  ;;  %3106 = vmatmul.bf16.vlgmr.msra.gmra.mxu3 %v2882_v32 }
0x11e6   :  { %3119 = vmatmul.bf16.vlgmr.msra.gmra.mxu0 %v2882_v32  ;;  %3132 = vmatmul.bf16.vlgmr.msrb.gmra.mxu1 %v2882_v32  ;;  %v3965_v32 = vld [vmem:[%s5820_s19 + $0x20] sm:$0xff] }
0x11e7   :  { %3354 = vmatpush.bf16.msrb.mxu3 %v3974_v43 }
0x11e8   :  { %3342 = vmatpush.bf16.msra.mxu2 %v3965_v32 }
0x1263   :  { %v3120_v46 = vpop.f32.mrf.mxu0  ;;  %v3133_v23 = vpop.f32.mrf.mxu1 }
0x1264   :  { %v3121_v11 = vadd.f32 %v3120_v46, %v2919_v9  ;;  %v3134_v24 = vadd.f32 %v3133_v23, %v2920_v26  ;;  %v3973_v46 = vld [vmem:[%s5820_s19 + $0x60] sm:$0xff]  ;;  %v3964_v23 = vld [vmem:[%s5820_s19 + $0x18] sm:$0xff] }
0x1265   :  { %3355 = vmatpush.bf16.msrb.mxu3 %v3973_v46  ;;  %3343 = vmatpush.bf16.msra.mxu2 %v3964_v23 }
0x1268   :  { %v3094_v12 = vpop.f32.mrf.mxu2  ;;  %v3107_v60 = vpop.f32.mrf.mxu3 }
0x1269   :  { %v3095_v1 = vadd.f32 %v3094_v12, %v2917_v49  ;;  %v3108_v2 = vadd.f32 %v3107_v60, %v2918_v13  ;;  %3356 = vmatpush.bf16.msrb.mxu3 %v3972_v47  ;;  %v3963_v49 = vld [vmem:[%s5820_s19 + $0x10] sm:$0xff]  ;;  %v3962_v12 = vld [vmem:[%s5820_s19 + $0x8] sm:$0xff] }
0x126a   :  { %v3971_v13 = vld [vmem:[%s5820_s19 + $0x50] sm:$0xff]  ;;  %3344 = vmatpush.bf16.msra.mxu2 %v3963_v49  ;;  %v3970_v60 = vld [vmem:[%s5820_s19 + $0x48] sm:$0xff] }
0x126b   :  { %v3137_v35 = vmul.f32 %v3095_v1, %v3095_v1  ;;  %v3138_v61 = vmul.f32 %v3108_v2, %v3108_v2  ;;  %v3122_v41 = vpop.f32.mrf.mxu0  ;;  %v3135_v20 = vpop.f32.mrf.mxu1 }
0x126d   :  { %v3139_v59 = vmul.f32 %v3137_v35, %v3095_v1  ;;  %v3140_v3 = vmul.f32 %v3138_v61, %v3108_v2  ;;  %3357 = vmatpush.bf16.msrb.mxu3 %v3971_v13 }
0x126e   :  { %3345 = vmatpush.bf16.msra.mxu2 %v3962_v12 }
0x126f   :  { %v3141_v52 = vmul.f32 0.044715, %v3139_v59  ;;  %v3142_v29 = vmul.f32 0.044715, %v3140_v3 }
0x1270   :  { %v3096_v48 = vpop.f32.mrf.mxu2  ;;  %v3109_v34 = vpop.f32.mrf.mxu3 }
0x1271   :  { %v3143_v19 = vadd.f32 %v3141_v52, %v3095_v1  ;;  %v3144_v55 = vadd.f32 %v3142_v29, %v3108_v2  ;;  %3358 = vmatpush.bf16.msrb.mxu3 %v3970_v60  ;;  %v3157_v48 = vld [vmem:[%s5818_s17] sm:$0x3] }
0x1273   :  { %v3145_v18 = vmul.f32 0.7978846, %v3143_v19  ;;  %v3146_v45 = vmul.f32 0.7978846, %v3144_v55  ;;  %v3158_v19 = vld [vmem:[%s5819_s18] sm:$0x3] }
0x1274   :  { %v3196_v55 = vperm.slane %v3157_v48, 0  ;;  %v3203_v9 = vperm.slane %v3158_v19, 0 }
0x1275   :  { %4154 = vtanh.f32 %v3145_v18  ;;  %v3197_v18 = vperm.slane %v3157_v48, 1 }
0x1276   :  { %4156 = vtanh.f32 %v3146_v45 }
0x1277   :  { %4158 = vrcp.f32 %v4197_v21 }
0x127b   :  { %v4155_v10 = vpop.eup %4154 }
0x127c   :  { %v4157_v15 = vpop.eup %4156  ;;  %v3149_v8 = vadd.f32 1.0, %v4155_v10 }
0x127d   :  { %v3150_v40 = vadd.f32 1.0, %v4157_v15  ;;  %v4159_v62 = vpop.eup %4158 }
0x127e   :  { %v3151_v7 = vmul.f32 0.5, %v3149_v8  ;;  %v3165_v51 = vmul.f32 256.0, %v4159_v62  ;;  %vm3169_vm6 = vweird.f32 %v4159_v62  ;;  %v3204_v8 = vperm.slane %v3158_v19, 1 }
0x127f   :  { %v3152_v50 = vmul.f32 0.5, %v3150_v40 }
0x1280   :  { %v3153_v17 = vmul.f32 %v3151_v7, %v3095_v1  ;;  %v3166_v38 = vsub.f32 1.0, %v3165_v51  ;;  %v3961_v1 = vld [vmem:[%s5820_s19] sm:$0xff] }
0x1281   :  { %v3154_v4 = vmul.f32 %v3152_v50, %v3108_v2  ;;  %v3969_v2 = vld [vmem:[%s5820_s19 + $0x40] sm:$0xff]  ;;  %3346 = vmatpush.bf16.msra.mxu2 %v3961_v1 }
0x1282   :  { %v3155_v30 = vmul.f32 %v3153_v17, %v3121_v11  ;;  %v3167_v31 = vmul.f32 %v4159_v62, %v3166_v38  ;;  %3359 = vmatpush.bf16.msrb.mxu3 %v3969_v2 }
0x1283   :  { %v3156_v5 = vmul.f32 %v3154_v4, %v3134_v24 }
0x1284   :  { %v3159_v22 = vsel %vm5906_vm0, %v3155_v30, 0.0  ;;  %v3168_v33 = vadd.f32 %v4159_v62, %v3167_v31 }
0x1285   :  { %v3160_v63 = vsel %vm5907_vm7, %v3156_v5, 0.0 }
0x1286   :  { %v3161_v27 = vadd.f32 %v3160_v63, %v3159_v22  ;;  %v3170_v36 = vsel %vm3169_vm6, %v4159_v62, %v3168_v33 }
0x1288   :  { %3162 = vadd.xlane.f32.xlu1 %v3161_v27 }
0x12fb   :  { %v3163_v14 = vpop.xlane.xlu1 %3162 }
0x12fc   :  { %v3171_v54 = vmul.f32 %v3170_v36, %v3163_v14 }
0x12fe   :  { %v3172_v44 = vsub.f32 %v3155_v30, %v3171_v54  ;;  %v3173_v0 = vsub.f32 %v3156_v5, %v3171_v54  ;;  %v4065_v5 = vld [vmem:[%s5821_s20] ss:$0 sm:$0xff] }
0x1300   :  { %v3174_v57 = vmul.f32 %v3172_v44, %v3172_v44  ;;  %v3175_v39 = vmul.f32 %v3173_v0, %v3173_v0 }
0x1302   :  { %v3176_v56 = vsel %vm5908_vm8, %v3174_v57, 0.0  ;;  %v3177_v37 = vsel %vm5909_vm10, %v3175_v39, 0.0 }
0x1303   :  { %v3178_v16 = vadd.f32 %v3177_v37, %v3176_v56 }
0x1305   :  { %3179 = vadd.xlane.f32.xlu0 %v3178_v16 }
0x1378   :  { %v3180_v35 = vpop.xlane.xlu0 %3179 }
0x1379   :  { %v3181_v61 = vmul.f32 %v3180_v35, %v3170_v36 }
0x137b   :  { %v3182_v41 = vadd.f32 1e-05, %v3181_v61 }
0x137d   :  { %4160 = vrsqrt.f32 %v3182_v41  ;;  %vm3189_vm12 = vweird.f32 %v3182_v41 }
0x1383   :  { %v4161_v20 = vpop.eup %4160 }
0x1384   :  { %v3184_v59 = vmul.f32 %v4161_v20, %v3182_v41  ;;  %vm3190_vm11 = vweird.f32 %v4161_v20 }
0x1385   :  { %vm3191_vm15 = vmor %vm3189_vm12, %vm3190_vm11 }
0x1386   :  { %v3185_v3 = vmul.f32 %v4161_v20, %v3184_v59 }
0x1388   :  { %v3186_v52 = vmul.f32 0.5, %v3185_v3 }
0x138a   :  { %v3187_v29 = vsub.f32 1.5, %v3186_v52 }
0x138c   :  { %v3188_v34 = vmul.f32 %v4161_v20, %v3187_v29 }
0x138e   :  { %v3192_v45 = vsel %vm3191_vm15, %v4161_v20, %v3188_v34 }
0x138f   :  { %v3193_v10 = vmul.f32 %v3192_v45, %v3172_v44  ;;  %v3194_v15 = vmul.f32 %v3192_v45, %v3173_v0 }
0x1391   :  { %v3200_v26 = vmul.f32 %v3196_v55, %v3193_v10  ;;  %v3201_v40 = vmul.f32 %v3197_v18, %v3194_v15 }
0x1393   :  { %v3207_v7 = vadd.f32 %v3203_v9, %v3200_v26  ;;  %v3208_v50 = vadd.f32 %v3204_v8, %v3201_v40 }
0x1395   :  { %v3209_v11 = vpack.c.bf16 %v3207_v7, %v3207_v7  ;;  %v3210_v17 = vpack.c.bf16 %v3208_v50, %v3208_v50 }
0x1397   :  { %3347 = vmatmul.bf16.vlgmr.msra.gmra.mxu2 %v3209_v11  ;;  %3360 = vmatmul.bf16.vlgmr.msrb.gmra.mxu3 %v3210_v17 }
0x141a   :  { %v3348_v24 = vpop.f32.mrf.mxu2  ;;  %v3361_v4 = vpop.f32.mrf.mxu3 }
0x141b   :  { %v3362_v30 = vadd.f32 %v3361_v4, %v3348_v24 }
0x141d   :  { %v3365_v22 = vadd.f32 %v3362_v30, %v5517_v6 }
0x141f   :  { %v3370_v63 = vadd.f32 %v4065_v5, %v3365_v22 }
0x1421   :  { %3371 = vst [vmem:[%s5822_s21] sm:$0xf] %v3370_v63 }
0x1422   :  { %v3350_v27 = vpop.f32.mrf.mxu2  ;;  %v3363_v21 = vpop.f32.mrf.mxu3 }
0x1423   :  { %4188 = dma.done.wait [#allocation3 + $0x1], 128 }
0x1424   :  { %4189 = vsyncadd [#allocation3 + $0x1], 4294967168  ;;  %s3385_s29 = sshll.u32 %s5824_s23, 4  ;;  %s4198_s3 = smov [#allocation6]   ;;  %s3386_s29 = int_to_ptr.hbm [resolvable:$true] %s3385_s29 }
0x1425   :  { %s3383_s0 = sshll.u32 %s4198_s3, 4  ;;  %s4199_s20 = smov 4   ;;  %s3384_s0 = int_to_ptr.vmem [resolvable:$true] %s3383_s0 }
0x1426   :  { %3391 = dma.vmem_to_hbm [thread:$0]  %s3384_s0, 128, %s3386_s29, [#allocation7], %s4195_s2, %s4195_s2, %s4199_s20  }
0x1427   :  { %4190 = dma.done.wait [#allocation7], 128  }
0x1428   :  { %4191 = vsyncadd [#allocation7], 4294967168 }
0x1429   :  { %3398 = vsyncpa [#allocation7], 1 }
0x142a   :  { %3399 = vsyncmov [#allocation3] }
0x142d   :  { %s3400_s21 = vpop.sfrf %3399 }
0x142e   :  { %p3879_p0 = scmp.ne.s32.totalorder %s3400_s21, 0 }
0x1430   :  { %3404 = shalt.err (%p3879_p0)  }
0x1431   :  { %3406 = vsyncmov [#allocation3 + $0x1] }
0x1434   :  { %s3407_s15 = vpop.sfrf %3406 }
0x1435   :  { %p3880_p1 = scmp.ne.s32.totalorder %s3407_s15, 0 }
0x1437   :  { %3411 = shalt.err (%p3880_p1)  }

</bundles_post_ra>
